<compile_context>
chip_gen: v7x
topology: tpu7x:2x2x1
jax: 0.10.0
libtpu: 0.0.40
codegen_flags: <defaults>
</compile_context>

<pallas_src>
import functools
import math

import jax
import jax.numpy as jnp
from jax.experimental import pallas as pl
from jax.experimental.pallas import tpu as pltpu

BN_EPS = 1e-5

# Module configuration (consistent with the PyTorch module).
NUM_CHANNELS = 3
N_CONTEXT_CHANNELS = 3
NUM_CLASSES = 10
SUPPORT_SIZE = 2
CONTEXT_NUM = 2
CTX_HIDDEN = 64       # MContextNet3 hidden_dim
PRED_HIDDEN = 128     # MConvNet3 hidden_dim
FC_HIDDEN = 200
KSIZE = 5

LANE = 128
_VMEM = pl.BlockSpec(memory_space=pltpu.MemorySpace.VMEM)


def _round_up(n, m):
    return ((n + m - 1) // m) * m


def _row_tile(n, target=512):
    """Row-block size for the M grid: full array if small, else a divisor of n
    that is a multiple of 16 (bf16 sublane tile) and <= target."""
    if n <= target:
        return n
    for t in range(target, 0, -1):
        if n % t == 0 and t % 16 == 0:
            return t
    return n


# ------------------------------ Pallas kernels -------------------------------

def _mm_bn_act_kernel(p_ref, w_ref, scale_ref, shift_ref, o_ref, *, relu):
    """One fat matmul (conv taps folded into the contraction) + folded-BN + ReLU.

    p_ref:     (tm, Kc)   bf16 im2col patches (Kc padded to a 128 multiple)
    w_ref:     (Kc, Cout) bf16 weight matrix
    scale_ref: (1, Cout)  f32 folded BatchNorm scale (ones when no BN)
    shift_ref: (1, Cout)  f32 folded conv-bias + BatchNorm shift
    """
    acc = jnp.dot(p_ref[...], w_ref[...], preferred_element_type=jnp.float32)
    y = acc * scale_ref[...] + shift_ref[...]
    if relu:
        y = jnp.maximum(y, 0.0)
    o_ref[...] = y.astype(o_ref.dtype)


def _conv_bn_relu_pool_kernel(p_ref, w_ref, scale_ref, shift_ref, o_ref):
    """Conv + BN fused with the following ReLU + 2x2 max-pool.

    p_ref: (4, tn, Kc) quadrant-major patches (one row set per pooling member)
    o_ref: (tn, Cout)  pooled activation.  relu(max(.)) == max(relu(.)).
    """
    scale = scale_ref[...]
    shift = shift_ref[...]
    acc = None
    for q in range(p_ref.shape[0]):        # 4 pooling quadrants, weight stays resident
        z = jnp.dot(p_ref[q], w_ref[...], preferred_element_type=jnp.float32)
        z = z * scale + shift
        acc = z if acc is None else jnp.maximum(acc, z)
    o_ref[...] = jnp.maximum(acc, 0.0).astype(o_ref.dtype)


def _tail_kernel(p_ref, w2_ref, s2_ref, sh2_ref, w3_ref, b3_ref, w4_ref, b4_ref,
                 o_ref, *, n, s):
    """Fused head: conv2+BN+ReLU+MaxPool -> AdaptiveAvgPool(1) -> fc1+ReLU -> fc2."""
    s2 = s2_ref[...]
    sh2 = sh2_ref[...]
    acc = None
    for q in range(p_ref.shape[0]):
        z = jnp.dot(p_ref[q], w2_ref[...], preferred_element_type=jnp.float32)
        z = z * s2 + sh2
        acc = z if acc is None else jnp.maximum(acc, z)
    h = jnp.maximum(acc, 0.0)                       # (n*s, hidden), f32 epilogue
    if s > 1:                                       # AdaptiveAvgPool2d(1) + squeeze
        h = jnp.mean(h.reshape(n, s, h.shape[-1]), axis=1)
    h = jnp.dot(h.astype(w3_ref.dtype), w3_ref[...],
                preferred_element_type=jnp.float32) + b3_ref[...]
    h = jnp.maximum(h, 0.0)
    y = jnp.dot(h.astype(w4_ref.dtype), w4_ref[...],
                preferred_element_type=jnp.float32) + b4_ref[...]
    o_ref[...] = y.astype(o_ref.dtype)


# ------------------------------- JAX glue ------------------------------------

def _im2col(x, k, pad):
    """NHWC -> lane-dense patches (N, Ho, Wo, K*K*Cin) with tap-major channel order."""
    if pad:
        x = jnp.pad(x, ((0, 0), (pad, pad), (pad, pad), (0, 0)))
    n, hp, wp, cin = x.shape
    ho, wo = hp - k + 1, wp - k + 1
    taps = [x[:, ky:ky + ho, kx:kx + wo, :] for ky in range(k) for kx in range(k)]
    return jnp.concatenate(taps, axis=-1), ho, wo


def _pad_last(a, target):
    d = target - a.shape[-1]
    if d:
        a = jnp.pad(a, [(0, 0)] * (a.ndim - 1) + [(0, d)])
    return a


def _pool_quadrants(patches, ho, wo):
    """Reorder conv patches quadrant-major so the 2x2 max-pool fuses into the kernel."""
    n = patches.shape[0]
    kc = patches.shape[-1]
    hq, wq = ho // 2, wo // 2
    patches = patches[:, :2 * hq, :2 * wq, :]
    quads = [patches[:, dy::2, dx::2, :].reshape(n * hq * wq, kc)
             for dy in (0, 1) for dx in (0, 1)]
    return jnp.stack(quads, axis=0), hq, wq       # (4, N*Hq*Wq, Kc)


def conv_weight_matrix(w, kc_pad, cout_pad=None):
    """PyTorch (Cout, Cin, K, K) -> bf16 (kc_pad, cout_pad) matmul weight."""
    cout, cin, kh, kw = w.shape
    wm = jnp.transpose(w, (2, 3, 1, 0)).reshape(kh * kw * cin, cout)
    wm = jnp.pad(wm, ((0, kc_pad - kh * kw * cin), (0, (cout_pad or cout) - cout)))
    return wm.astype(jnp.bfloat16)


def batched_mm_bn_act(p, w, scale, shift, *, relu, out_dtype):
    """p: (G, M, Kc) bf16; w: (G, Kc, Cout) bf16; scale/shift: (G, 1, Cout) f32."""
    g, m, kc = p.shape
    cout = w.shape[-1]
    tm = _row_tile(m)
    grid = (g, m // tm)
    return pl.pallas_call(
        functools.partial(_mm_bn_act_kernel, relu=relu),
        out_shape=jax.ShapeDtypeStruct((g, m, cout), out_dtype),
        grid=grid,
        in_specs=[
            pl.BlockSpec((None, tm, kc), lambda i, r: (i, r, 0)),
            pl.BlockSpec((None, kc, cout), lambda i, r: (i, 0, 0)),
            pl.BlockSpec((None, 1, cout), lambda i, r: (i, 0, 0)),
            pl.BlockSpec((None, 1, cout), lambda i, r: (i, 0, 0)),
        ],
        out_specs=pl.BlockSpec((None, tm, cout), lambda i, r: (i, r, 0)),
        compiler_params=pltpu.CompilerParams(
            dimension_semantics=("parallel", "parallel")),
    )(p, w, scale, shift)


def conv_bn_relu_pool(p, w, scale, shift, *, out_dtype):
    """p: (4, Np, Kc) bf16 quadrant-major patches -> pooled activation (Np, Cout)."""
    q, npool, kc = p.shape
    cout = w.shape[-1]
    tn = _row_tile(npool)
    grid = (npool // tn,)
    return pl.pallas_call(
        _conv_bn_relu_pool_kernel,
        out_shape=jax.ShapeDtypeStruct((npool, cout), out_dtype),
        grid=grid,
        in_specs=[
            pl.BlockSpec((q, tn, kc), lambda r: (0, r, 0)),
            pl.BlockSpec((kc, cout), lambda r: (0, 0)),
            pl.BlockSpec((1, cout), lambda r: (0, 0)),
            pl.BlockSpec((1, cout), lambda r: (0, 0)),
        ],
        out_specs=pl.BlockSpec((tn, cout), lambda r: (r, 0)),
        compiler_params=pltpu.CompilerParams(dimension_semantics=("parallel",)),
    )(p, w, scale, shift)


# --------------------------- parameter initialization -------------------------

def _uniform(key, shape, bound):
    return jax.random.uniform(key, shape, jnp.float32, -bound, bound)


def init_conv(key, cout, cin, k):
    kw, kb = jax.random.split(key)
    bound = 1.0 / math.sqrt(cin * k * k)
    return {"w": _uniform(kw, (cout, cin, k, k), bound),   # PyTorch layout
            "b": _uniform(kb, (cout,), bound)}


def init_linear(key, dout, din):
    kw, kb = jax.random.split(key)
    bound = 1.0 / math.sqrt(din)
    return {"w": _uniform(kw, (dout, din), bound),          # PyTorch layout
            "b": _uniform(kb, (dout,), bound)}


def init_bn(c):
    return {"gamma": jnp.ones((c,), jnp.float32),
            "beta": jnp.zeros((c,), jnp.float32),
            "mean": jnp.zeros((c,), jnp.float32),
            "var": jnp.ones((c,), jnp.float32)}


def fold_bn(conv_bias, bn):
    """Fold conv bias + eval-mode BatchNorm into a per-channel scale/shift."""
    scale = bn["gamma"] / jnp.sqrt(bn["var"] + BN_EPS)
    shift = (conv_bias - bn["mean"]) * scale + bn["beta"]
    return scale, shift


def init_params(key):
    keys = jax.random.split(key, 8)
    params = {"context": []}
    for i in range(CONTEXT_NUM):
        params["context"].append({
            "conv1": init_conv(keys[2 * i], CTX_HIDDEN, NUM_CHANNELS, KSIZE),
            "bn1": init_bn(CTX_HIDDEN),
            "conv2": init_conv(keys[2 * i + 1], N_CONTEXT_CHANNELS, CTX_HIDDEN, KSIZE),
        })
    n_pred = NUM_CHANNELS + N_CONTEXT_CHANNELS
    params["pred"] = {
        "conv1": init_conv(keys[4], PRED_HIDDEN, n_pred, KSIZE),
        "bn1": init_bn(PRED_HIDDEN),
        "conv2": init_conv(keys[5], PRED_HIDDEN, PRED_HIDDEN, KSIZE),
        "bn2": init_bn(PRED_HIDDEN),
        "fc1": init_linear(keys[6], FC_HIDDEN, PRED_HIDDEN),
        "fc2": init_linear(keys[7], NUM_CLASSES, FC_HIDDEN),
    }
    return params


# --------------------------------- forward ------------------------------------

def context_nets_forward(x_nhwc, ctx_params):
    """Both MContextNet3 branches, each layer batched into one gridded pallas_call.
    Returns (CONTEXT_NUM, sbatch, H, W, n_context_channels)."""
    b, h, w, _ = x_nhwc.shape
    sbatch = b // CONTEXT_NUM

    # conv1: 3 -> 64, pad 2, BN(eval) + ReLU
    kc1 = _round_up(KSIZE * KSIZE * NUM_CHANNELS, LANE)
    p_l, w_l, s_l, sh_l = [], [], [], []
    for i in range(CONTEXT_NUM):
        xi = x_nhwc[i * sbatch:(i + 1) * sbatch].astype(jnp.bfloat16)
        patches, ho, wo = _im2col(xi, KSIZE, pad=2)
        p_l.append(_pad_last(patches, kc1).reshape(sbatch * ho * wo, kc1))
        cp = ctx_params[i]
        scale, shift = fold_bn(cp["conv1"]["b"], cp["bn1"])
        w_l.append(conv_weight_matrix(cp["conv1"]["w"], kc1))
        s_l.append(scale.reshape(1, CTX_HIDDEN))
        sh_l.append(shift.reshape(1, CTX_HIDDEN))
    hid = batched_mm_bn_act(jnp.stack(p_l), jnp.stack(w_l), jnp.stack(s_l),
                            jnp.stack(sh_l), relu=True, out_dtype=jnp.bfloat16)
    hid = hid.reshape(CONTEXT_NUM, sbatch, h, w, CTX_HIDDEN)

    # conv2: 64 -> 3, pad 2 (output lanes zero-padded to 128 for unmasked stores)
    kc2 = _round_up(KSIZE * KSIZE * CTX_HIDDEN, LANE)
    cout2 = _round_up(N_CONTEXT_CHANNELS, LANE)
    p_l, w_l, b_l = [], [], []
    for i in range(CONTEXT_NUM):
        patches, ho, wo = _im2col(hid[i], KSIZE, pad=2)
        p_l.append(_pad_last(patches, kc2).reshape(sbatch * ho * wo, kc2))
        cp = ctx_params[i]
        w_l.append(conv_weight_matrix(cp["conv2"]["w"], kc2, cout_pad=cout2))
        b_l.append(jnp.pad(cp["conv2"]["b"],
                           (0, cout2 - N_CONTEXT_CHANNELS)).reshape(1, cout2))
    ones = jnp.ones((CONTEXT_NUM, 1, cout2), jnp.float32)
    out = batched_mm_bn_act(jnp.stack(p_l), jnp.stack(w_l), ones, jnp.stack(b_l),
                            relu=False, out_dtype=jnp.float32)
    out = out[..., :N_CONTEXT_CHANNELS]
    return out.reshape(CONTEXT_NUM, sbatch, h, w, N_CONTEXT_CHANNELS)


def prediction_net_forward(x_nhwc, p):
    """MConvNet3 (cml=True): conv1 block + fully fused conv2/pool/avgpool/MLP tail."""
    n, h, w, cin = x_nhwc.shape

    # block 1: Conv(6->128, K=5) + BN + ReLU + MaxPool2d(2), fused in one kernel
    kc1 = _round_up(KSIZE * KSIZE * cin, LANE)
    patches, ho, wo = _im2col(x_nhwc.astype(jnp.bfloat16), KSIZE, pad=0)
    pq, hq, wq = _pool_quadrants(patches, ho, wo)
    pq = _pad_last(pq, kc1)
    s1, sh1 = fold_bn(p["conv1"]["b"], p["bn1"])
    w1 = conv_weight_matrix(p["conv1"]["w"], kc1)
    act = conv_bn_relu_pool(pq, w1, s1.reshape(1, -1), sh1.reshape(1, -1),
                            out_dtype=jnp.bfloat16)
    act = act.reshape(n, hq, wq, PRED_HIDDEN)

    # block 2 + head: Conv2+BN+ReLU+Pool -> AdaptiveAvgPool(1) -> fc1+ReLU -> fc2
    kc2 = _round_up(KSIZE * KSIZE * PRED_HIDDEN, LANE)
    patches2, ho2, wo2 = _im2col(act, KSIZE, pad=0)
    pq2, hq2, wq2 = _pool_quadrants(patches2, ho2, wo2)
    pq2 = _pad_last(pq2, kc2)
    s2, sh2 = fold_bn(p["conv2"]["b"], p["bn2"])
    w2 = conv_weight_matrix(p["conv2"]["w"], kc2)

    f1p = _round_up(FC_HIDDEN, LANE)          # 200 -> 256 (lane-dense internal layout)
    f2p = _round_up(NUM_CLASSES, LANE)        # 10  -> 128 (unmasked final store)
    wf1 = jnp.pad(p["fc1"]["w"].T, ((0, 0), (0, f1p - FC_HIDDEN))).astype(jnp.bfloat16)
    bf1 = jnp.pad(p["fc1"]["b"], (0, f1p - FC_HIDDEN)).reshape(1, f1p)
    wf2 = jnp.pad(p["fc2"]["w"].T,
                  ((0, f1p - FC_HIDDEN), (0, f2p - NUM_CLASSES))).astype(jnp.bfloat16)
    bf2 = jnp.pad(p["fc2"]["b"], (0, f2p - NUM_CLASSES)).reshape(1, f2p)

    logits = pl.pallas_call(
        functools.partial(_tail_kernel, n=n, s=hq2 * wq2),
        out_shape=jax.ShapeDtypeStruct((n, f2p), jnp.float32),
        in_specs=[_VMEM] * 8,
        out_specs=_VMEM,
    )(pq2, w2, s2.reshape(1, -1), sh2.reshape(1, -1), wf1, bf1, wf2, bf2)
    return logits[:, :NUM_CLASSES]


def mmaml_convnet3_forward(params, x_nchw):
    """Matches MMAMLConvNet3.forward with use_context=True, prediction_net='convnet'."""
    b, _, h, w = x_nchw.shape
    x = jnp.transpose(x_nchw, (0, 2, 3, 1))                    # NCHW -> NHWC
    if b % SUPPORT_SIZE == 0:
        meta_batch, support = b // SUPPORT_SIZE, SUPPORT_SIZE
    else:                                                      # mirrors PyTorch branch
        meta_batch, support = b, SUPPORT_SIZE
    ctx_maps = context_nets_forward(x, params["context"])      # (CN, sbatch, H, W, Cc)
    g = meta_batch // CONTEXT_NUM
    contexts = []
    for i in range(CONTEXT_NUM):
        ti = ctx_maps[i].reshape(g, -1, h, w, N_CONTEXT_CHANNELS).mean(axis=1)
        ti = jnp.repeat(ti, support, axis=0)                   # repeat_interleave(dim=0)
        contexts.append(ti)
    condition = jnp.concatenate(contexts, axis=0)              # (B, H, W, Cc)
    x = jnp.concatenate([x, condition], axis=-1)               # channel concat
    return prediction_net_forward(x, params["pred"])


# ----------------------------------- main --------------------------------------

if __name__ == "__main__":
    key = jax.random.PRNGKey(0)
    pkey, xkey = jax.random.split(key)
    params = init_params(pkey)
    # batch=4 (divisible by support_size=2 and context_num=2), 3 channels, 16x16.
    x = jax.random.normal(xkey, (4, NUM_CHANNELS, 16, 16), dtype=jnp.float32)
    fwd = jax.jit(mmaml_convnet3_forward)
    out = jax.block_until_ready(fwd(params, x))
    assert out.shape == (4, NUM_CLASSES), out.shape
    assert bool(jnp.all(jnp.isfinite(out)))
    print("KERNEL_OK")
</pallas_src>

<mosaic_0001>
module attributes {stable_mosaic.version = 11 : i64} {
  func.func @_mm_bn_act_kernel(%arg0: i32, %arg1: i32, %arg2: memref<1x512x128xbf16, #tpu.memory_space<vmem>>, %arg3: memref<1x128x64xbf16, #tpu.memory_space<vmem>>, %arg4: memref<1x1x64xf32, #tpu.memory_space<vmem>>, %arg5: memref<1x1x64xf32, #tpu.memory_space<vmem>>, %arg6: memref<1x512x64xbf16, #tpu.memory_space<vmem>>) attributes {dimension_semantics = [#tpu.dimension_semantics<parallel>, #tpu.dimension_semantics<parallel>], iteration_bounds = array<i64: 2, 1>, scalar_prefetch = 0 : i64, scratch_operands = 0 : i64, tpu.core_type = #tpu.core_type<tc>, window_params = [{transform_indices = @transform_0, window_bounds = array<i64: 1, 512, 128>}, {transform_indices = @transform_1, window_bounds = array<i64: 1, 128, 64>}, {transform_indices = @transform_2, window_bounds = array<i64: 1, 1, 64>}, {transform_indices = @transform_3, window_bounds = array<i64: 1, 1, 64>}, {transform_indices = @transform_4, window_bounds = array<i64: 1, 512, 64>}]} {
    %c0 = arith.constant 0 : index
    %c0_0 = arith.constant 0 : index
    %c0_1 = arith.constant 0 : index
    %0 = vector.load %arg2[%c0, %c0_0, %c0_1] : memref<1x512x128xbf16, #tpu.memory_space<vmem>>, vector<1x512x128xbf16>
    %1 = vector.shape_cast %0 : vector<1x512x128xbf16> to vector<512x128xbf16>
    %c0_2 = arith.constant 0 : index
    %c0_3 = arith.constant 0 : index
    %c0_4 = arith.constant 0 : index
    %2 = vector.load %arg3[%c0_2, %c0_3, %c0_4] : memref<1x128x64xbf16, #tpu.memory_space<vmem>>, vector<1x128x64xbf16>
    %3 = vector.shape_cast %2 : vector<1x128x64xbf16> to vector<128x64xbf16>
    %cst = arith.constant dense<0.000000e+00> : vector<512x64xf32>
    %4 = tpu.matmul %1, %3, %cst {dimension_numbers = #tpu.dot_dimension_numbers<[1], [0], [0], [1], [0, 0, 1, 1], [], []>} : vector<512x128xbf16>, vector<128x64xbf16>, vector<512x64xf32> -> vector<512x64xf32>
    %c0_5 = arith.constant 0 : index
    %c0_6 = arith.constant 0 : index
    %c0_7 = arith.constant 0 : index
    %5 = vector.load %arg4[%c0_5, %c0_6, %c0_7] : memref<1x1x64xf32, #tpu.memory_space<vmem>>, vector<1x1x64xf32>
    %6 = vector.shape_cast %5 : vector<1x1x64xf32> to vector<1x64xf32>
    %7 = vector.broadcast %6 : vector<1x64xf32> to vector<512x64xf32>
    %8 = arith.mulf %4, %7 : vector<512x64xf32>
    %c0_8 = arith.constant 0 : index
    %c0_9 = arith.constant 0 : index
    %c0_10 = arith.constant 0 : index
    %9 = vector.load %arg5[%c0_8, %c0_9, %c0_10] : memref<1x1x64xf32, #tpu.memory_space<vmem>>, vector<1x1x64xf32>
    %10 = vector.shape_cast %9 : vector<1x1x64xf32> to vector<1x64xf32>
    %11 = vector.broadcast %10 : vector<1x64xf32> to vector<512x64xf32>
    %12 = arith.addf %8, %11 : vector<512x64xf32>
    %cst_11 = arith.constant 0.000000e+00 : f32
    %13 = vector.broadcast %cst_11 : f32 to vector<512x64xf32>
    %14 = arith.maximumf %12, %13 : vector<512x64xf32>
    %15 = arith.truncf %14 : vector<512x64xf32> to vector<512x64xbf16>
    %c0_12 = arith.constant 0 : index
    %c0_13 = arith.constant 0 : index
    %c0_14 = arith.constant 0 : index
    %16 = vector.load %arg6[%c0_12, %c0_13, %c0_14] : memref<1x512x64xbf16, #tpu.memory_space<vmem>>, vector<1x512x64xbf16>
    %17 = vector.shape_cast %16 : vector<1x512x64xbf16> to vector<512x64xbf16>
    %18 = vector.shape_cast %15 : vector<512x64xbf16> to vector<1x512x64xbf16>
    tpu.vector_store %arg6[%c0_12, %c0_13, %c0_14], %18 {strides = array<i32>} : memref<1x512x64xbf16, #tpu.memory_space<vmem>>, vector<1x512x64xbf16>,
    return
  }
  func.func @transform_0(%arg0: i32, %arg1: i32) -> (i32, i32, i32) {
    %c0_i32 = arith.constant 0 : i32
    %c0_i32_0 = arith.constant 0 : i32
    return %arg0, %arg1, %c0_i32 : i32, i32, i32
  }
  func.func @transform_1(%arg0: i32, %arg1: i32) -> (i32, i32, i32) {
    %c0_i32 = arith.constant 0 : i32
    %c0_i32_0 = arith.constant 0 : i32
    %c0_i32_1 = arith.constant 0 : i32
    return %arg0, %c0_i32, %c0_i32_0 : i32, i32, i32
  }
  func.func @transform_2(%arg0: i32, %arg1: i32) -> (i32, i32, i32) {
    %c0_i32 = arith.constant 0 : i32
    %c0_i32_0 = arith.constant 0 : i32
    %c0_i32_1 = arith.constant 0 : i32
    return %arg0, %c0_i32, %c0_i32_0 : i32, i32, i32
  }
  func.func @transform_3(%arg0: i32, %arg1: i32) -> (i32, i32, i32) {
    %c0_i32 = arith.constant 0 : i32
    %c0_i32_0 = arith.constant 0 : i32
    %c0_i32_1 = arith.constant 0 : i32
    return %arg0, %c0_i32, %c0_i32_0 : i32, i32, i32
  }
  func.func @transform_4(%arg0: i32, %arg1: i32) -> (i32, i32, i32) {
    %c0_i32 = arith.constant 0 : i32
    %c0_i32_0 = arith.constant 0 : i32
    return %arg0, %arg1, %c0_i32 : i32, i32, i32
  }
}

module attributes {stable_mosaic.version = 11 : i64} {
  func.func @_mm_bn_act_kernel(%arg0: i32, %arg1: i32, %arg2: memref<1x512x1664xbf16, #tpu.memory_space<vmem>>, %arg3: memref<1x1664x128xbf16, #tpu.memory_space<vmem>>, %arg4: memref<1x1x128xf32, #tpu.memory_space<vmem>>, %arg5: memref<1x1x128xf32, #tpu.memory_space<vmem>>, %arg6: memref<1x512x128xf32, #tpu.memory_space<vmem>>) attributes {dimension_semantics = [#tpu.dimension_semantics<parallel>, #tpu.dimension_semantics<parallel>], iteration_bounds = array<i64: 2, 1>, scalar_prefetch = 0 : i64, scratch_operands = 0 : i64, tpu.core_type = #tpu.core_type<tc>, window_params = [{transform_indices = @transform_0, window_bounds = array<i64: 1, 512, 1664>}, {transform_indices = @transform_1, window_bounds = array<i64: 1, 1664, 128>}, {transform_indices = @transform_2, window_bounds = array<i64: 1, 1, 128>}, {transform_indices = @transform_3, window_bounds = array<i64: 1, 1, 128>}, {transform_indices = @transform_4, window_bounds = array<i64: 1, 512, 128>}]} {
    %c0 = arith.constant 0 : index
    %c0_0 = arith.constant 0 : index
    %c0_1 = arith.constant 0 : index
    %0 = vector.load %arg2[%c0, %c0_0, %c0_1] : memref<1x512x1664xbf16, #tpu.memory_space<vmem>>, vector<1x512x1664xbf16>
    %1 = vector.shape_cast %0 : vector<1x512x1664xbf16> to vector<512x1664xbf16>
    %c0_2 = arith.constant 0 : index
    %c0_3 = arith.constant 0 : index
    %c0_4 = arith.constant 0 : index
    %2 = vector.load %arg3[%c0_2, %c0_3, %c0_4] : memref<1x1664x128xbf16, #tpu.memory_space<vmem>>, vector<1x1664x128xbf16>
    %3 = vector.shape_cast %2 : vector<1x1664x128xbf16> to vector<1664x128xbf16>
    %cst = arith.constant dense<0.000000e+00> : vector<512x128xf32>
    %4 = tpu.matmul %1, %3, %cst {dimension_numbers = #tpu.dot_dimension_numbers<[1], [0], [0], [1], [0, 0, 1, 1], [], []>} : vector<512x1664xbf16>, vector<1664x128xbf16>, vector<512x128xf32> -> vector<512x128xf32>
    %c0_5 = arith.constant 0 : index
    %c0_6 = arith.constant 0 : index
    %c0_7 = arith.constant 0 : index
    %5 = vector.load %arg4[%c0_5, %c0_6, %c0_7] : memref<1x1x128xf32, #tpu.memory_space<vmem>>, vector<1x1x128xf32>
    %6 = vector.shape_cast %5 : vector<1x1x128xf32> to vector<1x128xf32>
    %7 = vector.broadcast %6 : vector<1x128xf32> to vector<512x128xf32>
    %8 = arith.mulf %4, %7 : vector<512x128xf32>
    %c0_8 = arith.constant 0 : index
    %c0_9 = arith.constant 0 : index
    %c0_10 = arith.constant 0 : index
    %9 = vector.load %arg5[%c0_8, %c0_9, %c0_10] : memref<1x1x128xf32, #tpu.memory_space<vmem>>, vector<1x1x128xf32>
    %10 = vector.shape_cast %9 : vector<1x1x128xf32> to vector<1x128xf32>
    %11 = vector.broadcast %10 : vector<1x128xf32> to vector<512x128xf32>
    %12 = arith.addf %8, %11 : vector<512x128xf32>
    %c0_11 = arith.constant 0 : index
    %c0_12 = arith.constant 0 : index
    %c0_13 = arith.constant 0 : index
    %13 = vector.load %arg6[%c0_11, %c0_12, %c0_13] : memref<1x512x128xf32, #tpu.memory_space<vmem>>, vector<1x512x128xf32>
    %14 = vector.shape_cast %13 : vector<1x512x128xf32> to vector<512x128xf32>
    %15 = vector.shape_cast %12 : vector<512x128xf32> to vector<1x512x128xf32>
    tpu.vector_store %arg6[%c0_11, %c0_12, %c0_13], %15 {strides = array<i32>} : memref<1x512x128xf32, #tpu.memory_space<vmem>>, vector<1x512x128xf32>,
    return
  }
  func.func @transform_0(%arg0: i32, %arg1: i32) -> (i32, i32, i32) {
    %c0_i32 = arith.constant 0 : i32
    %c0_i32_0 = arith.constant 0 : i32
    return %arg0, %arg1, %c0_i32 : i32, i32, i32
  }
  func.func @transform_1(%arg0: i32, %arg1: i32) -> (i32, i32, i32) {
    %c0_i32 = arith.constant 0 : i32
    %c0_i32_0 = arith.constant 0 : i32
    %c0_i32_1 = arith.constant 0 : i32
    return %arg0, %c0_i32, %c0_i32_0 : i32, i32, i32
  }
  func.func @transform_2(%arg0: i32, %arg1: i32) -> (i32, i32, i32) {
    %c0_i32 = arith.constant 0 : i32
    %c0_i32_0 = arith.constant 0 : i32
    %c0_i32_1 = arith.constant 0 : i32
    return %arg0, %c0_i32, %c0_i32_0 : i32, i32, i32
  }
  func.func @transform_3(%arg0: i32, %arg1: i32) -> (i32, i32, i32) {
    %c0_i32 = arith.constant 0 : i32
    %c0_i32_0 = arith.constant 0 : i32
    %c0_i32_1 = arith.constant 0 : i32
    return %arg0, %c0_i32, %c0_i32_0 : i32, i32, i32
  }
  func.func @transform_4(%arg0: i32, %arg1: i32) -> (i32, i32, i32) {
    %c0_i32 = arith.constant 0 : i32
    %c0_i32_0 = arith.constant 0 : i32
    return %arg0, %arg1, %c0_i32 : i32, i32, i32
  }
}

module attributes {stable_mosaic.version = 11 : i64} {
  func.func @_conv_bn_relu_pool_kernel(%arg0: i32, %arg1: memref<4x144x256xbf16, #tpu.memory_space<vmem>>, %arg2: memref<256x128xbf16, #tpu.memory_space<vmem>>, %arg3: memref<1x128xf32, #tpu.memory_space<vmem>>, %arg4: memref<1x128xf32, #tpu.memory_space<vmem>>, %arg5: memref<144x128xbf16, #tpu.memory_space<vmem>>) attributes {dimension_semantics = [#tpu.dimension_semantics<parallel>], iteration_bounds = array<i64: 1>, scalar_prefetch = 0 : i64, scratch_operands = 0 : i64, tpu.core_type = #tpu.core_type<tc>, window_params = [{transform_indices = @transform_0, window_bounds = array<i64: 4, 144, 256>}, {pipeline_mode = #tpu.pipeline_mode<synchronous>, transform_indices = @transform_1, window_bounds = array<i64: 256, 128>}, {pipeline_mode = #tpu.pipeline_mode<synchronous>, transform_indices = @transform_2, window_bounds = array<i64: 1, 128>}, {pipeline_mode = #tpu.pipeline_mode<synchronous>, transform_indices = @transform_3, window_bounds = array<i64: 1, 128>}, {transform_indices = @transform_4, window_bounds = array<i64: 144, 128>}]} {
    %c0 = arith.constant 0 : index
    %c0_0 = arith.constant 0 : index
    %0 = vector.load %arg3[%c0, %c0_0] : memref<1x128xf32, #tpu.memory_space<vmem>>, vector<1x128xf32>
    %c0_1 = arith.constant 0 : index
    %c0_2 = arith.constant 0 : index
    %1 = vector.load %arg4[%c0_1, %c0_2] : memref<1x128xf32, #tpu.memory_space<vmem>>, vector<1x128xf32>
    %c0_3 = arith.constant 0 : index
    %c0_4 = arith.constant 0 : index
    %c0_5 = arith.constant 0 : index
    %2 = vector.load %arg1[%c0_3, %c0_4, %c0_5] : memref<4x144x256xbf16, #tpu.memory_space<vmem>>, vector<1x144x256xbf16>
    %3 = vector.shape_cast %2 : vector<1x144x256xbf16> to vector<144x256xbf16>
    %c0_6 = arith.constant 0 : index
    %c0_7 = arith.constant 0 : index
    %4 = vector.load %arg2[%c0_6, %c0_7] : memref<256x128xbf16, #tpu.memory_space<vmem>>, vector<256x128xbf16>
    %cst = arith.constant dense<0.000000e+00> : vector<144x128xf32>
    %5 = tpu.matmul %3, %4, %cst {dimension_numbers = #tpu.dot_dimension_numbers<[1], [0], [0], [1], [0, 0, 1, 1], [], []>} : vector<144x256xbf16>, vector<256x128xbf16>, vector<144x128xf32> -> vector<144x128xf32>
    %6 = vector.broadcast %0 : vector<1x128xf32> to vector<144x128xf32>
    %7 = arith.mulf %5, %6 : vector<144x128xf32>
    %8 = vector.broadcast %1 : vector<1x128xf32> to vector<144x128xf32>
    %9 = arith.addf %7, %8 : vector<144x128xf32>
    %c1 = arith.constant 1 : index
    %c0_8 = arith.constant 0 : index
    %c0_9 = arith.constant 0 : index
    %10 = vector.load %arg1[%c1, %c0_8, %c0_9] : memref<4x144x256xbf16, #tpu.memory_space<vmem>>, vector<1x144x256xbf16>
    %11 = vector.shape_cast %10 : vector<1x144x256xbf16> to vector<144x256xbf16>
    %c0_10 = arith.constant 0 : index
    %c0_11 = arith.constant 0 : index
    %12 = vector.load %arg2[%c0_10, %c0_11] : memref<256x128xbf16, #tpu.memory_space<vmem>>, vector<256x128xbf16>
    %cst_12 = arith.constant dense<0.000000e+00> : vector<144x128xf32>
    %13 = tpu.matmul %11, %12, %cst_12 {dimension_numbers = #tpu.dot_dimension_numbers<[1], [0], [0], [1], [0, 0, 1, 1], [], []>} : vector<144x256xbf16>, vector<256x128xbf16>, vector<144x128xf32> -> vector<144x128xf32>
    %14 = vector.broadcast %0 : vector<1x128xf32> to vector<144x128xf32>
    %15 = arith.mulf %13, %14 : vector<144x128xf32>
    %16 = vector.broadcast %1 : vector<1x128xf32> to vector<144x128xf32>
    %17 = arith.addf %15, %16 : vector<144x128xf32>
    %18 = arith.maximumf %9, %17 : vector<144x128xf32>
    %c2 = arith.constant 2 : index
    %c0_13 = arith.constant 0 : index
    %c0_14 = arith.constant 0 : index
    %19 = vector.load %arg1[%c2, %c0_13, %c0_14] : memref<4x144x256xbf16, #tpu.memory_space<vmem>>, vector<1x144x256xbf16>
    %20 = vector.shape_cast %19 : vector<1x144x256xbf16> to vector<144x256xbf16>
    %c0_15 = arith.constant 0 : index
    %c0_16 = arith.constant 0 : index
    %21 = vector.load %arg2[%c0_15, %c0_16] : memref<256x128xbf16, #tpu.memory_space<vmem>>, vector<256x128xbf16>
    %cst_17 = arith.constant dense<0.000000e+00> : vector<144x128xf32>
    %22 = tpu.matmul %20, %21, %cst_17 {dimension_numbers = #tpu.dot_dimension_numbers<[1], [0], [0], [1], [0, 0, 1, 1], [], []>} : vector<144x256xbf16>, vector<256x128xbf16>, vector<144x128xf32> -> vector<144x128xf32>
    %23 = vector.broadcast %0 : vector<1x128xf32> to vector<144x128xf32>
    %24 = arith.mulf %22, %23 : vector<144x128xf32>
    %25 = vector.broadcast %1 : vector<1x128xf32> to vector<144x128xf32>
    %26 = arith.addf %24, %25 : vector<144x128xf32>
    %27 = arith.maximumf %18, %26 : vector<144x128xf32>
    %c3 = arith.constant 3 : index
    %c0_18 = arith.constant 0 : index
    %c0_19 = arith.constant 0 : index
    %28 = vector.load %arg1[%c3, %c0_18, %c0_19] : memref<4x144x256xbf16, #tpu.memory_space<vmem>>, vector<1x144x256xbf16>
    %29 = vector.shape_cast %28 : vector<1x144x256xbf16> to vector<144x256xbf16>
    %c0_20 = arith.constant 0 : index
    %c0_21 = arith.constant 0 : index
    %30 = vector.load %arg2[%c0_20, %c0_21] : memref<256x128xbf16, #tpu.memory_space<vmem>>, vector<256x128xbf16>
    %cst_22 = arith.constant dense<0.000000e+00> : vector<144x128xf32>
    %31 = tpu.matmul %29, %30, %cst_22 {dimension_numbers = #tpu.dot_dimension_numbers<[1], [0], [0], [1], [0, 0, 1, 1], [], []>} : vector<144x256xbf16>, vector<256x128xbf16>, vector<144x128xf32> -> vector<144x128xf32>
    %32 = vector.broadcast %0 : vector<1x128xf32> to vector<144x128xf32>
    %33 = arith.mulf %31, %32 : vector<144x128xf32>
    %34 = vector.broadcast %1 : vector<1x128xf32> to vector<144x128xf32>
    %35 = arith.addf %33, %34 : vector<144x128xf32>
    %36 = arith.maximumf %27, %35 : vector<144x128xf32>
    %cst_23 = arith.constant 0.000000e+00 : f32
    %37 = vector.broadcast %cst_23 : f32 to vector<144x128xf32>
    %38 = arith.maximumf %36, %37 : vector<144x128xf32>
    %39 = arith.truncf %38 : vector<144x128xf32> to vector<144x128xbf16>
    %c0_24 = arith.constant 0 : index
    %c0_25 = arith.constant 0 : index
    %40 = vector.load %arg5[%c0_24, %c0_25] : memref<144x128xbf16, #tpu.memory_space<vmem>>, vector<144x128xbf16>
    tpu.vector_store %arg5[%c0_24, %c0_25], %39 {strides = array<i32>} : memref<144x128xbf16, #tpu.memory_space<vmem>>, vector<144x128xbf16>,
    return
  }
  func.func @transform_0(%arg0: i32) -> (i32, i32, i32) {
    %c0_i32 = arith.constant 0 : i32
    %c0_i32_0 = arith.constant 0 : i32
    %c0_i32_1 = arith.constant 0 : i32
    return %c0_i32, %arg0, %c0_i32_0 : i32, i32, i32
  }
  func.func @transform_1(%arg0: i32) -> (i32, i32) {
    %c0_i32 = arith.constant 0 : i32
    %c0_i32_0 = arith.constant 0 : i32
    %c0_i32_1 = arith.constant 0 : i32
    return %c0_i32, %c0_i32_0 : i32, i32
  }
  func.func @transform_2(%arg0: i32) -> (i32, i32) {
    %c0_i32 = arith.constant 0 : i32
    %c0_i32_0 = arith.constant 0 : i32
    %c0_i32_1 = arith.constant 0 : i32
    return %c0_i32, %c0_i32_0 : i32, i32
  }
  func.func @transform_3(%arg0: i32) -> (i32, i32) {
    %c0_i32 = arith.constant 0 : i32
    %c0_i32_0 = arith.constant 0 : i32
    %c0_i32_1 = arith.constant 0 : i32
    return %c0_i32, %c0_i32_0 : i32, i32
  }
  func.func @transform_4(%arg0: i32) -> (i32, i32) {
    %c0_i32 = arith.constant 0 : i32
    %c0_i32_0 = arith.constant 0 : i32
    return %arg0, %c0_i32 : i32, i32
  }
}

module attributes {stable_mosaic.version = 11 : i64} {
  func.func @_tail_kernel(%arg0: memref<4x4x3200xbf16, #tpu.memory_space<vmem>>, %arg1: memref<3200x128xbf16, #tpu.memory_space<vmem>>, %arg2: memref<1x128xf32, #tpu.memory_space<vmem>>, %arg3: memref<1x128xf32, #tpu.memory_space<vmem>>, %arg4: memref<128x256xbf16, #tpu.memory_space<vmem>>, %arg5: memref<1x256xf32, #tpu.memory_space<vmem>>, %arg6: memref<256x128xbf16, #tpu.memory_space<vmem>>, %arg7: memref<1x128xf32, #tpu.memory_space<vmem>>, %arg8: memref<4x128xf32, #tpu.memory_space<vmem>>) attributes {dimension_semantics = [], scalar_prefetch = 0 : i64, scratch_operands = 0 : i64, tpu.core_type = #tpu.core_type<tc>} {
    %c0 = arith.constant 0 : index
    %c0_0 = arith.constant 0 : index
    %0 = vector.load %arg2[%c0, %c0_0] : memref<1x128xf32, #tpu.memory_space<vmem>>, vector<1x128xf32>
    %c0_1 = arith.constant 0 : index
    %c0_2 = arith.constant 0 : index
    %1 = vector.load %arg3[%c0_1, %c0_2] : memref<1x128xf32, #tpu.memory_space<vmem>>, vector<1x128xf32>
    %c0_3 = arith.constant 0 : index
    %c0_4 = arith.constant 0 : index
    %c0_5 = arith.constant 0 : index
    %2 = vector.load %arg0[%c0_3, %c0_4, %c0_5] : memref<4x4x3200xbf16, #tpu.memory_space<vmem>>, vector<1x4x3200xbf16>
    %3 = vector.shape_cast %2 : vector<1x4x3200xbf16> to vector<4x3200xbf16>
    %c0_6 = arith.constant 0 : index
    %c0_7 = arith.constant 0 : index
    %4 = vector.load %arg1[%c0_6, %c0_7] : memref<3200x128xbf16, #tpu.memory_space<vmem>>, vector<3200x128xbf16>
    %cst = arith.constant dense<0.000000e+00> : vector<4x128xf32>
    %5 = tpu.matmul %3, %4, %cst {dimension_numbers = #tpu.dot_dimension_numbers<[1], [0], [0], [1], [0, 0, 1, 1], [], []>} : vector<4x3200xbf16>, vector<3200x128xbf16>, vector<4x128xf32> -> vector<4x128xf32>
    %6 = vector.broadcast %0 : vector<1x128xf32> to vector<4x128xf32>
    %7 = arith.mulf %5, %6 : vector<4x128xf32>
    %8 = vector.broadcast %1 : vector<1x128xf32> to vector<4x128xf32>
    %9 = arith.addf %7, %8 : vector<4x128xf32>
    %c1 = arith.constant 1 : index
    %c0_8 = arith.constant 0 : index
    %c0_9 = arith.constant 0 : index
    %10 = vector.load %arg0[%c1, %c0_8, %c0_9] : memref<4x4x3200xbf16, #tpu.memory_space<vmem>>, vector<1x4x3200xbf16>
    %11 = vector.shape_cast %10 : vector<1x4x3200xbf16> to vector<4x3200xbf16>
    %c0_10 = arith.constant 0 : index
    %c0_11 = arith.constant 0 : index
    %12 = vector.load %arg1[%c0_10, %c0_11] : memref<3200x128xbf16, #tpu.memory_space<vmem>>, vector<3200x128xbf16>
    %cst_12 = arith.constant dense<0.000000e+00> : vector<4x128xf32>
    %13 = tpu.matmul %11, %12, %cst_12 {dimension_numbers = #tpu.dot_dimension_numbers<[1], [0], [0], [1], [0, 0, 1, 1], [], []>} : vector<4x3200xbf16>, vector<3200x128xbf16>, vector<4x128xf32> -> vector<4x128xf32>
    %14 = vector.broadcast %0 : vector<1x128xf32> to vector<4x128xf32>
    %15 = arith.mulf %13, %14 : vector<4x128xf32>
    %16 = vector.broadcast %1 : vector<1x128xf32> to vector<4x128xf32>
    %17 = arith.addf %15, %16 : vector<4x128xf32>
    %18 = arith.maximumf %9, %17 : vector<4x128xf32>
    %c2 = arith.constant 2 : index
    %c0_13 = arith.constant 0 : index
    %c0_14 = arith.constant 0 : index
    %19 = vector.load %arg0[%c2, %c0_13, %c0_14] : memref<4x4x3200xbf16, #tpu.memory_space<vmem>>, vector<1x4x3200xbf16>
    %20 = vector.shape_cast %19 : vector<1x4x3200xbf16> to vector<4x3200xbf16>
    %c0_15 = arith.constant 0 : index
    %c0_16 = arith.constant 0 : index
    %21 = vector.load %arg1[%c0_15, %c0_16] : memref<3200x128xbf16, #tpu.memory_space<vmem>>, vector<3200x128xbf16>
    %cst_17 = arith.constant dense<0.000000e+00> : vector<4x128xf32>
    %22 = tpu.matmul %20, %21, %cst_17 {dimension_numbers = #tpu.dot_dimension_numbers<[1], [0], [0], [1], [0, 0, 1, 1], [], []>} : vector<4x3200xbf16>, vector<3200x128xbf16>, vector<4x128xf32> -> vector<4x128xf32>
    %23 = vector.broadcast %0 : vector<1x128xf32> to vector<4x128xf32>
    %24 = arith.mulf %22, %23 : vector<4x128xf32>
    %25 = vector.broadcast %1 : vector<1x128xf32> to vector<4x128xf32>
    %26 = arith.addf %24, %25 : vector<4x128xf32>
    %27 = arith.maximumf %18, %26 : vector<4x128xf32>
    %c3 = arith.constant 3 : index
    %c0_18 = arith.constant 0 : index
    %c0_19 = arith.constant 0 : index
    %28 = vector.load %arg0[%c3, %c0_18, %c0_19] : memref<4x4x3200xbf16, #tpu.memory_space<vmem>>, vector<1x4x3200xbf16>
    %29 = vector.shape_cast %28 : vector<1x4x3200xbf16> to vector<4x3200xbf16>
    %c0_20 = arith.constant 0 : index
    %c0_21 = arith.constant 0 : index
    %30 = vector.load %arg1[%c0_20, %c0_21] : memref<3200x128xbf16, #tpu.memory_space<vmem>>, vector<3200x128xbf16>
    %cst_22 = arith.constant dense<0.000000e+00> : vector<4x128xf32>
    %31 = tpu.matmul %29, %30, %cst_22 {dimension_numbers = #tpu.dot_dimension_numbers<[1], [0], [0], [1], [0, 0, 1, 1], [], []>} : vector<4x3200xbf16>, vector<3200x128xbf16>, vector<4x128xf32> -> vector<4x128xf32>
    %32 = vector.broadcast %0 : vector<1x128xf32> to vector<4x128xf32>
    %33 = arith.mulf %31, %32 : vector<4x128xf32>
    %34 = vector.broadcast %1 : vector<1x128xf32> to vector<4x128xf32>
    %35 = arith.addf %33, %34 : vector<4x128xf32>
    %36 = arith.maximumf %27, %35 : vector<4x128xf32>
    %cst_23 = arith.constant 0.000000e+00 : f32
    %37 = vector.broadcast %cst_23 : f32 to vector<4x128xf32>
    %38 = arith.maximumf %36, %37 : vector<4x128xf32>
    %39 = arith.truncf %38 : vector<4x128xf32> to vector<4x128xbf16>
    %c0_24 = arith.constant 0 : index
    %c0_25 = arith.constant 0 : index
    %40 = vector.load %arg4[%c0_24, %c0_25] : memref<128x256xbf16, #tpu.memory_space<vmem>>, vector<128x256xbf16>
    %cst_26 = arith.constant dense<0.000000e+00> : vector<4x256xf32>
    %41 = tpu.matmul %39, %40, %cst_26 {dimension_numbers = #tpu.dot_dimension_numbers<[1], [0], [0], [1], [0, 0, 1, 1], [], []>} : vector<4x128xbf16>, vector<128x256xbf16>, vector<4x256xf32> -> vector<4x256xf32>
    %c0_27 = arith.constant 0 : index
    %c0_28 = arith.constant 0 : index
    %42 = vector.load %arg5[%c0_27, %c0_28] : memref<1x256xf32, #tpu.memory_space<vmem>>, vector<1x256xf32>
    %43 = vector.broadcast %42 : vector<1x256xf32> to vector<4x256xf32>
    %44 = arith.addf %41, %43 : vector<4x256xf32>
    %cst_29 = arith.constant 0.000000e+00 : f32
    %45 = vector.broadcast %cst_29 : f32 to vector<4x256xf32>
    %46 = arith.maximumf %44, %45 : vector<4x256xf32>
    %47 = arith.truncf %46 : vector<4x256xf32> to vector<4x256xbf16>
    %c0_30 = arith.constant 0 : index
    %c0_31 = arith.constant 0 : index
    %48 = vector.load %arg6[%c0_30, %c0_31] : memref<256x128xbf16, #tpu.memory_space<vmem>>, vector<256x128xbf16>
    %cst_32 = arith.constant dense<0.000000e+00> : vector<4x128xf32>
    %49 = tpu.matmul %47, %48, %cst_32 {dimension_numbers = #tpu.dot_dimension_numbers<[1], [0], [0], [1], [0, 0, 1, 1], [], []>} : vector<4x256xbf16>, vector<256x128xbf16>, vector<4x128xf32> -> vector<4x128xf32>
    %c0_33 = arith.constant 0 : index
    %c0_34 = arith.constant 0 : index
    %50 = vector.load %arg7[%c0_33, %c0_34] : memref<1x128xf32, #tpu.memory_space<vmem>>, vector<1x128xf32>
    %51 = vector.broadcast %50 : vector<1x128xf32> to vector<4x128xf32>
    %52 = arith.addf %49, %51 : vector<4x128xf32>
    %c0_35 = arith.constant 0 : index
    %c0_36 = arith.constant 0 : index
    %53 = vector.load %arg8[%c0_35, %c0_36] : memref<4x128xf32, #tpu.memory_space<vmem>>, vector<4x128xf32>
    tpu.vector_store %arg8[%c0_35, %c0_36], %52 {strides = array<i32>} : memref<4x128xf32, #tpu.memory_space<vmem>>, vector<4x128xf32>,
    return
  }
}

</mosaic_0001>

<bundles_post_ra>
// kernel: mmaml_convnet3_forward.4
= control target key start
LH: loop header
LB: loop body
LE: loop exit
PB: predicated region body
PF: predicated region fallthrough
CT: control target
= control target key end

     0   :  { %s1974_s15 = smov 0   ;;  %s1976_s16 = smov 0   ;;  %s2332_s0 = inlined_call_operand.vmem [shape: bf16[2,512,128], index: 0, kind: input, shape index: {}]   ;;  %s2333_s1 = inlined_call_operand.vmem [shape: bf16[2,128,64], index: 1, kind: input, shape index: {}]   ;;  %s2334_s2 = inlined_call_operand.vmem [shape: f32[2,1,64], index: 2, kind: input, shape index: {}]   ;;  %s2335_s3 = inlined_call_operand.vmem [shape: f32[2,1,64], index: 3, kind: input, shape index: {}]   ;;  %s2336_s4 = inlined_call_operand.vmem [shape: bf16[2,512,64], index: 4, kind: output, shape index: {}]  }
   0x1   :  { %s1978_s17 = smov 0  }
   0x2 LB: > { %s26_s18 = sadd.s32 1, %s1943_s16  ;;  %p1543_p0 = scmp.ge.s32.totalorder %s1947_s17, 1  ;;  %s1947_s17 = sphi %s1978_s17, %s14_s17   ;;  %s1943_s16 = sphi %s1976_s16, %s2338_s16   ;;  %s1939_s15 = sphi %s1974_s15, %s2337_s15  }
   0x3   : > { %p28_p1 = scmp.ge.s32.totalorder %s26_s18, 2  ;;  %p209_p2 = scmp.lt.s32.totalorder %s1947_s17, 3 }
   0x5   : > { %s2340_s18 = smov (%p28_p1, %s26_s18), 0  ;;  %p210_p3 = pnand %p1543_p0, %p209_p2 }
   0x6   : > { %p255_p4 = scmp.lt.s32.totalorder (!%p210_p3), %s1939_s15, 1  ;;  %vm1357_vm0 = vcmask (!%p210_p3), 519168  }
   0x7   : > { %213 = sbr.rel (%p210_p3) target bundleno = 337 (0x151), region = 36 }
   0xe   : > { %s2342_s15 = smov (!%p255_p4, %s1939_s15), 1 }
   0xf   : > { %s1659_s19 = sshll.u32 %s2342_s15, 6  ;;  %s1658_s23 = sshll.u32 %s2342_s15, 8 }
  0x10   : > { %s1998_s22 = scalar_lea.vmem %s2333_s1, %s1659_s19  ;;  %s2009_s26 = scalar_lea.vmem %s2332_s0, %s1658_s23 }
  0x11   : > { %v1885_v0 = vld [vmem:[%s1998_s22] sm:$0xff]   ;;  %v1886_v1 = vld [vmem:[%s1998_s22 + $0x8] sm:$0xff]   ;;  %v1887_v2 = vld [vmem:[%s1998_s22 + $0x10] sm:$0xff]   ;;  %s271_s29 = scalar_lea.vmem %s2334_s2, %s2342_s15  ;;  %s274_s6 = scalar_lea.vmem %s2335_s3, %s2342_s15 }
  0x12   : > { %1765 = vmatprep.subr.bf16.mxu0 %v1885_v0  ;;  %1845 = vmatprep.subr.bf16.mxu1 %v1885_v0  ;;  %v1888_v3 = vld [vmem:[%s1998_s22 + $0x18] sm:$0xff]   ;;  %v1893_v4 = vld [vmem:[%s2009_s26] sm:$0xff]   ;;  %v1890_v7 = vld [vmem:[%s1998_s22 + $0x28] sm:$0xff]   ;;  %s2079_s9 = scalar_lea.vmem %s2336_s4, %s1658_s23 }
  0x13   : > { %1766 = vmatpush3.bf16.msra.mxu0 %v1885_v0  ;;  %1853 = vmatpush3.bf16.msra.mxu1 %v1885_v0  ;;  %v1894_v5 = vld [vmem:[%s2009_s26 + $0x80] sm:$0xff]   ;;  %v1891_v8 = vld [vmem:[%s1998_s22 + $0x30] sm:$0xff]   ;;  %v1892_v9 = vld [vmem:[%s1998_s22 + $0x38] sm:$0xff]  }
  0x14   : > { %1767 = vmatprep.subr.bf16.mxu0 %v1886_v1  ;;  %1846 = vmatprep.subr.bf16.mxu1 %v1886_v1  ;;  %v1889_v6 = vld [vmem:[%s1998_s22 + $0x20] sm:$0xff]   ;;  %v1895_v10 = vld [vmem:[%s2009_s26 + $0x8] sm:$0xff]   ;;  %v1897_v12 = vld [vmem:[%s2009_s26 + $0x10] sm:$0xff]  }
  0x15   : > { %1781 = vmatprep.mubr.bf16.mxu0 %v1893_v4  ;;  %1813 = vmatprep.mubr.bf16.mxu1 %v1894_v5  ;;  %v1896_v11 = vld [vmem:[%s2009_s26 + $0x88] sm:$0xff]   ;;  %v1898_v13 = vld [vmem:[%s2009_s26 + $0x90] sm:$0xff]   ;;  %v1899_v14 = vld [vmem:[%s2009_s26 + $0x18] sm:$0xff]  }
  0x16   : > { %v1900_v15 = vld [vmem:[%s2009_s26 + $0x98] sm:$0xff]   ;;  %v1901_v16 = vld [vmem:[%s2009_s26 + $0x20] sm:$0xff]   ;;  %v1903_v18 = vld [vmem:[%s2009_s26 + $0x28] sm:$0xff]  }
  0x17   : > { %1768 = vmatpush3.bf16.msra.mxu0 %v1886_v1  ;;  %1854 = vmatpush3.bf16.msra.mxu1 %v1886_v1  ;;  %v1902_v17 = vld [vmem:[%s2009_s26 + $0xa0] sm:$0xff]   ;;  %v1904_v19 = vld [vmem:[%s2009_s26 + $0xa8] sm:$0xff]   ;;  %v1905_v20 = vld [vmem:[%s2009_s26 + $0x30] sm:$0xff]  }
  0x18   : > { %1769 = vmatprep.subr.bf16.mxu0 %v1887_v2  ;;  %1847 = vmatprep.subr.bf16.mxu1 %v1887_v2  ;;  %v1906_v21 = vld [vmem:[%s2009_s26 + $0xb0] sm:$0xff]   ;;  %v1907_v22 = vld [vmem:[%s2009_s26 + $0x38] sm:$0xff]   ;;  %v1909_v24 = vld [vmem:[%s2009_s26 + $0x40] sm:$0xff]  }
  0x19   : > { %v1908_v23 = vld [vmem:[%s2009_s26 + $0xb8] sm:$0xff]   ;;  %v1910_v25 = vld [vmem:[%s2009_s26 + $0xc0] sm:$0xff]   ;;  %v1911_v26 = vld [vmem:[%s2009_s26 + $0x48] sm:$0xff]  }
  0x1a   : > { %v1912_v27 = vld [vmem:[%s2009_s26 + $0xc8] sm:$0xff]   ;;  %v1913_v28 = vld [vmem:[%s2009_s26 + $0x50] sm:$0xff]   ;;  %v1915_v30 = vld [vmem:[%s2009_s26 + $0x58] sm:$0xff]  }
  0x1b   : > { %1770 = vmatpush3.bf16.msra.mxu0 %v1887_v2  ;;  %1855 = vmatpush3.bf16.msra.mxu1 %v1887_v2  ;;  %v1914_v29 = vld [vmem:[%s2009_s26 + $0xd0] sm:$0xff]   ;;  %v1916_v31 = vld [vmem:[%s2009_s26 + $0xd8] sm:$0xff]   ;;  %v1917_v32 = vld [vmem:[%s2009_s26 + $0x60] sm:$0xff]  }
  0x1c   : > { %1771 = vmatprep.subr.bf16.mxu0 %v1888_v3  ;;  %1848 = vmatprep.subr.bf16.mxu1 %v1888_v3  ;;  %v1918_v33 = vld [vmem:[%s2009_s26 + $0xe0] sm:$0xff]   ;;  %v1919_v34 = vld [vmem:[%s2009_s26 + $0x68] sm:$0xff]   ;;  %v1921_v36 = vld [vmem:[%s2009_s26 + $0x70] sm:$0xff]  }
  0x1d   : > { %v1920_v35 = vld [vmem:[%s2009_s26 + $0xe8] sm:$0xff]   ;;  %v1922_v37 = vld [vmem:[%s2009_s26 + $0xf0] sm:$0xff]   ;;  %v1923_v38 = vld [vmem:[%s2009_s26 + $0x78] sm:$0xff]  }
  0x1e   : > { %v1924_v39 = vld [vmem:[%s2009_s26 + $0xf8] sm:$0xff]   ;;  %v2056_v40 = vld [vmem:[%s271_s29] ss:$0 sm:$0xff] }
  0x1f   : > { %1772 = vmatpush3.bf16.msra.mxu0 %v1888_v3  ;;  %1856 = vmatpush3.bf16.msra.mxu1 %v1888_v3  ;;  %v2058_v42 = vld [vmem:[%s274_s6] ss:$0 sm:$0xff] }
  0x20   : > { %1773 = vmatprep.subr.bf16.mxu0 %v1889_v6  ;;  %1849 = vmatprep.subr.bf16.mxu1 %v1889_v6 }
  0x23   : > { %1774 = vmatpush3.bf16.msra.mxu0 %v1889_v6  ;;  %1857 = vmatpush3.bf16.msra.mxu1 %v1889_v6 }
  0x24   : > { %1775 = vmatprep.subr.bf16.mxu0 %v1890_v7  ;;  %1850 = vmatprep.subr.bf16.mxu1 %v1890_v7 }
  0x27   : > { %1776 = vmatpush3.bf16.msra.mxu0 %v1890_v7  ;;  %1858 = vmatpush3.bf16.msra.mxu1 %v1890_v7 }
  0x28   : > { %1777 = vmatprep.subr.bf16.mxu0 %v1891_v8  ;;  %1851 = vmatprep.subr.bf16.mxu1 %v1891_v8 }
  0x2b   : > { %1778 = vmatpush3.bf16.msra.mxu0 %v1891_v8  ;;  %1859 = vmatpush3.bf16.msra.mxu1 %v1891_v8 }
  0x2c   : > { %1779 = vmatprep.subr.bf16.mxu0 %v1892_v9  ;;  %1852 = vmatprep.subr.bf16.mxu1 %v1892_v9 }
  0x2f   : > { %1780 = vmatpush3.bf16.msra.mxu0 %v1892_v9  ;;  %1860 = vmatpush3.bf16.msra.mxu1 %v1892_v9 }
  0x32   : > { %1782 = vmatmul.mubr.bf16.vlgmr.msra.gmra.mrb[0].mxu0 %v1895_v10  ;;  %1814 = vmatmul.mubr.bf16.vlgmr.msra.gmra.mrb[0].mxu1 %v1896_v11 }
  0x33   : > { %1785 = vmatprep.mubr.bf16.mxu0 %v1897_v12  ;;  %1817 = vmatprep.mubr.bf16.mxu1 %v1898_v13 }
  0x3a   : > { %1786 = vmatmul.mubr.bf16.gmra.mrb[4].mxu0 %v1899_v14  ;;  %1818 = vmatmul.mubr.bf16.gmra.mrb[4].mxu1 %v1900_v15 }
  0x3b   : > { %1789 = vmatprep.mubr.bf16.mxu0 %v1901_v16  ;;  %1821 = vmatprep.mubr.bf16.mxu1 %v1902_v17 }
  0x42   : > { %1790 = vmatmul.mubr.bf16.gmra.mrb[8].mxu0 %v1903_v18  ;;  %1822 = vmatmul.mubr.bf16.gmra.mrb[8].mxu1 %v1904_v19 }
  0x43   : > { %1793 = vmatprep.mubr.bf16.mxu0 %v1905_v20  ;;  %1825 = vmatprep.mubr.bf16.mxu1 %v1906_v21 }
  0x4a   : > { %1794 = vmatmul.mubr.bf16.gmra.mrb[12].mxu0 %v1907_v22  ;;  %1826 = vmatmul.mubr.bf16.gmra.mrb[12].mxu1 %v1908_v23 }
  0x4b   : > { %1797 = vmatprep.mubr.bf16.mxu0 %v1909_v24  ;;  %1829 = vmatprep.mubr.bf16.mxu1 %v1910_v25 }
  0x52   : > { %1798 = vmatmul.mubr.bf16.gmra.mrb[16].mxu0 %v1911_v26  ;;  %1830 = vmatmul.mubr.bf16.gmra.mrb[16].mxu1 %v1912_v27 }
  0x53   : > { %1801 = vmatprep.mubr.bf16.mxu0 %v1913_v28  ;;  %1833 = vmatprep.mubr.bf16.mxu1 %v1914_v29 }
  0x5a   : > { %1802 = vmatmul.mubr.bf16.gmra.mrb[20].mxu0 %v1915_v30  ;;  %1834 = vmatmul.mubr.bf16.gmra.mrb[20].mxu1 %v1916_v31 }
  0x5b   : > { %1805 = vmatprep.mubr.bf16.mxu0 %v1917_v32  ;;  %1837 = vmatprep.mubr.bf16.mxu1 %v1918_v33 }
  0x62   : > { %1806 = vmatmul.mubr.bf16.gmra.mrb[24].mxu0 %v1919_v34  ;;  %1838 = vmatmul.mubr.bf16.gmra.mrb[24].mxu1 %v1920_v35 }
  0x63   : > { %1809 = vmatprep.mubr.bf16.mxu0 %v1921_v36  ;;  %1841 = vmatprep.mubr.bf16.mxu1 %v1922_v37 }
  0x6a   : > { %1810 = vmatmul.mubr.bf16.gmra.mrb[28].mxu0 %v1923_v38  ;;  %1842 = vmatmul.mubr.bf16.gmra.mrb[28].mxu1 %v1924_v39 }
 0x105   : > { %v1783_v41 = vpop.f32.mrb[0].mxu0  ;;  %v1815_v43 = vpop.f32.mrb[0].mxu1 }
 0x106   : > { %v904_v44 = vmul.f32 %v1783_v41, %v2056_v40  ;;  %v936_v45 = vmul.f32 %v1815_v43, %v2056_v40  ;;  %v640_v46 = vpop.f32.mrb[1].mxu0  ;;  %v768_v47 = vpop.f32.mrb[1].mxu1 }
 0x107   : > { %v902_v48 = vmul.f32 %v2056_v40, %v640_v46  ;;  %v934_v49 = vmul.f32 %v2056_v40, %v768_v47  ;;  %v1784_v50 = vpop.f32.mrb[2].mxu0  ;;  %v1816_v51 = vpop.f32.mrb[2].mxu1 }
 0x108   : > { %v975_v52 = vadd.f32 %v2058_v42, %v904_v44  ;;  %v1007_v53 = vadd.f32 %v2058_v42, %v936_v45  ;;  %v905_v54 = vmul.f32 %v1784_v50, %v2056_v40  ;;  %v937_v55 = vmul.f32 %v1816_v51, %v2056_v40  ;;  %v643_v56 = vpop.f32.mrb[3].mxu0  ;;  %v771_v57 = vpop.f32.mrb[3].mxu1 }
 0x109   : > { %v973_v58 = vadd.f32 %v2058_v42, %v902_v48  ;;  %v1005_v59 = vadd.f32 %v2058_v42, %v934_v49  ;;  %v903_v60 = vmul.f32 %v2056_v40, %v643_v56  ;;  %v935_v61 = vmul.f32 %v2056_v40, %v771_v57 }
 0x10a   : > { %v1039_v62 = vmax.f32 %v975_v52, 0.0  ;;  %v1071_v63 = vmax.f32 %v1007_v53, 0.0  ;;  %v976_v0 = vadd.f32 %v2058_v42, %v905_v54  ;;  %v1008_v1 = vadd.f32 %v2058_v42, %v937_v55 }
 0x10b   : > { %v1037_v2 = vmax.f32 %v973_v58, 0.0  ;;  %v1069_v3 = vmax.f32 %v1005_v59, 0.0  ;;  %v974_v4 = vadd.f32 %v2058_v42, %v903_v60  ;;  %v1006_v5 = vadd.f32 %v2058_v42, %v935_v61 }
 0x10c   : > { %v1663_v6 = vpack.c.bf16 %v1039_v62, %v1039_v62  ;;  %v1695_v7 = vpack.c.bf16 %v1071_v63, %v1071_v63  ;;  %v1040_v8 = vmax.f32 %v976_v0, 0.0  ;;  %v1072_v9 = vmax.f32 %v1008_v1, 0.0 }
 0x10d   : > { %v1661_v10 = vpack.c.bf16 %v1037_v2, %v1037_v2  ;;  %v1693_v11 = vpack.c.bf16 %v1069_v3, %v1069_v3  ;;  %v1038_v12 = vmax.f32 %v974_v4, 0.0  ;;  %v1070_v13 = vmax.f32 %v1006_v5, 0.0  ;;  %v1787_v14 = vpop.f32.mrb[4].mxu0  ;;  %v1819_v15 = vpop.f32.mrb[4].mxu1 }
 0x10e   : > { %1360 = vst.msk [vmem:[%s2079_s9 + $0x8] sm:$0xf] %vm1357_vm0, %v1663_v6  ;;  %1392 = vst.msk [vmem:[%s2079_s9 + $0x88] sm:$0xf] %vm1357_vm0, %v1695_v7  ;;  %v1664_v16 = vpack.c.bf16 %v1040_v8, %v1040_v8  ;;  %v1696_v17 = vpack.c.bf16 %v1072_v9, %v1072_v9  ;;  %v908_v18 = vmul.f32 %v1787_v14, %v2056_v40  ;;  %v656_v20 = vpop.f32.mrb[5].mxu0  ;;  %v784_v21 = vpop.f32.mrb[5].mxu1 }
 0x10f   : > { %v940_v19 = vmul.f32 %v1819_v15, %v2056_v40  ;;  %1358 = vst.msk [vmem:[%s2079_s9] sm:$0xf] %vm1357_vm0, %v1661_v10  ;;  %1390 = vst.msk [vmem:[%s2079_s9 + $0x80] sm:$0xf] %vm1357_vm0, %v1693_v11  ;;  %v1662_v22 = vpack.c.bf16 %v1038_v12, %v1038_v12  ;;  %v1694_v23 = vpack.c.bf16 %v1070_v13, %v1070_v13  ;;  %v1788_v26 = vpop.f32.mrb[6].mxu0  ;;  %v1820_v27 = vpop.f32.mrb[6].mxu1 }
 0x110   : > { %v906_v24 = vmul.f32 %v2056_v40, %v656_v20  ;;  %v938_v25 = vmul.f32 %v2056_v40, %v784_v21  ;;  %1361 = vst.msk [vmem:[%s2079_s9 + $0xc] sm:$0xf] %vm1357_vm0, %v1664_v16  ;;  %1393 = vst.msk [vmem:[%s2079_s9 + $0x8c] sm:$0xf] %vm1357_vm0, %v1696_v17  ;;  %v979_v28 = vadd.f32 %v2058_v42, %v908_v18  ;;  %v659_v32 = vpop.f32.mrb[7].mxu0  ;;  %v787_v33 = vpop.f32.mrb[7].mxu1 }
 0x111   : > { %v1011_v29 = vadd.f32 %v2058_v42, %v940_v19  ;;  %v909_v30 = vmul.f32 %v1788_v26, %v2056_v40  ;;  %v941_v31 = vmul.f32 %v1820_v27, %v2056_v40  ;;  %1359 = vst.msk [vmem:[%s2079_s9 + $0x4] sm:$0xf] %vm1357_vm0, %v1662_v22  ;;  %1391 = vst.msk [vmem:[%s2079_s9 + $0x84] sm:$0xf] %vm1357_vm0, %v1694_v23 }
 0x112   : > { %v977_v34 = vadd.f32 %v2058_v42, %v906_v24  ;;  %v1009_v35 = vadd.f32 %v2058_v42, %v938_v25  ;;  %v907_v36 = vmul.f32 %v2056_v40, %v659_v32  ;;  %v939_v37 = vmul.f32 %v2056_v40, %v787_v33 }
 0x113   : > { %v1043_v38 = vmax.f32 %v979_v28, 0.0  ;;  %v1075_v39 = vmax.f32 %v1011_v29, 0.0  ;;  %v980_v41 = vadd.f32 %v2058_v42, %v909_v30  ;;  %v1012_v43 = vadd.f32 %v2058_v42, %v941_v31 }
 0x114   : > { %v1041_v44 = vmax.f32 %v977_v34, 0.0  ;;  %v1073_v45 = vmax.f32 %v1009_v35, 0.0  ;;  %v978_v46 = vadd.f32 %v2058_v42, %v907_v36  ;;  %v1010_v47 = vadd.f32 %v2058_v42, %v939_v37 }
 0x115   : > { %v1667_v48 = vpack.c.bf16 %v1043_v38, %v1043_v38  ;;  %v1699_v49 = vpack.c.bf16 %v1075_v39, %v1075_v39  ;;  %v1044_v50 = vmax.f32 %v980_v41, 0.0  ;;  %v1076_v51 = vmax.f32 %v1012_v43, 0.0  ;;  %v1791_v56 = vpop.f32.mrb[8].mxu0  ;;  %v1823_v57 = vpop.f32.mrb[8].mxu1 }
 0x116   : > { %v1665_v52 = vpack.c.bf16 %v1041_v44, %v1041_v44  ;;  %v1697_v53 = vpack.c.bf16 %v1073_v45, %v1073_v45  ;;  %v1042_v54 = vmax.f32 %v978_v46, 0.0  ;;  %v1074_v55 = vmax.f32 %v1010_v47, 0.0  ;;  %v672_v62 = vpop.f32.mrb[9].mxu0  ;;  %v800_v63 = vpop.f32.mrb[9].mxu1 }
 0x117   : > { %1364 = vst.msk [vmem:[%s2079_s9 + $0x18] sm:$0xf] %vm1357_vm0, %v1667_v48  ;;  %1396 = vst.msk [vmem:[%s2079_s9 + $0x98] sm:$0xf] %vm1357_vm0, %v1699_v49  ;;  %v1668_v58 = vpack.c.bf16 %v1044_v50, %v1044_v50  ;;  %v1700_v59 = vpack.c.bf16 %v1076_v51, %v1076_v51  ;;  %v912_v60 = vmul.f32 %v1791_v56, %v2056_v40  ;;  %v1792_v4 = vpop.f32.mrb[10].mxu0  ;;  %v1824_v5 = vpop.f32.mrb[10].mxu1 }
 0x118   : > { %v944_v61 = vmul.f32 %v1823_v57, %v2056_v40  ;;  %1362 = vst.msk [vmem:[%s2079_s9 + $0x10] sm:$0xf] %vm1357_vm0, %v1665_v52  ;;  %1394 = vst.msk [vmem:[%s2079_s9 + $0x90] sm:$0xf] %vm1357_vm0, %v1697_v53  ;;  %v1666_v0 = vpack.c.bf16 %v1042_v54, %v1042_v54  ;;  %v1698_v1 = vpack.c.bf16 %v1074_v55, %v1074_v55  ;;  %v675_v10 = vpop.f32.mrb[11].mxu0  ;;  %v803_v11 = vpop.f32.mrb[11].mxu1 }
 0x119   : > { %v910_v2 = vmul.f32 %v2056_v40, %v672_v62  ;;  %v942_v3 = vmul.f32 %v2056_v40, %v800_v63  ;;  %1365 = vst.msk [vmem:[%s2079_s9 + $0x1c] sm:$0xf] %vm1357_vm0, %v1668_v58  ;;  %1397 = vst.msk [vmem:[%s2079_s9 + $0x9c] sm:$0xf] %vm1357_vm0, %v1700_v59  ;;  %v983_v6 = vadd.f32 %v2058_v42, %v912_v60 }
 0x11a   : > { %v1015_v7 = vadd.f32 %v2058_v42, %v944_v61  ;;  %v913_v8 = vmul.f32 %v1792_v4, %v2056_v40  ;;  %v945_v9 = vmul.f32 %v1824_v5, %v2056_v40  ;;  %1363 = vst.msk [vmem:[%s2079_s9 + $0x14] sm:$0xf] %vm1357_vm0, %v1666_v0  ;;  %1395 = vst.msk [vmem:[%s2079_s9 + $0x94] sm:$0xf] %vm1357_vm0, %v1698_v1 }
 0x11b   : > { %v981_v12 = vadd.f32 %v2058_v42, %v910_v2  ;;  %v1013_v13 = vadd.f32 %v2058_v42, %v942_v3  ;;  %v911_v14 = vmul.f32 %v2056_v40, %v675_v10  ;;  %v943_v15 = vmul.f32 %v2056_v40, %v803_v11 }
 0x11c   : > { %v1047_v16 = vmax.f32 %v983_v6, 0.0  ;;  %v1079_v17 = vmax.f32 %v1015_v7, 0.0  ;;  %v984_v18 = vadd.f32 %v2058_v42, %v913_v8  ;;  %v1016_v19 = vadd.f32 %v2058_v42, %v945_v9 }
 0x11d   : > { %v1045_v20 = vmax.f32 %v981_v12, 0.0  ;;  %v1077_v21 = vmax.f32 %v1013_v13, 0.0  ;;  %v982_v22 = vadd.f32 %v2058_v42, %v911_v14  ;;  %v1014_v23 = vadd.f32 %v2058_v42, %v943_v15  ;;  %v1795_v32 = vpop.f32.mrb[12].mxu0  ;;  %v1827_v33 = vpop.f32.mrb[12].mxu1 }
 0x11e   : > { %v1671_v24 = vpack.c.bf16 %v1047_v16, %v1047_v16  ;;  %v1703_v25 = vpack.c.bf16 %v1079_v17, %v1079_v17  ;;  %v1048_v26 = vmax.f32 %v984_v18, 0.0  ;;  %v1080_v27 = vmax.f32 %v1016_v19, 0.0  ;;  %v688_v38 = vpop.f32.mrb[13].mxu0  ;;  %v816_v39 = vpop.f32.mrb[13].mxu1 }
 0x11f   : > { %v1669_v28 = vpack.c.bf16 %v1045_v20, %v1045_v20  ;;  %v1701_v29 = vpack.c.bf16 %v1077_v21, %v1077_v21  ;;  %v1046_v30 = vmax.f32 %v982_v22, 0.0  ;;  %v1078_v31 = vmax.f32 %v1014_v23, 0.0  ;;  %v1796_v46 = vpop.f32.mrb[14].mxu0  ;;  %v1828_v47 = vpop.f32.mrb[14].mxu1 }
 0x120   : > { %1368 = vst.msk [vmem:[%s2079_s9 + $0x28] sm:$0xf] %vm1357_vm0, %v1671_v24  ;;  %1400 = vst.msk [vmem:[%s2079_s9 + $0xa8] sm:$0xf] %vm1357_vm0, %v1703_v25  ;;  %v1672_v34 = vpack.c.bf16 %v1048_v26, %v1048_v26  ;;  %v1704_v35 = vpack.c.bf16 %v1080_v27, %v1080_v27  ;;  %v916_v36 = vmul.f32 %v1795_v32, %v2056_v40  ;;  %v691_v52 = vpop.f32.mrb[15].mxu0  ;;  %v819_v53 = vpop.f32.mrb[15].mxu1 }
 0x121   : > { %v948_v37 = vmul.f32 %v1827_v33, %v2056_v40  ;;  %1366 = vst.msk [vmem:[%s2079_s9 + $0x20] sm:$0xf] %vm1357_vm0, %v1669_v28  ;;  %1398 = vst.msk [vmem:[%s2079_s9 + $0xa0] sm:$0xf] %vm1357_vm0, %v1701_v29  ;;  %v1670_v41 = vpack.c.bf16 %v1046_v30, %v1046_v30  ;;  %v1702_v43 = vpack.c.bf16 %v1078_v31, %v1078_v31 }
 0x122   : > { %v914_v44 = vmul.f32 %v2056_v40, %v688_v38  ;;  %v946_v45 = vmul.f32 %v2056_v40, %v816_v39  ;;  %1369 = vst.msk [vmem:[%s2079_s9 + $0x2c] sm:$0xf] %vm1357_vm0, %v1672_v34  ;;  %1401 = vst.msk [vmem:[%s2079_s9 + $0xac] sm:$0xf] %vm1357_vm0, %v1704_v35  ;;  %v987_v48 = vadd.f32 %v2058_v42, %v916_v36 }
 0x123   : > { %v1019_v49 = vadd.f32 %v2058_v42, %v948_v37  ;;  %v917_v50 = vmul.f32 %v1796_v46, %v2056_v40  ;;  %v949_v51 = vmul.f32 %v1828_v47, %v2056_v40  ;;  %1367 = vst.msk [vmem:[%s2079_s9 + $0x24] sm:$0xf] %vm1357_vm0, %v1670_v41  ;;  %1399 = vst.msk [vmem:[%s2079_s9 + $0xa4] sm:$0xf] %vm1357_vm0, %v1702_v43 }
 0x124   : > { %v985_v54 = vadd.f32 %v2058_v42, %v914_v44  ;;  %v1017_v55 = vadd.f32 %v2058_v42, %v946_v45  ;;  %v915_v56 = vmul.f32 %v2056_v40, %v691_v52  ;;  %v947_v57 = vmul.f32 %v2056_v40, %v819_v53 }
 0x125   : > { %v1051_v58 = vmax.f32 %v987_v48, 0.0  ;;  %v1083_v59 = vmax.f32 %v1019_v49, 0.0  ;;  %v988_v60 = vadd.f32 %v2058_v42, %v917_v50  ;;  %v1020_v61 = vadd.f32 %v2058_v42, %v949_v51  ;;  %v1799_v10 = vpop.f32.mrb[16].mxu0  ;;  %v1831_v11 = vpop.f32.mrb[16].mxu1 }
 0x126   : > { %v1049_v62 = vmax.f32 %v985_v54, 0.0  ;;  %v1081_v63 = vmax.f32 %v1017_v55, 0.0  ;;  %v986_v0 = vadd.f32 %v2058_v42, %v915_v56  ;;  %v1018_v1 = vadd.f32 %v2058_v42, %v947_v57  ;;  %v704_v16 = vpop.f32.mrb[17].mxu0  ;;  %v832_v17 = vpop.f32.mrb[17].mxu1 }
 0x127   : > { %v1675_v2 = vpack.c.bf16 %v1051_v58, %v1051_v58  ;;  %v1707_v3 = vpack.c.bf16 %v1083_v59, %v1083_v59  ;;  %v1052_v4 = vmax.f32 %v988_v60, 0.0  ;;  %v1084_v5 = vmax.f32 %v1020_v61, 0.0  ;;  %v1800_v22 = vpop.f32.mrb[18].mxu0  ;;  %v1832_v23 = vpop.f32.mrb[18].mxu1 }
 0x128   : > { %v1673_v6 = vpack.c.bf16 %v1049_v62, %v1049_v62  ;;  %v1705_v7 = vpack.c.bf16 %v1081_v63, %v1081_v63  ;;  %v1050_v8 = vmax.f32 %v986_v0, 0.0  ;;  %v1082_v9 = vmax.f32 %v1018_v1, 0.0  ;;  %v707_v28 = vpop.f32.mrb[19].mxu0  ;;  %v835_v29 = vpop.f32.mrb[19].mxu1 }
 0x129   : > { %1372 = vst.msk [vmem:[%s2079_s9 + $0x38] sm:$0xf] %vm1357_vm0, %v1675_v2  ;;  %1404 = vst.msk [vmem:[%s2079_s9 + $0xb8] sm:$0xf] %vm1357_vm0, %v1707_v3  ;;  %v1676_v12 = vpack.c.bf16 %v1052_v4, %v1052_v4  ;;  %v1708_v13 = vpack.c.bf16 %v1084_v5, %v1084_v5  ;;  %v920_v14 = vmul.f32 %v1799_v10, %v2056_v40 }
 0x12a   : > { %v952_v15 = vmul.f32 %v1831_v11, %v2056_v40  ;;  %1370 = vst.msk [vmem:[%s2079_s9 + $0x30] sm:$0xf] %vm1357_vm0, %v1673_v6  ;;  %1402 = vst.msk [vmem:[%s2079_s9 + $0xb0] sm:$0xf] %vm1357_vm0, %v1705_v7  ;;  %v1674_v18 = vpack.c.bf16 %v1050_v8, %v1050_v8  ;;  %v1706_v19 = vpack.c.bf16 %v1082_v9, %v1082_v9 }
 0x12b   : > { %v918_v20 = vmul.f32 %v2056_v40, %v704_v16  ;;  %v950_v21 = vmul.f32 %v2056_v40, %v832_v17  ;;  %1373 = vst.msk [vmem:[%s2079_s9 + $0x3c] sm:$0xf] %vm1357_vm0, %v1676_v12  ;;  %1405 = vst.msk [vmem:[%s2079_s9 + $0xbc] sm:$0xf] %vm1357_vm0, %v1708_v13  ;;  %v991_v24 = vadd.f32 %v2058_v42, %v920_v14 }
 0x12c   : > { %v1023_v25 = vadd.f32 %v2058_v42, %v952_v15  ;;  %v921_v26 = vmul.f32 %v1800_v22, %v2056_v40  ;;  %v953_v27 = vmul.f32 %v1832_v23, %v2056_v40  ;;  %1371 = vst.msk [vmem:[%s2079_s9 + $0x34] sm:$0xf] %vm1357_vm0, %v1674_v18  ;;  %1403 = vst.msk [vmem:[%s2079_s9 + $0xb4] sm:$0xf] %vm1357_vm0, %v1706_v19 }
 0x12d   : > { %v989_v30 = vadd.f32 %v2058_v42, %v918_v20  ;;  %v1021_v31 = vadd.f32 %v2058_v42, %v950_v21  ;;  %v919_v32 = vmul.f32 %v2056_v40, %v707_v28  ;;  %v951_v33 = vmul.f32 %v2056_v40, %v835_v29  ;;  %v1803_v52 = vpop.f32.mrb[20].mxu0  ;;  %v1835_v53 = vpop.f32.mrb[20].mxu1 }
 0x12e   : > { %v1055_v34 = vmax.f32 %v991_v24, 0.0  ;;  %v1087_v35 = vmax.f32 %v1023_v25, 0.0  ;;  %v992_v36 = vadd.f32 %v2058_v42, %v921_v26  ;;  %v1024_v37 = vadd.f32 %v2058_v42, %v953_v27  ;;  %v720_v58 = vpop.f32.mrb[21].mxu0  ;;  %v848_v59 = vpop.f32.mrb[21].mxu1 }
 0x12f   : > { %v1053_v38 = vmax.f32 %v989_v30, 0.0  ;;  %v1085_v39 = vmax.f32 %v1021_v31, 0.0  ;;  %v990_v41 = vadd.f32 %v2058_v42, %v919_v32  ;;  %v1022_v43 = vadd.f32 %v2058_v42, %v951_v33  ;;  %v1804_v0 = vpop.f32.mrb[22].mxu0  ;;  %v1836_v1 = vpop.f32.mrb[22].mxu1 }
 0x130   : > { %v1679_v44 = vpack.c.bf16 %v1055_v34, %v1055_v34  ;;  %v1711_v45 = vpack.c.bf16 %v1087_v35, %v1087_v35  ;;  %v1056_v46 = vmax.f32 %v992_v36, 0.0  ;;  %v1088_v47 = vmax.f32 %v1024_v37, 0.0  ;;  %v723_v6 = vpop.f32.mrb[23].mxu0  ;;  %v851_v7 = vpop.f32.mrb[23].mxu1 }
 0x131   : > { %v1677_v48 = vpack.c.bf16 %v1053_v38, %v1053_v38  ;;  %v1709_v49 = vpack.c.bf16 %v1085_v39, %v1085_v39  ;;  %v1054_v50 = vmax.f32 %v990_v41, 0.0  ;;  %v1086_v51 = vmax.f32 %v1022_v43, 0.0 }
 0x132   : > { %1376 = vst.msk [vmem:[%s2079_s9 + $0x48] sm:$0xf] %vm1357_vm0, %v1679_v44  ;;  %1408 = vst.msk [vmem:[%s2079_s9 + $0xc8] sm:$0xf] %vm1357_vm0, %v1711_v45  ;;  %v1680_v54 = vpack.c.bf16 %v1056_v46, %v1056_v46  ;;  %v1712_v55 = vpack.c.bf16 %v1088_v47, %v1088_v47  ;;  %v924_v56 = vmul.f32 %v1803_v52, %v2056_v40 }
 0x133   : > { %v956_v57 = vmul.f32 %v1835_v53, %v2056_v40  ;;  %1374 = vst.msk [vmem:[%s2079_s9 + $0x40] sm:$0xf] %vm1357_vm0, %v1677_v48  ;;  %1406 = vst.msk [vmem:[%s2079_s9 + $0xc0] sm:$0xf] %vm1357_vm0, %v1709_v49  ;;  %v1678_v60 = vpack.c.bf16 %v1054_v50, %v1054_v50  ;;  %v1710_v61 = vpack.c.bf16 %v1086_v51, %v1086_v51 }
 0x134   : > { %v922_v62 = vmul.f32 %v2056_v40, %v720_v58  ;;  %v954_v63 = vmul.f32 %v2056_v40, %v848_v59  ;;  %1377 = vst.msk [vmem:[%s2079_s9 + $0x4c] sm:$0xf] %vm1357_vm0, %v1680_v54  ;;  %1409 = vst.msk [vmem:[%s2079_s9 + $0xcc] sm:$0xf] %vm1357_vm0, %v1712_v55  ;;  %v995_v2 = vadd.f32 %v2058_v42, %v924_v56 }
 0x135   : > { %v1027_v3 = vadd.f32 %v2058_v42, %v956_v57  ;;  %v925_v4 = vmul.f32 %v1804_v0, %v2056_v40  ;;  %v957_v5 = vmul.f32 %v1836_v1, %v2056_v40  ;;  %1375 = vst.msk [vmem:[%s2079_s9 + $0x44] sm:$0xf] %vm1357_vm0, %v1678_v60  ;;  %1407 = vst.msk [vmem:[%s2079_s9 + $0xc4] sm:$0xf] %vm1357_vm0, %v1710_v61  ;;  %v1807_v28 = vpop.f32.mrb[24].mxu0  ;;  %v1839_v29 = vpop.f32.mrb[24].mxu1 }
 0x136   : > { %v993_v8 = vadd.f32 %v2058_v42, %v922_v62  ;;  %v1025_v9 = vadd.f32 %v2058_v42, %v954_v63  ;;  %v923_v10 = vmul.f32 %v2056_v40, %v723_v6  ;;  %v955_v11 = vmul.f32 %v2056_v40, %v851_v7  ;;  %v736_v34 = vpop.f32.mrb[25].mxu0  ;;  %v864_v35 = vpop.f32.mrb[25].mxu1 }
 0x137   : > { %v1059_v12 = vmax.f32 %v995_v2, 0.0  ;;  %v1091_v13 = vmax.f32 %v1027_v3, 0.0  ;;  %v996_v14 = vadd.f32 %v2058_v42, %v925_v4  ;;  %v1028_v15 = vadd.f32 %v2058_v42, %v957_v5  ;;  %v1808_v41 = vpop.f32.mrb[26].mxu0  ;;  %v1840_v43 = vpop.f32.mrb[26].mxu1 }
 0x138   : > { %v1057_v16 = vmax.f32 %v993_v8, 0.0  ;;  %v1089_v17 = vmax.f32 %v1025_v9, 0.0  ;;  %v994_v18 = vadd.f32 %v2058_v42, %v923_v10  ;;  %v1026_v19 = vadd.f32 %v2058_v42, %v955_v11  ;;  %v739_v48 = vpop.f32.mrb[27].mxu0  ;;  %v867_v49 = vpop.f32.mrb[27].mxu1 }
 0x139   : > { %v1683_v20 = vpack.c.bf16 %v1059_v12, %v1059_v12  ;;  %v1715_v21 = vpack.c.bf16 %v1091_v13, %v1091_v13  ;;  %v1060_v22 = vmax.f32 %v996_v14, 0.0  ;;  %v1092_v23 = vmax.f32 %v1028_v15, 0.0 }
 0x13a   : > { %v1681_v24 = vpack.c.bf16 %v1057_v16, %v1057_v16  ;;  %v1713_v25 = vpack.c.bf16 %v1089_v17, %v1089_v17  ;;  %v1058_v26 = vmax.f32 %v994_v18, 0.0  ;;  %v1090_v27 = vmax.f32 %v1026_v19, 0.0 }
 0x13b   : > { %1380 = vst.msk [vmem:[%s2079_s9 + $0x58] sm:$0xf] %vm1357_vm0, %v1683_v20  ;;  %1412 = vst.msk [vmem:[%s2079_s9 + $0xd8] sm:$0xf] %vm1357_vm0, %v1715_v21  ;;  %v1684_v30 = vpack.c.bf16 %v1060_v22, %v1060_v22  ;;  %v1716_v31 = vpack.c.bf16 %v1092_v23, %v1092_v23  ;;  %v928_v32 = vmul.f32 %v1807_v28, %v2056_v40 }
 0x13c   : > { %v960_v33 = vmul.f32 %v1839_v29, %v2056_v40  ;;  %1378 = vst.msk [vmem:[%s2079_s9 + $0x50] sm:$0xf] %vm1357_vm0, %v1681_v24  ;;  %1410 = vst.msk [vmem:[%s2079_s9 + $0xd0] sm:$0xf] %vm1357_vm0, %v1713_v25  ;;  %v1682_v36 = vpack.c.bf16 %v1058_v26, %v1058_v26  ;;  %v1714_v37 = vpack.c.bf16 %v1090_v27, %v1090_v27 }
 0x13d   : > { %v926_v38 = vmul.f32 %v2056_v40, %v736_v34  ;;  %v958_v39 = vmul.f32 %v2056_v40, %v864_v35  ;;  %1381 = vst.msk [vmem:[%s2079_s9 + $0x5c] sm:$0xf] %vm1357_vm0, %v1684_v30  ;;  %1413 = vst.msk [vmem:[%s2079_s9 + $0xdc] sm:$0xf] %vm1357_vm0, %v1716_v31  ;;  %v999_v44 = vadd.f32 %v2058_v42, %v928_v32  ;;  %v1811_v6 = vpop.f32.mrb[28].mxu0  ;;  %v1843_v7 = vpop.f32.mrb[28].mxu1 }
 0x13e   : > { %v1031_v45 = vadd.f32 %v2058_v42, %v960_v33  ;;  %v929_v46 = vmul.f32 %v1808_v41, %v2056_v40  ;;  %v961_v47 = vmul.f32 %v1840_v43, %v2056_v40  ;;  %1379 = vst.msk [vmem:[%s2079_s9 + $0x54] sm:$0xf] %vm1357_vm0, %v1682_v36  ;;  %1411 = vst.msk [vmem:[%s2079_s9 + $0xd4] sm:$0xf] %vm1357_vm0, %v1714_v37  ;;  %v752_v12 = vpop.f32.mrb[29].mxu0  ;;  %v880_v13 = vpop.f32.mrb[29].mxu1 }
 0x13f   : > { %v997_v50 = vadd.f32 %v2058_v42, %v926_v38  ;;  %v1029_v51 = vadd.f32 %v2058_v42, %v958_v39  ;;  %v927_v52 = vmul.f32 %v2056_v40, %v739_v48  ;;  %v959_v53 = vmul.f32 %v2056_v40, %v867_v49  ;;  %v1812_v18 = vpop.f32.mrb[30].mxu0  ;;  %v1844_v19 = vpop.f32.mrb[30].mxu1 }
 0x140   : > { %v1063_v54 = vmax.f32 %v999_v44, 0.0  ;;  %v1095_v55 = vmax.f32 %v1031_v45, 0.0  ;;  %v1000_v56 = vadd.f32 %v2058_v42, %v929_v46  ;;  %v1032_v57 = vadd.f32 %v2058_v42, %v961_v47  ;;  %v755_v24 = vpop.f32.mrb[31].mxu0  ;;  %v883_v25 = vpop.f32.mrb[31].mxu1 }
 0x141   : > { %v1061_v58 = vmax.f32 %v997_v50, 0.0  ;;  %v1093_v59 = vmax.f32 %v1029_v51, 0.0  ;;  %v998_v60 = vadd.f32 %v2058_v42, %v927_v52  ;;  %v1030_v61 = vadd.f32 %v2058_v42, %v959_v53 }
 0x142   : > { %v1687_v62 = vpack.c.bf16 %v1063_v54, %v1063_v54  ;;  %v1719_v63 = vpack.c.bf16 %v1095_v55, %v1095_v55  ;;  %v1064_v0 = vmax.f32 %v1000_v56, 0.0  ;;  %v1096_v1 = vmax.f32 %v1032_v57, 0.0 }
 0x143   : > { %v1685_v2 = vpack.c.bf16 %v1061_v58, %v1061_v58  ;;  %v1717_v3 = vpack.c.bf16 %v1093_v59, %v1093_v59  ;;  %v1062_v4 = vmax.f32 %v998_v60, 0.0  ;;  %v1094_v5 = vmax.f32 %v1030_v61, 0.0 }
 0x144   : > { %1384 = vst.msk [vmem:[%s2079_s9 + $0x68] sm:$0xf] %vm1357_vm0, %v1687_v62  ;;  %1416 = vst.msk [vmem:[%s2079_s9 + $0xe8] sm:$0xf] %vm1357_vm0, %v1719_v63  ;;  %v1688_v8 = vpack.c.bf16 %v1064_v0, %v1064_v0  ;;  %v1720_v9 = vpack.c.bf16 %v1096_v1, %v1096_v1  ;;  %v932_v10 = vmul.f32 %v1811_v6, %v2056_v40 }
 0x145   : > { %v964_v11 = vmul.f32 %v1843_v7, %v2056_v40  ;;  %1382 = vst.msk [vmem:[%s2079_s9 + $0x60] sm:$0xf] %vm1357_vm0, %v1685_v2  ;;  %1414 = vst.msk [vmem:[%s2079_s9 + $0xe0] sm:$0xf] %vm1357_vm0, %v1717_v3  ;;  %v1686_v14 = vpack.c.bf16 %v1062_v4, %v1062_v4  ;;  %v1718_v15 = vpack.c.bf16 %v1094_v5, %v1094_v5 }
 0x146   : > { %v930_v16 = vmul.f32 %v2056_v40, %v752_v12  ;;  %v962_v17 = vmul.f32 %v2056_v40, %v880_v13  ;;  %1385 = vst.msk [vmem:[%s2079_s9 + $0x6c] sm:$0xf] %vm1357_vm0, %v1688_v8  ;;  %1417 = vst.msk [vmem:[%s2079_s9 + $0xec] sm:$0xf] %vm1357_vm0, %v1720_v9  ;;  %v1003_v20 = vadd.f32 %v2058_v42, %v932_v10 }
 0x147   : > { %v1035_v21 = vadd.f32 %v2058_v42, %v964_v11  ;;  %v933_v22 = vmul.f32 %v1812_v18, %v2056_v40  ;;  %v965_v23 = vmul.f32 %v1844_v19, %v2056_v40  ;;  %1383 = vst.msk [vmem:[%s2079_s9 + $0x64] sm:$0xf] %vm1357_vm0, %v1686_v14  ;;  %1415 = vst.msk [vmem:[%s2079_s9 + $0xe4] sm:$0xf] %vm1357_vm0, %v1718_v15 }
 0x148   : > { %v1001_v26 = vadd.f32 %v2058_v42, %v930_v16  ;;  %v1033_v27 = vadd.f32 %v2058_v42, %v962_v17  ;;  %v931_v28 = vmul.f32 %v2056_v40, %v755_v24  ;;  %v963_v29 = vmul.f32 %v2056_v40, %v883_v25 }
 0x149   : > { %v1067_v30 = vmax.f32 %v1003_v20, 0.0  ;;  %v1099_v31 = vmax.f32 %v1035_v21, 0.0  ;;  %v1004_v32 = vadd.f32 %v2058_v42, %v933_v22  ;;  %v1036_v33 = vadd.f32 %v2058_v42, %v965_v23 }
 0x14a   : > { %v1065_v34 = vmax.f32 %v1001_v26, 0.0  ;;  %v1097_v35 = vmax.f32 %v1033_v27, 0.0  ;;  %v1002_v36 = vadd.f32 %v2058_v42, %v931_v28  ;;  %v1034_v37 = vadd.f32 %v2058_v42, %v963_v29 }
 0x14b   : > { %v1691_v38 = vpack.c.bf16 %v1067_v30, %v1067_v30  ;;  %v1723_v39 = vpack.c.bf16 %v1099_v31, %v1099_v31  ;;  %v1068_v40 = vmax.f32 %v1004_v32, 0.0  ;;  %v1100_v41 = vmax.f32 %v1036_v33, 0.0 }
 0x14c   : > { %v1689_v43 = vpack.c.bf16 %v1065_v34, %v1065_v34  ;;  %v1721_v44 = vpack.c.bf16 %v1097_v35, %v1097_v35  ;;  %v1066_v45 = vmax.f32 %v1002_v36, 0.0  ;;  %v1098_v46 = vmax.f32 %v1034_v37, 0.0 }
 0x14d   : > { %1388 = vst.msk [vmem:[%s2079_s9 + $0x78] sm:$0xf] %vm1357_vm0, %v1691_v38  ;;  %1420 = vst.msk [vmem:[%s2079_s9 + $0xf8] sm:$0xf] %vm1357_vm0, %v1723_v39  ;;  %v1692_v47 = vpack.c.bf16 %v1068_v40, %v1068_v40  ;;  %v1724_v48 = vpack.c.bf16 %v1100_v41, %v1100_v41 }
 0x14e   : > { %1386 = vst.msk [vmem:[%s2079_s9 + $0x70] sm:$0xf] %vm1357_vm0, %v1689_v43  ;;  %1418 = vst.msk [vmem:[%s2079_s9 + $0xf0] sm:$0xf] %vm1357_vm0, %v1721_v44  ;;  %v1690_v42 = vpack.c.bf16 %v1066_v45, %v1066_v45  ;;  %v1722_v49 = vpack.c.bf16 %v1098_v46, %v1098_v46 }
 0x14f   : > { %1389 = vst.msk [vmem:[%s2079_s9 + $0x7c] sm:$0xf] %vm1357_vm0, %v1692_v47  ;;  %1421 = vst.msk [vmem:[%s2079_s9 + $0xfc] sm:$0xf] %vm1357_vm0, %v1724_v48 }
 0x150   : > { %1387 = vst.msk [vmem:[%s2079_s9 + $0x74] sm:$0xf] %vm1357_vm0, %v1690_v42  ;;  %1419 = vst.msk [vmem:[%s2079_s9 + $0xf4] sm:$0xf] %vm1357_vm0, %v1722_v49 }
 0x151 PF: > { %s14_s17 = sadd.s32 1, %s1947_s17   ;;  %s2337_s15 = smov %s1943_s16 }
 0x152   : > { %p11_p5 = scmp.ge.s32.totalorder %s14_s17, 4   ;;  %s2338_s16 = smov %s2340_s18 }
 0x154   :  { %13 = sbr.rel (!%p11_p5) target bundleno = 2 (0x2), region = 75 }

// kernel: mmaml_convnet3_forward.5
= control target key start
LH: loop header
LB: loop body
LE: loop exit
PB: predicated region body
PF: predicated region fallthrough
CT: control target
= control target key end

     0   :  { %s8097_s15 = smov 0   ;;  %s8099_s16 = smov 0   ;;  %s9354_s0 = inlined_call_operand.vmem [shape: bf16[2,512,1664], index: 0, kind: input, shape index: {}]   ;;  %s9355_s1 = inlined_call_operand.vmem [shape: bf16[2,1664,128], index: 1, kind: input, shape index: {}]   ;;  %s9356_s2 = inlined_call_operand.vmem [shape: f32[2,1,128], index: 2, kind: input, shape index: {}]   ;;  %s9357_s3 = inlined_call_operand.vmem [shape: f32[2,1,128], index: 3, kind: input, shape index: {}]   ;;  %s9358_s4 = inlined_call_operand.vmem [shape: f32[2,512,128], index: 4, kind: output, shape index: {}]  }
   0x1   :  { %s8101_s17 = smov 0  }
   0x2 LB: > { %s26_s18 = sadd.s32 1, %s8065_s16  ;;  %p6034_p0 = scmp.ge.s32.totalorder %s8069_s17, 1  ;;  %s8069_s17 = sphi %s8101_s17, %s14_s17   ;;  %s8065_s16 = sphi %s8099_s16, %s9388_s16   ;;  %s8061_s15 = sphi %s8097_s15, %s9387_s15  }
   0x3   : > { %p28_p1 = scmp.ge.s32.totalorder %s26_s18, 2  ;;  %p210_p2 = scmp.lt.s32.totalorder %s8069_s17, 3 }
   0x5   : > { %s9390_s18 = smov (%p28_p1, %s26_s18), 0  ;;  %p211_p3 = pnand %p6034_p0, %p210_p2 }
   0x7   : > { %214 = sbr.rel (%p211_p3) target bundleno = 1132 (0x46c), region = 36 }
   0xe   : > { %p257_p4 = scmp.lt.s32.totalorder %s8061_s15, 1  ;;  %v8071_v0 = vmov 0  }
   0xf   : > { %3681 = vmatprep.subr.bf16.mxu1 %v8071_v0  ;;  %4259 = vmatprep.subr.bf16.mxu0 %v8071_v0 }
  0x10   : > { %s9392_s15 = smov (!%p257_p4, %s8061_s15), 1 }
  0x11   : > { %s7293_s19 = smul.u32 832, %s9392_s15  ;;  %s274_s29 = scalar_lea.vmem %s9356_s2, %s9392_s15 }
  0x12   : > { %s7292_s23 = smul.u32 3328, %s9392_s15  ;;  %s277_s6 = scalar_lea.vmem %s9357_s3, %s9392_s15 }
  0x13   : > { %s8123_s22 = scalar_lea.vmem %s9355_s1, %s7293_s19  ;;  %s6563_s7 = sshll.u32 %s9392_s15, 9 }
  0x14   : > { %v7319_v1 = vld [vmem:[%s8123_s22] sm:$0xff]   ;;  %v7321_v3 = vld [vmem:[%s8123_s22 + $0x8] sm:$0xff]   ;;  %v7323_v5 = vld [vmem:[%s8123_s22 + $0x10] sm:$0xff]   ;;  %s8160_s26 = scalar_lea.vmem %s9354_s0, %s7292_s23  ;;  %s9028_s10 = scalar_lea.vmem %s9358_s4, %s6563_s7 }
  0x15   : > { %v7320_v2 = vld [vmem:[%s8123_s22 + $0x100] sm:$0xff]   ;;  %3682 = vmatpush1.bf16.msra.mxu1 %v7319_v1  ;;  %v7322_v4 = vld [vmem:[%s8123_s22 + $0x108] sm:$0xff]   ;;  %v7324_v6 = vld [vmem:[%s8123_s22 + $0x110] sm:$0xff]  }
  0x16   : > { %4260 = vmatpush1.bf16.msra.mxu0 %v7320_v2  ;;  %3683 = vmatprep.subr.bf16.mxu1 %v8071_v0  ;;  %v7325_v7 = vld [vmem:[%s8123_s22 + $0x18] sm:$0xff]   ;;  %v7327_v9 = vld [vmem:[%s8123_s22 + $0x20] sm:$0xff]   ;;  %v7329_v11 = vld [vmem:[%s8123_s22 + $0x28] sm:$0xff]  }
  0x17   : > { %4261 = vmatprep.subr.bf16.mxu0 %v8071_v0  ;;  %v7326_v8 = vld [vmem:[%s8123_s22 + $0x118] sm:$0xff]   ;;  %v7328_v10 = vld [vmem:[%s8123_s22 + $0x120] sm:$0xff]   ;;  %v7330_v12 = vld [vmem:[%s8123_s22 + $0x128] sm:$0xff]  }
  0x18   : > { %v7331_v13 = vld [vmem:[%s8123_s22 + $0x30] sm:$0xff]   ;;  %v7333_v15 = vld [vmem:[%s8123_s22 + $0x38] sm:$0xff]   ;;  %v7335_v17 = vld [vmem:[%s8123_s22 + $0x40] sm:$0xff]  }
  0x19   : > { %3684 = vmatpush1.bf16.msra.mxu1 %v7321_v3  ;;  %v7332_v14 = vld [vmem:[%s8123_s22 + $0x130] sm:$0xff]   ;;  %v7334_v16 = vld [vmem:[%s8123_s22 + $0x138] sm:$0xff]   ;;  %v7336_v18 = vld [vmem:[%s8123_s22 + $0x140] sm:$0xff]  }
  0x1a   : > { %4262 = vmatpush1.bf16.msra.mxu0 %v7322_v4  ;;  %3685 = vmatprep.subr.bf16.mxu1 %v8071_v0  ;;  %v7353_v19 = vld [vmem:[%s8160_s26 + $0x4] ss:$52 sps:$4 sm:$0xff]   ;;  %v7337_v20 = vld [vmem:[%s8123_s22 + $0x48] sm:$0xff]   ;;  %v7339_v23 = vld [vmem:[%s8123_s22 + $0x50] sm:$0xff]  }
  0x1b   : > { %4263 = vmatprep.subr.bf16.mxu0 %v8071_v0  ;;  %v7356_v21 = vld [vmem:[%s8160_s26 + $0x14] ss:$52 sps:$4 sm:$0xff]   ;;  %3713 = vmatprep.mubr.bf16.mxu1 %v7353_v19  ;;  %v7341_v25 = vld [vmem:[%s8123_s22 + $0x58] sm:$0xff]   ;;  %v7343_v27 = vld [vmem:[%s8123_s22 + $0x60] sm:$0xff]  }
  0x1c   : > { %v7338_v22 = vld [vmem:[%s8123_s22 + $0x148] sm:$0xff]   ;;  %4291 = vmatprep.mubr.bf16.mxu0 %v7356_v21  ;;  %v7340_v24 = vld [vmem:[%s8123_s22 + $0x150] sm:$0xff]   ;;  %v7342_v26 = vld [vmem:[%s8123_s22 + $0x158] sm:$0xff]  }
  0x1d   : > { %3686 = vmatpush1.bf16.msra.mxu1 %v7323_v5  ;;  %v7344_v28 = vld [vmem:[%s8123_s22 + $0x160] sm:$0xff]   ;;  %v7345_v29 = vld [vmem:[%s8123_s22 + $0x68] sm:$0xff]   ;;  %v7347_v31 = vld [vmem:[%s8123_s22 + $0x70] sm:$0xff]  }
  0x1e   : > { %4264 = vmatpush1.bf16.msra.mxu0 %v7324_v6  ;;  %3687 = vmatprep.subr.bf16.mxu1 %v8071_v0  ;;  %v7346_v30 = vld [vmem:[%s8123_s22 + $0x168] sm:$0xff]   ;;  %v7348_v32 = vld [vmem:[%s8123_s22 + $0x170] sm:$0xff]   ;;  %v7349_v33 = vld [vmem:[%s8123_s22 + $0x78] sm:$0xff]  }
  0x1f   : > { %4265 = vmatprep.subr.bf16.mxu0 %v8071_v0  ;;  %v7350_v34 = vld [vmem:[%s8123_s22 + $0x178] sm:$0xff]   ;;  %v7351_v35 = vld [vmem:[%s8160_s26] ss:$52 sps:$4 sm:$0xff]   ;;  %v7354_v36 = vld [vmem:[%s8160_s26 + $0x10] ss:$52 sps:$4 sm:$0xff]  }
  0x20   : > { %v7357_v37 = vld [vmem:[%s8123_s22 + $0x180] sm:$0xff]   ;;  %v7362_v40 = vld [vmem:[%s8160_s26 + $0x7c] ss:$52 sps:$4 sm:$0xff]   ;;  %v7375_v41 = vld [vmem:[%s8123_s22 + $0x88] sm:$0xff]  }
  0x21   : > { %3688 = vmatpush1.bf16.msra.mxu1 %v7325_v7  ;;  %v7358_v38 = vld [vmem:[%s8123_s22 + $0x80] sm:$0xff]   ;;  %v7359_v42 = vld [vmem:[%s8123_s22 + $0x188] sm:$0xff]   ;;  %v7366_v45 = vld [vmem:[%s8123_s22 + $0x190] sm:$0xff]  }
  0x22   : > { %4266 = vmatpush1.bf16.msra.mxu0 %v7326_v8  ;;  %3689 = vmatprep.subr.bf16.mxu1 %v8071_v0  ;;  %v7360_v39 = vld [vmem:[%s8160_s26 + $0x6c] ss:$52 sps:$4 sm:$0xff]   ;;  %v7364_v43 = vld [vmem:[%s8160_s26 + $0x68] ss:$52 sps:$4 sm:$0xff]   ;;  %v7370_v47 = vld [vmem:[%s8160_s26 + $0xe4] ss:$52 sps:$4 sm:$0xff]  }
  0x23   : > { %4267 = vmatprep.subr.bf16.mxu0 %v8071_v0  ;;  %v7365_v44 = vld [vmem:[%s8160_s26 + $0x78] ss:$52 sps:$4 sm:$0xff]   ;;  %v7368_v46 = vld [vmem:[%s8160_s26 + $0xd4] ss:$52 sps:$4 sm:$0xff]   ;;  %v7372_v50 = vld [vmem:[%s8160_s26 + $0xd0] ss:$52 sps:$4 sm:$0xff]  }
  0x24   : > { %v7392_v48 = vld [vmem:[%s8123_s22 + $0x90] sm:$0xff]   ;;  %v7367_v49 = vld [vmem:[%s8123_s22 + $0x198] sm:$0xff]   ;;  %v7374_v53 = vld [vmem:[%s8123_s22 + $0x1a0] sm:$0xff]  }
  0x25   : > { %3690 = vmatpush1.bf16.msra.mxu1 %v7327_v9  ;;  %v7373_v51 = vld [vmem:[%s8160_s26 + $0xe0] ss:$52 sps:$4 sm:$0xff]   ;;  %v7409_v52 = vld [vmem:[%s8123_s22 + $0x98] sm:$0xff]   ;;  %v7376_v57 = vld [vmem:[%s8123_s22 + $0x1a8] sm:$0xff]  }
  0x26   : > { %4268 = vmatpush1.bf16.msra.mxu0 %v7328_v10  ;;  %3691 = vmatprep.subr.bf16.mxu1 %v8071_v0  ;;  %v7377_v54 = vld [vmem:[%s8160_s26 + $0x13c] ss:$52 sps:$4 sm:$0xff]   ;;  %v7379_v55 = vld [vmem:[%s8160_s26 + $0x14c] ss:$52 sps:$4 sm:$0xff]   ;;  %v7385_v61 = vld [vmem:[%s8160_s26 + $0x1a4] ss:$52 sps:$4 sm:$0xff]  }
  0x27   : > { %4269 = vmatprep.subr.bf16.mxu0 %v8071_v0  ;;  %v7426_v56 = vld [vmem:[%s8123_s22 + $0xa0] sm:$0xff]   ;;  %v7381_v58 = vld [vmem:[%s8160_s26 + $0x138] ss:$52 sps:$4 sm:$0xff]   ;;  %v7382_v59 = vld [vmem:[%s8160_s26 + $0x148] ss:$52 sps:$4 sm:$0xff]  }
  0x28   : > { %v7440_v60 = vld [vmem:[%s8123_s22 + $0xa8] sm:$0xff]   ;;  %v7383_v62 = vld [vmem:[%s8123_s22 + $0x1b0] sm:$0xff]   ;;  %v7384_v1 = vld [vmem:[%s8123_s22 + $0x1b8] sm:$0xff]  }
  0x29   : > { %3692 = vmatpush1.bf16.msra.mxu1 %v7329_v11  ;;  %v7387_v63 = vld [vmem:[%s8160_s26 + $0x1b4] ss:$52 sps:$4 sm:$0xff]   ;;  %v7390_v4 = vld [vmem:[%s8160_s26 + $0x1b0] ss:$52 sps:$4 sm:$0xff]   ;;  %v7394_v6 = vld [vmem:[%s8160_s26 + $0x20c] ss:$52 sps:$4 sm:$0xff]  }
  0x2a   : > { %4270 = vmatpush1.bf16.msra.mxu0 %v7330_v12  ;;  %3693 = vmatprep.subr.bf16.mxu1 %v8071_v0  ;;  %v7389_v2 = vld [vmem:[%s8160_s26 + $0x1a0] ss:$52 sps:$4 sm:$0xff]   ;;  %v7396_v7 = vld [vmem:[%s8160_s26 + $0x21c] ss:$52 sps:$4 sm:$0xff]   ;;  %v7393_v8 = vld [vmem:[%s8123_s22 + $0x1c8] sm:$0xff]  }
  0x2b   : > { %4271 = vmatprep.subr.bf16.mxu0 %v8071_v0  ;;  %v7454_v3 = vld [vmem:[%s8123_s22 + $0xb0] sm:$0xff]   ;;  %v7391_v5 = vld [vmem:[%s8123_s22 + $0x1c0] sm:$0xff]   ;;  %v7468_v9 = vld [vmem:[%s8123_s22 + $0xb8] sm:$0xff]  }
  0x2c   : > { %v7398_v10 = vld [vmem:[%s8160_s26 + $0x208] ss:$52 sps:$4 sm:$0xff]   ;;  %v7399_v11 = vld [vmem:[%s8160_s26 + $0x218] ss:$52 sps:$4 sm:$0xff]   ;;  %v7400_v12 = vld [vmem:[%s8123_s22 + $0x1d0] sm:$0xff]  }
  0x2d   : > { %3694 = vmatpush1.bf16.msra.mxu1 %v7331_v13  ;;  %v7402_v13 = vld [vmem:[%s8160_s26 + $0x274] ss:$52 sps:$4 sm:$0xff]   ;;  %v7408_v19 = vld [vmem:[%s8123_s22 + $0x1e0] sm:$0xff]  }
  0x2e   : > { %4272 = vmatpush1.bf16.msra.mxu0 %v7332_v14  ;;  %3695 = vmatprep.subr.bf16.mxu1 %v8071_v0  ;;  %v7404_v14 = vld [vmem:[%s8160_s26 + $0x284] ss:$52 sps:$4 sm:$0xff]   ;;  %v7413_v21 = vld [vmem:[%s8160_s26 + $0x2ec] ss:$52 sps:$4 sm:$0xff]  }
  0x2f   : > { %4273 = vmatprep.subr.bf16.mxu0 %v8071_v0 }
  0x31   : > { %3696 = vmatpush1.bf16.msra.mxu1 %v7333_v15  ;;  %v7401_v15 = vld [vmem:[%s8123_s22 + $0x1d8] sm:$0xff]  }
  0x32   : > { %4274 = vmatpush1.bf16.msra.mxu0 %v7334_v16  ;;  %3697 = vmatprep.subr.bf16.mxu1 %v8071_v0  ;;  %v7482_v16 = vld [vmem:[%s8123_s22 + $0xc0] sm:$0xff]  }
  0x33   : > { %4275 = vmatprep.subr.bf16.mxu0 %v8071_v0 }
  0x35   : > { %3698 = vmatpush1.bf16.msra.mxu1 %v7335_v17  ;;  %v7406_v17 = vld [vmem:[%s8160_s26 + $0x270] ss:$52 sps:$4 sm:$0xff]  }
  0x36   : > { %4276 = vmatpush1.bf16.msra.mxu0 %v7336_v18  ;;  %3699 = vmatprep.subr.bf16.mxu1 %v8071_v0  ;;  %v7407_v18 = vld [vmem:[%s8160_s26 + $0x280] ss:$52 sps:$4 sm:$0xff]  }
  0x37   : > { %4277 = vmatprep.subr.bf16.mxu0 %v8071_v0 }
  0x39   : > { %3700 = vmatpush1.bf16.msra.mxu1 %v7337_v20  ;;  %v7411_v20 = vld [vmem:[%s8160_s26 + $0x2dc] ss:$52 sps:$4 sm:$0xff]  }
  0x3a   : > { %4278 = vmatpush1.bf16.msra.mxu0 %v7338_v22  ;;  %3701 = vmatprep.subr.bf16.mxu1 %v8071_v0  ;;  %v7496_v22 = vld [vmem:[%s8123_s22 + $0xc8] sm:$0xff]  }
  0x3b   : > { %4279 = vmatprep.subr.bf16.mxu0 %v8071_v0 }
  0x3d   : > { %3702 = vmatpush1.bf16.msra.mxu1 %v7339_v23  ;;  %v7410_v23 = vld [vmem:[%s8123_s22 + $0x1e8] sm:$0xff]  }
  0x3e   : > { %4280 = vmatpush1.bf16.msra.mxu0 %v7340_v24  ;;  %3703 = vmatprep.subr.bf16.mxu1 %v8071_v0  ;;  %v7415_v24 = vld [vmem:[%s8160_s26 + $0x2d8] ss:$52 sps:$4 sm:$0xff]  }
  0x3f   : > { %4281 = vmatprep.subr.bf16.mxu0 %v8071_v0 }
  0x41   : > { %3704 = vmatpush1.bf16.msra.mxu1 %v7341_v25  ;;  %v7416_v25 = vld [vmem:[%s8160_s26 + $0x2e8] ss:$52 sps:$4 sm:$0xff]  }
  0x42   : > { %4282 = vmatpush1.bf16.msra.mxu0 %v7342_v26  ;;  %3705 = vmatprep.subr.bf16.mxu1 %v8071_v0  ;;  %v7419_v26 = vld [vmem:[%s8160_s26 + $0x344] ss:$52 sps:$4 sm:$0xff]  }
  0x43   : > { %4283 = vmatprep.subr.bf16.mxu0 %v8071_v0 }
  0x45   : > { %3706 = vmatpush1.bf16.msra.mxu1 %v7343_v27  ;;  %v7417_v27 = vld [vmem:[%s8123_s22 + $0x1f0] sm:$0xff]  }
  0x46   : > { %4284 = vmatpush1.bf16.msra.mxu0 %v7344_v28  ;;  %3707 = vmatprep.subr.bf16.mxu1 %v8071_v0  ;;  %v7423_v28 = vld [vmem:[%s8160_s26 + $0x1c] ss:$52 sps:$4 sm:$0xff]  }
  0x47   : > { %4285 = vmatprep.subr.bf16.mxu0 %v8071_v0 }
  0x49   : > { %3708 = vmatpush1.bf16.msra.mxu1 %v7345_v29  ;;  %v7510_v29 = vld [vmem:[%s8123_s22 + $0xd0] sm:$0xff]  }
  0x4a   : > { %4286 = vmatpush1.bf16.msra.mxu0 %v7346_v30  ;;  %3709 = vmatprep.subr.bf16.mxu1 %v8071_v0  ;;  %v7418_v30 = vld [vmem:[%s8123_s22 + $0x1f8] sm:$0xff]  }
  0x4b   : > { %4287 = vmatprep.subr.bf16.mxu0 %v8071_v0 }
  0x4d   : > { %3710 = vmatpush1.bf16.msra.mxu1 %v7347_v31  ;;  %v7421_v31 = vld [vmem:[%s8160_s26 + $0x18] ss:$52 sps:$4 sm:$0xff]  }
  0x4e   : > { %4288 = vmatpush1.bf16.msra.mxu0 %v7348_v32  ;;  %3711 = vmatprep.subr.bf16.mxu1 %v8071_v0  ;;  %v7424_v32 = vld [vmem:[%s8160_s26 + $0x340] ss:$52 sps:$4 sm:$0xff]  }
  0x4f   : > { %4289 = vmatprep.subr.bf16.mxu0 %v8071_v0 }
  0x51   : > { %3712 = vmatpush1.bf16.msra.mxu1 %v7349_v33  ;;  %v7425_v33 = vld [vmem:[%s8123_s22 + $0x200] sm:$0xff]  }
  0x52   : > { %4290 = vmatpush1.bf16.msra.mxu0 %v7350_v34  ;;  %3970 = vmatprep.subr.bf16.mxu1 %v8071_v0  ;;  %v7427_v34 = vld [vmem:[%s8160_s26 + $0x3ac] ss:$52 sps:$4 sm:$0xff]  }
  0x53   : > { %4548 = vmatprep.subr.bf16.mxu0 %v8071_v0 }
  0x54   : > { %3714 = vmatmul.mubr.bf16.vlgmr.msra.gmra.mrb[0].mxu1 %v7351_v35  ;;  %v7429_v35 = vld [vmem:[%s8160_s26 + $0x84] ss:$52 sps:$4 sm:$0xff]  }
  0x55   : > { %4292 = vmatmul.mubr.bf16.vlgmr.msra.gmra.mrb[0].mxu0 %v7354_v36  ;;  %3971 = vmatpush1.bf16.msra.mxu1 %v7358_v38  ;;  %v7524_v36 = vld [vmem:[%s8123_s22 + $0xd8] sm:$0xff]  }
  0x56   : > { %4549 = vmatpush1.bf16.msra.mxu0 %v7357_v37  ;;  %3721 = vmatprep.mubr.bf16.mxu1 %v7360_v39  ;;  %v7439_v37 = vld [vmem:[%s8123_s22 + $0x208] sm:$0xff]   ;;  %v7432_v39 = vld [vmem:[%s8160_s26 + $0x80] ss:$52 sps:$4 sm:$0xff]  }
  0x57   : > { %4550 = vmatprep.subr.bf16.mxu0 %v8071_v0  ;;  %4299 = vmatprep.mubr.bf16.mxu0 %v7362_v40  ;;  %v7431_v38 = vld [vmem:[%s8160_s26 + $0x3a8] ss:$52 sps:$4 sm:$0xff]  }
  0x58   : > { %3972 = vmatprep.subr.bf16.mxu1 %v8071_v0  ;;  %v7433_v40 = vld [vmem:[%s8160_s26 + $0x414] ss:$52 sps:$4 sm:$0xff]  }
  0x59   : > { %3973 = vmatpush1.bf16.msra.mxu1 %v7375_v41  ;;  %v7435_v41 = vld [vmem:[%s8160_s26 + $0xec] ss:$52 sps:$4 sm:$0xff]  }
  0x5a   : > { %4551 = vmatpush1.bf16.msra.mxu0 %v7359_v42  ;;  %3974 = vmatprep.subr.bf16.mxu1 %v8071_v0  ;;  %v7453_v42 = vld [vmem:[%s8123_s22 + $0x210] sm:$0xff]  }
  0x5b   : > { %4552 = vmatprep.subr.bf16.mxu0 %v8071_v0 }
  0x5c   : > { %3722 = vmatmul.mubr.bf16.gmra.mrb[4].mxu1 %v7364_v43  ;;  %v7538_v43 = vld [vmem:[%s8123_s22 + $0xe0] sm:$0xff]  }
  0x5d   : > { %4300 = vmatmul.mubr.bf16.gmra.mrb[4].mxu0 %v7365_v44  ;;  %3729 = vmatprep.mubr.bf16.mxu1 %v7368_v46  ;;  %v7437_v44 = vld [vmem:[%s8160_s26 + $0x410] ss:$52 sps:$4 sm:$0xff]   ;;  %v7438_v46 = vld [vmem:[%s8160_s26 + $0xe8] ss:$52 sps:$4 sm:$0xff]  }
  0x5e   : > { %4553 = vmatpush1.bf16.msra.mxu0 %v7366_v45  ;;  %4307 = vmatprep.mubr.bf16.mxu0 %v7370_v47  ;;  %v7467_v45 = vld [vmem:[%s8123_s22 + $0x218] sm:$0xff]  }
  0x5f   : > { %4554 = vmatprep.subr.bf16.mxu0 %v8071_v0  ;;  %3975 = vmatpush1.bf16.msra.mxu1 %v7392_v48  ;;  %v7441_v47 = vld [vmem:[%s8160_s26 + $0x47c] ss:$52 sps:$4 sm:$0xff]   ;;  %v7443_v48 = vld [vmem:[%s8160_s26 + $0x154] ss:$52 sps:$4 sm:$0xff]  }
  0x60   : > { %3976 = vmatprep.subr.bf16.mxu1 %v8071_v0 }
  0x62   : > { %4555 = vmatpush1.bf16.msra.mxu0 %v7367_v49  ;;  %v7481_v49 = vld [vmem:[%s8123_s22 + $0x220] sm:$0xff]  }
  0x63   : > { %4556 = vmatprep.subr.bf16.mxu0 %v8071_v0  ;;  %3977 = vmatpush1.bf16.msra.mxu1 %v7409_v52  ;;  %v7495_v52 = vld [vmem:[%s8123_s22 + $0x228] sm:$0xff]  }
  0x64   : > { %3730 = vmatmul.mubr.bf16.gmra.mrb[8].mxu1 %v7372_v50  ;;  %3978 = vmatprep.subr.bf16.mxu1 %v8071_v0  ;;  %v7552_v50 = vld [vmem:[%s8123_s22 + $0xe8] sm:$0xff]  }
  0x65   : > { %4308 = vmatmul.mubr.bf16.gmra.mrb[8].mxu0 %v7373_v51  ;;  %3737 = vmatprep.mubr.bf16.mxu1 %v7377_v54  ;;  %v7445_v51 = vld [vmem:[%s8160_s26 + $0x478] ss:$52 sps:$4 sm:$0xff]  }
  0x66   : > { %4557 = vmatpush1.bf16.msra.mxu0 %v7374_v53  ;;  %4315 = vmatprep.mubr.bf16.mxu0 %v7379_v55  ;;  %v7446_v53 = vld [vmem:[%s8160_s26 + $0x150] ss:$52 sps:$4 sm:$0xff]  }
  0x67   : > { %4558 = vmatprep.subr.bf16.mxu0 %v8071_v0  ;;  %3979 = vmatpush1.bf16.msra.mxu1 %v7426_v56  ;;  %v7447_v54 = vld [vmem:[%s8160_s26 + $0x4e4] ss:$52 sps:$4 sm:$0xff]   ;;  %v7449_v55 = vld [vmem:[%s8160_s26 + $0x1bc] ss:$52 sps:$4 sm:$0xff]  }
  0x68   : > { %3980 = vmatprep.subr.bf16.mxu1 %v8071_v0  ;;  %v7509_v56 = vld [vmem:[%s8123_s22 + $0x230] sm:$0xff]  }
  0x6a   : > { %4559 = vmatpush1.bf16.msra.mxu0 %v7376_v57  ;;  %v7451_v57 = vld [vmem:[%s8160_s26 + $0x4e0] ss:$52 sps:$4 sm:$0xff]  }
  0x6b   : > { %4560 = vmatprep.subr.bf16.mxu0 %v8071_v0  ;;  %3981 = vmatpush1.bf16.msra.mxu1 %v7440_v60  ;;  %v7455_v60 = vld [vmem:[%s8160_s26 + $0x54c] ss:$52 sps:$4 sm:$0xff]  }
  0x6c   : > { %3738 = vmatmul.mubr.bf16.gmra.mrb[12].mxu1 %v7381_v58  ;;  %3982 = vmatprep.subr.bf16.mxu1 %v8071_v0  ;;  %v7523_v58 = vld [vmem:[%s8123_s22 + $0x238] sm:$0xff]  }
  0x6d   : > { %4316 = vmatmul.mubr.bf16.gmra.mrb[12].mxu0 %v7382_v59  ;;  %3745 = vmatprep.mubr.bf16.mxu1 %v7385_v61  ;;  %v7452_v59 = vld [vmem:[%s8160_s26 + $0x1b8] ss:$52 sps:$4 sm:$0xff]  }
  0x6e   : > { %4561 = vmatpush1.bf16.msra.mxu0 %v7383_v62  ;;  %4323 = vmatprep.mubr.bf16.mxu0 %v7387_v63  ;;  %v7457_v61 = vld [vmem:[%s8160_s26 + $0x224] ss:$52 sps:$4 sm:$0xff]   ;;  %v7566_v63 = vld [vmem:[%s8123_s22 + $0xf0] sm:$0xff]  }
  0x6f   : > { %4562 = vmatprep.subr.bf16.mxu0 %v8071_v0  ;;  %3983 = vmatpush1.bf16.msra.mxu1 %v7454_v3  ;;  %v7537_v62 = vld [vmem:[%s8123_s22 + $0x240] sm:$0xff]  }
  0x70   : > { %3984 = vmatprep.subr.bf16.mxu1 %v8071_v0  ;;  %v7460_v3 = vld [vmem:[%s8160_s26 + $0x220] ss:$52 sps:$4 sm:$0xff]  }
  0x72   : > { %4563 = vmatpush1.bf16.msra.mxu0 %v7384_v1  ;;  %v7459_v1 = vld [vmem:[%s8160_s26 + $0x548] ss:$52 sps:$4 sm:$0xff]  }
  0x73   : > { %4564 = vmatprep.subr.bf16.mxu0 %v8071_v0  ;;  %3985 = vmatpush1.bf16.msra.mxu1 %v7468_v9  ;;  %v7469_v9 = vld [vmem:[%s8160_s26 + $0x61c] ss:$52 sps:$4 sm:$0xff]  }
  0x74   : > { %3746 = vmatmul.mubr.bf16.gmra.mrb[16].mxu1 %v7389_v2  ;;  %3986 = vmatprep.subr.bf16.mxu1 %v8071_v0  ;;  %v7551_v2 = vld [vmem:[%s8123_s22 + $0x248] sm:$0xff]  }
  0x75   : > { %4324 = vmatmul.mubr.bf16.gmra.mrb[16].mxu0 %v7390_v4  ;;  %3753 = vmatprep.mubr.bf16.mxu1 %v7394_v6  ;;  %v7461_v4 = vld [vmem:[%s8160_s26 + $0x5b4] ss:$52 sps:$4 sm:$0xff]  }
  0x76   : > { %4565 = vmatpush1.bf16.msra.mxu0 %v7391_v5  ;;  %4331 = vmatprep.mubr.bf16.mxu0 %v7396_v7  ;;  %v7463_v5 = vld [vmem:[%s8160_s26 + $0x28c] ss:$52 sps:$4 sm:$0xff]   ;;  %v7565_v6 = vld [vmem:[%s8123_s22 + $0x250] sm:$0xff]  }
  0x77   : > { %4566 = vmatprep.subr.bf16.mxu0 %v8071_v0  ;;  %3987 = vmatpush1.bf16.msra.mxu1 %v7482_v16  ;;  %v7465_v7 = vld [vmem:[%s8160_s26 + $0x5b0] ss:$52 sps:$4 sm:$0xff]  }
  0x78   : > { %3988 = vmatprep.subr.bf16.mxu1 %v8071_v0  ;;  %v7477_v16 = vld [vmem:[%s8160_s26 + $0x35c] ss:$52 sps:$4 sm:$0xff]  }
  0x7a   : > { %4567 = vmatpush1.bf16.msra.mxu0 %v7393_v8  ;;  %v7466_v8 = vld [vmem:[%s8160_s26 + $0x288] ss:$52 sps:$4 sm:$0xff]  }
  0x7b   : > { %4568 = vmatprep.subr.bf16.mxu0 %v8071_v0  ;;  %3989 = vmatpush1.bf16.msra.mxu1 %v7496_v22  ;;  %v7487_v22 = vld [vmem:[%s8160_s26 + $0x6e8] ss:$52 sps:$4 sm:$0xff]  }
  0x7c   : > { %3754 = vmatmul.mubr.bf16.gmra.mrb[20].mxu1 %v7398_v10  ;;  %3990 = vmatprep.subr.bf16.mxu1 %v8071_v0  ;;  %v7471_v10 = vld [vmem:[%s8160_s26 + $0x2f4] ss:$52 sps:$4 sm:$0xff]  }
  0x7d   : > { %4332 = vmatmul.mubr.bf16.gmra.mrb[20].mxu0 %v7399_v11  ;;  %3761 = vmatprep.mubr.bf16.mxu1 %v7402_v13  ;;  %v7579_v11 = vld [vmem:[%s8123_s22 + $0x258] sm:$0xff]  }
  0x7e   : > { %4569 = vmatpush1.bf16.msra.mxu0 %v7400_v12  ;;  %4339 = vmatprep.mubr.bf16.mxu0 %v7404_v14  ;;  %v7580_v12 = vld [vmem:[%s8123_s22 + $0xf8] sm:$0xff]   ;;  %v7474_v14 = vld [vmem:[%s8160_s26 + $0x2f0] ss:$52 sps:$4 sm:$0xff]  }
  0x7f   : > { %4570 = vmatprep.subr.bf16.mxu0 %v8071_v0  ;;  %3991 = vmatpush1.bf16.msra.mxu1 %v7510_v29  ;;  %v7473_v13 = vld [vmem:[%s8160_s26 + $0x618] ss:$52 sps:$4 sm:$0xff]   ;;  %v7499_v29 = vld [vmem:[%s8160_s26 + $0x494] ss:$52 sps:$4 sm:$0xff]  }
  0x80   : > { %3992 = vmatprep.subr.bf16.mxu1 %v8071_v0 }
  0x82   : > { %4571 = vmatpush1.bf16.msra.mxu0 %v7401_v15  ;;  %v7475_v15 = vld [vmem:[%s8160_s26 + $0x684] ss:$52 sps:$4 sm:$0xff]  }
  0x83   : > { %4572 = vmatprep.subr.bf16.mxu0 %v8071_v0  ;;  %3993 = vmatpush1.bf16.msra.mxu1 %v7524_v36  ;;  %v7508_v36 = vld [vmem:[%s8160_s26 + $0x4f8] ss:$52 sps:$4 sm:$0xff]  }
  0x84   : > { %3762 = vmatmul.mubr.bf16.gmra.mrb[24].mxu1 %v7406_v17  ;;  %3994 = vmatprep.subr.bf16.mxu1 %v8071_v0  ;;  %v7479_v17 = vld [vmem:[%s8160_s26 + $0x680] ss:$52 sps:$4 sm:$0xff]  }
  0x85   : > { %4340 = vmatmul.mubr.bf16.gmra.mrb[24].mxu0 %v7407_v18  ;;  %3769 = vmatprep.mubr.bf16.mxu1 %v7411_v20  ;;  %v7480_v18 = vld [vmem:[%s8160_s26 + $0x358] ss:$52 sps:$4 sm:$0xff]  }
  0x86   : > { %4573 = vmatpush1.bf16.msra.mxu0 %v7408_v19  ;;  %4347 = vmatprep.mubr.bf16.mxu0 %v7413_v21  ;;  %v7483_v19 = vld [vmem:[%s8160_s26 + $0x6ec] ss:$52 sps:$4 sm:$0xff]   ;;  %v7485_v20 = vld [vmem:[%s8160_s26 + $0x3c4] ss:$52 sps:$4 sm:$0xff]  }
  0x87   : > { %4574 = vmatprep.subr.bf16.mxu0 %v8071_v0  ;;  %3995 = vmatpush1.bf16.msra.mxu1 %v7538_v43  ;;  %v7593_v21 = vld [vmem:[%s8123_s22 + $0x260] sm:$0xff]  }
  0x88   : > { %3996 = vmatprep.subr.bf16.mxu1 %v8071_v0  ;;  %v7519_v43 = vld [vmem:[%s8160_s26 + $0x5cc] ss:$52 sps:$4 sm:$0xff]  }
  0x8a   : > { %4575 = vmatpush1.bf16.msra.mxu0 %v7410_v23  ;;  %v7488_v23 = vld [vmem:[%s8160_s26 + $0x3c0] ss:$52 sps:$4 sm:$0xff]  }
  0x8b   : > { %4576 = vmatprep.subr.bf16.mxu0 %v8071_v0  ;;  %3997 = vmatpush1.bf16.msra.mxu1 %v7552_v50  ;;  %v7530_v50 = vld [vmem:[%s8160_s26 + $0x630] ss:$52 sps:$4 sm:$0xff]  }
  0x8c   : > { %3770 = vmatmul.mubr.bf16.gmra.mrb[28].mxu1 %v7415_v24  ;;  %3998 = vmatprep.subr.bf16.mxu1 %v8071_v0  ;;  %v7489_v24 = vld [vmem:[%s8160_s26 + $0x754] ss:$52 sps:$4 sm:$0xff]  }
  0x8d   : > { %4348 = vmatmul.mubr.bf16.gmra.mrb[28].mxu0 %v7416_v25  ;;  %3777 = vmatprep.mubr.bf16.mxu1 %v7419_v26  ;;  %v7491_v25 = vld [vmem:[%s8160_s26 + $0x42c] ss:$52 sps:$4 sm:$0xff]   ;;  %v7493_v26 = vld [vmem:[%s8160_s26 + $0x750] ss:$52 sps:$4 sm:$0xff]  }
  0x8e   : > { %4577 = vmatpush1.bf16.msra.mxu0 %v7417_v27  ;;  %4580 = vmatprep.mubr.bf16.mxu0 %v7423_v28  ;;  %v7494_v27 = vld [vmem:[%s8160_s26 + $0x428] ss:$52 sps:$4 sm:$0xff]  }
  0x8f   : > { %4578 = vmatprep.subr.bf16.mxu0 %v8071_v0  ;;  %3999 = vmatpush1.bf16.msra.mxu1 %v7566_v63  ;;  %v7497_v28 = vld [vmem:[%s8160_s26 + $0x7bc] ss:$52 sps:$4 sm:$0xff]  }
  0x90   : > { %4000 = vmatprep.subr.bf16.mxu1 %v8071_v0  ;;  %v7553_v63 = vld [vmem:[%s8160_s26 + $0xafc] ss:$52 sps:$4 sm:$0xff]  }
  0x92   : > { %4579 = vmatpush1.bf16.msra.mxu0 %v7418_v30  ;;  %v7606_v30 = vld [vmem:[%s8123_s22 + $0x268] sm:$0xff]  }
  0x93   : > { %4837 = vmatprep.subr.bf16.mxu0 %v8071_v0  ;;  %4001 = vmatpush1.bf16.msra.mxu1 %v7580_v12  ;;  %v7573_v12 = vld [vmem:[%s8160_s26 + $0xc34] ss:$52 sps:$4 sm:$0xff]  }
  0x94   : > { %3778 = vmatmul.mubr.bf16.gmra.mrb[32].mxu1 %v7424_v32  ;;  %6684 = vmatprep.subr.bf16.mxu1 %v8071_v0  ;;  %v7502_v32 = vld [vmem:[%s8160_s26 + $0x490] ss:$52 sps:$4 sm:$0xff]  }
  0x95   : > { %4581 = vmatmul.mubr.bf16.vlgmr.msra.gmra.mrb[0].mxu0 %v7421_v31  ;;  %3785 = vmatprep.mubr.bf16.mxu1 %v7427_v34  ;;  %v7501_v31 = vld [vmem:[%s8160_s26 + $0x7b8] ss:$52 sps:$4 sm:$0xff]   ;;  %v7505_v34 = vld [vmem:[%s8160_s26 + $0x4fc] ss:$52 sps:$4 sm:$0xff]  }
  0x96   : > { %4838 = vmatpush1.bf16.msra.mxu0 %v7425_v33  ;;  %4588 = vmatprep.mubr.bf16.mxu0 %v7429_v35  ;;  %v7503_v33 = vld [vmem:[%s8160_s26 + $0x824] ss:$52 sps:$4 sm:$0xff]   ;;  %v7507_v35 = vld [vmem:[%s8160_s26 + $0x820] ss:$52 sps:$4 sm:$0xff]  }
  0x97   : > { %4839 = vmatprep.subr.bf16.mxu0 %v8071_v0 }
  0x9a   : > { %4840 = vmatpush1.bf16.msra.mxu0 %v7439_v37  ;;  %v7511_v37 = vld [vmem:[%s8160_s26 + $0x88c] ss:$52 sps:$4 sm:$0xff]  }
  0x9b   : > { %4841 = vmatprep.subr.bf16.mxu0 %v8071_v0 }
  0x9c   : > { %3786 = vmatmul.mubr.bf16.gmra.mrb[36].mxu1 %v7431_v38  ;;  %v7513_v38 = vld [vmem:[%s8160_s26 + $0x564] ss:$52 sps:$4 sm:$0xff]  }
  0x9d   : > { %4589 = vmatmul.mubr.bf16.gmra.mrb[4].mxu0 %v7432_v39  ;;  %3793 = vmatprep.mubr.bf16.mxu1 %v7433_v40  ;;  %v7619_v39 = vld [vmem:[%s8123_s22 + $0x270] sm:$0xff]   ;;  %v7515_v40 = vld [vmem:[%s8160_s26 + $0x888] ss:$52 sps:$4 sm:$0xff]  }
  0x9e   : > { %4596 = vmatprep.mubr.bf16.mxu0 %v7435_v41  ;;  %4842 = vmatpush1.bf16.msra.mxu0 %v7453_v42  ;;  %v7516_v41 = vld [vmem:[%s8160_s26 + $0x560] ss:$52 sps:$4 sm:$0xff]  }
  0x9f   : > { %4843 = vmatprep.subr.bf16.mxu0 %v8071_v0  ;;  %v7517_v42 = vld [vmem:[%s8160_s26 + $0x8f4] ss:$52 sps:$4 sm:$0xff]  }
  0xa2   : > { %4844 = vmatpush1.bf16.msra.mxu0 %v7467_v45  ;;  %v7522_v45 = vld [vmem:[%s8160_s26 + $0x5c8] ss:$52 sps:$4 sm:$0xff]  }
  0xa3   : > { %4845 = vmatprep.subr.bf16.mxu0 %v8071_v0 }
  0xa4   : > { %3794 = vmatmul.mubr.bf16.gmra.mrb[40].mxu1 %v7437_v44  ;;  %v7521_v44 = vld [vmem:[%s8160_s26 + $0x8f0] ss:$52 sps:$4 sm:$0xff]  }
  0xa5   : > { %4597 = vmatmul.mubr.bf16.gmra.mrb[8].mxu0 %v7438_v46  ;;  %3801 = vmatprep.mubr.bf16.mxu1 %v7441_v47  ;;  %v7525_v46 = vld [vmem:[%s8160_s26 + $0x95c] ss:$52 sps:$4 sm:$0xff]   ;;  %v7527_v47 = vld [vmem:[%s8160_s26 + $0x634] ss:$52 sps:$4 sm:$0xff]  }
  0xa6   : > { %4604 = vmatprep.mubr.bf16.mxu0 %v7443_v48  ;;  %4846 = vmatpush1.bf16.msra.mxu0 %v7481_v49  ;;  %v7632_v48 = vld [vmem:[%s8123_s22 + $0x278] sm:$0xff]  }
  0xa7   : > { %4847 = vmatprep.subr.bf16.mxu0 %v8071_v0  ;;  %v7529_v49 = vld [vmem:[%s8160_s26 + $0x958] ss:$52 sps:$4 sm:$0xff]  }
  0xaa   : > { %4848 = vmatpush1.bf16.msra.mxu0 %v7495_v52  ;;  %v7533_v52 = vld [vmem:[%s8160_s26 + $0x69c] ss:$52 sps:$4 sm:$0xff]  }
  0xab   : > { %4849 = vmatprep.subr.bf16.mxu0 %v8071_v0 }
  0xac   : > { %3802 = vmatmul.mubr.bf16.gmra.mrb[44].mxu1 %v7445_v51  ;;  %v7531_v51 = vld [vmem:[%s8160_s26 + $0x9c4] ss:$52 sps:$4 sm:$0xff]  }
  0xad   : > { %4605 = vmatmul.mubr.bf16.gmra.mrb[12].mxu0 %v7446_v53  ;;  %3809 = vmatprep.mubr.bf16.mxu1 %v7447_v54  ;;  %v7535_v53 = vld [vmem:[%s8160_s26 + $0x9c0] ss:$52 sps:$4 sm:$0xff]   ;;  %v7536_v54 = vld [vmem:[%s8160_s26 + $0x698] ss:$52 sps:$4 sm:$0xff]  }
  0xae   : > { %4612 = vmatprep.mubr.bf16.mxu0 %v7449_v55  ;;  %4850 = vmatpush1.bf16.msra.mxu0 %v7509_v56  ;;  %v7539_v55 = vld [vmem:[%s8160_s26 + $0xa2c] ss:$52 sps:$4 sm:$0xff]   ;;  %v7541_v56 = vld [vmem:[%s8160_s26 + $0x704] ss:$52 sps:$4 sm:$0xff]  }
  0xaf   : > { %4851 = vmatprep.subr.bf16.mxu0 %v8071_v0 }
  0xb2   : > { %4852 = vmatpush1.bf16.msra.mxu0 %v7523_v58  ;;  %v7544_v58 = vld [vmem:[%s8160_s26 + $0x700] ss:$52 sps:$4 sm:$0xff]  }
  0xb3   : > { %4853 = vmatprep.subr.bf16.mxu0 %v8071_v0 }
  0xb4   : > { %3810 = vmatmul.mubr.bf16.gmra.mrb[48].mxu1 %v7451_v57  ;;  %v7543_v57 = vld [vmem:[%s8160_s26 + $0xa28] ss:$52 sps:$4 sm:$0xff]  }
  0xb5   : > { %4613 = vmatmul.mubr.bf16.gmra.mrb[16].mxu0 %v7452_v59  ;;  %3817 = vmatprep.mubr.bf16.mxu1 %v7455_v60  ;;  %v7545_v59 = vld [vmem:[%s8160_s26 + $0xa94] ss:$52 sps:$4 sm:$0xff]   ;;  %v7547_v60 = vld [vmem:[%s8160_s26 + $0x76c] ss:$52 sps:$4 sm:$0xff]  }
  0xb6   : > { %4620 = vmatprep.mubr.bf16.mxu0 %v7457_v61  ;;  %4854 = vmatpush1.bf16.msra.mxu0 %v7537_v62  ;;  %v7549_v61 = vld [vmem:[%s8160_s26 + $0xa90] ss:$52 sps:$4 sm:$0xff]   ;;  %v7550_v62 = vld [vmem:[%s8160_s26 + $0x768] ss:$52 sps:$4 sm:$0xff]  }
  0xb7   : > { %4855 = vmatprep.subr.bf16.mxu0 %v8071_v0 }
  0xba   : > { %4856 = vmatpush1.bf16.msra.mxu0 %v7551_v2  ;;  %v7557_v2 = vld [vmem:[%s8160_s26 + $0xaf8] ss:$52 sps:$4 sm:$0xff]  }
  0xbb   : > { %4857 = vmatprep.subr.bf16.mxu0 %v8071_v0 }
  0xbc   : > { %3818 = vmatmul.mubr.bf16.gmra.mrb[52].mxu1 %v7459_v1  ;;  %v7555_v1 = vld [vmem:[%s8160_s26 + $0x7d4] ss:$52 sps:$4 sm:$0xff]  }
  0xbd   : > { %4621 = vmatmul.mubr.bf16.gmra.mrb[20].mxu0 %v7460_v3  ;;  %3825 = vmatprep.mubr.bf16.mxu1 %v7461_v4  ;;  %v7558_v3 = vld [vmem:[%s8160_s26 + $0x7d0] ss:$52 sps:$4 sm:$0xff]  }
  0xbe   : > { %4628 = vmatprep.mubr.bf16.mxu0 %v7463_v5  ;;  %4858 = vmatpush1.bf16.msra.mxu0 %v7565_v6  ;;  %v7559_v4 = vld [vmem:[%s8160_s26 + $0xb64] ss:$52 sps:$4 sm:$0xff]   ;;  %v7561_v5 = vld [vmem:[%s8160_s26 + $0x83c] ss:$52 sps:$4 sm:$0xff]   ;;  %v7563_v6 = vld [vmem:[%s8160_s26 + $0xb60] ss:$52 sps:$4 sm:$0xff]  }
  0xbf   : > { %4859 = vmatprep.subr.bf16.mxu0 %v8071_v0 }
  0xc2   : > { %4860 = vmatpush1.bf16.msra.mxu0 %v7579_v11  ;;  %v7572_v11 = vld [vmem:[%s8160_s26 + $0x8a0] ss:$52 sps:$4 sm:$0xff]  }
  0xc3   : > { %4861 = vmatprep.subr.bf16.mxu0 %v8071_v0 }
  0xc4   : > { %3826 = vmatmul.mubr.bf16.gmra.mrb[56].mxu1 %v7465_v7  ;;  %v7564_v7 = vld [vmem:[%s8160_s26 + $0x838] ss:$52 sps:$4 sm:$0xff]  }
  0xc5   : > { %4629 = vmatmul.mubr.bf16.gmra.mrb[24].mxu0 %v7466_v8  ;;  %3833 = vmatprep.mubr.bf16.mxu1 %v7469_v9  ;;  %v7567_v8 = vld [vmem:[%s8160_s26 + $0xbcc] ss:$52 sps:$4 sm:$0xff]   ;;  %v7569_v9 = vld [vmem:[%s8160_s26 + $0x8a4] ss:$52 sps:$4 sm:$0xff]  }
  0xc6   : > { %4636 = vmatprep.mubr.bf16.mxu0 %v7471_v10  ;;  %4862 = vmatpush1.bf16.msra.mxu0 %v7593_v21  ;;  %v7571_v10 = vld [vmem:[%s8160_s26 + $0xbc8] ss:$52 sps:$4 sm:$0xff]  }
  0xc7   : > { %4863 = vmatprep.subr.bf16.mxu0 %v8071_v0  ;;  %v7590_v21 = vld [vmem:[%s8160_s26 + $0x9dc] ss:$52 sps:$4 sm:$0xff]  }
  0xca   : > { %4864 = vmatpush1.bf16.msra.mxu0 %v7606_v30  ;;  %v8032_v30 = vld [vmem:[%s8123_s22 + $0x108] sm:$0xff]  }
  0xcb   : > { %4865 = vmatprep.subr.bf16.mxu0 %v8071_v0 }
  0xcc   : > { %3834 = vmatmul.mubr.bf16.gmra.mrb[60].mxu1 %v7473_v13  ;;  %v7575_v13 = vld [vmem:[%s8160_s26 + $0x90c] ss:$52 sps:$4 sm:$0xff]  }
  0xcd   : > { %4637 = vmatmul.mubr.bf16.gmra.mrb[28].mxu0 %v7474_v14  ;;  %3841 = vmatprep.mubr.bf16.mxu1 %v7475_v15  ;;  %v7577_v14 = vld [vmem:[%s8160_s26 + $0xc30] ss:$52 sps:$4 sm:$0xff]   ;;  %v7578_v15 = vld [vmem:[%s8160_s26 + $0x908] ss:$52 sps:$4 sm:$0xff]  }
  0xce   : > { %4644 = vmatprep.mubr.bf16.mxu0 %v7477_v16  ;;  %4866 = vmatpush1.bf16.msra.mxu0 %v7619_v39  ;;  %v7581_v16 = vld [vmem:[%s8160_s26 + $0xc9c] ss:$52 sps:$4 sm:$0xff]   ;;  %v7611_v39 = vld [vmem:[%s8160_s26 + $0x140] ss:$52 sps:$4 sm:$0xff]  }
  0xcf   : > { %4867 = vmatprep.subr.bf16.mxu0 %v8071_v0 }
  0xd2   : > { %4868 = vmatpush1.bf16.msra.mxu0 %v7632_v48  ;;  %v7622_v48 = vld [vmem:[%s8160_s26 + $0xbe4] ss:$52 sps:$4 sm:$0xff]  }
  0xd3   : > { %5126 = vmatprep.subr.bf16.mxu0 %v8071_v0 }
  0xd4   : > { %3842 = vmatmul.mubr.bf16.gmra.mrb[64].mxu1 %v7479_v17  ;;  %v7583_v17 = vld [vmem:[%s8160_s26 + $0x974] ss:$52 sps:$4 sm:$0xff]  }
  0xd5   : > { %4645 = vmatmul.mubr.bf16.gmra.mrb[32].mxu0 %v7480_v18  ;;  %3849 = vmatprep.mubr.bf16.mxu1 %v7483_v19  ;;  %v7585_v18 = vld [vmem:[%s8160_s26 + $0xc98] ss:$52 sps:$4 sm:$0xff]   ;;  %v7586_v19 = vld [vmem:[%s8160_s26 + $0x970] ss:$52 sps:$4 sm:$0xff]  }
  0xd6   : > { %4652 = vmatprep.mubr.bf16.mxu0 %v7485_v20  ;;  %v7589_v20 = vld [vmem:[%s8160_s26 + $0xc] ss:$52 sps:$4 sm:$0xff]  }
  0xdc   : > { %3850 = vmatmul.mubr.bf16.gmra.mrb[68].mxu1 %v7487_v22  ;;  %v7587_v22 = vld [vmem:[%s8160_s26 + $0x8] ss:$52 sps:$4 sm:$0xff]  }
  0xdd   : > { %4653 = vmatmul.mubr.bf16.gmra.mrb[36].mxu0 %v7488_v23  ;;  %3857 = vmatprep.mubr.bf16.mxu1 %v7489_v24  ;;  %v7592_v23 = vld [vmem:[%s8160_s26 + $0x9d8] ss:$52 sps:$4 sm:$0xff]   ;;  %v7594_v24 = vld [vmem:[%s8160_s26 + $0x74] ss:$52 sps:$4 sm:$0xff]  }
  0xde   : > { %4660 = vmatprep.mubr.bf16.mxu0 %v7491_v25  ;;  %v7596_v25 = vld [vmem:[%s8160_s26 + $0xa44] ss:$52 sps:$4 sm:$0xff]  }
  0xe4   : > { %3858 = vmatmul.mubr.bf16.gmra.mrb[72].mxu1 %v7493_v26  ;;  %v8031_v26 = vld [vmem:[%s8123_s22 + $0x100] sm:$0xff]  }
  0xe5   : > { %4661 = vmatmul.mubr.bf16.gmra.mrb[40].mxu0 %v7494_v27  ;;  %3865 = vmatprep.mubr.bf16.mxu1 %v7497_v28  ;;  %v7598_v27 = vld [vmem:[%s8160_s26 + $0x70] ss:$52 sps:$4 sm:$0xff]   ;;  %v7599_v28 = vld [vmem:[%s8160_s26 + $0xa40] ss:$52 sps:$4 sm:$0xff]  }
  0xe6   : > { %4668 = vmatprep.mubr.bf16.mxu0 %v7499_v29  ;;  %v7600_v29 = vld [vmem:[%s8160_s26 + $0xdc] ss:$52 sps:$4 sm:$0xff]  }
  0xec   : > { %3866 = vmatmul.mubr.bf16.gmra.mrb[76].mxu1 %v7501_v31  ;;  %v7602_v31 = vld [vmem:[%s8160_s26 + $0xaac] ss:$52 sps:$4 sm:$0xff]  }
  0xed   : > { %4669 = vmatmul.mubr.bf16.gmra.mrb[44].mxu0 %v7502_v32  ;;  %3873 = vmatprep.mubr.bf16.mxu1 %v7503_v33  ;;  %v8033_v32 = vld [vmem:[%s8123_s22 + $0x110] sm:$0xff]   ;;  %v7604_v33 = vld [vmem:[%s8160_s26 + $0xd8] ss:$52 sps:$4 sm:$0xff]  }
  0xee   : > { %4676 = vmatprep.mubr.bf16.mxu0 %v7505_v34  ;;  %v7605_v34 = vld [vmem:[%s8160_s26 + $0xaa8] ss:$52 sps:$4 sm:$0xff]  }
  0xf4   : > { %3874 = vmatmul.mubr.bf16.gmra.mrb[80].mxu1 %v7507_v35  ;;  %v7607_v35 = vld [vmem:[%s8160_s26 + $0x144] ss:$52 sps:$4 sm:$0xff]  }
  0xf5   : > { %4677 = vmatmul.mubr.bf16.gmra.mrb[48].mxu0 %v7508_v36  ;;  %3881 = vmatprep.mubr.bf16.mxu1 %v7511_v37  ;;  %v7609_v36 = vld [vmem:[%s8160_s26 + $0xb14] ss:$52 sps:$4 sm:$0xff]   ;;  %v8034_v37 = vld [vmem:[%s8123_s22 + $0x118] sm:$0xff]  }
  0xf6   : > { %4684 = vmatprep.mubr.bf16.mxu0 %v7513_v38  ;;  %v8035_v38 = vld [vmem:[%s8123_s22 + $0x120] sm:$0xff]  }
  0xfc   : > { %3882 = vmatmul.mubr.bf16.gmra.mrb[84].mxu1 %v7515_v40  ;;  %v7612_v40 = vld [vmem:[%s8160_s26 + $0xb10] ss:$52 sps:$4 sm:$0xff]  }
  0xfd   : > { %4685 = vmatmul.mubr.bf16.gmra.mrb[52].mxu0 %v7516_v41  ;;  %3889 = vmatprep.mubr.bf16.mxu1 %v7517_v42  ;;  %v7613_v41 = vld [vmem:[%s8160_s26 + $0x1ac] ss:$52 sps:$4 sm:$0xff]   ;;  %v7615_v42 = vld [vmem:[%s8160_s26 + $0xb7c] ss:$52 sps:$4 sm:$0xff]  }
  0xfe   : > { %4692 = vmatprep.mubr.bf16.mxu0 %v7519_v43  ;;  %v8036_v43 = vld [vmem:[%s8123_s22 + $0x128] sm:$0xff]  }
 0x104   : > { %3890 = vmatmul.mubr.bf16.gmra.mrb[88].mxu1 %v7521_v44  ;;  %v8037_v44 = vld [vmem:[%s8123_s22 + $0x130] sm:$0xff]  }
 0x105   : > { %4693 = vmatmul.mubr.bf16.gmra.mrb[56].mxu0 %v7522_v45  ;;  %3897 = vmatprep.mubr.bf16.mxu1 %v7525_v46  ;;  %v7617_v45 = vld [vmem:[%s8160_s26 + $0x1a8] ss:$52 sps:$4 sm:$0xff]   ;;  %v7618_v46 = vld [vmem:[%s8160_s26 + $0xb78] ss:$52 sps:$4 sm:$0xff]  }
 0x106   : > { %4700 = vmatprep.mubr.bf16.mxu0 %v7527_v47  ;;  %v7620_v47 = vld [vmem:[%s8160_s26 + $0x214] ss:$52 sps:$4 sm:$0xff]  }
 0x10c   : > { %3898 = vmatmul.mubr.bf16.gmra.mrb[92].mxu1 %v7529_v49  ;;  %v8038_v49 = vld [vmem:[%s8123_s22 + $0x138] sm:$0xff]  }
 0x10d   : > { %4701 = vmatmul.mubr.bf16.gmra.mrb[60].mxu0 %v7530_v50  ;;  %3905 = vmatprep.mubr.bf16.mxu1 %v7531_v51  ;;  %v8039_v50 = vld [vmem:[%s8123_s22 + $0x140] sm:$0xff]  }
 0x10e   : > { %4708 = vmatprep.mubr.bf16.mxu0 %v7533_v52  ;;  %v7624_v51 = vld [vmem:[%s8160_s26 + $0x210] ss:$52 sps:$4 sm:$0xff]   ;;  %v7625_v52 = vld [vmem:[%s8160_s26 + $0xbe0] ss:$52 sps:$4 sm:$0xff]  }
 0x114   : > { %3906 = vmatmul.mubr.bf16.gmra.mrb[96].mxu1 %v7535_v53  ;;  %v7626_v53 = vld [vmem:[%s8160_s26 + $0x27c] ss:$52 sps:$4 sm:$0xff]  }
 0x115   : > { %4709 = vmatmul.mubr.bf16.gmra.mrb[64].mxu0 %v7536_v54  ;;  %3913 = vmatprep.mubr.bf16.mxu1 %v7539_v55  ;;  %v7628_v54 = vld [vmem:[%s8160_s26 + $0xc4c] ss:$52 sps:$4 sm:$0xff]  }
 0x116   : > { %4716 = vmatprep.mubr.bf16.mxu0 %v7541_v56  ;;  %v8040_v55 = vld [vmem:[%s8123_s22 + $0x148] sm:$0xff]   ;;  %v8041_v56 = vld [vmem:[%s8123_s22 + $0x150] sm:$0xff]  }
 0x11c   : > { %3914 = vmatmul.mubr.bf16.gmra.mrb[100].mxu1 %v7543_v57  ;;  %v7630_v57 = vld [vmem:[%s8160_s26 + $0x278] ss:$52 sps:$4 sm:$0xff]  }
 0x11d   : > { %4717 = vmatmul.mubr.bf16.gmra.mrb[68].mxu0 %v7544_v58  ;;  %3921 = vmatprep.mubr.bf16.mxu1 %v7545_v59  ;;  %v7631_v58 = vld [vmem:[%s8160_s26 + $0xc48] ss:$52 sps:$4 sm:$0xff]   ;;  %v7633_v59 = vld [vmem:[%s8160_s26 + $0x2e4] ss:$52 sps:$4 sm:$0xff]  }
 0x11e   : > { %4724 = vmatprep.mubr.bf16.mxu0 %v7547_v60  ;;  %v7635_v60 = vld [vmem:[%s8160_s26 + $0xcb4] ss:$52 sps:$4 sm:$0xff]  }
 0x124   : > { %3922 = vmatmul.mubr.bf16.gmra.mrb[104].mxu1 %v7549_v61  ;;  %v8042_v61 = vld [vmem:[%s8123_s22 + $0x158] sm:$0xff]  }
 0x125   : > { %4725 = vmatmul.mubr.bf16.gmra.mrb[72].mxu0 %v7550_v62  ;;  %3929 = vmatprep.mubr.bf16.mxu1 %v7553_v63  ;;  %v8043_v62 = vld [vmem:[%s8123_s22 + $0x160] sm:$0xff]  }
 0x126   : > { %4732 = vmatprep.mubr.bf16.mxu0 %v7555_v1  ;;  %v7637_v63 = vld [vmem:[%s8160_s26 + $0x2e0] ss:$52 sps:$4 sm:$0xff]   ;;  %v7638_v1 = vld [vmem:[%s8160_s26 + $0xcb0] ss:$52 sps:$4 sm:$0xff]  }
 0x12c   : > { %3930 = vmatmul.mubr.bf16.gmra.mrb[108].mxu1 %v7557_v2  ;;  %v7639_v2 = vld [vmem:[%s8160_s26 + $0x34c] ss:$52 sps:$4 sm:$0xff]  }
 0x12d   : > { %4733 = vmatmul.mubr.bf16.gmra.mrb[76].mxu0 %v7558_v3  ;;  %3937 = vmatprep.mubr.bf16.mxu1 %v7559_v4  ;;  %v7643_v3 = vld [vmem:[%s8160_s26 + $0x24] ss:$52 sps:$4 sm:$0xff]   ;;  %v8044_v4 = vld [vmem:[%s8123_s22 + $0x168] sm:$0xff]  }
 0x12e   : > { %4740 = vmatprep.mubr.bf16.mxu0 %v7561_v5  ;;  %v8045_v5 = vld [vmem:[%s8123_s22 + $0x170] sm:$0xff]  }
 0x134   : > { %3938 = vmatmul.mubr.bf16.gmra.mrb[112].mxu1 %v7563_v6  ;;  %v7644_v6 = vld [vmem:[%s8160_s26 + $0x348] ss:$52 sps:$4 sm:$0xff]  }
 0x135   : > { %4741 = vmatmul.mubr.bf16.gmra.mrb[80].mxu0 %v7564_v7  ;;  %3945 = vmatprep.mubr.bf16.mxu1 %v7567_v8  ;;  %v7641_v7 = vld [vmem:[%s8160_s26 + $0x20] ss:$52 sps:$4 sm:$0xff]  }
 0x136   : > { %4748 = vmatprep.mubr.bf16.mxu0 %v7569_v9  ;;  %v7646_v8 = vld [vmem:[%s8160_s26 + $0x3b4] ss:$52 sps:$4 sm:$0xff]   ;;  %v7645_v9 = vld [vmem:[%s8123_s22 + $0x280] sm:$0xff]  }
 0x13c   : > { %3946 = vmatmul.mubr.bf16.gmra.mrb[116].mxu1 %v7571_v10  ;;  %v7648_v10 = vld [vmem:[%s8160_s26 + $0x8c] ss:$52 sps:$4 sm:$0xff]  }
 0x13d   : > { %4749 = vmatmul.mubr.bf16.gmra.mrb[84].mxu0 %v7572_v11  ;;  %3953 = vmatprep.mubr.bf16.mxu1 %v7573_v12  ;;  %v8046_v11 = vld [vmem:[%s8123_s22 + $0x178] sm:$0xff]   ;;  %v7658_v12 = vld [vmem:[%s8123_s22 + $0x288] sm:$0xff]  }
 0x13e   : > { %4756 = vmatprep.mubr.bf16.mxu0 %v7575_v13  ;;  %v7650_v13 = vld [vmem:[%s8160_s26 + $0x3b0] ss:$52 sps:$4 sm:$0xff]  }
 0x144   : > { %3954 = vmatmul.mubr.bf16.gmra.mrb[120].mxu1 %v7577_v14  ;;  %v7651_v14 = vld [vmem:[%s8160_s26 + $0x88] ss:$52 sps:$4 sm:$0xff]  }
 0x145   : > { %4757 = vmatmul.mubr.bf16.gmra.mrb[88].mxu0 %v7578_v15  ;;  %3961 = vmatprep.mubr.bf16.mxu1 %v7581_v16  ;;  %v7652_v15 = vld [vmem:[%s8160_s26 + $0x41c] ss:$52 sps:$4 sm:$0xff]   ;;  %v7654_v16 = vld [vmem:[%s8160_s26 + $0xf4] ss:$52 sps:$4 sm:$0xff]  }
 0x146   : > { %4764 = vmatprep.mubr.bf16.mxu0 %v7583_v17  ;;  %v7671_v17 = vld [vmem:[%s8123_s22 + $0x290] sm:$0xff]  }
 0x14c   : > { %3962 = vmatmul.mubr.bf16.gmra.mrb[124].mxu1 %v7585_v18  ;;  %v7684_v18 = vld [vmem:[%s8123_s22 + $0x298] sm:$0xff]  }
 0x14d   : > { %4765 = vmatmul.mubr.bf16.gmra.mrb[92].mxu0 %v7586_v19  ;;  %4002 = vmatprep.mubr.bf16.mxu1 %v7589_v20  ;;  %v7656_v19 = vld [vmem:[%s8160_s26 + $0x418] ss:$52 sps:$4 sm:$0xff]   ;;  %v7657_v20 = vld [vmem:[%s8160_s26 + $0xf0] ss:$52 sps:$4 sm:$0xff]  }
 0x14e   : > { %4772 = vmatprep.mubr.bf16.mxu0 %v7590_v21  ;;  %v7659_v21 = vld [vmem:[%s8160_s26 + $0x484] ss:$52 sps:$4 sm:$0xff]  }
 0x154   : > { %4003 = vmatmul.mubr.bf16.vlgmr.msra.gmra.mrb[0].mxu1 %v7587_v22  ;;  %v7661_v22 = vld [vmem:[%s8160_s26 + $0x15c] ss:$52 sps:$4 sm:$0xff]  }
 0x155   : > { %4773 = vmatmul.mubr.bf16.gmra.mrb[96].mxu0 %v7592_v23  ;;  %6700 = vmatpush1.bf16.msra.mxu1 %v8031_v26  ;;  %v7697_v23 = vld [vmem:[%s8123_s22 + $0x2a0] sm:$0xff]   ;;  %v7664_v26 = vld [vmem:[%s8160_s26 + $0x158] ss:$52 sps:$4 sm:$0xff]  }
 0x156   : > { %4010 = vmatprep.mubr.bf16.mxu1 %v7594_v24  ;;  %4780 = vmatprep.mubr.bf16.mxu0 %v7596_v25  ;;  %v7710_v24 = vld [vmem:[%s8123_s22 + $0x2a8] sm:$0xff]   ;;  %v7663_v25 = vld [vmem:[%s8160_s26 + $0x480] ss:$52 sps:$4 sm:$0xff]  }
 0x157   : > { %6685 = vmatprep.subr.bf16.mxu1 %v8071_v0 }
 0x159   : > { %6701 = vmatpush1.bf16.msra.mxu1 %v8032_v30  ;;  %v7736_v30 = vld [vmem:[%s8123_s22 + $0x2b8] sm:$0xff]  }
 0x15a   : > { %6686 = vmatprep.subr.bf16.mxu1 %v8071_v0 }
 0x15c   : > { %4011 = vmatmul.mubr.bf16.gmra.mrb[4].mxu1 %v7598_v27  ;;  %v7665_v27 = vld [vmem:[%s8160_s26 + $0x4ec] ss:$52 sps:$4 sm:$0xff]  }
 0x15d   : > { %4781 = vmatmul.mubr.bf16.gmra.mrb[100].mxu0 %v7599_v28  ;;  %4018 = vmatprep.mubr.bf16.mxu1 %v7600_v29  ;;  %v7667_v28 = vld [vmem:[%s8160_s26 + $0x1c4] ss:$52 sps:$4 sm:$0xff]   ;;  %v7723_v29 = vld [vmem:[%s8123_s22 + $0x2b0] sm:$0xff]  }
 0x15e   : > { %4788 = vmatprep.mubr.bf16.mxu0 %v7602_v31  ;;  %6702 = vmatpush1.bf16.msra.mxu1 %v8033_v32  ;;  %v7669_v31 = vld [vmem:[%s8160_s26 + $0x4e8] ss:$52 sps:$4 sm:$0xff]   ;;  %v7670_v32 = vld [vmem:[%s8160_s26 + $0x1c0] ss:$52 sps:$4 sm:$0xff]  }
 0x15f   : > { %6687 = vmatprep.subr.bf16.mxu1 %v8071_v0 }
 0x162   : > { %6703 = vmatpush1.bf16.msra.mxu1 %v8034_v37  ;;  %v7676_v37 = vld [vmem:[%s8160_s26 + $0x550] ss:$52 sps:$4 sm:$0xff]  }
 0x163   : > { %6688 = vmatprep.subr.bf16.mxu1 %v8071_v0 }
 0x164   : > { %4019 = vmatmul.mubr.bf16.gmra.mrb[8].mxu1 %v7604_v33  ;;  %v7672_v33 = vld [vmem:[%s8160_s26 + $0x554] ss:$52 sps:$4 sm:$0xff]  }
 0x165   : > { %4789 = vmatmul.mubr.bf16.gmra.mrb[104].mxu0 %v7605_v34  ;;  %4026 = vmatprep.mubr.bf16.mxu1 %v7607_v35  ;;  %v7674_v34 = vld [vmem:[%s8160_s26 + $0x22c] ss:$52 sps:$4 sm:$0xff]  }
 0x166   : > { %4796 = vmatprep.mubr.bf16.mxu0 %v7609_v36  ;;  %6704 = vmatpush1.bf16.msra.mxu1 %v8035_v38  ;;  %v7749_v35 = vld [vmem:[%s8123_s22 + $0x2c0] sm:$0xff]   ;;  %v7762_v36 = vld [vmem:[%s8123_s22 + $0x2c8] sm:$0xff]  }
 0x167   : > { %6689 = vmatprep.subr.bf16.mxu1 %v8071_v0  ;;  %v7677_v38 = vld [vmem:[%s8160_s26 + $0x228] ss:$52 sps:$4 sm:$0xff]  }
 0x16a   : > { %6705 = vmatpush1.bf16.msra.mxu1 %v8036_v43  ;;  %v7683_v43 = vld [vmem:[%s8160_s26 + $0x290] ss:$52 sps:$4 sm:$0xff]  }
 0x16b   : > { %6690 = vmatprep.subr.bf16.mxu1 %v8071_v0 }
 0x16c   : > { %4027 = vmatmul.mubr.bf16.gmra.mrb[12].mxu1 %v7611_v39  ;;  %v7678_v39 = vld [vmem:[%s8160_s26 + $0x5bc] ss:$52 sps:$4 sm:$0xff]  }
 0x16d   : > { %4797 = vmatmul.mubr.bf16.gmra.mrb[108].mxu0 %v7612_v40  ;;  %4034 = vmatprep.mubr.bf16.mxu1 %v7613_v41  ;;  %v7680_v40 = vld [vmem:[%s8160_s26 + $0x294] ss:$52 sps:$4 sm:$0xff]  }
 0x16e   : > { %4804 = vmatprep.mubr.bf16.mxu0 %v7615_v42  ;;  %6706 = vmatpush1.bf16.msra.mxu1 %v8037_v44  ;;  %v7775_v41 = vld [vmem:[%s8123_s22 + $0x2d0] sm:$0xff]   ;;  %v7682_v42 = vld [vmem:[%s8160_s26 + $0x5b8] ss:$52 sps:$4 sm:$0xff]  }
 0x16f   : > { %6691 = vmatprep.subr.bf16.mxu1 %v8071_v0  ;;  %v7685_v44 = vld [vmem:[%s8160_s26 + $0x624] ss:$52 sps:$4 sm:$0xff]  }
 0x172   : > { %6707 = vmatpush1.bf16.msra.mxu1 %v8038_v49  ;;  %v7691_v49 = vld [vmem:[%s8160_s26 + $0x68c] ss:$52 sps:$4 sm:$0xff]  }
 0x173   : > { %6692 = vmatprep.subr.bf16.mxu1 %v8071_v0 }
 0x174   : > { %4035 = vmatmul.mubr.bf16.gmra.mrb[16].mxu1 %v7617_v45  ;;  %v7687_v45 = vld [vmem:[%s8160_s26 + $0x2fc] ss:$52 sps:$4 sm:$0xff]  }
 0x175   : > { %4805 = vmatmul.mubr.bf16.gmra.mrb[112].mxu0 %v7618_v46  ;;  %4042 = vmatprep.mubr.bf16.mxu1 %v7620_v47  ;;  %v7788_v46 = vld [vmem:[%s8123_s22 + $0x2d8] sm:$0xff]   ;;  %v7689_v47 = vld [vmem:[%s8160_s26 + $0x620] ss:$52 sps:$4 sm:$0xff]  }
 0x176   : > { %4812 = vmatprep.mubr.bf16.mxu0 %v7622_v48  ;;  %6708 = vmatpush1.bf16.msra.mxu1 %v8039_v50  ;;  %v7690_v48 = vld [vmem:[%s8160_s26 + $0x2f8] ss:$52 sps:$4 sm:$0xff]  }
 0x177   : > { %6693 = vmatprep.subr.bf16.mxu1 %v8071_v0  ;;  %v7693_v50 = vld [vmem:[%s8160_s26 + $0x364] ss:$52 sps:$4 sm:$0xff]  }
 0x17a   : > { %6709 = vmatpush1.bf16.msra.mxu1 %v8040_v55  ;;  %v7801_v55 = vld [vmem:[%s8123_s22 + $0x2e0] sm:$0xff]  }
 0x17b   : > { %6694 = vmatprep.subr.bf16.mxu1 %v8071_v0 }
 0x17c   : > { %4043 = vmatmul.mubr.bf16.gmra.mrb[20].mxu1 %v7624_v51  ;;  %v7695_v51 = vld [vmem:[%s8160_s26 + $0x688] ss:$52 sps:$4 sm:$0xff]  }
 0x17d   : > { %4813 = vmatmul.mubr.bf16.gmra.mrb[116].mxu0 %v7625_v52  ;;  %4050 = vmatprep.mubr.bf16.mxu1 %v7626_v53  ;;  %v7696_v52 = vld [vmem:[%s8160_s26 + $0x360] ss:$52 sps:$4 sm:$0xff]  }
 0x17e   : > { %4820 = vmatprep.mubr.bf16.mxu0 %v7628_v54  ;;  %6710 = vmatpush1.bf16.msra.mxu1 %v8041_v56  ;;  %v7698_v53 = vld [vmem:[%s8160_s26 + $0x6f4] ss:$52 sps:$4 sm:$0xff]   ;;  %v7700_v54 = vld [vmem:[%s8160_s26 + $0x3cc] ss:$52 sps:$4 sm:$0xff]  }
 0x17f   : > { %6695 = vmatprep.subr.bf16.mxu1 %v8071_v0  ;;  %v8546_v56 = vld [vmem:[%s8123_s22 + $0x300] sm:$0xff]  }
 0x182   : > { %6711 = vmatpush1.bf16.msra.mxu1 %v8042_v61  ;;  %v7708_v61 = vld [vmem:[%s8160_s26 + $0x758] ss:$52 sps:$4 sm:$0xff]  }
 0x183   : > { %6696 = vmatprep.subr.bf16.mxu1 %v8071_v0 }
 0x184   : > { %4051 = vmatmul.mubr.bf16.gmra.mrb[24].mxu1 %v7630_v57  ;;  %v7702_v57 = vld [vmem:[%s8160_s26 + $0x6f0] ss:$52 sps:$4 sm:$0xff]  }
 0x185   : > { %4821 = vmatmul.mubr.bf16.gmra.mrb[120].mxu0 %v7631_v58  ;;  %4058 = vmatprep.mubr.bf16.mxu1 %v7633_v59  ;;  %v7703_v58 = vld [vmem:[%s8160_s26 + $0x3c8] ss:$52 sps:$4 sm:$0xff]  }
 0x186   : > { %4828 = vmatprep.mubr.bf16.mxu0 %v7635_v60  ;;  %6712 = vmatpush1.bf16.msra.mxu1 %v8043_v62  ;;  %v7704_v59 = vld [vmem:[%s8160_s26 + $0x75c] ss:$52 sps:$4 sm:$0xff]   ;;  %v7706_v60 = vld [vmem:[%s8160_s26 + $0x434] ss:$52 sps:$4 sm:$0xff]  }
 0x187   : > { %6697 = vmatprep.subr.bf16.mxu1 %v8071_v0  ;;  %v7709_v62 = vld [vmem:[%s8160_s26 + $0x430] ss:$52 sps:$4 sm:$0xff]  }
 0x18a   : > { %6713 = vmatpush1.bf16.msra.mxu1 %v8044_v4  ;;  %v7716_v4 = vld [vmem:[%s8160_s26 + $0x498] ss:$52 sps:$4 sm:$0xff]  }
 0x18b   : > { %6698 = vmatprep.subr.bf16.mxu1 %v8071_v0 }
 0x18c   : > { %4059 = vmatmul.mubr.bf16.gmra.mrb[28].mxu1 %v7637_v63  ;;  %v7711_v63 = vld [vmem:[%s8160_s26 + $0x7c4] ss:$52 sps:$4 sm:$0xff]  }
 0x18d   : > { %4829 = vmatmul.mubr.bf16.gmra.mrb[124].mxu0 %v7638_v1  ;;  %4066 = vmatprep.mubr.bf16.mxu1 %v7639_v2  ;;  %v7713_v1 = vld [vmem:[%s8160_s26 + $0x49c] ss:$52 sps:$4 sm:$0xff]   ;;  %v7815_v2 = vld [vmem:[%s8123_s22 + $0x2e8] sm:$0xff]  }
 0x18e   : > { %4869 = vmatprep.mubr.bf16.mxu0 %v7643_v3  ;;  %6714 = vmatpush1.bf16.msra.mxu1 %v8045_v5  ;;  %v7715_v3 = vld [vmem:[%s8160_s26 + $0x7c0] ss:$52 sps:$4 sm:$0xff]  }
 0x18f   : > { %6699 = vmatprep.subr.bf16.mxu1 %v8071_v0  ;;  %v7717_v5 = vld [vmem:[%s8160_s26 + $0x82c] ss:$52 sps:$4 sm:$0xff]  }
 0x192   : > { %6715 = vmatpush1.bf16.msra.mxu1 %v8046_v11  ;;  %v7829_v11 = vld [vmem:[%s8123_s22 + $0x2f0] sm:$0xff]  }
 0x193   : > { %6604 = vmatprep.subr.bf16.mxu1 %v8546_v56 }
 0x194   : > { %4067 = vmatmul.mubr.bf16.gmra.mrb[32].mxu1 %v7644_v6  ;;  %v7719_v6 = vld [vmem:[%s8160_s26 + $0x504] ss:$52 sps:$4 sm:$0xff]  }
 0x195   : > { %4870 = vmatmul.mubr.bf16.vlgmr.msra.gmra.mrb[0].mxu0 %v7641_v7  ;;  %4074 = vmatprep.mubr.bf16.mxu1 %v7646_v8  ;;  %v7721_v7 = vld [vmem:[%s8160_s26 + $0x828] ss:$52 sps:$4 sm:$0xff]   ;;  %v7722_v8 = vld [vmem:[%s8160_s26 + $0x500] ss:$52 sps:$4 sm:$0xff]  }
 0x196   : > { %5127 = vmatpush1.bf16.msra.mxu0 %v7645_v9  ;;  %4877 = vmatprep.mubr.bf16.mxu0 %v7648_v10  ;;  %v7724_v9 = vld [vmem:[%s8160_s26 + $0x894] ss:$52 sps:$4 sm:$0xff]   ;;  %v7726_v10 = vld [vmem:[%s8160_s26 + $0x56c] ss:$52 sps:$4 sm:$0xff]  }
 0x197   : > { %5128 = vmatprep.subr.bf16.mxu0 %v8071_v0 }
 0x19a   : > { %5129 = vmatpush1.bf16.msra.mxu0 %v7658_v12  ;;  %v7728_v12 = vld [vmem:[%s8160_s26 + $0x890] ss:$52 sps:$4 sm:$0xff]  }
 0x19b   : > { %5130 = vmatprep.subr.bf16.mxu0 %v8071_v0 }
 0x19c   : > { %4075 = vmatmul.mubr.bf16.gmra.mrb[36].mxu1 %v7650_v13  ;;  %v7729_v13 = vld [vmem:[%s8160_s26 + $0x568] ss:$52 sps:$4 sm:$0xff]  }
 0x19d   : > { %4878 = vmatmul.mubr.bf16.gmra.mrb[4].mxu0 %v7651_v14  ;;  %4082 = vmatprep.mubr.bf16.mxu1 %v7652_v15  ;;  %v7730_v14 = vld [vmem:[%s8160_s26 + $0x8fc] ss:$52 sps:$4 sm:$0xff]   ;;  %v7732_v15 = vld [vmem:[%s8160_s26 + $0x5d4] ss:$52 sps:$4 sm:$0xff]  }
 0x19e   : > { %4885 = vmatprep.mubr.bf16.mxu0 %v7654_v16  ;;  %5131 = vmatpush1.bf16.msra.mxu0 %v7671_v17  ;;  %v7734_v16 = vld [vmem:[%s8160_s26 + $0x8f8] ss:$52 sps:$4 sm:$0xff]   ;;  %v7735_v17 = vld [vmem:[%s8160_s26 + $0x5d0] ss:$52 sps:$4 sm:$0xff]  }
 0x19f   : > { %5132 = vmatprep.subr.bf16.mxu0 %v8071_v0 }
 0x1a2   : > { %5133 = vmatpush1.bf16.msra.mxu0 %v7684_v18  ;;  %v7737_v18 = vld [vmem:[%s8160_s26 + $0x964] ss:$52 sps:$4 sm:$0xff]  }
 0x1a3   : > { %5134 = vmatprep.subr.bf16.mxu0 %v8071_v0 }
 0x1a4   : > { %4083 = vmatmul.mubr.bf16.gmra.mrb[40].mxu1 %v7656_v19  ;;  %v7739_v19 = vld [vmem:[%s8160_s26 + $0x63c] ss:$52 sps:$4 sm:$0xff]  }
 0x1a5   : > { %4886 = vmatmul.mubr.bf16.gmra.mrb[8].mxu0 %v7657_v20  ;;  %4090 = vmatprep.mubr.bf16.mxu1 %v7659_v21  ;;  %v7741_v20 = vld [vmem:[%s8160_s26 + $0x960] ss:$52 sps:$4 sm:$0xff]   ;;  %v7742_v21 = vld [vmem:[%s8160_s26 + $0x638] ss:$52 sps:$4 sm:$0xff]  }
 0x1a6   : > { %4893 = vmatprep.mubr.bf16.mxu0 %v7661_v22  ;;  %5135 = vmatpush1.bf16.msra.mxu0 %v7697_v23  ;;  %v7743_v22 = vld [vmem:[%s8160_s26 + $0x9cc] ss:$52 sps:$4 sm:$0xff]   ;;  %v7745_v23 = vld [vmem:[%s8160_s26 + $0x6a4] ss:$52 sps:$4 sm:$0xff]  }
 0x1a7   : > { %5136 = vmatprep.subr.bf16.mxu0 %v8071_v0 }
 0x1aa   : > { %5137 = vmatpush1.bf16.msra.mxu0 %v7710_v24  ;;  %v7747_v24 = vld [vmem:[%s8160_s26 + $0x9c8] ss:$52 sps:$4 sm:$0xff]  }
 0x1ab   : > { %5138 = vmatprep.subr.bf16.mxu0 %v8071_v0 }
 0x1ac   : > { %4091 = vmatmul.mubr.bf16.gmra.mrb[44].mxu1 %v7663_v25  ;;  %v7748_v25 = vld [vmem:[%s8160_s26 + $0x6a0] ss:$52 sps:$4 sm:$0xff]  }
 0x1ad   : > { %4894 = vmatmul.mubr.bf16.gmra.mrb[12].mxu0 %v7664_v26  ;;  %4098 = vmatprep.mubr.bf16.mxu1 %v7665_v27  ;;  %v7750_v26 = vld [vmem:[%s8160_s26 + $0xa34] ss:$52 sps:$4 sm:$0xff]   ;;  %v7752_v27 = vld [vmem:[%s8160_s26 + $0x70c] ss:$52 sps:$4 sm:$0xff]  }
 0x1ae   : > { %4901 = vmatprep.mubr.bf16.mxu0 %v7667_v28  ;;  %5139 = vmatpush1.bf16.msra.mxu0 %v7723_v29  ;;  %v7754_v28 = vld [vmem:[%s8160_s26 + $0xa30] ss:$52 sps:$4 sm:$0xff]   ;;  %v7755_v29 = vld [vmem:[%s8160_s26 + $0x708] ss:$52 sps:$4 sm:$0xff]  }
 0x1af   : > { %5140 = vmatprep.subr.bf16.mxu0 %v8071_v0 }
 0x1b2   : > { %5141 = vmatpush1.bf16.msra.mxu0 %v7736_v30  ;;  %v7756_v30 = vld [vmem:[%s8160_s26 + $0xa9c] ss:$52 sps:$4 sm:$0xff]  }
 0x1b3   : > { %5142 = vmatprep.subr.bf16.mxu0 %v8071_v0 }
 0x1b4   : > { %4099 = vmatmul.mubr.bf16.gmra.mrb[48].mxu1 %v7669_v31  ;;  %v7758_v31 = vld [vmem:[%s8160_s26 + $0x774] ss:$52 sps:$4 sm:$0xff]  }
 0x1b5   : > { %4902 = vmatmul.mubr.bf16.gmra.mrb[16].mxu0 %v7670_v32  ;;  %4106 = vmatprep.mubr.bf16.mxu1 %v7672_v33  ;;  %v7760_v32 = vld [vmem:[%s8160_s26 + $0xa98] ss:$52 sps:$4 sm:$0xff]   ;;  %v7761_v33 = vld [vmem:[%s8160_s26 + $0x770] ss:$52 sps:$4 sm:$0xff]  }
 0x1b6   : > { %4909 = vmatprep.mubr.bf16.mxu0 %v7674_v34  ;;  %5143 = vmatpush1.bf16.msra.mxu0 %v7749_v35  ;;  %v7763_v34 = vld [vmem:[%s8160_s26 + $0xb04] ss:$52 sps:$4 sm:$0xff]   ;;  %v7765_v35 = vld [vmem:[%s8160_s26 + $0x7dc] ss:$52 sps:$4 sm:$0xff]  }
 0x1b7   : > { %5144 = vmatprep.subr.bf16.mxu0 %v8071_v0 }
 0x1ba   : > { %5145 = vmatpush1.bf16.msra.mxu0 %v7762_v36 }
 0x1bb   : > { %5146 = vmatprep.subr.bf16.mxu0 %v8071_v0 }
 0x1bc   : > { %4107 = vmatmul.mubr.bf16.gmra.mrb[52].mxu1 %v7676_v37 }
 0x1bd   : > { %4910 = vmatmul.mubr.bf16.gmra.mrb[20].mxu0 %v7677_v38  ;;  %4114 = vmatprep.mubr.bf16.mxu1 %v7678_v39  ;;  %v7767_v38 = vld [vmem:[%s8160_s26 + $0xb00] ss:$52 sps:$4 sm:$0xff]  }
 0x1be   : > { %4917 = vmatprep.mubr.bf16.mxu0 %v7680_v40  ;;  %5147 = vmatpush1.bf16.msra.mxu0 %v7775_v41  ;;  %v7768_v40 = vld [vmem:[%s8160_s26 + $0x7d8] ss:$52 sps:$4 sm:$0xff]  }
 0x1bf   : > { %5148 = vmatprep.subr.bf16.mxu0 %v8071_v0  ;;  %v7769_v41 = vld [vmem:[%s8160_s26 + $0xb6c] ss:$52 sps:$4 sm:$0xff]  }
 0x1c2   : > { %5149 = vmatpush1.bf16.msra.mxu0 %v7788_v46  ;;  %v7773_v46 = vld [vmem:[%s8160_s26 + $0xb68] ss:$52 sps:$4 sm:$0xff]  }
 0x1c3   : > { %5150 = vmatprep.subr.bf16.mxu0 %v8071_v0 }
 0x1c4   : > { %4115 = vmatmul.mubr.bf16.gmra.mrb[56].mxu1 %v7682_v42 }
 0x1c5   : > { %4918 = vmatmul.mubr.bf16.gmra.mrb[24].mxu0 %v7683_v43  ;;  %4122 = vmatprep.mubr.bf16.mxu1 %v7685_v44  ;;  %v7771_v43 = vld [vmem:[%s8160_s26 + $0x844] ss:$52 sps:$4 sm:$0xff]  }
 0x1c6   : > { %4925 = vmatprep.mubr.bf16.mxu0 %v7687_v45  ;;  %5151 = vmatpush1.bf16.msra.mxu0 %v7801_v55 }
 0x1c7   : > { %5152 = vmatprep.subr.bf16.mxu0 %v8071_v0 }
 0x1ca   : > { %5153 = vmatpush1.bf16.msra.mxu0 %v7815_v2  ;;  %v7787_v2 = vld [vmem:[%s8160_s26 + $0x910] ss:$52 sps:$4 sm:$0xff]  }
 0x1cb   : > { %5154 = vmatprep.subr.bf16.mxu0 %v8071_v0 }
 0x1cc   : > { %4123 = vmatmul.mubr.bf16.gmra.mrb[60].mxu1 %v7689_v47 }
 0x1cd   : > { %4926 = vmatmul.mubr.bf16.gmra.mrb[28].mxu0 %v7690_v48  ;;  %4130 = vmatprep.mubr.bf16.mxu1 %v7691_v49  ;;  %v7774_v48 = vld [vmem:[%s8160_s26 + $0x840] ss:$52 sps:$4 sm:$0xff]  }
 0x1ce   : > { %4933 = vmatprep.mubr.bf16.mxu0 %v7693_v50  ;;  %5155 = vmatpush1.bf16.msra.mxu0 %v7829_v11  ;;  %v7776_v49 = vld [vmem:[%s8160_s26 + $0xbd4] ss:$52 sps:$4 sm:$0xff]  }
 0x1cf   : > { %5156 = vmatprep.subr.bf16.mxu0 %v8071_v0  ;;  %v7842_v0 = vld [vmem:[%s8123_s22 + $0x2f8] sm:$0xff]   ;;  %v7797_v11 = vld [vmem:[%s8160_s26 + $0x354] ss:$52 sps:$4 sm:$0xff]  }
 0x1d2   : > { %5157 = vmatpush1.bf16.msra.mxu0 %v7842_v0  ;;  %v7803_v0 = vld [vmem:[%s8160_s26 + $0x3bc] ss:$52 sps:$4 sm:$0xff]  }
 0x1d4   : > { %4131 = vmatmul.mubr.bf16.gmra.mrb[64].mxu1 %v7695_v51  ;;  %v7778_v51 = vld [vmem:[%s8160_s26 + $0x8ac] ss:$52 sps:$4 sm:$0xff]  }
 0x1d5   : > { %4934 = vmatmul.mubr.bf16.gmra.mrb[32].mxu0 %v7696_v52  ;;  %4138 = vmatprep.mubr.bf16.mxu1 %v7698_v53 }
 0x1d6   : > { %4941 = vmatprep.mubr.bf16.mxu0 %v7700_v54  ;;  %v7780_v54 = vld [vmem:[%s8160_s26 + $0xbd0] ss:$52 sps:$4 sm:$0xff]  }
 0x1dc   : > { %4139 = vmatmul.mubr.bf16.gmra.mrb[68].mxu1 %v7702_v57  ;;  %v7781_v57 = vld [vmem:[%s8160_s26 + $0x8a8] ss:$52 sps:$4 sm:$0xff]  }
 0x1dd   : > { %4942 = vmatmul.mubr.bf16.gmra.mrb[36].mxu0 %v7703_v58  ;;  %4146 = vmatprep.mubr.bf16.mxu1 %v7704_v59  ;;  %v7782_v58 = vld [vmem:[%s8160_s26 + $0xc3c] ss:$52 sps:$4 sm:$0xff]  }
 0x1de   : > { %4949 = vmatprep.mubr.bf16.mxu0 %v7706_v60  ;;  %v7784_v60 = vld [vmem:[%s8160_s26 + $0x914] ss:$52 sps:$4 sm:$0xff]  }
 0x1e4   : > { %4147 = vmatmul.mubr.bf16.gmra.mrb[72].mxu1 %v7708_v61 }
 0x1e5   : > { %4950 = vmatmul.mubr.bf16.gmra.mrb[40].mxu0 %v7709_v62  ;;  %4154 = vmatprep.mubr.bf16.mxu1 %v7711_v63  ;;  %v7786_v63 = vld [vmem:[%s8160_s26 + $0xc38] ss:$52 sps:$4 sm:$0xff]  }
 0x1e6   : > { %4957 = vmatprep.mubr.bf16.mxu0 %v7713_v1 }
 0x1ec   : > { %4155 = vmatmul.mubr.bf16.gmra.mrb[76].mxu1 %v7715_v3  ;;  %v7789_v3 = vld [vmem:[%s8160_s26 + $0xca4] ss:$52 sps:$4 sm:$0xff]  }
 0x1ed   : > { %4958 = vmatmul.mubr.bf16.gmra.mrb[44].mxu0 %v7716_v4  ;;  %4162 = vmatprep.mubr.bf16.mxu1 %v7717_v5  ;;  %v7791_v5 = vld [vmem:[%s8160_s26 + $0x97c] ss:$52 sps:$4 sm:$0xff]  }
 0x1ee   : > { %4965 = vmatprep.mubr.bf16.mxu0 %v7719_v6 }
 0x1f4   : > { %4163 = vmatmul.mubr.bf16.gmra.mrb[80].mxu1 %v7721_v7 }
 0x1f5   : > { %4966 = vmatmul.mubr.bf16.gmra.mrb[48].mxu0 %v7722_v8  ;;  %4170 = vmatprep.mubr.bf16.mxu1 %v7724_v9  ;;  %v7793_v8 = vld [vmem:[%s8160_s26 + $0xca0] ss:$52 sps:$4 sm:$0xff]  }
 0x1f6   : > { %4973 = vmatprep.mubr.bf16.mxu0 %v7726_v10  ;;  %v7794_v10 = vld [vmem:[%s8160_s26 + $0x978] ss:$52 sps:$4 sm:$0xff]  }
 0x1fc   : > { %4171 = vmatmul.mubr.bf16.gmra.mrb[84].mxu1 %v7728_v12 }
 0x1fd   : > { %4974 = vmatmul.mubr.bf16.gmra.mrb[52].mxu0 %v7729_v13  ;;  %4178 = vmatprep.mubr.bf16.mxu1 %v7730_v14  ;;  %v7798_v13 = vld [vmem:[%s8160_s26 + $0x9e4] ss:$52 sps:$4 sm:$0xff]  }
 0x1fe   : > { %4981 = vmatprep.mubr.bf16.mxu0 %v7732_v15 }
 0x204   : > { %4179 = vmatmul.mubr.bf16.gmra.mrb[88].mxu1 %v7734_v16  ;;  %v7795_v16 = vld [vmem:[%s8160_s26 + $0x350] ss:$52 sps:$4 sm:$0xff]  }
 0x205   : > { %4982 = vmatmul.mubr.bf16.gmra.mrb[56].mxu0 %v7735_v17  ;;  %4186 = vmatprep.mubr.bf16.mxu1 %v7737_v18  ;;  %v7800_v18 = vld [vmem:[%s8160_s26 + $0x9e0] ss:$52 sps:$4 sm:$0xff]  }
 0x206   : > { %4989 = vmatprep.mubr.bf16.mxu0 %v7739_v19 }
 0x20c   : > { %4187 = vmatmul.mubr.bf16.gmra.mrb[92].mxu1 %v7741_v20  ;;  %v7805_v20 = vld [vmem:[%s8160_s26 + $0xa4c] ss:$52 sps:$4 sm:$0xff]  }
 0x20d   : > { %4990 = vmatmul.mubr.bf16.gmra.mrb[60].mxu0 %v7742_v21  ;;  %4194 = vmatprep.mubr.bf16.mxu1 %v7743_v22  ;;  %v7822_v21 = vld [vmem:[%s8123_s22 + $0x308] sm:$0xff]   ;;  %v7843_v22 = vld [vmem:[%s8123_s22 + $0x310] sm:$0xff]  }
 0x20e   : > { %4997 = vmatprep.mubr.bf16.mxu0 %v7745_v23 }
 0x214   : > { %4195 = vmatmul.mubr.bf16.gmra.mrb[96].mxu1 %v7747_v24 }
 0x215   : > { %4998 = vmatmul.mubr.bf16.gmra.mrb[64].mxu0 %v7748_v25  ;;  %4202 = vmatprep.mubr.bf16.mxu1 %v7750_v26  ;;  %v7807_v25 = vld [vmem:[%s8160_s26 + $0x3b8] ss:$52 sps:$4 sm:$0xff]  }
 0x216   : > { %5005 = vmatprep.mubr.bf16.mxu0 %v7752_v27  ;;  %v7808_v27 = vld [vmem:[%s8160_s26 + $0xa48] ss:$52 sps:$4 sm:$0xff]  }
 0x21c   : > { %4203 = vmatmul.mubr.bf16.gmra.mrb[100].mxu1 %v7754_v28  ;;  %v7809_v28 = vld [vmem:[%s8160_s26 + $0x424] ss:$52 sps:$4 sm:$0xff]  }
 0x21d   : > { %5006 = vmatmul.mubr.bf16.gmra.mrb[68].mxu0 %v7755_v29  ;;  %4210 = vmatprep.mubr.bf16.mxu1 %v7756_v30  ;;  %v7811_v30 = vld [vmem:[%s8160_s26 + $0xab4] ss:$52 sps:$4 sm:$0xff]  }
 0x21e   : > { %5013 = vmatprep.mubr.bf16.mxu0 %v7758_v31 }
 0x224   : > { %4211 = vmatmul.mubr.bf16.gmra.mrb[104].mxu1 %v7760_v32  ;;  %v7881_v32 = vld [vmem:[%s8123_s22 + $0x320] sm:$0xff]  }
 0x225   : > { %5014 = vmatmul.mubr.bf16.gmra.mrb[72].mxu0 %v7761_v33  ;;  %4218 = vmatprep.mubr.bf16.mxu1 %v7763_v34  ;;  %v7813_v34 = vld [vmem:[%s8160_s26 + $0x420] ss:$52 sps:$4 sm:$0xff]  }
 0x226   : > { %5021 = vmatprep.mubr.bf16.mxu0 %v7765_v35 }
 0x227   : > { %v8595_v36 = vpop.f32.mrb[0].mxu1 }
 0x228   : > { %v4006_v37 = vpop.f32.mrb[1].mxu1 }
 0x229   : > { %v8598_v39 = vpop.f32.mrb[2].mxu1  ;;  %v7814_v37 = vld [vmem:[%s8160_s26 + $0xab0] ss:$52 sps:$4 sm:$0xff]  }
 0x22a   : > { %v4009_v42 = vpop.f32.mrb[3].mxu1 }
 0x22b   : > { %v7900_v42 = vld [vmem:[%s8123_s22 + $0x328] sm:$0xff]  }
 0x22c   : > { %4219 = vmatmul.mubr.bf16.gmra.mrb[108].mxu1 %v7767_v38  ;;  %v7816_v38 = vld [vmem:[%s8160_s26 + $0x48c] ss:$52 sps:$4 sm:$0xff]  }
 0x22d   : > { %5022 = vmatmul.mubr.bf16.gmra.mrb[76].mxu0 %v7768_v40  ;;  %4226 = vmatprep.mubr.bf16.mxu1 %v7769_v41  ;;  %v7818_v41 = vld [vmem:[%s8160_s26 + $0xb1c] ss:$52 sps:$4 sm:$0xff]  }
 0x22e   : > { %5029 = vmatprep.mubr.bf16.mxu0 %v7771_v43  ;;  %v7919_v43 = vld [vmem:[%s8123_s22 + $0x330] sm:$0xff]  }
 0x22f   : > { %v8603_v44 = vpop.f32.mrb[4].mxu1 }
 0x230   : > { %v4014_v45 = vpop.f32.mrb[5].mxu1 }
 0x231   : > { %v8606_v47 = vpop.f32.mrb[6].mxu1  ;;  %v7820_v45 = vld [vmem:[%s8160_s26 + $0x488] ss:$52 sps:$4 sm:$0xff]  }
 0x232   : > { %v4017_v50 = vpop.f32.mrb[7].mxu1 }
 0x233   : > { %v7827_v50 = vld [vmem:[%s8160_s26 + $0x4f0] ss:$52 sps:$4 sm:$0xff]  }
 0x234   : > { %4227 = vmatmul.mubr.bf16.gmra.mrb[112].mxu1 %v7773_v46  ;;  %v7821_v46 = vld [vmem:[%s8160_s26 + $0xb18] ss:$52 sps:$4 sm:$0xff]  }
 0x235   : > { %5030 = vmatmul.mubr.bf16.gmra.mrb[80].mxu0 %v7774_v48  ;;  %4234 = vmatprep.mubr.bf16.mxu1 %v7776_v49  ;;  %v7823_v48 = vld [vmem:[%s8160_s26 + $0x4f4] ss:$52 sps:$4 sm:$0xff]   ;;  %v7825_v49 = vld [vmem:[%s8160_s26 + $0xb84] ss:$52 sps:$4 sm:$0xff]  }
 0x236   : > { %5037 = vmatprep.mubr.bf16.mxu0 %v7778_v51  ;;  %v7828_v51 = vld [vmem:[%s8160_s26 + $0xb80] ss:$52 sps:$4 sm:$0xff]  }
 0x237   : > { %v8611_v52 = vpop.f32.mrb[8].mxu1 }
 0x238   : > { %v4022_v53 = vpop.f32.mrb[9].mxu1 }
 0x239   : > { %v8614_v55 = vpop.f32.mrb[10].mxu1  ;;  %v7830_v53 = vld [vmem:[%s8160_s26 + $0x55c] ss:$52 sps:$4 sm:$0xff]  }
 0x23a   : > { %v4025_v59 = vpop.f32.mrb[11].mxu1 }
 0x23b   : > { %v7836_v59 = vld [vmem:[%s8160_s26 + $0x5c4] ss:$52 sps:$4 sm:$0xff]  }
 0x23c   : > { %4235 = vmatmul.mubr.bf16.gmra.mrb[116].mxu1 %v7780_v54  ;;  %v7832_v54 = vld [vmem:[%s8160_s26 + $0xbec] ss:$52 sps:$4 sm:$0xff]  }
 0x23d   : > { %5038 = vmatmul.mubr.bf16.gmra.mrb[84].mxu0 %v7781_v57  ;;  %4242 = vmatprep.mubr.bf16.mxu1 %v7782_v58  ;;  %v7834_v57 = vld [vmem:[%s8160_s26 + $0x558] ss:$52 sps:$4 sm:$0xff]   ;;  %v7835_v58 = vld [vmem:[%s8160_s26 + $0xbe8] ss:$52 sps:$4 sm:$0xff]  }
 0x23e   : > { %5045 = vmatprep.mubr.bf16.mxu0 %v7784_v60  ;;  %v7838_v60 = vld [vmem:[%s8160_s26 + $0xc54] ss:$52 sps:$4 sm:$0xff]  }
 0x23f   : > { %v8619_v61 = vpop.f32.mrb[12].mxu1 }
 0x240   : > { %v4030_v62 = vpop.f32.mrb[13].mxu1 }
 0x241   : > { %v8622_v1 = vpop.f32.mrb[14].mxu1  ;;  %v7938_v62 = vld [vmem:[%s8123_s22 + $0x338] sm:$0xff]  }
 0x242   : > { %v4033_v4 = vpop.f32.mrb[15].mxu1 }
 0x243   : > { %v7846_v4 = vld [vmem:[%s8160_s26 + $0xcbc] ss:$52 sps:$4 sm:$0xff]  }
 0x244   : > { %4243 = vmatmul.mubr.bf16.gmra.mrb[120].mxu1 %v7786_v63  ;;  %v7840_v63 = vld [vmem:[%s8160_s26 + $0x5c0] ss:$52 sps:$4 sm:$0xff]  }
 0x245   : > { %5046 = vmatmul.mubr.bf16.gmra.mrb[88].mxu0 %v7787_v2  ;;  %4250 = vmatprep.mubr.bf16.mxu1 %v7789_v3  ;;  %v7841_v2 = vld [vmem:[%s8160_s26 + $0xc50] ss:$52 sps:$4 sm:$0xff]   ;;  %v7844_v3 = vld [vmem:[%s8160_s26 + $0x62c] ss:$52 sps:$4 sm:$0xff]  }
 0x246   : > { %5053 = vmatprep.mubr.bf16.mxu0 %v7791_v5  ;;  %v7848_v5 = vld [vmem:[%s8160_s26 + $0x628] ss:$52 sps:$4 sm:$0xff]  }
 0x247   : > { %v8627_v6 = vpop.f32.mrb[16].mxu1 }
 0x248   : > { %v4038_v7 = vpop.f32.mrb[17].mxu1 }
 0x249   : > { %v8630_v9 = vpop.f32.mrb[18].mxu1  ;;  %v7849_v7 = vld [vmem:[%s8160_s26 + $0xcb8] ss:$52 sps:$4 sm:$0xff]  }
 0x24a   : > { %v4041_v12 = vpop.f32.mrb[19].mxu1 }
 0x24b   : > { %v7852_v12 = vld [vmem:[%s8160_s26 + $0x28] ss:$52 sps:$4 sm:$0xff]  }
 0x24c   : > { %4251 = vmatmul.mubr.bf16.gmra.mrb[124].mxu1 %v7793_v8  ;;  %v7850_v8 = vld [vmem:[%s8160_s26 + $0x694] ss:$52 sps:$4 sm:$0xff]  }
 0x24d   : > { %5054 = vmatmul.mubr.bf16.gmra.mrb[92].mxu0 %v7794_v10  ;;  %4355 = vmatprep.mubr.bf16.mxu1 %v7797_v11  ;;  %v7854_v10 = vld [vmem:[%s8160_s26 + $0x2c] ss:$52 sps:$4 sm:$0xff]   ;;  %v7855_v11 = vld [vmem:[%s8160_s26 + $0x690] ss:$52 sps:$4 sm:$0xff]  }
 0x24e   : > { %5061 = vmatprep.mubr.bf16.mxu0 %v7798_v13  ;;  %v7856_v13 = vld [vmem:[%s8160_s26 + $0x6fc] ss:$52 sps:$4 sm:$0xff]  }
 0x24f   : > { %v8635_v14 = vpop.f32.mrb[20].mxu1 }
 0x250   : > { %v4046_v15 = vpop.f32.mrb[21].mxu1 }
 0x251   : > { %v8638_v17 = vpop.f32.mrb[22].mxu1  ;;  %v7858_v15 = vld [vmem:[%s8160_s26 + $0x94] ss:$52 sps:$4 sm:$0xff]  }
 0x252   : > { %v4049_v19 = vpop.f32.mrb[23].mxu1 }
 0x253   : > { %v7863_v19 = vld [vmem:[%s8160_s26 + $0x764] ss:$52 sps:$4 sm:$0xff]  }
 0x254   : > { %4356 = vmatmul.mubr.bf16.vlgmr.msra.gmra.mrb[32].mxu1 %v7795_v16  ;;  %v7860_v16 = vld [vmem:[%s8160_s26 + $0x6f8] ss:$52 sps:$4 sm:$0xff]  }
 0x255   : > { %5062 = vmatmul.mubr.bf16.gmra.mrb[96].mxu0 %v7800_v18  ;;  %6605 = vmatpush3.bf16.msra.mxu1 %v8546_v56  ;;  %v7862_v56 = vld [vmem:[%s8123_s22 + $0x318] sm:$0xff]   ;;  %v7861_v18 = vld [vmem:[%s8160_s26 + $0x90] ss:$52 sps:$4 sm:$0xff]  }
 0x256   : > { %4363 = vmatprep.mubr.bf16.mxu1 %v7803_v0  ;;  %5069 = vmatprep.mubr.bf16.mxu0 %v7805_v20  ;;  %v7865_v0 = vld [vmem:[%s8160_s26 + $0xfc] ss:$52 sps:$4 sm:$0xff]   ;;  %v7867_v20 = vld [vmem:[%s8160_s26 + $0x760] ss:$52 sps:$4 sm:$0xff]  }
 0x257   : > { %v8646_v23 = vpop.f32.mrb[24].mxu1  ;;  %6606 = vmatprep.subr.bf16.mxu1 %v7822_v21 }
 0x258   : > { %v4054_v24 = vpop.f32.mrb[25].mxu1 }
 0x259   : > { %v8649_v26 = vpop.f32.mrb[26].mxu1  ;;  %6607 = vmatpush3.bf16.msra.mxu1 %v7822_v21  ;;  %v7868_v21 = vld [vmem:[%s8160_s26 + $0xf8] ss:$52 sps:$4 sm:$0xff]  }
 0x25a   : > { %v4057_v29 = vpop.f32.mrb[27].mxu1  ;;  %6608 = vmatprep.subr.bf16.mxu1 %v7843_v22  ;;  %v7871_v24 = vld [vmem:[%s8160_s26 + $0x164] ss:$52 sps:$4 sm:$0xff]  }
 0x25b   : > { %v7877_v29 = vld [vmem:[%s8160_s26 + $0x1cc] ss:$52 sps:$4 sm:$0xff]  }
 0x25c   : > { %4364 = vmatmul.mubr.bf16.gmra.mrb[36].mxu1 %v7807_v25  ;;  %v7873_v25 = vld [vmem:[%s8160_s26 + $0x7c8] ss:$52 sps:$4 sm:$0xff]  }
 0x25d   : > { %5070 = vmatmul.mubr.bf16.gmra.mrb[100].mxu0 %v7808_v27  ;;  %4371 = vmatprep.mubr.bf16.mxu1 %v7809_v28  ;;  %v7874_v27 = vld [vmem:[%s8160_s26 + $0x160] ss:$52 sps:$4 sm:$0xff]  }
 0x25e   : > { %5077 = vmatprep.mubr.bf16.mxu0 %v7811_v30  ;;  %6609 = vmatpush3.bf16.msra.mxu1 %v7843_v22  ;;  %v7869_v22 = vld [vmem:[%s8160_s26 + $0x7cc] ss:$52 sps:$4 sm:$0xff]   ;;  %v7875_v28 = vld [vmem:[%s8160_s26 + $0x834] ss:$52 sps:$4 sm:$0xff]   ;;  %v7879_v30 = vld [vmem:[%s8160_s26 + $0x830] ss:$52 sps:$4 sm:$0xff]  }
 0x25f   : > { %v8655_v31 = vpop.f32.mrb[28].mxu1  ;;  %6610 = vmatprep.subr.bf16.mxu1 %v7862_v56 }
 0x260   : > { %v4062_v33 = vpop.f32.mrb[29].mxu1 }
 0x261   : > { %v8659_v35 = vpop.f32.mrb[30].mxu1  ;;  %v7884_v33 = vld [vmem:[%s8160_s26 + $0x234] ss:$52 sps:$4 sm:$0xff]  }
 0x262   : > { %v4065_v40 = vpop.f32.mrb[31].mxu1  ;;  %6611 = vmatpush3.bf16.msra.mxu1 %v7862_v56  ;;  %v7880_v56 = vld [vmem:[%s8160_s26 + $0x1c8] ss:$52 sps:$4 sm:$0xff]  }
 0x263   : > { %6612 = vmatprep.subr.bf16.mxu1 %v7881_v32  ;;  %v7890_v40 = vld [vmem:[%s8160_s26 + $0x29c] ss:$52 sps:$4 sm:$0xff]  }
 0x264   : > { %4372 = vmatmul.mubr.bf16.gmra.mrb[40].mxu1 %v7813_v34  ;;  %v7886_v34 = vld [vmem:[%s8160_s26 + $0x898] ss:$52 sps:$4 sm:$0xff]  }
 0x265   : > { %5078 = vmatmul.mubr.bf16.gmra.mrb[104].mxu0 %v7814_v37  ;;  %4379 = vmatprep.mubr.bf16.mxu1 %v7816_v38  ;;  %v7887_v37 = vld [vmem:[%s8160_s26 + $0x230] ss:$52 sps:$4 sm:$0xff]  }
 0x266   : > { %5085 = vmatprep.mubr.bf16.mxu0 %v7818_v41  ;;  %6613 = vmatpush3.bf16.msra.mxu1 %v7881_v32  ;;  %v7882_v32 = vld [vmem:[%s8160_s26 + $0x89c] ss:$52 sps:$4 sm:$0xff]   ;;  %v7888_v38 = vld [vmem:[%s8160_s26 + $0x904] ss:$52 sps:$4 sm:$0xff]   ;;  %v7892_v41 = vld [vmem:[%s8160_s26 + $0x900] ss:$52 sps:$4 sm:$0xff]  }
 0x267   : > { %6614 = vmatprep.subr.bf16.mxu1 %v7900_v42 }
 0x26a   : > { %6615 = vmatpush3.bf16.msra.mxu1 %v7900_v42  ;;  %v7893_v42 = vld [vmem:[%s8160_s26 + $0x298] ss:$52 sps:$4 sm:$0xff]  }
 0x26b   : > { %6616 = vmatprep.subr.bf16.mxu1 %v7919_v43 }
 0x26c   : > { %4380 = vmatmul.mubr.bf16.gmra.mrb[44].mxu1 %v7820_v45  ;;  %v7896_v45 = vld [vmem:[%s8160_s26 + $0x304] ss:$52 sps:$4 sm:$0xff]  }
 0x26d   : > { %5086 = vmatmul.mubr.bf16.gmra.mrb[108].mxu0 %v7821_v46  ;;  %4387 = vmatprep.mubr.bf16.mxu1 %v7823_v48  ;;  %v7898_v46 = vld [vmem:[%s8160_s26 + $0x968] ss:$52 sps:$4 sm:$0xff]   ;;  %v7899_v48 = vld [vmem:[%s8160_s26 + $0x300] ss:$52 sps:$4 sm:$0xff]  }
 0x26e   : > { %5093 = vmatprep.mubr.bf16.mxu0 %v7825_v49  ;;  %6617 = vmatpush3.bf16.msra.mxu1 %v7919_v43  ;;  %v7894_v43 = vld [vmem:[%s8160_s26 + $0x96c] ss:$52 sps:$4 sm:$0xff]   ;;  %v7901_v49 = vld [vmem:[%s8160_s26 + $0x9d4] ss:$52 sps:$4 sm:$0xff]  }
 0x26f   : > { %6618 = vmatprep.subr.bf16.mxu1 %v7938_v62 }
 0x272   : > { %6619 = vmatpush3.bf16.msra.mxu1 %v7938_v62  ;;  %v7915_v62 = vld [vmem:[%s8160_s26 + $0x43c] ss:$52 sps:$4 sm:$0xff]  }
 0x274   : > { %4388 = vmatmul.mubr.bf16.gmra.mrb[48].mxu1 %v7827_v50  ;;  %v7903_v50 = vld [vmem:[%s8160_s26 + $0x36c] ss:$52 sps:$4 sm:$0xff]  }
 0x275   : > { %5094 = vmatmul.mubr.bf16.gmra.mrb[112].mxu0 %v7828_v51  ;;  %4395 = vmatprep.mubr.bf16.mxu1 %v7830_v53  ;;  %v7905_v51 = vld [vmem:[%s8160_s26 + $0x9d0] ss:$52 sps:$4 sm:$0xff]   ;;  %v7906_v53 = vld [vmem:[%s8160_s26 + $0x368] ss:$52 sps:$4 sm:$0xff]  }
 0x276   : > { %5101 = vmatprep.mubr.bf16.mxu0 %v7832_v54  ;;  %v7907_v54 = vld [vmem:[%s8160_s26 + $0xa3c] ss:$52 sps:$4 sm:$0xff]  }
 0x27c   : > { %4396 = vmatmul.mubr.bf16.gmra.mrb[52].mxu1 %v7834_v57  ;;  %v7909_v57 = vld [vmem:[%s8160_s26 + $0x3d4] ss:$52 sps:$4 sm:$0xff]  }
 0x27d   : > { %5102 = vmatmul.mubr.bf16.gmra.mrb[116].mxu0 %v7835_v58  ;;  %4403 = vmatprep.mubr.bf16.mxu1 %v7836_v59  ;;  %v7911_v58 = vld [vmem:[%s8160_s26 + $0xa38] ss:$52 sps:$4 sm:$0xff]   ;;  %v7912_v59 = vld [vmem:[%s8160_s26 + $0x3d0] ss:$52 sps:$4 sm:$0xff]  }
 0x27e   : > { %5109 = vmatprep.mubr.bf16.mxu0 %v7838_v60  ;;  %v7913_v60 = vld [vmem:[%s8160_s26 + $0xaa4] ss:$52 sps:$4 sm:$0xff]  }
 0x284   : > { %4404 = vmatmul.mubr.bf16.gmra.mrb[56].mxu1 %v7840_v63  ;;  %v7917_v63 = vld [vmem:[%s8160_s26 + $0xaa0] ss:$52 sps:$4 sm:$0xff]  }
 0x285   : > { %5110 = vmatmul.mubr.bf16.gmra.mrb[120].mxu0 %v7841_v2  ;;  %4411 = vmatprep.mubr.bf16.mxu1 %v7844_v3  ;;  %v7918_v2 = vld [vmem:[%s8160_s26 + $0x438] ss:$52 sps:$4 sm:$0xff]  }
 0x286   : > { %5117 = vmatprep.mubr.bf16.mxu0 %v7846_v4  ;;  %v7920_v3 = vld [vmem:[%s8160_s26 + $0xb0c] ss:$52 sps:$4 sm:$0xff]   ;;  %v7922_v4 = vld [vmem:[%s8160_s26 + $0x4a4] ss:$52 sps:$4 sm:$0xff]  }
 0x28c   : > { %4412 = vmatmul.mubr.bf16.gmra.mrb[60].mxu1 %v7848_v5  ;;  %v7924_v5 = vld [vmem:[%s8160_s26 + $0xb08] ss:$52 sps:$4 sm:$0xff]  }
 0x28d   : > { %5118 = vmatmul.mubr.bf16.gmra.mrb[124].mxu0 %v7849_v7  ;;  %4419 = vmatprep.mubr.bf16.mxu1 %v7850_v8  ;;  %v7925_v7 = vld [vmem:[%s8160_s26 + $0x4a0] ss:$52 sps:$4 sm:$0xff]  }
 0x28e   : > { %5158 = vmatprep.mubr.bf16.mxu0 %v7854_v10  ;;  %v7926_v8 = vld [vmem:[%s8160_s26 + $0xb74] ss:$52 sps:$4 sm:$0xff]   ;;  %v7928_v10 = vld [vmem:[%s8160_s26 + $0x50c] ss:$52 sps:$4 sm:$0xff]  }
 0x294   : > { %4420 = vmatmul.mubr.bf16.gmra.mrb[64].mxu1 %v7855_v11  ;;  %v7930_v11 = vld [vmem:[%s8160_s26 + $0xb70] ss:$52 sps:$4 sm:$0xff]  }
 0x295   : > { %5159 = vmatmul.mubr.bf16.vlgmr.msra.gmra.mrb[0].mxu0 %v7852_v12  ;;  %4427 = vmatprep.mubr.bf16.mxu1 %v7856_v13  ;;  %v7931_v12 = vld [vmem:[%s8160_s26 + $0x508] ss:$52 sps:$4 sm:$0xff]  }
 0x296   : > { %5166 = vmatprep.mubr.bf16.mxu0 %v7858_v15  ;;  %v7932_v13 = vld [vmem:[%s8160_s26 + $0xbdc] ss:$52 sps:$4 sm:$0xff]   ;;  %v7934_v15 = vld [vmem:[%s8160_s26 + $0x574] ss:$52 sps:$4 sm:$0xff]  }
 0x29c   : > { %4428 = vmatmul.mubr.bf16.gmra.mrb[68].mxu1 %v7860_v16  ;;  %v7936_v16 = vld [vmem:[%s8160_s26 + $0xbd8] ss:$52 sps:$4 sm:$0xff]  }
 0x29d   : > { %5167 = vmatmul.mubr.bf16.gmra.mrb[4].mxu0 %v7861_v18  ;;  %4435 = vmatprep.mubr.bf16.mxu1 %v7863_v19  ;;  %v7937_v18 = vld [vmem:[%s8160_s26 + $0x570] ss:$52 sps:$4 sm:$0xff]  }
 0x29e   : > { %5174 = vmatprep.mubr.bf16.mxu0 %v7865_v0  ;;  %v7939_v19 = vld [vmem:[%s8160_s26 + $0xc44] ss:$52 sps:$4 sm:$0xff]   ;;  %v7941_v0 = vld [vmem:[%s8160_s26 + $0x5dc] ss:$52 sps:$4 sm:$0xff]  }
 0x2a4   : > { %4436 = vmatmul.mubr.bf16.gmra.mrb[72].mxu1 %v7867_v20  ;;  %v7943_v20 = vld [vmem:[%s8160_s26 + $0xc40] ss:$52 sps:$4 sm:$0xff]  }
 0x2a5   : > { %5175 = vmatmul.mubr.bf16.gmra.mrb[8].mxu0 %v7868_v21  ;;  %4443 = vmatprep.mubr.bf16.mxu1 %v7869_v22  ;;  %v7944_v21 = vld [vmem:[%s8160_s26 + $0x5d8] ss:$52 sps:$4 sm:$0xff]  }
 0x2a6   : > { %5182 = vmatprep.mubr.bf16.mxu0 %v7871_v24  ;;  %v7945_v22 = vld [vmem:[%s8160_s26 + $0xcac] ss:$52 sps:$4 sm:$0xff]   ;;  %v7947_v24 = vld [vmem:[%s8160_s26 + $0x644] ss:$52 sps:$4 sm:$0xff]  }
 0x2ac   : > { %4444 = vmatmul.mubr.bf16.gmra.mrb[76].mxu1 %v7873_v25  ;;  %v7949_v25 = vld [vmem:[%s8160_s26 + $0xca8] ss:$52 sps:$4 sm:$0xff]  }
 0x2ad   : > { %5183 = vmatmul.mubr.bf16.gmra.mrb[12].mxu0 %v7874_v27  ;;  %4451 = vmatprep.mubr.bf16.mxu1 %v7875_v28  ;;  %v7950_v27 = vld [vmem:[%s8160_s26 + $0x640] ss:$52 sps:$4 sm:$0xff]   ;;  %v7953_v28 = vld [vmem:[%s8160_s26 + $0x30] ss:$52 sps:$4 sm:$0xff]  }
 0x2ae   : > { %5190 = vmatprep.mubr.bf16.mxu0 %v7877_v29  ;;  %v7951_v29 = vld [vmem:[%s8160_s26 + $0x6ac] ss:$52 sps:$4 sm:$0xff]  }
 0x2b4   : > { %4452 = vmatmul.mubr.bf16.gmra.mrb[80].mxu1 %v7879_v30  ;;  %v7955_v30 = vld [vmem:[%s8160_s26 + $0x98] ss:$52 sps:$4 sm:$0xff]  }
 0x2b5   : > { %5191 = vmatmul.mubr.bf16.gmra.mrb[16].mxu0 %v7880_v56  ;;  %4459 = vmatprep.mubr.bf16.mxu1 %v7882_v32  ;;  %v7954_v56 = vld [vmem:[%s8160_s26 + $0x6a8] ss:$52 sps:$4 sm:$0xff]   ;;  %v7958_v32 = vld [vmem:[%s8160_s26 + $0x100] ss:$52 sps:$4 sm:$0xff]  }
 0x2b6   : > { %5198 = vmatprep.mubr.bf16.mxu0 %v7884_v33  ;;  %v7956_v33 = vld [vmem:[%s8160_s26 + $0x714] ss:$52 sps:$4 sm:$0xff]  }
 0x2bc   : > { %4460 = vmatmul.mubr.bf16.gmra.mrb[84].mxu1 %v7886_v34  ;;  %v7960_v34 = vld [vmem:[%s8160_s26 + $0x168] ss:$52 sps:$4 sm:$0xff]  }
 0x2bd   : > { %5199 = vmatmul.mubr.bf16.gmra.mrb[20].mxu0 %v7887_v37  ;;  %4467 = vmatprep.mubr.bf16.mxu1 %v7888_v38  ;;  %v7959_v37 = vld [vmem:[%s8160_s26 + $0x710] ss:$52 sps:$4 sm:$0xff]  }
 0x2be   : > { %5206 = vmatprep.mubr.bf16.mxu0 %v7890_v40  ;;  %v7963_v38 = vld [vmem:[%s8160_s26 + $0x1d0] ss:$52 sps:$4 sm:$0xff]  }
 0x2bf   : > { %v7961_v40 = vld [vmem:[%s8160_s26 + $0x77c] ss:$52 sps:$4 sm:$0xff]  }
 0x2c4   : > { %4468 = vmatmul.mubr.bf16.gmra.mrb[88].mxu1 %v7892_v41  ;;  %v7965_v41 = vld [vmem:[%s8160_s26 + $0x238] ss:$52 sps:$4 sm:$0xff]  }
 0x2c5   : > { %5207 = vmatmul.mubr.bf16.gmra.mrb[24].mxu0 %v7893_v42  ;;  %4475 = vmatprep.mubr.bf16.mxu1 %v7894_v43  ;;  %v7964_v42 = vld [vmem:[%s8160_s26 + $0x778] ss:$52 sps:$4 sm:$0xff]   ;;  %v7968_v43 = vld [vmem:[%s8160_s26 + $0x2a0] ss:$52 sps:$4 sm:$0xff]  }
 0x2c6   : > { %5214 = vmatprep.mubr.bf16.mxu0 %v7896_v45  ;;  %v7966_v45 = vld [vmem:[%s8160_s26 + $0x7e4] ss:$52 sps:$4 sm:$0xff]  }
 0x2cc   : > { %4476 = vmatmul.mubr.bf16.gmra.mrb[92].mxu1 %v7898_v46 }
 0x2cd   : > { %5215 = vmatmul.mubr.bf16.gmra.mrb[28].mxu0 %v7899_v48  ;;  %4483 = vmatprep.mubr.bf16.mxu1 %v7901_v49  ;;  %v7970_v49 = vld [vmem:[%s8160_s26 + $0x308] ss:$52 sps:$4 sm:$0xff]  }
 0x2ce   : > { %5222 = vmatprep.mubr.bf16.mxu0 %v7903_v50 }
 0x2d4   : > { %4484 = vmatmul.mubr.bf16.gmra.mrb[96].mxu1 %v7905_v51  ;;  %v7969_v51 = vld [vmem:[%s8160_s26 + $0x7e0] ss:$52 sps:$4 sm:$0xff]  }
 0x2d5   : > { %5223 = vmatmul.mubr.bf16.gmra.mrb[32].mxu0 %v7906_v53  ;;  %4491 = vmatprep.mubr.bf16.mxu1 %v7907_v54  ;;  %v7973_v53 = vld [vmem:[%s8160_s26 + $0x370] ss:$52 sps:$4 sm:$0xff]  }
 0x2d6   : > { %5230 = vmatprep.mubr.bf16.mxu0 %v7909_v57  ;;  %v7971_v57 = vld [vmem:[%s8160_s26 + $0x84c] ss:$52 sps:$4 sm:$0xff]  }
 0x2dc   : > { %4492 = vmatmul.mubr.bf16.gmra.mrb[100].mxu1 %v7911_v58 }
 0x2dd   : > { %5231 = vmatmul.mubr.bf16.gmra.mrb[36].mxu0 %v7912_v59  ;;  %4499 = vmatprep.mubr.bf16.mxu1 %v7913_v60  ;;  %v7975_v60 = vld [vmem:[%s8160_s26 + $0x3d8] ss:$52 sps:$4 sm:$0xff]  }
 0x2de   : > { %5238 = vmatprep.mubr.bf16.mxu0 %v7915_v62 }
 0x2e4   : > { %4500 = vmatmul.mubr.bf16.gmra.mrb[104].mxu1 %v7917_v63  ;;  %v7974_v63 = vld [vmem:[%s8160_s26 + $0x848] ss:$52 sps:$4 sm:$0xff]  }
 0x2e5   : > { %5239 = vmatmul.mubr.bf16.gmra.mrb[40].mxu0 %v7918_v2  ;;  %4507 = vmatprep.mubr.bf16.mxu1 %v7920_v3  ;;  %v7978_v2 = vld [vmem:[%s8160_s26 + $0x440] ss:$52 sps:$4 sm:$0xff]  }
 0x2e6   : > { %5246 = vmatprep.mubr.bf16.mxu0 %v7922_v4  ;;  %v7976_v4 = vld [vmem:[%s8160_s26 + $0x8b4] ss:$52 sps:$4 sm:$0xff]  }
 0x2ec   : > { %4508 = vmatmul.mubr.bf16.gmra.mrb[108].mxu1 %v7924_v5 }
 0x2ed   : > { %5247 = vmatmul.mubr.bf16.gmra.mrb[44].mxu0 %v7925_v7  ;;  %4515 = vmatprep.mubr.bf16.mxu1 %v7926_v8  ;;  %v7980_v8 = vld [vmem:[%s8160_s26 + $0x4a8] ss:$52 sps:$4 sm:$0xff]  }
 0x2ee   : > { %5254 = vmatprep.mubr.bf16.mxu0 %v7928_v10 }
 0x2f4   : > { %4516 = vmatmul.mubr.bf16.gmra.mrb[112].mxu1 %v7930_v11  ;;  %v7979_v11 = vld [vmem:[%s8160_s26 + $0x8b0] ss:$52 sps:$4 sm:$0xff]  }
 0x2f5   : > { %5255 = vmatmul.mubr.bf16.gmra.mrb[48].mxu0 %v7931_v12  ;;  %4523 = vmatprep.mubr.bf16.mxu1 %v7932_v13  ;;  %v7983_v12 = vld [vmem:[%s8160_s26 + $0x510] ss:$52 sps:$4 sm:$0xff]  }
 0x2f6   : > { %5262 = vmatprep.mubr.bf16.mxu0 %v7934_v15  ;;  %v7981_v15 = vld [vmem:[%s8160_s26 + $0x91c] ss:$52 sps:$4 sm:$0xff]  }
 0x2fc   : > { %4524 = vmatmul.mubr.bf16.gmra.mrb[116].mxu1 %v7936_v16 }
 0x2fd   : > { %5263 = vmatmul.mubr.bf16.gmra.mrb[52].mxu0 %v7937_v18  ;;  %4531 = vmatprep.mubr.bf16.mxu1 %v7939_v19  ;;  %v7985_v19 = vld [vmem:[%s8160_s26 + $0x578] ss:$52 sps:$4 sm:$0xff]  }
 0x2fe   : > { %5270 = vmatprep.mubr.bf16.mxu0 %v7941_v0 }
 0x304   : > { %4532 = vmatmul.mubr.bf16.gmra.mrb[120].mxu1 %v7943_v20  ;;  %v7984_v20 = vld [vmem:[%s8160_s26 + $0x918] ss:$52 sps:$4 sm:$0xff]  }
 0x305   : > { %5271 = vmatmul.mubr.bf16.gmra.mrb[56].mxu0 %v7944_v21  ;;  %4539 = vmatprep.mubr.bf16.mxu1 %v7945_v22  ;;  %v7988_v21 = vld [vmem:[%s8160_s26 + $0x5e0] ss:$52 sps:$4 sm:$0xff]  }
 0x306   : > { %5278 = vmatprep.mubr.bf16.mxu0 %v7947_v24  ;;  %v7986_v24 = vld [vmem:[%s8160_s26 + $0x984] ss:$52 sps:$4 sm:$0xff]  }
 0x30c   : > { %4540 = vmatmul.mubr.bf16.gmra.mrb[124].mxu1 %v7949_v25 }
 0x30d   : > { %5279 = vmatmul.mubr.bf16.gmra.mrb[60].mxu0 %v7950_v27  ;;  %6620 = vmatprep.mubr.bf16.mxu1 %v7953_v28  ;;  %v7990_v28 = vld [vmem:[%s8160_s26 + $0x648] ss:$52 sps:$4 sm:$0xff]  }
 0x30e   : > { %5286 = vmatprep.mubr.bf16.mxu0 %v7951_v29 }
 0x314   : > { %6621 = vmatmul.mubr.bf16.vlgmr.msra.gmra.mrb[128].mxu1 %v7955_v30  ;;  %v7989_v30 = vld [vmem:[%s8160_s26 + $0x980] ss:$52 sps:$4 sm:$0xff]  }
 0x315   : > { %5287 = vmatmul.mubr.bf16.gmra.mrb[64].mxu0 %v7954_v56  ;;  %6624 = vmatprep.mubr.bf16.mxu1 %v7958_v32  ;;  %v7993_v56 = vld [vmem:[%s8160_s26 + $0x6b0] ss:$52 sps:$4 sm:$0xff]  }
 0x316   : > { %5294 = vmatprep.mubr.bf16.mxu0 %v7956_v33  ;;  %v7991_v33 = vld [vmem:[%s8160_s26 + $0x9ec] ss:$52 sps:$4 sm:$0xff]  }
 0x31c   : > { %6625 = vmatmul.mubr.bf16.gmra.mrb[132].mxu1 %v7960_v34 }
 0x31d   : > { %5295 = vmatmul.mubr.bf16.gmra.mrb[68].mxu0 %v7959_v37  ;;  %6628 = vmatprep.mubr.bf16.mxu1 %v7963_v38  ;;  %v7995_v38 = vld [vmem:[%s8160_s26 + $0x718] ss:$52 sps:$4 sm:$0xff]  }
 0x31e   : > { %5302 = vmatprep.mubr.bf16.mxu0 %v7961_v40 }
 0x324   : > { %6629 = vmatmul.mubr.bf16.gmra.mrb[136].mxu1 %v7965_v41  ;;  %v7994_v41 = vld [vmem:[%s8160_s26 + $0x9e8] ss:$52 sps:$4 sm:$0xff]  }
 0x325   : > { %5303 = vmatmul.mubr.bf16.gmra.mrb[72].mxu0 %v7964_v42  ;;  %6632 = vmatprep.mubr.bf16.mxu1 %v7968_v43  ;;  %v7998_v42 = vld [vmem:[%s8160_s26 + $0x780] ss:$52 sps:$4 sm:$0xff]  }
 0x326   : > { %5310 = vmatprep.mubr.bf16.mxu0 %v7966_v45  ;;  %v7996_v45 = vld [vmem:[%s8160_s26 + $0xa54] ss:$52 sps:$4 sm:$0xff]  }
 0x327   : > { %v8763_v46 = vpop.f32.mrb[32].mxu1 }
 0x328   : > { %v4359_v48 = vpop.f32.mrb[33].mxu1 }
 0x329   : > { %v8766_v50 = vpop.f32.mrb[34].mxu1 }
 0x32a   : > { %v4362_v54 = vpop.f32.mrb[35].mxu1 }
 0x32b   : > { %v7999_v54 = vld [vmem:[%s8160_s26 + $0xa50] ss:$52 sps:$4 sm:$0xff]  }
 0x32c   : > { %6633 = vmatmul.mubr.bf16.gmra.mrb[140].mxu1 %v7970_v49 }
 0x32d   : > { %5311 = vmatmul.mubr.bf16.gmra.mrb[76].mxu0 %v7969_v51  ;;  %6636 = vmatprep.mubr.bf16.mxu1 %v7973_v53  ;;  %v8000_v51 = vld [vmem:[%s8160_s26 + $0x7e8] ss:$52 sps:$4 sm:$0xff]  }
 0x32e   : > { %5318 = vmatprep.mubr.bf16.mxu0 %v7971_v57  ;;  %v8003_v57 = vld [vmem:[%s8160_s26 + $0x850] ss:$52 sps:$4 sm:$0xff]  }
 0x32f   : > { %v8771_v58 = vpop.f32.mrb[36].mxu1 }
 0x330   : > { %v4367_v59 = vpop.f32.mrb[37].mxu1 }
 0x331   : > { %v8774_v62 = vpop.f32.mrb[38].mxu1 }
 0x332   : > { %v4370_v3 = vpop.f32.mrb[39].mxu1 }
 0x333   : > { %v8005_v3 = vld [vmem:[%s8160_s26 + $0x8b8] ss:$52 sps:$4 sm:$0xff]  }
 0x334   : > { %6637 = vmatmul.mubr.bf16.gmra.mrb[144].mxu1 %v7975_v60  ;;  %v8001_v60 = vld [vmem:[%s8160_s26 + $0xabc] ss:$52 sps:$4 sm:$0xff]  }
 0x335   : > { %5319 = vmatmul.mubr.bf16.gmra.mrb[80].mxu0 %v7974_v63  ;;  %6640 = vmatprep.mubr.bf16.mxu1 %v7978_v2 }
 0x336   : > { %5326 = vmatprep.mubr.bf16.mxu0 %v7976_v4 }
 0x337   : > { %v8779_v5 = vpop.f32.mrb[40].mxu1 }
 0x338   : > { %v4375_v7 = vpop.f32.mrb[41].mxu1 }
 0x339   : > { %v8782_v10 = vpop.f32.mrb[42].mxu1  ;;  %v8004_v7 = vld [vmem:[%s8160_s26 + $0xab8] ss:$52 sps:$4 sm:$0xff]  }
 0x33a   : > { %v4378_v13 = vpop.f32.mrb[43].mxu1 }
 0x33c   : > { %6641 = vmatmul.mubr.bf16.gmra.mrb[148].mxu1 %v7980_v8  ;;  %v8008_v8 = vld [vmem:[%s8160_s26 + $0x920] ss:$52 sps:$4 sm:$0xff]  }
 0x33d   : > { %5327 = vmatmul.mubr.bf16.gmra.mrb[84].mxu0 %v7979_v11  ;;  %6644 = vmatprep.mubr.bf16.mxu1 %v7983_v12  ;;  %v8006_v12 = vld [vmem:[%s8160_s26 + $0xb24] ss:$52 sps:$4 sm:$0xff]  }
 0x33e   : > { %5334 = vmatprep.mubr.bf16.mxu0 %v7981_v15 }
 0x33f   : > { %v8787_v16 = vpop.f32.mrb[44].mxu1 }
 0x340   : > { %v4383_v18 = vpop.f32.mrb[45].mxu1 }
 0x341   : > { %v8790_v0 = vpop.f32.mrb[46].mxu1 }
 0x342   : > { %v4386_v22 = vpop.f32.mrb[47].mxu1 }
 0x344   : > { %6645 = vmatmul.mubr.bf16.gmra.mrb[152].mxu1 %v7985_v19  ;;  %v8010_v19 = vld [vmem:[%s8160_s26 + $0x988] ss:$52 sps:$4 sm:$0xff]  }
 0x345   : > { %5335 = vmatmul.mubr.bf16.gmra.mrb[88].mxu0 %v7984_v20  ;;  %6648 = vmatprep.mubr.bf16.mxu1 %v7988_v21 }
 0x346   : > { %5342 = vmatprep.mubr.bf16.mxu0 %v7986_v24  ;;  %v8009_v24 = vld [vmem:[%s8160_s26 + $0xb20] ss:$52 sps:$4 sm:$0xff]  }
 0x347   : > { %v8795_v25 = vpop.f32.mrb[48].mxu1 }
 0x348   : > { %v4391_v27 = vpop.f32.mrb[49].mxu1 }
 0x349   : > { %v8798_v29 = vpop.f32.mrb[50].mxu1  ;;  %v8013_v27 = vld [vmem:[%s8160_s26 + $0x9f0] ss:$52 sps:$4 sm:$0xff]  }
 0x34a   : > { %v4394_v32 = vpop.f32.mrb[51].mxu1 }
 0x34c   : > { %6649 = vmatmul.mubr.bf16.gmra.mrb[156].mxu1 %v7990_v28 }
 0x34d   : > { %5343 = vmatmul.mubr.bf16.gmra.mrb[92].mxu0 %v7989_v30  ;;  %6652 = vmatprep.mubr.bf16.mxu1 %v7993_v56  ;;  %v8011_v56 = vld [vmem:[%s8160_s26 + $0xb8c] ss:$52 sps:$4 sm:$0xff]  }
 0x34e   : > { %5350 = vmatprep.mubr.bf16.mxu0 %v7991_v33 }
 0x34f   : > { %v8803_v34 = vpop.f32.mrb[52].mxu1 }
 0x350   : > { %v4399_v37 = vpop.f32.mrb[53].mxu1 }
 0x351   : > { %v8806_v40 = vpop.f32.mrb[54].mxu1 }
 0x352   : > { %v4402_v43 = vpop.f32.mrb[55].mxu1 }
 0x354   : > { %6653 = vmatmul.mubr.bf16.gmra.mrb[160].mxu1 %v7995_v38 }
 0x355   : > { %5351 = vmatmul.mubr.bf16.gmra.mrb[96].mxu0 %v7994_v41  ;;  %6656 = vmatprep.mubr.bf16.mxu1 %v7998_v42  ;;  %v8015_v41 = vld [vmem:[%s8160_s26 + $0xa58] ss:$52 sps:$4 sm:$0xff]  }
 0x356   : > { %5358 = vmatprep.mubr.bf16.mxu0 %v7996_v45 }
 0x357   : > { %v8811_v48 = vpop.f32.mrb[56].mxu1 }
 0x358   : > { %v4407_v49 = vpop.f32.mrb[57].mxu1 }
 0x359   : > { %v8814_v53 = vpop.f32.mrb[58].mxu1  ;;  %v8018_v49 = vld [vmem:[%s8160_s26 + $0xac0] ss:$52 sps:$4 sm:$0xff]  }
 0x35a   : > { %v4410_v59 = vpop.f32.mrb[59].mxu1 }
 0x35c   : > { %6657 = vmatmul.mubr.bf16.gmra.mrb[164].mxu1 %v8000_v51 }
 0x35d   : > { %5359 = vmatmul.mubr.bf16.gmra.mrb[100].mxu0 %v7999_v54  ;;  %6660 = vmatprep.mubr.bf16.mxu1 %v8003_v57  ;;  %v8016_v57 = vld [vmem:[%s8160_s26 + $0xbf4] ss:$52 sps:$4 sm:$0xff]  }
 0x35e   : > { %5366 = vmatprep.mubr.bf16.mxu0 %v8001_v60 }
 0x35f   : > { %v8819_v63 = vpop.f32.mrb[60].mxu1 }
 0x360   : > { %v4415_v2 = vpop.f32.mrb[61].mxu1 }
 0x361   : > { %v8822_v4 = vpop.f32.mrb[62].mxu1 }
 0x362   : > { %v4418_v11 = vpop.f32.mrb[63].mxu1 }
 0x364   : > { %6661 = vmatmul.mubr.bf16.gmra.mrb[168].mxu1 %v8005_v3 }
 0x365   : > { %5367 = vmatmul.mubr.bf16.gmra.mrb[104].mxu0 %v8004_v7  ;;  %6664 = vmatprep.mubr.bf16.mxu1 %v8008_v8  ;;  %v8020_v7 = vld [vmem:[%s8160_s26 + $0xb28] ss:$52 sps:$4 sm:$0xff]  }
 0x366   : > { %5374 = vmatprep.mubr.bf16.mxu0 %v8006_v12 }
 0x367   : > { %v8827_v13 = vpop.f32.mrb[64].mxu1 }
 0x368   : > { %v5160_v15 = vpop.f32.mrb[0].mxu0  ;;  %v4423_v18 = vpop.f32.mrb[65].mxu1 }
 0x369   : > { %v8831_v20 = vadd.f32 %v5160_v15, %v8595_v36  ;;  %v5162_v21 = vpop.f32.mrb[1].mxu0  ;;  %v8833_v22 = vpop.f32.mrb[66].mxu1  ;;  %v8023_v15 = vld [vmem:[%s8160_s26 + $0xb90] ss:$52 sps:$4 sm:$0xff]  }
 0x36a   : > { %v5163_v28 = vpop.f32.mrb[2].mxu0  ;;  %v4426_v30 = vpop.f32.mrb[67].mxu1  ;;  %v8021_v21 = vld [vmem:[%s8160_s26 + $0xc5c] ss:$52 sps:$4 sm:$0xff]  }
 0x36b   : > { %v8839_v32 = vadd.f32 %v5163_v28, %v8598_v39  ;;  %v5165_v33 = vpop.f32.mrb[3].mxu0  ;;  %v8014_v39 = vld [vmem:[%s8160_s26 + $0xb88] ss:$52 sps:$4 sm:$0xff]  }
 0x36c   : > { %6665 = vmatmul.mubr.bf16.gmra.mrb[172].mxu1 %v8010_v19 }
 0x36d   : > { %5375 = vmatmul.mubr.bf16.gmra.mrb[108].mxu0 %v8009_v24  ;;  %6668 = vmatprep.mubr.bf16.mxu1 %v8013_v27 }
 0x36e   : > { %5382 = vmatprep.mubr.bf16.mxu0 %v8011_v56  ;;  %v8025_v56 = vld [vmem:[%s8160_s26 + $0xbf8] ss:$52 sps:$4 sm:$0xff]  }
 0x36f   : > { %v8841_v36 = vpop.f32.mrb[68].mxu1 }
 0x370   : > { %v5168_v37 = vpop.f32.mrb[4].mxu0  ;;  %v4431_v38 = vpop.f32.mrb[69].mxu1 }
 0x371   : > { %v8845_v42 = vadd.f32 %v5168_v37, %v8603_v44  ;;  %v5170_v43 = vpop.f32.mrb[5].mxu0  ;;  %v8847_v45 = vpop.f32.mrb[70].mxu1 }
 0x372   : > { %v5171_v51 = vpop.f32.mrb[6].mxu0  ;;  %v4434_v54 = vpop.f32.mrb[71].mxu1 }
 0x373   : > { %v8853_v59 = vadd.f32 %v5171_v51, %v8606_v47  ;;  %v5173_v60 = vpop.f32.mrb[7].mxu0  ;;  %v8019_v47 = vld [vmem:[%s8160_s26 + $0xbf0] ss:$52 sps:$4 sm:$0xff]  }
 0x374   : > { %6669 = vmatmul.mubr.bf16.gmra.mrb[176].mxu1 %v8015_v41  ;;  %v8028_v41 = vld [vmem:[%s8160_s26 + $0xc60] ss:$52 sps:$4 sm:$0xff]  }
 0x375   : > { %5383 = vmatmul.mubr.bf16.gmra.mrb[112].mxu0 %v8014_v39  ;;  %6672 = vmatprep.mubr.bf16.mxu1 %v8018_v49  ;;  %v8026_v49 = vld [vmem:[%s8160_s26 + $0xcc4] ss:$52 sps:$4 sm:$0xff]  }
 0x376   : > { %5390 = vmatprep.mubr.bf16.mxu0 %v8016_v57 }
 0x377   : > { %v8855_v44 = vpop.f32.mrb[72].mxu1 }
 0x378   : > { %v5176_v2 = vpop.f32.mrb[8].mxu0  ;;  %v4439_v3 = vpop.f32.mrb[73].mxu1 }
 0x379   : > { %v8859_v8 = vadd.f32 %v5176_v2, %v8611_v52  ;;  %v5178_v11 = vpop.f32.mrb[9].mxu0  ;;  %v8861_v12 = vpop.f32.mrb[74].mxu1  ;;  %v8030_v2 = vld [vmem:[%s8160_s26 + $0xcc8] ss:$52 sps:$4 sm:$0xff]  }
 0x37a   : > { %v5179_v18 = vpop.f32.mrb[10].mxu0  ;;  %v4442_v19 = vpop.f32.mrb[75].mxu1 }
 0x37b   : > { %v8867_v24 = vadd.f32 %v5179_v18, %v8614_v55  ;;  %v5181_v27 = vpop.f32.mrb[11].mxu0  ;;  %v8024_v55 = vld [vmem:[%s8160_s26 + $0xc58] ss:$52 sps:$4 sm:$0xff]  }
 0x37c   : > { %6673 = vmatmul.mubr.bf16.gmra.mrb[180].mxu1 %v8020_v7 }
 0x37d   : > { %5391 = vmatmul.mubr.bf16.gmra.mrb[116].mxu0 %v8019_v47  ;;  %6676 = vmatprep.mubr.bf16.mxu1 %v8023_v15  ;;  %v8029_v47 = vld [vmem:[%s8160_s26 + $0xcc0] ss:$52 sps:$4 sm:$0xff]  }
 0x37e   : > { %5398 = vmatprep.mubr.bf16.mxu0 %v8021_v21 }
 0x37f   : > { %v8869_v52 = vpop.f32.mrb[76].mxu1 }
 0x380   : > { %v5184_v28 = vpop.f32.mrb[12].mxu0  ;;  %v4447_v30 = vpop.f32.mrb[77].mxu1 }
 0x381   : > { %v8873_v33 = vadd.f32 %v5184_v28, %v8619_v61  ;;  %v5186_v37 = vpop.f32.mrb[13].mxu0  ;;  %v8875_v38 = vpop.f32.mrb[78].mxu1 }
 0x382   : > { %v5187_v43 = vpop.f32.mrb[14].mxu0  ;;  %v4450_v39 = vpop.f32.mrb[79].mxu1 }
 0x383   : > { %v8881_v51 = vadd.f32 %v5187_v43, %v8622_v1  ;;  %v5189_v54 = vpop.f32.mrb[15].mxu0 }
 0x384   : > { %6677 = vmatmul.mubr.bf16.gmra.mrb[184].mxu1 %v8025_v56 }
 0x385   : > { %5399 = vmatmul.mubr.bf16.gmra.mrb[120].mxu0 %v8024_v55  ;;  %6680 = vmatprep.mubr.bf16.mxu1 %v8028_v41 }
 0x386   : > { %5406 = vmatprep.mubr.bf16.mxu0 %v8026_v49 }
 0x387   : > { %v8883_v61 = vpop.f32.mrb[80].mxu1 }
 0x388   : > { %v5192_v57 = vpop.f32.mrb[16].mxu0  ;;  %v4455_v60 = vpop.f32.mrb[81].mxu1 }
 0x389   : > { %v8887_v3 = vadd.f32 %v5192_v57, %v8627_v6  ;;  %v5194_v7 = vpop.f32.mrb[17].mxu0  ;;  %v8889_v11 = vpop.f32.mrb[82].mxu1 }
 0x38a   : > { %v5195_v15 = vpop.f32.mrb[18].mxu0  ;;  %v4458_v1 = vpop.f32.mrb[83].mxu1 }
 0x38b   : > { %v8893_v18 = vadd.f32 %v5195_v15, %v8630_v9  ;;  %v5197_v19 = vpop.f32.mrb[19].mxu0 }
 0x38c   : > { %6681 = vmatmul.mubr.bf16.gmra.mrb[188].mxu1 %v8030_v2 }
 0x38d   : > { %5407 = vmatmul.mubr.bf16.gmra.mrb[124].mxu0 %v8029_v47 }
 0x38f   : > { %v8895_v21 = vpop.f32.mrb[84].mxu1 }
 0x390   : > { %v5200_v27 = vpop.f32.mrb[20].mxu0  ;;  %v4463_v28 = vpop.f32.mrb[85].mxu1 }
 0x391   : > { %v8898_v30 = vadd.f32 %v5200_v27, %v8635_v14  ;;  %v5202_v6 = vpop.f32.mrb[21].mxu0  ;;  %v8900_v56 = vpop.f32.mrb[86].mxu1 }
 0x392   : > { %v5203_v37 = vpop.f32.mrb[22].mxu0  ;;  %v4466_v55 = vpop.f32.mrb[87].mxu1 }
 0x393   : > { %v8903_v41 = vadd.f32 %v5203_v37, %v8638_v17  ;;  %v5205_v9 = vpop.f32.mrb[23].mxu0 }
 0x397   : > { %v8905_v43 = vpop.f32.mrb[88].mxu1 }
 0x398   : > { %v5208_v39 = vpop.f32.mrb[24].mxu0  ;;  %v4471_v49 = vpop.f32.mrb[89].mxu1 }
 0x399   : > { %v8908_v54 = vadd.f32 %v5208_v39, %v8646_v23  ;;  %v5210_v57 = vpop.f32.mrb[25].mxu0  ;;  %v8910_v60 = vpop.f32.mrb[90].mxu1 }
 0x39a   : > { %v5211_v14 = vpop.f32.mrb[26].mxu0  ;;  %v4474_v2 = vpop.f32.mrb[91].mxu1 }
 0x39b   : > { %v8913_v7 = vadd.f32 %v5211_v14, %v8649_v26  ;;  %v5213_v47 = vpop.f32.mrb[27].mxu0 }
 0x39f   : > { %v8915_v15 = vpop.f32.mrb[92].mxu1 }
 0x3a0   : > { %v5216_v17 = vpop.f32.mrb[28].mxu0  ;;  %v4479_v1 = vpop.f32.mrb[93].mxu1 }
 0x3a1   : > { %v8918_v19 = vadd.f32 %v5216_v17, %v8655_v31  ;;  %v5218_v27 = vpop.f32.mrb[29].mxu0  ;;  %v8920_v28 = vpop.f32.mrb[94].mxu1 }
 0x3a2   : > { %v5219_v23 = vpop.f32.mrb[30].mxu0  ;;  %v4482_v6 = vpop.f32.mrb[95].mxu1 }
 0x3a3   : > { %v8923_v37 = vadd.f32 %v5219_v23, %v8659_v35  ;;  %v5221_v55 = vpop.f32.mrb[31].mxu0 }
 0x3a7   : > { %v8925_v9 = vpop.f32.mrb[96].mxu1 }
 0x3a8   : > { %v5224_v26 = vpop.f32.mrb[32].mxu0  ;;  %v4487_v39 = vpop.f32.mrb[97].mxu1 }
 0x3a9   : > { %v8928_v49 = vadd.f32 %v5224_v26, %v8763_v46  ;;  %v5226_v57 = vpop.f32.mrb[33].mxu0  ;;  %v8930_v14 = vpop.f32.mrb[98].mxu1 }
 0x3aa   : > { %v5227_v31 = vpop.f32.mrb[34].mxu0  ;;  %v4490_v2 = vpop.f32.mrb[99].mxu1 }
 0x3ab   : > { %v8933_v47 = vadd.f32 %v5227_v31, %v8766_v50  ;;  %v5229_v17 = vpop.f32.mrb[35].mxu0 }
 0x3af   : > { %v8935_v1 = vpop.f32.mrb[100].mxu1 }
 0x3b0   : > { %9359 = vst [vmem:[#allocation2_spill] sm:$0xff] %v8935_v1  ;;  %v5232_v35 = vpop.f32.mrb[36].mxu0  ;;  %v4495_v27 = vpop.f32.mrb[101].mxu1 }
 0x3b1   : > { %v8938_v23 = vadd.f32 %v5232_v35, %v8771_v58  ;;  %v5234_v6 = vpop.f32.mrb[37].mxu0  ;;  %v8940_v55 = vpop.f32.mrb[102].mxu1 }
 0x3b2   : > { %9360 = vst [vmem:[#allocation3_spill] sm:$0xff] %v8940_v55  ;;  %v5235_v46 = vpop.f32.mrb[38].mxu0  ;;  %v4498_v26 = vpop.f32.mrb[103].mxu1 }
 0x3b3   : > { %v8943_v39 = vadd.f32 %v5235_v46, %v8774_v62  ;;  %v5237_v57 = vpop.f32.mrb[39].mxu0 }
 0x3b7   : > { %v8945_v2 = vpop.f32.mrb[104].mxu1 }
 0x3b8   : > { %9361 = vst [vmem:[#allocation4_spill] sm:$0xff] %v8945_v2  ;;  %v5240_v50 = vpop.f32.mrb[40].mxu0  ;;  %v4503_v31 = vpop.f32.mrb[105].mxu1 }
 0x3b9   : > { %v8948_v17 = vadd.f32 %v5240_v50, %v8779_v5  ;;  %v5242_v27 = vpop.f32.mrb[41].mxu0  ;;  %v8950_v1 = vpop.f32.mrb[106].mxu1 }
 0x3ba   : > { %9362 = vst [vmem:[#allocation5_spill] sm:$0xff] %v8950_v1  ;;  %v5243_v58 = vpop.f32.mrb[42].mxu0  ;;  %v4506_v35 = vpop.f32.mrb[107].mxu1 }
 0x3bb   : > { %v8953_v6 = vadd.f32 %v5243_v58, %v8782_v10  ;;  %v5245_v26 = vpop.f32.mrb[43].mxu0 }
 0x3bf   : > { %v8955_v55 = vpop.f32.mrb[108].mxu1 }
 0x3c0   : > { %9363 = vst [vmem:[#allocation6_spill] sm:$0xff] %v8955_v55  ;;  %v5248_v62 = vpop.f32.mrb[44].mxu0  ;;  %v4511_v46 = vpop.f32.mrb[109].mxu1 }
 0x3c1   : > { %v8958_v57 = vadd.f32 %v5248_v62, %v8787_v16  ;;  %v5250_v31 = vpop.f32.mrb[45].mxu0  ;;  %v8960_v2 = vpop.f32.mrb[110].mxu1 }
 0x3c2   : > { %9364 = vst [vmem:[#allocation7_spill] sm:$0xff] %v8960_v2  ;;  %v5251_v5 = vpop.f32.mrb[46].mxu0  ;;  %v4514_v50 = vpop.f32.mrb[111].mxu1 }
 0x3c3   : > { %v8963_v27 = vadd.f32 %v5251_v5, %v8790_v0  ;;  %v5253_v35 = vpop.f32.mrb[47].mxu0 }
 0x3c7   : > { %v8965_v1 = vpop.f32.mrb[112].mxu1 }
 0x3c8   : > { %9365 = vst [vmem:[#allocation8_spill] sm:$0xff] %v8965_v1  ;;  %v5256_v10 = vpop.f32.mrb[48].mxu0  ;;  %v4519_v58 = vpop.f32.mrb[113].mxu1 }
 0x3c9   : > { %v8968_v26 = vadd.f32 %v5256_v10, %v8795_v25  ;;  %v5258_v46 = vpop.f32.mrb[49].mxu0  ;;  %v8970_v55 = vpop.f32.mrb[114].mxu1 }
 0x3ca   : > { %9366 = vst [vmem:[#allocation9_spill] sm:$0xff] %v8970_v55  ;;  %v5259_v16 = vpop.f32.mrb[50].mxu0  ;;  %v4522_v62 = vpop.f32.mrb[115].mxu1 }
 0x3cb   : > { %v8973_v31 = vadd.f32 %v5259_v16, %v8798_v29  ;;  %v5261_v50 = vpop.f32.mrb[51].mxu0 }
 0x3cf   : > { %v8975_v2 = vpop.f32.mrb[116].mxu1 }
 0x3d0   : > { %9367 = vst [vmem:[#allocation10_spill] sm:$0xff] %v8975_v2  ;;  %v5264_v0 = vpop.f32.mrb[52].mxu0  ;;  %v4527_v5 = vpop.f32.mrb[117].mxu1 }
 0x3d1   : > { %v8978_v35 = vadd.f32 %v5264_v0, %v8803_v34  ;;  %v5266_v58 = vpop.f32.mrb[53].mxu0  ;;  %v8980_v1 = vpop.f32.mrb[118].mxu1 }
 0x3d2   : > { %9368 = vst [vmem:[#allocation11_spill] sm:$0xff] %v8980_v1  ;;  %v5267_v25 = vpop.f32.mrb[54].mxu0  ;;  %v4530_v10 = vpop.f32.mrb[119].mxu1 }
 0x3d3   : > { %v8983_v46 = vadd.f32 %v5267_v25, %v8806_v40  ;;  %v5269_v62 = vpop.f32.mrb[55].mxu0 }
 0x3d7   : > { %v8985_v55 = vpop.f32.mrb[120].mxu1 }
 0x3d8   : > { %9369 = vst [vmem:[#allocation12_spill] sm:$0xff] %v8985_v55  ;;  %v5272_v29 = vpop.f32.mrb[56].mxu0  ;;  %v4535_v16 = vpop.f32.mrb[121].mxu1 }
 0x3d9   : > { %v8988_v50 = vadd.f32 %v5272_v29, %v8811_v48  ;;  %v5274_v5 = vpop.f32.mrb[57].mxu0  ;;  %v8990_v34 = vpop.f32.mrb[122].mxu1 }
 0x3da   : > { %9370 = vst [vmem:[#allocation13_spill] sm:$0xff] %v8990_v34  ;;  %v5275_v0 = vpop.f32.mrb[58].mxu0  ;;  %v4538_v58 = vpop.f32.mrb[123].mxu1 }
 0x3db   : > { %v8993_v10 = vadd.f32 %v5275_v0, %v8814_v53  ;;  %v5277_v40 = vpop.f32.mrb[59].mxu0 }
 0x3dc   : > { %v9020_v40 = vld [vmem:[%s277_s6] ss:$0 sm:$0xff] }
 0x3df   : > { %v8995_v25 = vpop.f32.mrb[124].mxu1 }
 0x3e0   : > { %9371 = vst [vmem:[#allocation14_spill] sm:$0xff] %v8995_v25  ;;  %v5280_v62 = vpop.f32.mrb[60].mxu0  ;;  %v4543_v55 = vpop.f32.mrb[125].mxu1 }
 0x3e1   : > { %v8998_v16 = vadd.f32 %v5280_v62, %v8819_v63  ;;  %v5282_v48 = vpop.f32.mrb[61].mxu0  ;;  %v9000_v29 = vpop.f32.mrb[126].mxu1  ;;  %v9013_v63 = vld [vmem:[%s274_s29] ss:$0 sm:$0xff] }
 0x3e2   : > { %9372 = vst [vmem:[#allocation15_spill] sm:$0xff] %v9000_v29  ;;  %v5283_v5 = vpop.f32.mrb[62].mxu0  ;;  %v4546_v34 = vpop.f32.mrb[127].mxu1 }
 0x3e3   : > { %v9003_v1 = vadd.f32 %v5283_v5, %v8822_v4  ;;  %v5285_v58 = vpop.f32.mrb[63].mxu0 }
 0x3e7   : > { %v6622_v53 = vpop.f32.mrb[128].mxu1 }
 0x3e8   : > { %v5288_v55 = vpop.f32.mrb[64].mxu0  ;;  %v5458_v0 = vadd.f32 %v8845_v42, %v6622_v53  ;;  %v5449_v34 = vpop.f32.mrb[129].mxu1 }
 0x3e9   : > { %v9018_v4 = vadd.f32 %v5288_v55, %v8827_v13  ;;  %v5290_v62 = vpop.f32.mrb[65].mxu0  ;;  %v5450_v48 = vadd.f32 %v8831_v20, %v5449_v34  ;;  %v6623_v5 = vpop.f32.mrb[130].mxu1 }
 0x3ea   : > { %v5713_v58 = vmul.f32 %v9013_v63, %v5458_v0  ;;  %v5291_v29 = vpop.f32.mrb[66].mxu0  ;;  %v5461_v25 = vadd.f32 %v8853_v59, %v6623_v5  ;;  %v5452_v2 = vpop.f32.mrb[131].mxu1 }
 0x3eb   : > { %v5711_v13 = vmul.f32 %v9013_v63, %v5450_v48  ;;  %v9032_v42 = vadd.f32 %v5291_v29, %v8833_v22  ;;  %v5293_v20 = vpop.f32.mrb[67].mxu0  ;;  %v5453_v53 = vadd.f32 %v8839_v32, %v5452_v2 }
 0x3ec   : > { %v5784_v59 = vadd.f32 %v9020_v40, %v5713_v58  ;;  %v5714_v55 = vmul.f32 %v9013_v63, %v5461_v25 }
 0x3ed   : > { %v5782_v0 = vadd.f32 %v9020_v40, %v5711_v13  ;;  %v5712_v34 = vmul.f32 %v9013_v63, %v5453_v53 }
 0x3ee   : > { %5848 = vst [vmem:[%s9028_s10 + $0x10] sm:$0xff] %v5784_v59  ;;  %v5785_v62 = vadd.f32 %v9020_v40, %v5714_v55 }
 0x3ef   : > { %5846 = vst [vmem:[%s9028_s10] sm:$0xff] %v5782_v0  ;;  %v5783_v48 = vadd.f32 %v9020_v40, %v5712_v34  ;;  %v6626_v22 = vpop.f32.mrb[132].mxu1 }
 0x3f0   : > { %5849 = vst [vmem:[%s9028_s10 + $0x18] sm:$0xff] %v5785_v62  ;;  %v5296_v29 = vpop.f32.mrb[68].mxu0  ;;  %v5474_v5 = vadd.f32 %v8873_v33, %v6626_v22  ;;  %v5465_v32 = vpop.f32.mrb[133].mxu1 }
 0x3f1   : > { %5847 = vst [vmem:[%s9028_s10 + $0x8] sm:$0xff] %v5783_v48  ;;  %v9047_v2 = vadd.f32 %v5296_v29, %v8841_v36  ;;  %v5298_v25 = vpop.f32.mrb[69].mxu0  ;;  %v5466_v58 = vadd.f32 %v8859_v8, %v5465_v32  ;;  %v6627_v13 = vpop.f32.mrb[134].mxu1 }
 0x3f2   : > { %v5717_v20 = vmul.f32 %v9013_v63, %v5474_v5  ;;  %v5299_v53 = vpop.f32.mrb[70].mxu0  ;;  %v5477_v59 = vadd.f32 %v8881_v51, %v6627_v13  ;;  %v5468_v55 = vpop.f32.mrb[135].mxu1 }
 0x3f3   : > { %v5715_v33 = vmul.f32 %v9013_v63, %v5466_v58  ;;  %v9054_v0 = vadd.f32 %v5299_v53, %v8847_v45  ;;  %v5301_v36 = vpop.f32.mrb[71].mxu0  ;;  %v5469_v34 = vadd.f32 %v8867_v24, %v5468_v55 }
 0x3f4   : > { %v5788_v8 = vadd.f32 %v9020_v40, %v5717_v20  ;;  %v5718_v62 = vmul.f32 %v9013_v63, %v5477_v59 }
 0x3f5   : > { %v5786_v48 = vadd.f32 %v9020_v40, %v5715_v33  ;;  %v5716_v22 = vmul.f32 %v9013_v63, %v5469_v34 }
 0x3f6   : > { %5852 = vst [vmem:[%s9028_s10 + $0x30] sm:$0xff] %v5788_v8  ;;  %v5789_v51 = vadd.f32 %v9020_v40, %v5718_v62 }
 0x3f7   : > { %5850 = vst [vmem:[%s9028_s10 + $0x20] sm:$0xff] %v5786_v48  ;;  %v5787_v29 = vadd.f32 %v9020_v40, %v5716_v22  ;;  %v6630_v45 = vpop.f32.mrb[136].mxu1 }
 0x3f8   : > { %5853 = vst [vmem:[%s9028_s10 + $0x38] sm:$0xff] %v5789_v51  ;;  %v5304_v5 = vpop.f32.mrb[72].mxu0  ;;  %v5490_v32 = vadd.f32 %v8898_v30, %v6630_v45  ;;  %v5481_v24 = vpop.f32.mrb[137].mxu1 }
 0x3f9   : > { %5851 = vst [vmem:[%s9028_s10 + $0x28] sm:$0xff] %v5787_v29  ;;  %v9069_v25 = vadd.f32 %v5304_v5, %v8855_v44  ;;  %v5306_v58 = vpop.f32.mrb[73].mxu0  ;;  %v5482_v13 = vadd.f32 %v8887_v3, %v5481_v24  ;;  %v6631_v20 = vpop.f32.mrb[138].mxu1 }
 0x3fa   : > { %v5721_v53 = vmul.f32 %v9013_v63, %v5490_v32  ;;  %v5307_v59 = vpop.f32.mrb[74].mxu0  ;;  %v5493_v55 = vadd.f32 %v8903_v41, %v6631_v20  ;;  %v5484_v33 = vpop.f32.mrb[139].mxu1 }
 0x3fb   : > { %v5719_v30 = vmul.f32 %v9013_v63, %v5482_v13  ;;  %v9076_v36 = vadd.f32 %v5307_v59, %v8861_v12  ;;  %v5309_v44 = vpop.f32.mrb[75].mxu0  ;;  %v5485_v34 = vadd.f32 %v8893_v18, %v5484_v33 }
 0x3fc   : > { %v5792_v3 = vadd.f32 %v9020_v40, %v5721_v53  ;;  %v5722_v8 = vmul.f32 %v9013_v63, %v5493_v55 }
 0x3fd   : > { %v5790_v62 = vadd.f32 %v9020_v40, %v5719_v30  ;;  %v5720_v48 = vmul.f32 %v9013_v63, %v5485_v34 }
 0x3fe   : > { %5856 = vst [vmem:[%s9028_s10 + $0x50] sm:$0xff] %v5792_v3  ;;  %v5793_v41 = vadd.f32 %v9020_v40, %v5722_v8 }
 0x3ff   : > { %5854 = vst [vmem:[%s9028_s10 + $0x40] sm:$0xff] %v5790_v62  ;;  %v5791_v22 = vadd.f32 %v9020_v40, %v5720_v48  ;;  %v6634_v12 = vpop.f32.mrb[140].mxu1 }
 0x400   : > { %5857 = vst [vmem:[%s9028_s10 + $0x58] sm:$0xff] %v5793_v41  ;;  %v5312_v51 = vpop.f32.mrb[76].mxu0  ;;  %v5506_v29 = vadd.f32 %v8918_v19, %v6634_v12  ;;  %v5497_v18 = vpop.f32.mrb[141].mxu1 }
 0x401   : > { %5855 = vst [vmem:[%s9028_s10 + $0x48] sm:$0xff] %v5791_v22  ;;  %v9091_v45 = vadd.f32 %v5312_v51, %v8869_v52  ;;  %v5314_v5 = vpop.f32.mrb[77].mxu0  ;;  %v5498_v32 = vadd.f32 %v8908_v54, %v5497_v18  ;;  %v6635_v24 = vpop.f32.mrb[142].mxu1 }
 0x402   : > { %v5725_v58 = vmul.f32 %v9013_v63, %v5506_v29  ;;  %v5315_v13 = vpop.f32.mrb[78].mxu0  ;;  %v5509_v20 = vadd.f32 %v8923_v37, %v6635_v24  ;;  %v5500_v53 = vpop.f32.mrb[143].mxu1 }
 0x403   : > { %v5723_v19 = vmul.f32 %v9013_v63, %v5498_v32  ;;  %v9098_v59 = vadd.f32 %v5315_v13, %v8875_v38  ;;  %v5317_v52 = vpop.f32.mrb[79].mxu0  ;;  %v5501_v55 = vadd.f32 %v8913_v7, %v5500_v53 }
 0x404   : > { %v5796_v54 = vadd.f32 %v9020_v40, %v5725_v58  ;;  %v5726_v33 = vmul.f32 %v9013_v63, %v5509_v20 }
 0x405   : > { %v5794_v30 = vadd.f32 %v9020_v40, %v5723_v19  ;;  %v5724_v44 = vmul.f32 %v9013_v63, %v5501_v55 }
 0x406   : > { %5860 = vst [vmem:[%s9028_s10 + $0x70] sm:$0xff] %v5796_v54  ;;  %v5797_v37 = vadd.f32 %v9020_v40, %v5726_v33 }
 0x407   : > { %5858 = vst [vmem:[%s9028_s10 + $0x60] sm:$0xff] %v5794_v30  ;;  %v5795_v34 = vadd.f32 %v9020_v40, %v5724_v44  ;;  %v6638_v38 = vpop.f32.mrb[144].mxu1 }
 0x408   : > { %5861 = vst [vmem:[%s9028_s10 + $0x78] sm:$0xff] %v5797_v37  ;;  %v5320_v3 = vpop.f32.mrb[80].mxu0  ;;  %v5522_v8 = vadd.f32 %v8938_v23, %v6638_v38  ;;  %v5513_v7 = vpop.f32.mrb[145].mxu1 }
 0x409   : > { %5859 = vst [vmem:[%s9028_s10 + $0x68] sm:$0xff] %v5795_v34  ;;  %v9113_v62 = vadd.f32 %v5320_v3, %v8883_v61  ;;  %v5322_v48 = vpop.f32.mrb[81].mxu0  ;;  %v5514_v41 = vadd.f32 %v8928_v49, %v5513_v7  ;;  %v6639_v22 = vpop.f32.mrb[146].mxu1 }
 0x40a   : > { %v5729_v12 = vmul.f32 %v9013_v63, %v5522_v8  ;;  %v5323_v51 = vpop.f32.mrb[82].mxu0  ;;  %v5525_v29 = vadd.f32 %v8943_v39, %v6639_v22  ;;  %v5516_v18 = vpop.f32.mrb[147].mxu1 }
 0x40b   : > { %v5727_v23 = vmul.f32 %v9013_v63, %v5514_v41  ;;  %v9120_v5 = vadd.f32 %v5323_v51, %v8889_v11  ;;  %v5325_v61 = vpop.f32.mrb[83].mxu0  ;;  %v5517_v32 = vadd.f32 %v8933_v47, %v5516_v18 }
 0x40c   : > { %v5800_v49 = vadd.f32 %v9020_v40, %v5729_v12  ;;  %v5730_v24 = vmul.f32 %v9013_v63, %v5525_v29 }
 0x40d   : > { %v5798_v58 = vadd.f32 %v9020_v40, %v5727_v23  ;;  %v5728_v13 = vmul.f32 %v9013_v63, %v5517_v32 }
 0x40e   : > { %5864 = vst [vmem:[%s9028_s10 + $0x90] sm:$0xff] %v5800_v49  ;;  %v5801_v39 = vadd.f32 %v9020_v40, %v5730_v24 }
 0x40f   : > { %5862 = vst [vmem:[%s9028_s10 + $0x80] sm:$0xff] %v5798_v58  ;;  %v5799_v20 = vadd.f32 %v9020_v40, %v5728_v13  ;;  %v6642_v11 = vpop.f32.mrb[148].mxu1 }
 0x410   : > { %5865 = vst [vmem:[%s9028_s10 + $0x98] sm:$0xff] %v5801_v39  ;;  %v5328_v53 = vpop.f32.mrb[84].mxu0  ;;  %v5538_v19 = vadd.f32 %v8958_v57, %v6642_v11  ;;  %v5529_v47 = vpop.f32.mrb[149].mxu1 }
 0x411   : > { %5863 = vst [vmem:[%s9028_s10 + $0x88] sm:$0xff] %v5799_v20  ;;  %v9135_v52 = vadd.f32 %v5328_v53, %v8895_v21  ;;  %v5330_v55 = vpop.f32.mrb[85].mxu0  ;;  %v5530_v54 = vadd.f32 %v8948_v17, %v5529_v47  ;;  %v6643_v33 = vpop.f32.mrb[150].mxu1 }
 0x412   : > { %v5733_v30 = vmul.f32 %v9013_v63, %v5538_v19  ;;  %v5331_v44 = vpop.f32.mrb[86].mxu0  ;;  %v5541_v37 = vadd.f32 %v8963_v27, %v6643_v33  ;;  %v5532_v34 = vpop.f32.mrb[151].mxu1 }
 0x413   : > { %v5731_v57 = vmul.f32 %v9013_v63, %v5530_v54  ;;  %v9142_v38 = vadd.f32 %v5331_v44, %v8900_v56  ;;  %v5333_v21 = vpop.f32.mrb[87].mxu0  ;;  %v5533_v3 = vadd.f32 %v8953_v6, %v5532_v34 }
 0x414   : > { %v5804_v17 = vadd.f32 %v9020_v40, %v5733_v30  ;;  %v5734_v8 = vmul.f32 %v9013_v63, %v5541_v37 }
 0x415   : > { %v5802_v7 = vadd.f32 %v9020_v40, %v5731_v57  ;;  %v5732_v48 = vmul.f32 %v9013_v63, %v5533_v3 }
 0x416   : > { %5868 = vst [vmem:[%s9028_s10 + $0xb0] sm:$0xff] %v5804_v17  ;;  %v5805_v27 = vadd.f32 %v9020_v40, %v5734_v8 }
 0x417   : > { %5866 = vst [vmem:[%s9028_s10 + $0xa0] sm:$0xff] %v5802_v7  ;;  %v5803_v41 = vadd.f32 %v9020_v40, %v5732_v48  ;;  %v6646_v56 = vpop.f32.mrb[152].mxu1 }
 0x418   : > { %5869 = vst [vmem:[%s9028_s10 + $0xb8] sm:$0xff] %v5805_v27  ;;  %v5336_v22 = vpop.f32.mrb[88].mxu0  ;;  %v5554_v12 = vadd.f32 %v8978_v35, %v6646_v56  ;;  %v5545_v6 = vpop.f32.mrb[153].mxu1 }
 0x419   : > { %5867 = vst [vmem:[%s9028_s10 + $0xa8] sm:$0xff] %v5803_v41  ;;  %v9157_v51 = vadd.f32 %v5336_v22, %v8905_v43  ;;  %v5338_v29 = vpop.f32.mrb[89].mxu0  ;;  %v5546_v18 = vadd.f32 %v8968_v26, %v5545_v6  ;;  %v6647_v23 = vpop.f32.mrb[154].mxu1 }
 0x41a   : > { %v5737_v61 = vmul.f32 %v9013_v63, %v5554_v12  ;;  %v5339_v32 = vpop.f32.mrb[90].mxu0  ;;  %v5557_v49 = vadd.f32 %v8983_v46, %v6647_v23  ;;  %v5548_v24 = vpop.f32.mrb[155].mxu1 }
 0x41b   : > { %v5735_v35 = vmul.f32 %v9013_v63, %v5546_v18  ;;  %v9164_v58 = vadd.f32 %v5339_v32, %v8910_v60  ;;  %v5341_v43 = vpop.f32.mrb[91].mxu0  ;;  %v5549_v13 = vadd.f32 %v8973_v31, %v5548_v24 }
 0x41c   : > { %v5808_v26 = vadd.f32 %v9020_v40, %v5737_v61  ;;  %v5738_v39 = vmul.f32 %v9013_v63, %v5557_v49 }
 0x41d   : > { %v5806_v20 = vadd.f32 %v9020_v40, %v5735_v35  ;;  %v5736_v11 = vmul.f32 %v9013_v63, %v5549_v13 }
 0x41e   : > { %5872 = vst [vmem:[%s9028_s10 + $0xd0] sm:$0xff] %v5808_v26  ;;  %v5809_v46 = vadd.f32 %v9020_v40, %v5738_v39 }
 0x41f   : > { %5870 = vst [vmem:[%s9028_s10 + $0xc0] sm:$0xff] %v5806_v20  ;;  %v5807_v53 = vadd.f32 %v9020_v40, %v5736_v11  ;;  %v6650_v60 = vpop.f32.mrb[156].mxu1  ;;  %v9373_v20 = vld [vmem:[#allocation2_spill] sm:$0xff] }
 0x420   : > { %5873 = vst [vmem:[%s9028_s10 + $0xd8] sm:$0xff] %v5809_v46  ;;  %v5344_v19 = vpop.f32.mrb[92].mxu0  ;;  %v5570_v47 = vadd.f32 %v8998_v16, %v6650_v60  ;;  %v5561_v31 = vpop.f32.mrb[157].mxu1 }
 0x421   : > { %5871 = vst [vmem:[%s9028_s10 + $0xc8] sm:$0xff] %v5807_v53  ;;  %v9179_v55 = vadd.f32 %v5344_v19, %v8915_v15  ;;  %v5346_v54 = vpop.f32.mrb[93].mxu0  ;;  %v5562_v33 = vadd.f32 %v8988_v50, %v5561_v31  ;;  %v6651_v30 = vpop.f32.mrb[158].mxu1 }
 0x422   : > { %v5741_v44 = vmul.f32 %v9013_v63, %v5570_v47  ;;  %v5347_v37 = vpop.f32.mrb[94].mxu0  ;;  %v5573_v34 = vadd.f32 %v9003_v1, %v6651_v30  ;;  %v5564_v57 = vpop.f32.mrb[159].mxu1 }
 0x423   : > { %v5739_v16 = vmul.f32 %v9013_v63, %v5562_v33  ;;  %v9186_v21 = vadd.f32 %v5347_v37, %v8920_v28  ;;  %v5349_v15 = vpop.f32.mrb[95].mxu0  ;;  %v5565_v3 = vadd.f32 %v8993_v10, %v5564_v57  ;;  %v9374_v33 = vld [vmem:[#allocation3_spill] sm:$0xff] }
 0x424   : > { %v5812_v50 = vadd.f32 %v9020_v40, %v5741_v44  ;;  %v5742_v17 = vmul.f32 %v9013_v63, %v5573_v34 }
 0x425   : > { %v5810_v8 = vadd.f32 %v9020_v40, %v5739_v16  ;;  %v5740_v7 = vmul.f32 %v9013_v63, %v5565_v3 }
 0x426   : > { %5876 = vst [vmem:[%s9028_s10 + $0xf0] sm:$0xff] %v5812_v50  ;;  %v5813_v1 = vadd.f32 %v9020_v40, %v5742_v17 }
 0x427   : > { %5874 = vst [vmem:[%s9028_s10 + $0xe0] sm:$0xff] %v5810_v8  ;;  %v5811_v48 = vadd.f32 %v9020_v40, %v5740_v7  ;;  %v6654_v28 = vpop.f32.mrb[160].mxu1  ;;  %v9375_v8 = vld [vmem:[#allocation4_spill] sm:$0xff] }
 0x428   : > { %5877 = vst [vmem:[%s9028_s10 + $0xf8] sm:$0xff] %v5813_v1  ;;  %v5352_v27 = vpop.f32.mrb[96].mxu0  ;;  %v5586_v41 = vadd.f32 %v9047_v2, %v6654_v28  ;;  %v5577_v10 = vpop.f32.mrb[161].mxu1 }
 0x429   : > { %5875 = vst [vmem:[%s9028_s10 + $0xe8] sm:$0xff] %v5811_v48  ;;  %v9201_v56 = vadd.f32 %v5352_v27, %v8925_v9  ;;  %v5354_v22 = vpop.f32.mrb[97].mxu0  ;;  %v5578_v12 = vadd.f32 %v9018_v4, %v5577_v10  ;;  %v6655_v6 = vpop.f32.mrb[162].mxu1 }
 0x42a   : > { %v5745_v29 = vmul.f32 %v9013_v63, %v5586_v41  ;;  %v5355_v18 = vpop.f32.mrb[98].mxu0  ;;  %v5589_v23 = vadd.f32 %v9054_v0, %v6655_v6  ;;  %v5580_v61 = vpop.f32.mrb[163].mxu1 }
 0x42b   : > { %v5743_v2 = vmul.f32 %v9013_v63, %v5578_v12  ;;  %v9208_v32 = vadd.f32 %v5355_v18, %v8930_v14  ;;  %v5357_v9 = vpop.f32.mrb[99].mxu0  ;;  %v5581_v49 = vadd.f32 %v9032_v42, %v5580_v61  ;;  %v9376_v12 = vld [vmem:[#allocation5_spill] sm:$0xff] }
 0x42c   : > { %v5816_v4 = vadd.f32 %v9020_v40, %v5745_v29  ;;  %v5746_v24 = vmul.f32 %v9013_v63, %v5589_v23 }
 0x42d   : > { %v5814_v35 = vadd.f32 %v9020_v40, %v5743_v2  ;;  %v5744_v43 = vmul.f32 %v9013_v63, %v5581_v49 }
 0x42e   : > { %5880 = vst [vmem:[%s9028_s10 + $0x110] sm:$0xff] %v5816_v4  ;;  %v5817_v0 = vadd.f32 %v9020_v40, %v5746_v24 }
 0x42f   : > { %5878 = vst [vmem:[%s9028_s10 + $0x100] sm:$0xff] %v5814_v35  ;;  %v5815_v13 = vadd.f32 %v9020_v40, %v5744_v43  ;;  %v6658_v14 = vpop.f32.mrb[164].mxu1  ;;  %v9377_v35 = vld [vmem:[#allocation6_spill] sm:$0xff] }
 0x430   : > { %5881 = vst [vmem:[%s9028_s10 + $0x118] sm:$0xff] %v5817_v0  ;;  %v5360_v26 = vpop.f32.mrb[100].mxu0  ;;  %v5602_v39 = vadd.f32 %v9091_v45, %v6658_v14  ;;  %v5593_v42 = vpop.f32.mrb[165].mxu1 }
 0x431   : > { %5879 = vst [vmem:[%s9028_s10 + $0x108] sm:$0xff] %v5815_v13  ;;  %v9223_v11 = vadd.f32 %v5360_v26, %v9373_v20  ;;  %v5362_v46 = vpop.f32.mrb[101].mxu0  ;;  %v5594_v53 = vadd.f32 %v9069_v25, %v5593_v42  ;;  %v6659_v60 = vpop.f32.mrb[166].mxu1 }
 0x432   : > { %v5749_v19 = vmul.f32 %v9013_v63, %v5602_v39  ;;  %v5363_v47 = vpop.f32.mrb[102].mxu0  ;;  %v5605_v31 = vadd.f32 %v9098_v59, %v6659_v60  ;;  %v5596_v54 = vpop.f32.mrb[167].mxu1 }
 0x433   : > { %v5747_v45 = vmul.f32 %v9013_v63, %v5594_v53  ;;  %v9230_v30 = vadd.f32 %v5363_v47, %v9374_v33  ;;  %v5365_v44 = vpop.f32.mrb[103].mxu0  ;;  %v5597_v37 = vadd.f32 %v9076_v36, %v5596_v54 }
 0x434   : > { %v5820_v25 = vadd.f32 %v9020_v40, %v5749_v19  ;;  %v5750_v34 = vmul.f32 %v9013_v63, %v5605_v31 }
 0x435   : > { %v5818_v57 = vadd.f32 %v9020_v40, %v5747_v45  ;;  %v5748_v16 = vmul.f32 %v9013_v63, %v5597_v37 }
 0x436   : > { %5884 = vst [vmem:[%s9028_s10 + $0x130] sm:$0xff] %v5820_v25  ;;  %v5821_v59 = vadd.f32 %v9020_v40, %v5750_v34  ;;  %v9379_v25 = vld [vmem:[#allocation8_spill] sm:$0xff] }
 0x437   : > { %5882 = vst [vmem:[%s9028_s10 + $0x120] sm:$0xff] %v5818_v57  ;;  %v5819_v15 = vadd.f32 %v9020_v40, %v5748_v16  ;;  %v6662_v3 = vpop.f32.mrb[168].mxu1 }
 0x438   : > { %5885 = vst [vmem:[%s9028_s10 + $0x138] sm:$0xff] %v5821_v59  ;;  %v5368_v50 = vpop.f32.mrb[104].mxu0  ;;  %v5618_v17 = vadd.f32 %v9135_v52, %v6662_v3  ;;  %v5609_v36 = vpop.f32.mrb[169].mxu1 }
 0x439   : > { %5883 = vst [vmem:[%s9028_s10 + $0x128] sm:$0xff] %v5819_v15  ;;  %v9245_v7 = vadd.f32 %v5368_v50, %v9375_v8  ;;  %v5370_v1 = vpop.f32.mrb[105].mxu0  ;;  %v5610_v48 = vadd.f32 %v9113_v62, %v5609_v36  ;;  %v6663_v28 = vpop.f32.mrb[170].mxu1 }
 0x43a   : > { %v5753_v27 = vmul.f32 %v9013_v63, %v5618_v17  ;;  %v5371_v41 = vpop.f32.mrb[106].mxu0  ;;  %v5621_v10 = vadd.f32 %v9142_v38, %v6663_v28  ;;  %v5612_v22 = vpop.f32.mrb[171].mxu1 }
 0x43b   : > { %v5751_v52 = vmul.f32 %v9013_v63, %v5610_v48  ;;  %v9252_v6 = vadd.f32 %v5371_v41, %v9376_v12  ;;  %v5373_v29 = vpop.f32.mrb[107].mxu0  ;;  %v5613_v18 = vadd.f32 %v9120_v5, %v5612_v22 }
 0x43c   : > { %v5824_v62 = vadd.f32 %v9020_v40, %v5753_v27  ;;  %v5754_v23 = vmul.f32 %v9013_v63, %v5621_v10 }
 0x43d   : > { %v5822_v61 = vadd.f32 %v9020_v40, %v5751_v52  ;;  %v5752_v2 = vmul.f32 %v9013_v63, %v5613_v18 }
 0x43e   : > { %5888 = vst [vmem:[%s9028_s10 + $0x150] sm:$0xff] %v5824_v62  ;;  %v5825_v38 = vadd.f32 %v9020_v40, %v5754_v23 }
 0x43f   : > { %5886 = vst [vmem:[%s9028_s10 + $0x140] sm:$0xff] %v5822_v61  ;;  %v5823_v9 = vadd.f32 %v9020_v40, %v5752_v2  ;;  %v6666_v49 = vpop.f32.mrb[172].mxu1 }
 0x440   : > { %5889 = vst [vmem:[%s9028_s10 + $0x158] sm:$0xff] %v5825_v38  ;;  %v5376_v4 = vpop.f32.mrb[108].mxu0  ;;  %v5634_v24 = vadd.f32 %v9179_v55, %v6666_v49  ;;  %v5625_v5 = vpop.f32.mrb[173].mxu1  ;;  %v9378_v55 = vld [vmem:[#allocation7_spill] sm:$0xff] }
 0x441   : > { %5887 = vst [vmem:[%s9028_s10 + $0x148] sm:$0xff] %v5823_v9  ;;  %v6770_v43 = vadd.f32 %v5376_v4, %v9377_v35  ;;  %v5378_v0 = vpop.f32.mrb[109].mxu0  ;;  %v5626_v13 = vadd.f32 %v9157_v51, %v5625_v5  ;;  %v6667_v14 = vpop.f32.mrb[174].mxu1 }
 0x442   : > { %v5757_v26 = vmul.f32 %v9013_v63, %v5634_v24  ;;  %v5379_v39 = vpop.f32.mrb[110].mxu0  ;;  %v5637_v42 = vadd.f32 %v9186_v21, %v6667_v14  ;;  %v5628_v20 = vpop.f32.mrb[175].mxu1  ;;  %v9382_v24 = vld [vmem:[#allocation11_spill] sm:$0xff] }
 0x443   : > { %v5755_v46 = vmul.f32 %v9013_v63, %v5626_v13  ;;  %v6771_v53 = vadd.f32 %v5379_v39, %v9378_v55  ;;  %v5381_v60 = vpop.f32.mrb[111].mxu0  ;;  %v5629_v19 = vadd.f32 %v9164_v58, %v5628_v20 }
 0x444   : > { %v5828_v47 = vadd.f32 %v9020_v40, %v5757_v26  ;;  %v5758_v51 = vmul.f32 %v9013_v63, %v5637_v42 }
 0x445   : > { %v5826_v31 = vadd.f32 %v9020_v40, %v5755_v46  ;;  %v5756_v54 = vmul.f32 %v9013_v63, %v5629_v19 }
 0x446   : > { %5892 = vst [vmem:[%s9028_s10 + $0x170] sm:$0xff] %v5828_v47  ;;  %v5829_v21 = vadd.f32 %v9020_v40, %v5758_v51 }
 0x447   : > { %5890 = vst [vmem:[%s9028_s10 + $0x160] sm:$0xff] %v5826_v31  ;;  %v5827_v45 = vadd.f32 %v9020_v40, %v5756_v54  ;;  %v6670_v33 = vpop.f32.mrb[176].mxu1 }
 0x448   : > { %5893 = vst [vmem:[%s9028_s10 + $0x178] sm:$0xff] %v5829_v21  ;;  %v5384_v44 = vpop.f32.mrb[112].mxu0  ;;  %v5650_v37 = vadd.f32 %v9223_v11, %v6670_v33  ;;  %v5641_v58 = vpop.f32.mrb[177].mxu1  ;;  %v9380_v11 = vld [vmem:[#allocation9_spill] sm:$0xff] }
 0x449   : > { %5891 = vst [vmem:[%s9028_s10 + $0x168] sm:$0xff] %v5827_v45  ;;  %v6772_v34 = vadd.f32 %v5384_v44, %v9379_v25  ;;  %v5386_v57 = vpop.f32.mrb[113].mxu0  ;;  %v5642_v16 = vadd.f32 %v9201_v56, %v5641_v58  ;;  %v6671_v59 = vpop.f32.mrb[178].mxu1  ;;  %v9384_v33 = vld [vmem:[#allocation13_spill] sm:$0xff] }
 0x44a   : > { %v5761_v15 = vmul.f32 %v9013_v63, %v5650_v37  ;;  %v5387_v3 = vpop.f32.mrb[114].mxu0  ;;  %v5653_v50 = vadd.f32 %v9230_v30, %v6671_v59  ;;  %v5644_v17 = vpop.f32.mrb[179].mxu1 }
 0x44b   : > { %v5759_v36 = vmul.f32 %v9013_v63, %v5642_v16  ;;  %v6773_v8 = vadd.f32 %v5387_v3, %v9380_v11  ;;  %v5389_v1 = vpop.f32.mrb[115].mxu0  ;;  %v5645_v48 = vadd.f32 %v9208_v32, %v5644_v17  ;;  %v9381_v32 = vld [vmem:[#allocation10_spill] sm:$0xff] }
 0x44c   : > { %v5832_v28 = vadd.f32 %v9020_v40, %v5761_v15  ;;  %v5762_v56 = vmul.f32 %v9013_v63, %v5653_v50 }
 0x44d   : > { %v5830_v27 = vadd.f32 %v9020_v40, %v5759_v36  ;;  %v5760_v41 = vmul.f32 %v9013_v63, %v5645_v48  ;;  %v9385_v36 = vld [vmem:[#allocation14_spill] sm:$0xff] }
 0x44e   : > { %5896 = vst [vmem:[%s9028_s10 + $0x190] sm:$0xff] %v5832_v28  ;;  %v5833_v30 = vadd.f32 %v9020_v40, %v5762_v56 }
 0x44f   : > { %5894 = vst [vmem:[%s9028_s10 + $0x180] sm:$0xff] %v5830_v27  ;;  %v5831_v10 = vadd.f32 %v9020_v40, %v5760_v41  ;;  %v6674_v22 = vpop.f32.mrb[180].mxu1 }
 0x450   : > { %5897 = vst [vmem:[%s9028_s10 + $0x198] sm:$0xff] %v5833_v30  ;;  %v5392_v52 = vpop.f32.mrb[116].mxu0  ;;  %v5666_v12 = vadd.f32 %v6770_v43, %v6674_v22  ;;  %v5657_v29 = vpop.f32.mrb[181].mxu1  ;;  %v9386_v30 = vld [vmem:[#allocation15_spill] sm:$0xff] }
 0x451   : > { %5895 = vst [vmem:[%s9028_s10 + $0x188] sm:$0xff] %v5831_v10  ;;  %v6774_v18 = vadd.f32 %v5392_v52, %v9381_v32  ;;  %v5394_v62 = vpop.f32.mrb[117].mxu0  ;;  %v5658_v23 = vadd.f32 %v9245_v7, %v5657_v29  ;;  %v6675_v61 = vpop.f32.mrb[182].mxu1 }
 0x452   : > { %v5765_v2 = vmul.f32 %v9013_v63, %v5666_v12  ;;  %v5395_v38 = vpop.f32.mrb[118].mxu0  ;;  %v5669_v9 = vadd.f32 %v6771_v53, %v6675_v61  ;;  %v5660_v49 = vpop.f32.mrb[183].mxu1 }
 0x453   : > { %v5763_v4 = vmul.f32 %v9013_v63, %v5658_v23  ;;  %v6775_v5 = vadd.f32 %v5395_v38, %v9382_v24  ;;  %v5397_v35 = vpop.f32.mrb[119].mxu0  ;;  %v5661_v43 = vadd.f32 %v9252_v6, %v5660_v49  ;;  %v9383_v6 = vld [vmem:[#allocation12_spill] sm:$0xff] }
 0x454   : > { %v5836_v0 = vadd.f32 %v9020_v40, %v5765_v2  ;;  %v5766_v7 = vmul.f32 %v9013_v63, %v5669_v9 }
 0x455   : > { %v5834_v13 = vadd.f32 %v9020_v40, %v5763_v4  ;;  %v5764_v14 = vmul.f32 %v9013_v63, %v5661_v43 }
 0x456   : > { %5900 = vst [vmem:[%s9028_s10 + $0x1b0] sm:$0xff] %v5836_v0  ;;  %v5837_v26 = vadd.f32 %v9020_v40, %v5766_v7 }
 0x457   : > { %5898 = vst [vmem:[%s9028_s10 + $0x1a0] sm:$0xff] %v5834_v13  ;;  %v5835_v39 = vadd.f32 %v9020_v40, %v5764_v14  ;;  %v6678_v42 = vpop.f32.mrb[184].mxu1 }
 0x458   : > { %5901 = vst [vmem:[%s9028_s10 + $0x1b8] sm:$0xff] %v5837_v26  ;;  %v5400_v20 = vpop.f32.mrb[120].mxu0  ;;  %v5682_v46 = vadd.f32 %v6774_v18, %v6678_v42  ;;  %v5673_v55 = vpop.f32.mrb[185].mxu1 }
 0x459   : > { %5899 = vst [vmem:[%s9028_s10 + $0x1a8] sm:$0xff] %v5835_v39  ;;  %v6776_v53 = vadd.f32 %v5400_v20, %v9383_v6  ;;  %v5402_v60 = vpop.f32.mrb[121].mxu0  ;;  %v5674_v19 = vadd.f32 %v6772_v34, %v5673_v55  ;;  %v6679_v47 = vpop.f32.mrb[186].mxu1 }
 0x45a   : > { %v5769_v51 = vmul.f32 %v9013_v63, %v5682_v46  ;;  %v5403_v31 = vpop.f32.mrb[122].mxu0  ;;  %v5685_v54 = vadd.f32 %v6775_v5, %v6679_v47  ;;  %v5676_v21 = vpop.f32.mrb[187].mxu1 }
 0x45b   : > { %v5767_v45 = vmul.f32 %v9013_v63, %v5674_v19  ;;  %v6777_v44 = vadd.f32 %v5403_v31, %v9384_v33  ;;  %v5405_v37 = vpop.f32.mrb[123].mxu0  ;;  %v5677_v58 = vadd.f32 %v6773_v8, %v5676_v21 }
 0x45c   : > { %v5840_v25 = vadd.f32 %v9020_v40, %v5769_v51  ;;  %v5770_v57 = vmul.f32 %v9013_v63, %v5685_v54 }
 0x45d   : > { %v5838_v34 = vadd.f32 %v9020_v40, %v5767_v45  ;;  %v5768_v16 = vmul.f32 %v9013_v63, %v5677_v58 }
 0x45e   : > { %5904 = vst [vmem:[%s9028_s10 + $0x1d0] sm:$0xff] %v5840_v25  ;;  %v5841_v59 = vadd.f32 %v9020_v40, %v5770_v57 }
 0x45f   : > { %5902 = vst [vmem:[%s9028_s10 + $0x1c0] sm:$0xff] %v5838_v34  ;;  %v5839_v15 = vadd.f32 %v9020_v40, %v5768_v16  ;;  %v6682_v3 = vpop.f32.mrb[188].mxu1 }
 0x460   : > { %5905 = vst [vmem:[%s9028_s10 + $0x1d8] sm:$0xff] %v5841_v59  ;;  %v5408_v50 = vpop.f32.mrb[124].mxu0  ;;  %v5689_v17 = vpop.f32.mrb[189].mxu1 }
 0x461   : > { %5903 = vst [vmem:[%s9028_s10 + $0x1c8] sm:$0xff] %v5839_v15  ;;  %v6778_v11 = vadd.f32 %v5408_v50, %v9385_v36  ;;  %v5410_v8 = vpop.f32.mrb[125].mxu0  ;;  %v5690_v1 = vadd.f32 %v6776_v53, %v5689_v17  ;;  %v6683_v48 = vpop.f32.mrb[190].mxu1 }
 0x462   : > { %v5411_v28 = vpop.f32.mrb[126].mxu0  ;;  %v5692_v56 = vpop.f32.mrb[191].mxu1 }
 0x463   : > { %v5698_v27 = vadd.f32 %v6778_v11, %v6682_v3  ;;  %v5771_v41 = vmul.f32 %v9013_v63, %v5690_v1  ;;  %v6779_v10 = vadd.f32 %v5411_v28, %v9386_v30  ;;  %v5413_v22 = vpop.f32.mrb[127].mxu0  ;;  %v5693_v52 = vadd.f32 %v6777_v44, %v5692_v56 }
 0x465   : > { %v5773_v12 = vmul.f32 %v9013_v63, %v5698_v27  ;;  %v5842_v29 = vadd.f32 %v9020_v40, %v5771_v41  ;;  %v5701_v32 = vadd.f32 %v6779_v10, %v6683_v48  ;;  %v5772_v18 = vmul.f32 %v9013_v63, %v5693_v52 }
 0x467   : > { %v5844_v62 = vadd.f32 %v9020_v40, %v5773_v12  ;;  %5906 = vst [vmem:[%s9028_s10 + $0x1e0] sm:$0xff] %v5842_v29  ;;  %v5774_v23 = vmul.f32 %v9013_v63, %v5701_v32  ;;  %v5843_v61 = vadd.f32 %v9020_v40, %v5772_v18 }
 0x469   : > { %5908 = vst [vmem:[%s9028_s10 + $0x1f0] sm:$0xff] %v5844_v62  ;;  %v5845_v2 = vadd.f32 %v9020_v40, %v5774_v23  ;;  %5907 = vst [vmem:[%s9028_s10 + $0x1e8] sm:$0xff] %v5843_v61 }
 0x46b   : > { %5909 = vst [vmem:[%s9028_s10 + $0x1f8] sm:$0xff] %v5845_v2 }
 0x46c PF: > { %s14_s17 = sadd.s32 1, %s8069_s17   ;;  %s9387_s15 = smov %s8065_s16 }
 0x46d   : > { %p11_p5 = scmp.ge.s32.totalorder %s14_s17, 4   ;;  %s9388_s16 = smov %s9390_s18 }
 0x46f   :  { %13 = sbr.rel (!%p11_p5) target bundleno = 2 (0x2), region = 75 }

// kernel: mmaml_convnet3_forward.6
= control target key start
LH: loop header
LB: loop body
LE: loop exit
PB: predicated region body
PF: predicated region fallthrough
CT: control target
= control target key end

     0   :  { %s2666_s1 = inlined_call_operand.vmem [shape: bf16[256,128], index: 1, kind: input, shape index: {}]   ;;  %s2667_s0 = inlined_call_operand.vmem [shape: bf16[4,144,256], index: 0, kind: input, shape index: {}]   ;;  %s2668_s2 = inlined_call_operand.vmem [shape: f32[1,128], index: 2, kind: input, shape index: {}]   ;;  %s2669_s3 = inlined_call_operand.vmem [shape: f32[1,128], index: 3, kind: input, shape index: {}]   ;;  %s2670_s4 = inlined_call_operand.vmem [shape: bf16[144,128], index: 4, kind: output, shape index: {}]  }
   0x1   :  { %v1838_v0 = vld [vmem:[%s2666_s1 + $0x40] sm:$0xff]   ;;  %v1840_v2 = vld [vmem:[%s2666_s1 + $0x48] sm:$0xff]   ;;  %v2002_v4 = vld [vmem:[%s2666_s1 + $0x50] sm:$0xff]  }
   0x2   :  { %v1839_v1 = vld [vmem:[%s2666_s1] sm:$0xff]   ;;  %1558 = vmatprep.subr.bf16.mxu0 %v1838_v0  ;;  %1628 = vmatprep.subr.bf16.mxu1 %v1838_v0  ;;  %v1841_v3 = vld [vmem:[%s2666_s1 + $0x8] sm:$0xff]   ;;  %v2007_v5 = vld [vmem:[%s2666_s1 + $0x10] sm:$0xff]  }
   0x3   :  { %1559 = vmatpush3.bf16.msra.mxu0 %v1839_v1  ;;  %1629 = vmatpush3.bf16.msra.mxu1 %v1839_v1  ;;  %v2014_v6 = vld [vmem:[%s2666_s1 + $0x58] sm:$0xff]   ;;  %v2028_v8 = vld [vmem:[%s2666_s1 + $0x60] sm:$0xff]   ;;  %v2042_v10 = vld [vmem:[%s2666_s1 + $0x68] sm:$0xff]  }
   0x4   :  { %1560 = vmatprep.subr.bf16.mxu0 %v1840_v2  ;;  %1630 = vmatprep.subr.bf16.mxu1 %v1840_v2  ;;  %v2021_v7 = vld [vmem:[%s2666_s1 + $0x18] sm:$0xff]   ;;  %v2035_v9 = vld [vmem:[%s2666_s1 + $0x20] sm:$0xff]   ;;  %v2055_v13 = vld [vmem:[%s2666_s1 + $0x28] sm:$0xff]  }
   0x5   :  { %v1856_v11 = vld [vmem:[%s2667_s0 + $0x4] ss:$8 sps:$4 sm:$0xff]   ;;  %v1859_v12 = vld [vmem:[%s2667_s0 + $0x94] ss:$8 sps:$4 sm:$0xff]   ;;  %v1854_v18 = vld [vmem:[%s2667_s0] ss:$8 sps:$4 sm:$0xff]  }
   0x6   :  { %v2062_v14 = vld [vmem:[%s2666_s1 + $0x70] sm:$0xff]   ;;  %288 = vmatprep.mubr.bf16.mxu0 %v1856_v11  ;;  %550 = vmatprep.mubr.bf16.mxu1 %v1859_v12  ;;  %v2076_v16 = vld [vmem:[%s2666_s1 + $0x78] sm:$0xff]   ;;  %v1862_v21 = vld [vmem:[%s2667_s0 + $0xa4] ss:$8 sps:$4 sm:$0xff]  }
   0x7   :  { %1561 = vmatpush3.bf16.msra.mxu0 %v1841_v3  ;;  %1631 = vmatpush3.bf16.msra.mxu1 %v1841_v3  ;;  %v2069_v15 = vld [vmem:[%s2666_s1 + $0x30] sm:$0xff]   ;;  %v2083_v17 = vld [vmem:[%s2666_s1 + $0x38] sm:$0xff]   ;;  %v1865_v23 = vld [vmem:[%s2667_s0 + $0xa0] ss:$8 sps:$4 sm:$0xff]  }
   0x8   :  { %1562 = vmatprep.subr.bf16.mxu0 %v2002_v4  ;;  %1632 = vmatprep.subr.bf16.mxu1 %v2002_v4  ;;  %v1857_v19 = vld [vmem:[%s2667_s0 + $0x90] ss:$8 sps:$4 sm:$0xff]   ;;  %v1860_v20 = vld [vmem:[%s2667_s0 + $0x14] ss:$8 sps:$4 sm:$0xff]   ;;  %v1866_v24 = vld [vmem:[%s2667_s0 + $0x24] ss:$8 sps:$4 sm:$0xff]  }
   0x9   :  { %v1864_v22 = vld [vmem:[%s2667_s0 + $0x10] ss:$8 sps:$4 sm:$0xff]   ;;  %v1868_v25 = vld [vmem:[%s2667_s0 + $0xb4] ss:$8 sps:$4 sm:$0xff]   ;;  %v1870_v26 = vld [vmem:[%s2667_s0 + $0x20] ss:$8 sps:$4 sm:$0xff]  }
   0xa   :  { %v1871_v27 = vld [vmem:[%s2667_s0 + $0xb0] ss:$8 sps:$4 sm:$0xff]   ;;  %v1872_v28 = vld [vmem:[%s2667_s0 + $0x34] ss:$8 sps:$4 sm:$0xff]   ;;  %v1874_v29 = vld [vmem:[%s2667_s0 + $0xc4] ss:$8 sps:$4 sm:$0xff]  }
   0xb   :  { %1563 = vmatpush3.bf16.msra.mxu0 %v2007_v5  ;;  %1633 = vmatpush3.bf16.msra.mxu1 %v2007_v5  ;;  %v1876_v30 = vld [vmem:[%s2667_s0 + $0x30] ss:$8 sps:$4 sm:$0xff]   ;;  %v1877_v31 = vld [vmem:[%s2667_s0 + $0xc0] ss:$8 sps:$4 sm:$0xff]   ;;  %v1878_v32 = vld [vmem:[%s2667_s0 + $0x44] ss:$8 sps:$4 sm:$0xff]  }
   0xc   :  { %1564 = vmatprep.subr.bf16.mxu0 %v2014_v6  ;;  %1634 = vmatprep.subr.bf16.mxu1 %v2014_v6  ;;  %v1880_v33 = vld [vmem:[%s2667_s0 + $0xd4] ss:$8 sps:$4 sm:$0xff]   ;;  %v1882_v34 = vld [vmem:[%s2667_s0 + $0x40] ss:$8 sps:$4 sm:$0xff]   ;;  %v1883_v35 = vld [vmem:[%s2667_s0 + $0xd0] ss:$8 sps:$4 sm:$0xff]  }
   0xd   :  { %v1884_v36 = vld [vmem:[%s2667_s0 + $0x54] ss:$8 sps:$4 sm:$0xff]   ;;  %v1886_v37 = vld [vmem:[%s2667_s0 + $0xe4] ss:$8 sps:$4 sm:$0xff]   ;;  %v1888_v38 = vld [vmem:[%s2667_s0 + $0x50] ss:$8 sps:$4 sm:$0xff]  }
   0xe   :  { %v1889_v39 = vld [vmem:[%s2667_s0 + $0xe0] ss:$8 sps:$4 sm:$0xff]   ;;  %v1890_v40 = vld [vmem:[%s2667_s0 + $0x64] ss:$8 sps:$4 sm:$0xff]   ;;  %v1892_v41 = vld [vmem:[%s2667_s0 + $0xf4] ss:$8 sps:$4 sm:$0xff]  }
   0xf   :  { %1565 = vmatpush3.bf16.msra.mxu0 %v2021_v7  ;;  %1635 = vmatpush3.bf16.msra.mxu1 %v2021_v7  ;;  %v1894_v42 = vld [vmem:[%s2667_s0 + $0x60] ss:$8 sps:$4 sm:$0xff]   ;;  %v1895_v43 = vld [vmem:[%s2667_s0 + $0xf0] ss:$8 sps:$4 sm:$0xff]   ;;  %v1896_v44 = vld [vmem:[%s2667_s0 + $0x74] ss:$8 sps:$4 sm:$0xff]  }
  0x10   :  { %1566 = vmatprep.subr.bf16.mxu0 %v2028_v8  ;;  %1636 = vmatprep.subr.bf16.mxu1 %v2028_v8  ;;  %v1898_v45 = vld [vmem:[%s2667_s0 + $0x104] ss:$8 sps:$4 sm:$0xff]   ;;  %v1900_v46 = vld [vmem:[%s2667_s0 + $0x70] ss:$8 sps:$4 sm:$0xff]   ;;  %v1901_v47 = vld [vmem:[%s2667_s0 + $0x100] ss:$8 sps:$4 sm:$0xff]  }
  0x11   :  { %v1902_v48 = vld [vmem:[%s2667_s0 + $0x84] ss:$8 sps:$4 sm:$0xff]   ;;  %v1904_v49 = vld [vmem:[%s2667_s0 + $0x114] ss:$8 sps:$4 sm:$0xff]   ;;  %v1906_v50 = vld [vmem:[%s2667_s0 + $0x80] ss:$8 sps:$4 sm:$0xff]  }
  0x12   :  { %v1907_v51 = vld [vmem:[%s2667_s0 + $0x110] ss:$8 sps:$4 sm:$0xff]   ;;  %v1910_v52 = vld [vmem:[%s2667_s0 + $0x124] ss:$8 sps:$4 sm:$0xff]   ;;  %v1913_v53 = vld [vmem:[%s2667_s0 + $0x1b4] ss:$8 sps:$4 sm:$0xff]  }
  0x13   :  { %1567 = vmatpush3.bf16.msra.mxu0 %v2035_v9  ;;  %1637 = vmatpush3.bf16.msra.mxu1 %v2035_v9  ;;  %v1908_v54 = vld [vmem:[%s2667_s0 + $0x120] ss:$8 sps:$4 sm:$0xff]   ;;  %v1911_v55 = vld [vmem:[%s2667_s0 + $0x1b0] ss:$8 sps:$4 sm:$0xff]   ;;  %v1914_v56 = vld [vmem:[%s2667_s0 + $0x134] ss:$8 sps:$4 sm:$0xff]  }
  0x14   :  { %1568 = vmatprep.subr.bf16.mxu0 %v2042_v10  ;;  %1638 = vmatprep.subr.bf16.mxu1 %v2042_v10  ;;  %v1916_v57 = vld [vmem:[%s2667_s0 + $0x1c4] ss:$8 sps:$4 sm:$0xff]   ;;  %v1918_v58 = vld [vmem:[%s2667_s0 + $0x130] ss:$8 sps:$4 sm:$0xff]   ;;  %v1919_v59 = vld [vmem:[%s2667_s0 + $0x1c0] ss:$8 sps:$4 sm:$0xff]  }
  0x15   :  { %v1920_v60 = vld [vmem:[%s2667_s0 + $0x144] ss:$8 sps:$4 sm:$0xff]   ;;  %v1922_v61 = vld [vmem:[%s2667_s0 + $0x1d4] ss:$8 sps:$4 sm:$0xff]   ;;  %v1924_v62 = vld [vmem:[%s2667_s0 + $0x140] ss:$8 sps:$4 sm:$0xff]  }
  0x16   :  { %v1925_v63 = vld [vmem:[%s2667_s0 + $0x1d0] ss:$8 sps:$4 sm:$0xff]   ;;  %v1943_v11 = vld [vmem:[%s2667_s0 + $0x200] ss:$8 sps:$4 sm:$0xff]   ;;  %v1944_v12 = vld [vmem:[%s2667_s0 + $0x184] ss:$8 sps:$4 sm:$0xff]  }
  0x17   :  { %1569 = vmatpush3.bf16.msra.mxu0 %v2055_v13  ;;  %1639 = vmatpush3.bf16.msra.mxu1 %v2055_v13 }
  0x18   :  { %1570 = vmatprep.subr.bf16.mxu0 %v2062_v14  ;;  %1640 = vmatprep.subr.bf16.mxu1 %v2062_v14 }
  0x1b   :  { %1571 = vmatpush3.bf16.msra.mxu0 %v2069_v15  ;;  %1641 = vmatpush3.bf16.msra.mxu1 %v2069_v15 }
  0x1c   :  { %1572 = vmatprep.subr.bf16.mxu0 %v2076_v16  ;;  %1642 = vmatprep.subr.bf16.mxu1 %v2076_v16 }
  0x1f   :  { %1573 = vmatpush3.bf16.msra.mxu0 %v2083_v17  ;;  %1643 = vmatpush3.bf16.msra.mxu1 %v2083_v17 }
  0x20   :  { %1698 = vmatprep.subr.bf16.mxu0 %v1838_v0  ;;  %1768 = vmatprep.subr.bf16.mxu1 %v1838_v0  ;;  %v1926_v0 = vld [vmem:[%s2667_s0 + $0x154] ss:$8 sps:$4 sm:$0xff]  }
  0x22   :  { %289 = vmatmul.mubr.bf16.vlgmr.msra.gmra.mrb[0].mxu0 %v1854_v18  ;;  %551 = vmatmul.mubr.bf16.vlgmr.msra.gmra.mrb[0].mxu1 %v1857_v19  ;;  %v1954_v18 = vld [vmem:[%s2667_s0 + $0x190] ss:$8 sps:$4 sm:$0xff]   ;;  %v1955_v19 = vld [vmem:[%s2667_s0 + $0x220] ss:$8 sps:$4 sm:$0xff]  }
  0x23   :  { %1699 = vmatpush3.bf16.msra.mxu0 %v1839_v1  ;;  %1769 = vmatpush3.bf16.msra.mxu1 %v1839_v1  ;;  %v1928_v1 = vld [vmem:[%s2667_s0 + $0x1e4] ss:$8 sps:$4 sm:$0xff]  }
  0x24   :  { %296 = vmatprep.mubr.bf16.mxu0 %v1860_v20  ;;  %558 = vmatprep.mubr.bf16.mxu1 %v1862_v21  ;;  %v1956_v20 = vld [vmem:[%s2667_s0 + $0x1a4] ss:$8 sps:$4 sm:$0xff]   ;;  %v1958_v21 = vld [vmem:[%s2667_s0 + $0x234] ss:$8 sps:$4 sm:$0xff]  }
  0x25   :  { %1700 = vmatprep.subr.bf16.mxu0 %v1840_v2  ;;  %1770 = vmatprep.subr.bf16.mxu1 %v1840_v2  ;;  %v1930_v2 = vld [vmem:[%s2667_s0 + $0x150] ss:$8 sps:$4 sm:$0xff]  }
  0x27   :  { %1701 = vmatpush3.bf16.msra.mxu0 %v1841_v3  ;;  %1771 = vmatpush3.bf16.msra.mxu1 %v1841_v3  ;;  %v1931_v3 = vld [vmem:[%s2667_s0 + $0x1e0] ss:$8 sps:$4 sm:$0xff]  }
  0x28   :  { %1702 = vmatprep.subr.bf16.mxu0 %v2002_v4  ;;  %1772 = vmatprep.subr.bf16.mxu1 %v2002_v4  ;;  %v1932_v4 = vld [vmem:[%s2667_s0 + $0x164] ss:$8 sps:$4 sm:$0xff]  }
  0x2a   :  { %297 = vmatmul.mubr.bf16.gmra.mrb[4].mxu0 %v1864_v22  ;;  %559 = vmatmul.mubr.bf16.gmra.mrb[4].mxu1 %v1865_v23  ;;  %v1960_v22 = vld [vmem:[%s2667_s0 + $0x1a0] ss:$8 sps:$4 sm:$0xff]   ;;  %v1961_v23 = vld [vmem:[%s2667_s0 + $0x230] ss:$8 sps:$4 sm:$0xff]  }
  0x2b   :  { %304 = vmatprep.mubr.bf16.mxu0 %v1866_v24  ;;  %566 = vmatprep.mubr.bf16.mxu1 %v1868_v25 }
  0x2c   :  { %1703 = vmatpush3.bf16.msra.mxu0 %v2007_v5  ;;  %1773 = vmatpush3.bf16.msra.mxu1 %v2007_v5  ;;  %v1934_v5 = vld [vmem:[%s2667_s0 + $0x1f4] ss:$8 sps:$4 sm:$0xff]  }
  0x2d   :  { %1704 = vmatprep.subr.bf16.mxu0 %v2014_v6  ;;  %1774 = vmatprep.subr.bf16.mxu1 %v2014_v6  ;;  %v1936_v6 = vld [vmem:[%s2667_s0 + $0x160] ss:$8 sps:$4 sm:$0xff]  }
  0x30   :  { %1705 = vmatpush3.bf16.msra.mxu0 %v2021_v7  ;;  %1775 = vmatpush3.bf16.msra.mxu1 %v2021_v7  ;;  %v1937_v7 = vld [vmem:[%s2667_s0 + $0x1f0] ss:$8 sps:$4 sm:$0xff]  }
  0x31   :  { %1706 = vmatprep.subr.bf16.mxu0 %v2028_v8  ;;  %1776 = vmatprep.subr.bf16.mxu1 %v2028_v8  ;;  %v1938_v8 = vld [vmem:[%s2667_s0 + $0x174] ss:$8 sps:$4 sm:$0xff]  }
  0x32   :  { %305 = vmatmul.mubr.bf16.gmra.mrb[8].mxu0 %v1870_v26  ;;  %567 = vmatmul.mubr.bf16.gmra.mrb[8].mxu1 %v1871_v27  ;;  %v2326_v26 = vld [vmem:[%s2668_s2] ss:$0 sm:$0xff] }
  0x33   :  { %312 = vmatprep.mubr.bf16.mxu0 %v1872_v28  ;;  %574 = vmatprep.mubr.bf16.mxu1 %v1874_v29 }
  0x34   :  { %1707 = vmatpush3.bf16.msra.mxu0 %v2035_v9  ;;  %1777 = vmatpush3.bf16.msra.mxu1 %v2035_v9  ;;  %v1940_v9 = vld [vmem:[%s2667_s0 + $0x204] ss:$8 sps:$4 sm:$0xff]  }
  0x35   :  { %1708 = vmatprep.subr.bf16.mxu0 %v2042_v10  ;;  %1778 = vmatprep.subr.bf16.mxu1 %v2042_v10  ;;  %v1942_v10 = vld [vmem:[%s2667_s0 + $0x170] ss:$8 sps:$4 sm:$0xff]  }
  0x38   :  { %1709 = vmatpush3.bf16.msra.mxu0 %v2055_v13  ;;  %1779 = vmatpush3.bf16.msra.mxu1 %v2055_v13  ;;  %v1946_v13 = vld [vmem:[%s2667_s0 + $0x214] ss:$8 sps:$4 sm:$0xff]  }
  0x39   :  { %1710 = vmatprep.subr.bf16.mxu0 %v2062_v14  ;;  %1780 = vmatprep.subr.bf16.mxu1 %v2062_v14  ;;  %v1948_v14 = vld [vmem:[%s2667_s0 + $0x180] ss:$8 sps:$4 sm:$0xff]  }
  0x3a   :  { %313 = vmatmul.mubr.bf16.gmra.mrb[12].mxu0 %v1876_v30  ;;  %575 = vmatmul.mubr.bf16.gmra.mrb[12].mxu1 %v1877_v31 }
  0x3b   :  { %320 = vmatprep.mubr.bf16.mxu0 %v1878_v32  ;;  %582 = vmatprep.mubr.bf16.mxu1 %v1880_v33  ;;  %v2331_v33 = vld [vmem:[%s2669_s3] ss:$0 sm:$0xff] }
  0x3c   :  { %1711 = vmatpush3.bf16.msra.mxu0 %v2069_v15  ;;  %1781 = vmatpush3.bf16.msra.mxu1 %v2069_v15  ;;  %v1949_v15 = vld [vmem:[%s2667_s0 + $0x210] ss:$8 sps:$4 sm:$0xff]  }
  0x3d   :  { %1712 = vmatprep.subr.bf16.mxu0 %v2076_v16  ;;  %1782 = vmatprep.subr.bf16.mxu1 %v2076_v16  ;;  %v1950_v16 = vld [vmem:[%s2667_s0 + $0x194] ss:$8 sps:$4 sm:$0xff]  }
  0x40   :  { %1713 = vmatpush3.bf16.msra.mxu0 %v2083_v17  ;;  %1783 = vmatpush3.bf16.msra.mxu1 %v2083_v17  ;;  %v1952_v17 = vld [vmem:[%s2667_s0 + $0x224] ss:$8 sps:$4 sm:$0xff]  }
  0x42   :  { %321 = vmatmul.mubr.bf16.gmra.mrb[16].mxu0 %v1882_v34  ;;  %583 = vmatmul.mubr.bf16.gmra.mrb[16].mxu1 %v1883_v35 }
  0x43   :  { %328 = vmatprep.mubr.bf16.mxu0 %v1884_v36  ;;  %590 = vmatprep.mubr.bf16.mxu1 %v1886_v37 }
  0x4a   :  { %329 = vmatmul.mubr.bf16.gmra.mrb[20].mxu0 %v1888_v38  ;;  %591 = vmatmul.mubr.bf16.gmra.mrb[20].mxu1 %v1889_v39 }
  0x4b   :  { %336 = vmatprep.mubr.bf16.mxu0 %v1890_v40  ;;  %598 = vmatprep.mubr.bf16.mxu1 %v1892_v41 }
  0x52   :  { %337 = vmatmul.mubr.bf16.gmra.mrb[24].mxu0 %v1894_v42  ;;  %599 = vmatmul.mubr.bf16.gmra.mrb[24].mxu1 %v1895_v43 }
  0x53   :  { %344 = vmatprep.mubr.bf16.mxu0 %v1896_v44  ;;  %606 = vmatprep.mubr.bf16.mxu1 %v1898_v45 }
  0x5a   :  { %345 = vmatmul.mubr.bf16.gmra.mrb[28].mxu0 %v1900_v46  ;;  %607 = vmatmul.mubr.bf16.gmra.mrb[28].mxu1 %v1901_v47 }
  0x5b   :  { %352 = vmatprep.mubr.bf16.mxu0 %v1902_v48  ;;  %614 = vmatprep.mubr.bf16.mxu1 %v1904_v49 }
  0x62   :  { %353 = vmatmul.mubr.bf16.gmra.mrb[32].mxu0 %v1906_v50  ;;  %615 = vmatmul.mubr.bf16.gmra.mrb[32].mxu1 %v1907_v51 }
  0x63   :  { %818 = vmatprep.mubr.bf16.mxu0 %v1910_v52  ;;  %1086 = vmatprep.mubr.bf16.mxu1 %v1913_v53 }
  0x6a   :  { %819 = vmatmul.mubr.bf16.vlgmr.msra.gmra.mrb[36].mxu0 %v1908_v54  ;;  %1087 = vmatmul.mubr.bf16.vlgmr.msra.gmra.mrb[36].mxu1 %v1911_v55 }
  0x6b   :  { %826 = vmatprep.mubr.bf16.mxu0 %v1914_v56  ;;  %1094 = vmatprep.mubr.bf16.mxu1 %v1916_v57 }
  0x72   :  { %827 = vmatmul.mubr.bf16.gmra.mrb[40].mxu0 %v1918_v58  ;;  %1095 = vmatmul.mubr.bf16.gmra.mrb[40].mxu1 %v1919_v59 }
  0x73   :  { %834 = vmatprep.mubr.bf16.mxu0 %v1920_v60  ;;  %1102 = vmatprep.mubr.bf16.mxu1 %v1922_v61 }
  0x7a   :  { %835 = vmatmul.mubr.bf16.gmra.mrb[44].mxu0 %v1924_v62  ;;  %1103 = vmatmul.mubr.bf16.gmra.mrb[44].mxu1 %v1925_v63 }
  0x7b   :  { %842 = vmatprep.mubr.bf16.mxu0 %v1926_v0  ;;  %1110 = vmatprep.mubr.bf16.mxu1 %v1928_v1 }
  0x82   :  { %843 = vmatmul.mubr.bf16.gmra.mrb[48].mxu0 %v1930_v2  ;;  %1111 = vmatmul.mubr.bf16.gmra.mrb[48].mxu1 %v1931_v3 }
  0x83   :  { %850 = vmatprep.mubr.bf16.mxu0 %v1932_v4  ;;  %1118 = vmatprep.mubr.bf16.mxu1 %v1934_v5 }
  0x8a   :  { %851 = vmatmul.mubr.bf16.gmra.mrb[52].mxu0 %v1936_v6  ;;  %1119 = vmatmul.mubr.bf16.gmra.mrb[52].mxu1 %v1937_v7 }
  0x8b   :  { %858 = vmatprep.mubr.bf16.mxu0 %v1938_v8  ;;  %1126 = vmatprep.mubr.bf16.mxu1 %v1940_v9 }
  0x92   :  { %859 = vmatmul.mubr.bf16.gmra.mrb[56].mxu0 %v1942_v10  ;;  %1127 = vmatmul.mubr.bf16.gmra.mrb[56].mxu1 %v1943_v11 }
  0x93   :  { %866 = vmatprep.mubr.bf16.mxu0 %v1944_v12  ;;  %1134 = vmatprep.mubr.bf16.mxu1 %v1946_v13 }
  0x9a   :  { %867 = vmatmul.mubr.bf16.gmra.mrb[60].mxu0 %v1948_v14  ;;  %1135 = vmatmul.mubr.bf16.gmra.mrb[60].mxu1 %v1949_v15 }
  0x9b   :  { %874 = vmatprep.mubr.bf16.mxu0 %v1950_v16  ;;  %1142 = vmatprep.mubr.bf16.mxu1 %v1952_v17 }
  0xa2   :  { %875 = vmatmul.mubr.bf16.gmra.mrb[64].mxu0 %v1954_v18  ;;  %1143 = vmatmul.mubr.bf16.gmra.mrb[64].mxu1 %v1955_v19 }
  0xa3   :  { %882 = vmatprep.mubr.bf16.mxu0 %v1956_v20  ;;  %1150 = vmatprep.mubr.bf16.mxu1 %v1958_v21 }
  0xaa   :  { %883 = vmatmul.mubr.bf16.gmra.mrb[68].mxu0 %v1960_v22  ;;  %1151 = vmatmul.mubr.bf16.gmra.mrb[68].mxu1 %v1961_v23 }
  0xf5   :  { %v1574_v24 = vpop.f32.mrb[0].mxu0  ;;  %v1644_v25 = vpop.f32.mrb[0].mxu1 }
  0xf6   :  { %v1575_v27 = vpop.f32.mrb[1].mxu0  ;;  %v1645_v28 = vpop.f32.mrb[1].mxu1 }
  0xf7   :  { %v1576_v29 = vadd.f32 %v1575_v27, %v1574_v24  ;;  %v1646_v30 = vadd.f32 %v1645_v28, %v1644_v25  ;;  %v1577_v31 = vpop.f32.mrb[2].mxu0  ;;  %v1647_v32 = vpop.f32.mrb[2].mxu1 }
  0xf8   :  { %v1578_v34 = vpop.f32.mrb[3].mxu0  ;;  %v1648_v35 = vpop.f32.mrb[3].mxu1 }
  0xf9   :  { %v367_v36 = vmul.f32 %v1576_v29, %v2326_v26  ;;  %v623_v37 = vmul.f32 %v1646_v30, %v2326_v26  ;;  %v1579_v38 = vadd.f32 %v1578_v34, %v1577_v31  ;;  %v1649_v39 = vadd.f32 %v1648_v35, %v1647_v32 }
  0xfb   :  { %v2336_v40 = vadd.f32 %v2331_v33, %v367_v36  ;;  %v2339_v41 = vadd.f32 %v2331_v33, %v623_v37  ;;  %v368_v42 = vmul.f32 %v1579_v38, %v2326_v26  ;;  %v624_v43 = vmul.f32 %v1649_v39, %v2326_v26 }
  0xfd   :  { %v659_v44 = vmax.f32 %v2336_v40, %v2339_v41  ;;  %v2346_v45 = vadd.f32 %v2331_v33, %v368_v42  ;;  %v2349_v46 = vadd.f32 %v2331_v33, %v624_v43  ;;  %v1580_v47 = vpop.f32.mrb[4].mxu0  ;;  %v1650_v48 = vpop.f32.mrb[4].mxu1 }
  0xfe   :  { %v1581_v49 = vpop.f32.mrb[5].mxu0  ;;  %v1651_v50 = vpop.f32.mrb[5].mxu1 }
  0xff   :  { %v660_v51 = vmax.f32 %v2346_v45, %v2349_v46  ;;  %v1582_v52 = vadd.f32 %v1581_v49, %v1580_v47  ;;  %v1652_v53 = vadd.f32 %v1651_v50, %v1650_v48  ;;  %v1583_v54 = vpop.f32.mrb[6].mxu0  ;;  %v1653_v55 = vpop.f32.mrb[6].mxu1 }
 0x100   :  { %v1584_v56 = vpop.f32.mrb[7].mxu0  ;;  %v1654_v57 = vpop.f32.mrb[7].mxu1 }
 0x101   :  { %v369_v58 = vmul.f32 %v1582_v52, %v2326_v26  ;;  %v625_v59 = vmul.f32 %v1652_v53, %v2326_v26  ;;  %v1585_v60 = vadd.f32 %v1584_v56, %v1583_v54  ;;  %v1655_v61 = vadd.f32 %v1654_v57, %v1653_v55 }
 0x103   :  { %v2356_v62 = vadd.f32 %v2331_v33, %v369_v58  ;;  %v2359_v63 = vadd.f32 %v2331_v33, %v625_v59  ;;  %v370_v0 = vmul.f32 %v1585_v60, %v2326_v26  ;;  %v626_v1 = vmul.f32 %v1655_v61, %v2326_v26 }
 0x105   :  { %v661_v2 = vmax.f32 %v2356_v62, %v2359_v63  ;;  %v2366_v3 = vadd.f32 %v2331_v33, %v370_v0  ;;  %v2369_v4 = vadd.f32 %v2331_v33, %v626_v1  ;;  %v1586_v5 = vpop.f32.mrb[8].mxu0  ;;  %v1656_v6 = vpop.f32.mrb[8].mxu1 }
 0x106   :  { %v1587_v7 = vpop.f32.mrb[9].mxu0  ;;  %v1657_v8 = vpop.f32.mrb[9].mxu1 }
 0x107   :  { %v662_v9 = vmax.f32 %v2366_v3, %v2369_v4  ;;  %v1588_v10 = vadd.f32 %v1587_v7, %v1586_v5  ;;  %v1658_v11 = vadd.f32 %v1657_v8, %v1656_v6  ;;  %v1589_v12 = vpop.f32.mrb[10].mxu0  ;;  %v1659_v13 = vpop.f32.mrb[10].mxu1 }
 0x108   :  { %v1590_v14 = vpop.f32.mrb[11].mxu0  ;;  %v1660_v15 = vpop.f32.mrb[11].mxu1 }
 0x109   :  { %v371_v16 = vmul.f32 %v1588_v10, %v2326_v26  ;;  %v627_v17 = vmul.f32 %v1658_v11, %v2326_v26  ;;  %v1591_v18 = vadd.f32 %v1590_v14, %v1589_v12  ;;  %v1661_v19 = vadd.f32 %v1660_v15, %v1659_v13 }
 0x10b   :  { %v2376_v20 = vadd.f32 %v2331_v33, %v371_v16  ;;  %v2379_v21 = vadd.f32 %v2331_v33, %v627_v17  ;;  %v372_v22 = vmul.f32 %v1591_v18, %v2326_v26  ;;  %v628_v23 = vmul.f32 %v1661_v19, %v2326_v26 }
 0x10d   :  { %v663_v24 = vmax.f32 %v2376_v20, %v2379_v21  ;;  %v2386_v25 = vadd.f32 %v2331_v33, %v372_v22  ;;  %v2389_v27 = vadd.f32 %v2331_v33, %v628_v23  ;;  %v1592_v28 = vpop.f32.mrb[12].mxu0  ;;  %v1662_v29 = vpop.f32.mrb[12].mxu1 }
 0x10e   :  { %v1593_v30 = vpop.f32.mrb[13].mxu0  ;;  %v1663_v31 = vpop.f32.mrb[13].mxu1 }
 0x10f   :  { %v664_v32 = vmax.f32 %v2386_v25, %v2389_v27  ;;  %v1594_v34 = vadd.f32 %v1593_v30, %v1592_v28  ;;  %v1664_v35 = vadd.f32 %v1663_v31, %v1662_v29  ;;  %v1595_v36 = vpop.f32.mrb[14].mxu0  ;;  %v1665_v37 = vpop.f32.mrb[14].mxu1 }
 0x110   :  { %v1596_v38 = vpop.f32.mrb[15].mxu0  ;;  %v1666_v39 = vpop.f32.mrb[15].mxu1 }
 0x111   :  { %v373_v42 = vmul.f32 %v1594_v34, %v2326_v26  ;;  %v629_v43 = vmul.f32 %v1664_v35, %v2326_v26  ;;  %v1597_v47 = vadd.f32 %v1596_v38, %v1595_v36  ;;  %v1667_v48 = vadd.f32 %v1666_v39, %v1665_v37 }
 0x113   :  { %v2396_v49 = vadd.f32 %v2331_v33, %v373_v42  ;;  %v2399_v50 = vadd.f32 %v2331_v33, %v629_v43  ;;  %v374_v52 = vmul.f32 %v1597_v47, %v2326_v26  ;;  %v630_v53 = vmul.f32 %v1667_v48, %v2326_v26 }
 0x115   :  { %v2406_v55 = vadd.f32 %v2331_v33, %v374_v52  ;;  %v2409_v56 = vadd.f32 %v2331_v33, %v630_v53  ;;  %v1598_v57 = vpop.f32.mrb[16].mxu0  ;;  %v1668_v58 = vpop.f32.mrb[16].mxu1 }
 0x116   :  { %v1599_v59 = vpop.f32.mrb[17].mxu0  ;;  %v1669_v60 = vpop.f32.mrb[17].mxu1 }
 0x117   :  { %v1600_v0 = vadd.f32 %v1599_v59, %v1598_v57  ;;  %v1670_v1 = vadd.f32 %v1669_v60, %v1668_v58  ;;  %v1601_v5 = vpop.f32.mrb[18].mxu0  ;;  %v1671_v6 = vpop.f32.mrb[18].mxu1 }
 0x118   :  { %v1602_v7 = vpop.f32.mrb[19].mxu0  ;;  %v1672_v8 = vpop.f32.mrb[19].mxu1 }
 0x119   :  { %v375_v10 = vmul.f32 %v1600_v0, %v2326_v26  ;;  %v631_v11 = vmul.f32 %v1670_v1, %v2326_v26  ;;  %v1603_v12 = vadd.f32 %v1602_v7, %v1601_v5  ;;  %v1673_v13 = vadd.f32 %v1672_v8, %v1671_v6 }
 0x11b   :  { %v2416_v14 = vadd.f32 %v2331_v33, %v375_v10  ;;  %v2419_v15 = vadd.f32 %v2331_v33, %v631_v11  ;;  %v376_v16 = vmul.f32 %v1603_v12, %v2326_v26  ;;  %v632_v17 = vmul.f32 %v1673_v13, %v2326_v26 }
 0x11d   :  { %v2426_v19 = vadd.f32 %v2331_v33, %v376_v16  ;;  %v2429_v22 = vadd.f32 %v2331_v33, %v632_v17  ;;  %v1604_v23 = vpop.f32.mrb[20].mxu0  ;;  %v1674_v28 = vpop.f32.mrb[20].mxu1 }
 0x11e   :  { %v1605_v29 = vpop.f32.mrb[21].mxu0  ;;  %v1675_v30 = vpop.f32.mrb[21].mxu1 }
 0x11f   :  { %v1606_v34 = vadd.f32 %v1605_v29, %v1604_v23  ;;  %v1676_v35 = vadd.f32 %v1675_v30, %v1674_v28  ;;  %v1607_v36 = vpop.f32.mrb[22].mxu0  ;;  %v1677_v37 = vpop.f32.mrb[22].mxu1 }
 0x120   :  { %v1608_v38 = vpop.f32.mrb[23].mxu0  ;;  %v1678_v39 = vpop.f32.mrb[23].mxu1 }
 0x121   :  { %v377_v42 = vmul.f32 %v1606_v34, %v2326_v26  ;;  %v633_v43 = vmul.f32 %v1676_v35, %v2326_v26  ;;  %v1609_v47 = vadd.f32 %v1608_v38, %v1607_v36  ;;  %v1679_v48 = vadd.f32 %v1678_v39, %v1677_v37 }
 0x123   :  { %v2436_v52 = vadd.f32 %v2331_v33, %v377_v42  ;;  %v2439_v53 = vadd.f32 %v2331_v33, %v633_v43  ;;  %v378_v57 = vmul.f32 %v1609_v47, %v2326_v26  ;;  %v634_v58 = vmul.f32 %v1679_v48, %v2326_v26 }
 0x125   :  { %v2446_v60 = vadd.f32 %v2331_v33, %v378_v57  ;;  %v2449_v0 = vadd.f32 %v2331_v33, %v634_v58  ;;  %v1610_v1 = vpop.f32.mrb[24].mxu0  ;;  %v1680_v5 = vpop.f32.mrb[24].mxu1 }
 0x126   :  { %v1611_v6 = vpop.f32.mrb[25].mxu0  ;;  %v1681_v7 = vpop.f32.mrb[25].mxu1 }
 0x127   :  { %v1612_v10 = vadd.f32 %v1611_v6, %v1610_v1  ;;  %v1682_v11 = vadd.f32 %v1681_v7, %v1680_v5  ;;  %v1613_v12 = vpop.f32.mrb[26].mxu0  ;;  %v1683_v13 = vpop.f32.mrb[26].mxu1 }
 0x128   :  { %v1614_v16 = vpop.f32.mrb[27].mxu0  ;;  %v1684_v17 = vpop.f32.mrb[27].mxu1 }
 0x129   :  { %v379_v23 = vmul.f32 %v1612_v10, %v2326_v26  ;;  %v635_v28 = vmul.f32 %v1682_v11, %v2326_v26  ;;  %v1615_v29 = vadd.f32 %v1614_v16, %v1613_v12  ;;  %v1685_v30 = vadd.f32 %v1684_v17, %v1683_v13 }
 0x12b   :  { %v2456_v34 = vadd.f32 %v2331_v33, %v379_v23  ;;  %v2459_v35 = vadd.f32 %v2331_v33, %v635_v28  ;;  %v380_v36 = vmul.f32 %v1615_v29, %v2326_v26  ;;  %v636_v37 = vmul.f32 %v1685_v30, %v2326_v26 }
 0x12d   :  { %v2466_v39 = vadd.f32 %v2331_v33, %v380_v36  ;;  %v2469_v42 = vadd.f32 %v2331_v33, %v636_v37  ;;  %v1616_v43 = vpop.f32.mrb[28].mxu0  ;;  %v1686_v47 = vpop.f32.mrb[28].mxu1 }
 0x12e   :  { %v1617_v48 = vpop.f32.mrb[29].mxu0  ;;  %v1687_v57 = vpop.f32.mrb[29].mxu1 }
 0x12f   :  { %v1618_v1 = vadd.f32 %v1617_v48, %v1616_v43  ;;  %v1688_v5 = vadd.f32 %v1687_v57, %v1686_v47  ;;  %v1619_v6 = vpop.f32.mrb[30].mxu0  ;;  %v1689_v7 = vpop.f32.mrb[30].mxu1 }
 0x130   :  { %v1620_v10 = vpop.f32.mrb[31].mxu0  ;;  %v1690_v11 = vpop.f32.mrb[31].mxu1 }
 0x131   :  { %v381_v12 = vmul.f32 %v1618_v1, %v2326_v26  ;;  %v637_v13 = vmul.f32 %v1688_v5, %v2326_v26  ;;  %v1621_v16 = vadd.f32 %v1620_v10, %v1619_v6  ;;  %v1691_v17 = vadd.f32 %v1690_v11, %v1689_v7 }
 0x133   :  { %v2476_v23 = vadd.f32 %v2331_v33, %v381_v12  ;;  %v2479_v28 = vadd.f32 %v2331_v33, %v637_v13  ;;  %v382_v29 = vmul.f32 %v1621_v16, %v2326_v26  ;;  %v638_v30 = vmul.f32 %v1691_v17, %v2326_v26 }
 0x135   :  { %v2486_v37 = vadd.f32 %v2331_v33, %v382_v29  ;;  %v2489_v43 = vadd.f32 %v2331_v33, %v638_v30  ;;  %v1622_v47 = vpop.f32.mrb[32].mxu0  ;;  %v1692_v48 = vpop.f32.mrb[32].mxu1 }
 0x136   :  { %v1623_v57 = vpop.f32.mrb[33].mxu0  ;;  %v1693_v1 = vpop.f32.mrb[33].mxu1 }
 0x137   :  { %v1624_v6 = vadd.f32 %v1623_v57, %v1622_v47  ;;  %v1694_v7 = vadd.f32 %v1693_v1, %v1692_v48  ;;  %v1625_v10 = vpop.f32.mrb[34].mxu0  ;;  %v1695_v11 = vpop.f32.mrb[34].mxu1 }
 0x138   :  { %v1626_v12 = vpop.f32.mrb[35].mxu0  ;;  %v1696_v13 = vpop.f32.mrb[35].mxu1 }
 0x139   :  { %v383_v16 = vmul.f32 %v1624_v6, %v2326_v26  ;;  %v639_v17 = vmul.f32 %v1694_v7, %v2326_v26  ;;  %v1627_v29 = vadd.f32 %v1626_v12, %v1625_v10  ;;  %v1697_v30 = vadd.f32 %v1696_v13, %v1695_v11 }
 0x13b   :  { %v2496_v36 = vadd.f32 %v2331_v33, %v383_v16  ;;  %v2499_v58 = vadd.f32 %v2331_v33, %v639_v17  ;;  %v384_v5 = vmul.f32 %v1627_v29, %v2326_v26  ;;  %v640_v47 = vmul.f32 %v1697_v30, %v2326_v26 }
 0x13d   :  { %v2506_v57 = vadd.f32 %v2331_v33, %v384_v5  ;;  %v2509_v1 = vadd.f32 %v2331_v33, %v640_v47  ;;  %v1714_v6 = vpop.f32.mrb[36].mxu0  ;;  %v1784_v7 = vpop.f32.mrb[36].mxu1 }
 0x13e   :  { %v1715_v10 = vpop.f32.mrb[37].mxu0  ;;  %v1785_v11 = vpop.f32.mrb[37].mxu1 }
 0x13f   :  { %v1716_v13 = vadd.f32 %v1715_v10, %v1714_v6  ;;  %v1786_v16 = vadd.f32 %v1785_v11, %v1784_v7  ;;  %v1717_v17 = vpop.f32.mrb[38].mxu0  ;;  %v1787_v29 = vpop.f32.mrb[38].mxu1 }
 0x140   :  { %v1718_v30 = vpop.f32.mrb[39].mxu0  ;;  %v1788_v38 = vpop.f32.mrb[39].mxu1 }
 0x141   :  { %v891_v48 = vmul.f32 %v1716_v13, %v2326_v26  ;;  %v1159_v5 = vmul.f32 %v1786_v16, %v2326_v26  ;;  %v1719_v8 = vadd.f32 %v1718_v30, %v1717_v17  ;;  %v1789_v47 = vadd.f32 %v1788_v38, %v1787_v29 }
 0x143   :  { %v909_v59 = vadd.f32 %v2331_v33, %v891_v48  ;;  %v1177_v31 = vadd.f32 %v2331_v33, %v1159_v5  ;;  %v892_v18 = vmul.f32 %v1719_v8, %v2326_v26  ;;  %v1160_v12 = vmul.f32 %v1789_v47, %v2326_v26 }
 0x145   :  { %v927_v6 = vmax.f32 %v659_v44, %v909_v59  ;;  %v910_v7 = vadd.f32 %v2331_v33, %v892_v18  ;;  %v1720_v10 = vpop.f32.mrb[40].mxu0  ;;  %v1790_v11 = vpop.f32.mrb[40].mxu1  ;;  %v1178_v13 = vadd.f32 %v2331_v33, %v1160_v12 }
 0x146   :  { %v1721_v16 = vpop.f32.mrb[41].mxu0  ;;  %v1791_v38 = vpop.f32.mrb[41].mxu1 }
 0x147   :  { %v1195_v17 = vmax.f32 %v927_v6, %v1177_v31  ;;  %v928_v48 = vmax.f32 %v660_v51, %v910_v7  ;;  %v1722_v8 = vadd.f32 %v1721_v16, %v1720_v10  ;;  %v1792_v29 = vadd.f32 %v1791_v38, %v1790_v11  ;;  %v1723_v30 = vpop.f32.mrb[42].mxu0  ;;  %v1793_v5 = vpop.f32.mrb[42].mxu1 }
 0x148   :  { %v1724_v47 = vpop.f32.mrb[43].mxu0  ;;  %v1794_v40 = vpop.f32.mrb[43].mxu1 }
 0x149   :  { %v1196_v41 = vmax.f32 %v928_v48, %v1178_v13  ;;  %v893_v44 = vmul.f32 %v1722_v8, %v2326_v26  ;;  %v1161_v18 = vmul.f32 %v1792_v29, %v2326_v26  ;;  %v1725_v59 = vadd.f32 %v1724_v47, %v1723_v30 }
 0x14a   :  { %v1795_v12 = vadd.f32 %v1794_v40, %v1793_v5  ;;  %v1213_v61 = vmax.f32 %v1195_v17, 0.0 }
 0x14b   :  { %v1214_v54 = vmax.f32 %v1196_v41, 0.0  ;;  %v911_v31 = vadd.f32 %v2331_v33, %v893_v44  ;;  %v1179_v45 = vadd.f32 %v2331_v33, %v1161_v18  ;;  %v894_v46 = vmul.f32 %v1725_v59, %v2326_v26 }
 0x14c   :  { %v1162_v51 = vmul.f32 %v1795_v12, %v2326_v26 }
 0x14d   :  { %v1508_v6 = vpack.c.bf16 %v1214_v54, %v1213_v61  ;;  %v929_v7 = vmax.f32 %v661_v2, %v911_v31  ;;  %v1726_v10 = vpop.f32.mrb[44].mxu0  ;;  %v1796_v11 = vpop.f32.mrb[44].mxu1  ;;  %v912_v13 = vadd.f32 %v2331_v33, %v894_v46 }
 0x14e   :  { %v1727_v16 = vpop.f32.mrb[45].mxu0  ;;  %v1797_v38 = vpop.f32.mrb[45].mxu1  ;;  %v1180_v63 = vadd.f32 %v2331_v33, %v1162_v51 }
 0x14f   :  { %1509 = vst [vmem:[%s2670_s4] sm:$0xff] %v1508_v6   ;;  %v1197_v17 = vmax.f32 %v929_v7, %v1179_v45  ;;  %v1728_v48 = vadd.f32 %v1727_v16, %v1726_v10  ;;  %v1798_v8 = vadd.f32 %v1797_v38, %v1796_v11  ;;  %v1729_v29 = vpop.f32.mrb[46].mxu0  ;;  %v1799_v30 = vpop.f32.mrb[46].mxu1  ;;  %v930_v62 = vmax.f32 %v662_v9, %v912_v13 }
 0x150   :  { %v1730_v2 = vpop.f32.mrb[47].mxu0  ;;  %v1800_v54 = vpop.f32.mrb[47].mxu1 }
 0x151   :  { %v895_v61 = vmul.f32 %v1728_v48, %v2326_v26  ;;  %v1163_v5 = vmul.f32 %v1798_v8, %v2326_v26  ;;  %v1731_v47 = vadd.f32 %v1730_v2, %v1729_v29  ;;  %v1198_v40 = vmax.f32 %v930_v62, %v1180_v63 }
 0x152   :  { %v1801_v41 = vadd.f32 %v1800_v54, %v1799_v30  ;;  %v1215_v12 = vmax.f32 %v1197_v17, 0.0 }
 0x153   :  { %v913_v44 = vadd.f32 %v2331_v33, %v895_v61  ;;  %v1181_v18 = vadd.f32 %v2331_v33, %v1163_v5  ;;  %v896_v59 = vmul.f32 %v1731_v47, %v2326_v26  ;;  %v1216_v3 = vmax.f32 %v1198_v40, 0.0 }
 0x154   :  { %v1164_v4 = vmul.f32 %v1801_v41, %v2326_v26  ;;  %v2671_v5 = vmax.f32 %v2396_v49, %v2399_v50 }
 0x155   :  { %v931_v9 = vmax.f32 %v663_v24, %v913_v44  ;;  %v914_v31 = vadd.f32 %v2331_v33, %v896_v59  ;;  %v1732_v45 = vpop.f32.mrb[48].mxu0  ;;  %v1802_v46 = vpop.f32.mrb[48].mxu1  ;;  %v1513_v51 = vpack.c.bf16 %v1216_v3, %v1215_v12 }
 0x156   :  { %v1182_v6 = vadd.f32 %v2331_v33, %v1164_v4  ;;  %v1733_v7 = vpop.f32.mrb[49].mxu0  ;;  %v1803_v10 = vpop.f32.mrb[49].mxu1 }
 0x157   :  { %v1199_v11 = vmax.f32 %v931_v9, %v1181_v18  ;;  %v932_v13 = vmax.f32 %v664_v32, %v914_v31  ;;  %v1734_v16 = vadd.f32 %v1733_v7, %v1732_v45  ;;  %v1804_v38 = vadd.f32 %v1803_v10, %v1802_v46  ;;  %v1735_v17 = vpop.f32.mrb[50].mxu0  ;;  %v1805_v48 = vpop.f32.mrb[50].mxu1  ;;  %1550 = vst [vmem:[%s2670_s4 + $0x8] sm:$0xff] %v1513_v51  }
 0x158   :  { %v1736_v20 = vpop.f32.mrb[51].mxu0  ;;  %v1806_v21 = vpop.f32.mrb[51].mxu1  ;;  %v2672_v45 = vmax.f32 %v2406_v55, %v2409_v56 }
 0x159   :  { %v1200_v24 = vmax.f32 %v932_v13, %v1182_v6  ;;  %v897_v8 = vmul.f32 %v1734_v16, %v2326_v26  ;;  %v1165_v29 = vmul.f32 %v1804_v38, %v2326_v26  ;;  %v1737_v30 = vadd.f32 %v1736_v20, %v1735_v17 }
 0x15a   :  { %v1807_v62 = vadd.f32 %v1806_v21, %v1805_v48  ;;  %v1217_v63 = vmax.f32 %v1199_v11, 0.0  ;;  %v2673_v20 = vmax.f32 %v2416_v14, %v2419_v15 }
 0x15b   :  { %v1218_v25 = vmax.f32 %v1200_v24, 0.0  ;;  %v915_v27 = vadd.f32 %v2331_v33, %v897_v8  ;;  %v1183_v32 = vadd.f32 %v2331_v33, %v1165_v29  ;;  %v898_v2 = vmul.f32 %v1737_v30, %v2326_v26 }
 0x15c   :  { %v1166_v54 = vmul.f32 %v1807_v62, %v2326_v26 }
 0x15d   :  { %v1518_v61 = vpack.c.bf16 %v1218_v25, %v1217_v63  ;;  %v933_v47 = vmax.f32 %v2671_v5, %v915_v27  ;;  %v1738_v40 = vpop.f32.mrb[52].mxu0  ;;  %v1808_v41 = vpop.f32.mrb[52].mxu1  ;;  %v916_v44 = vadd.f32 %v2331_v33, %v898_v2 }
 0x15e   :  { %v1739_v18 = vpop.f32.mrb[53].mxu0  ;;  %v1809_v59 = vpop.f32.mrb[53].mxu1  ;;  %v1184_v50 = vadd.f32 %v2331_v33, %v1166_v54 }
 0x15f   :  { %1551 = vst [vmem:[%s2670_s4 + $0x10] sm:$0xff] %v1518_v61   ;;  %v1201_v12 = vmax.f32 %v933_v47, %v1183_v32  ;;  %v1740_v3 = vadd.f32 %v1739_v18, %v1738_v40  ;;  %v1810_v4 = vadd.f32 %v1809_v59, %v1808_v41  ;;  %v1741_v9 = vpop.f32.mrb[54].mxu0  ;;  %v1811_v31 = vpop.f32.mrb[54].mxu1  ;;  %v934_v49 = vmax.f32 %v2672_v45, %v916_v44 }
 0x160   :  { %v1742_v46 = vpop.f32.mrb[55].mxu0  ;;  %v1812_v51 = vpop.f32.mrb[55].mxu1  ;;  %v2674_v32 = vmax.f32 %v2426_v19, %v2429_v22  ;;  %v2675_v45 = vmax.f32 %v2436_v52, %v2439_v53 }
 0x161   :  { %v899_v6 = vmul.f32 %v1740_v3, %v2326_v26  ;;  %v1167_v7 = vmul.f32 %v1810_v4, %v2326_v26  ;;  %v1743_v10 = vadd.f32 %v1742_v46, %v1741_v9  ;;  %v1202_v11 = vmax.f32 %v934_v49, %v1184_v50 }
 0x162   :  { %v1813_v13 = vadd.f32 %v1812_v51, %v1811_v31  ;;  %v1219_v48 = vmax.f32 %v1201_v12, 0.0 }
 0x163   :  { %v917_v16 = vadd.f32 %v2331_v33, %v899_v6  ;;  %v1185_v38 = vadd.f32 %v2331_v33, %v1167_v7  ;;  %v900_v17 = vmul.f32 %v1743_v10, %v2326_v26  ;;  %v1220_v55 = vmax.f32 %v1202_v11, 0.0 }
 0x164   :  { %v1168_v56 = vmul.f32 %v1813_v13, %v2326_v26 }
 0x165   :  { %v935_v21 = vmax.f32 %v2673_v20, %v917_v16  ;;  %v918_v24 = vadd.f32 %v2331_v33, %v900_v17  ;;  %v1744_v8 = vpop.f32.mrb[56].mxu0  ;;  %v1814_v29 = vpop.f32.mrb[56].mxu1  ;;  %v1523_v30 = vpack.c.bf16 %v1220_v55, %v1219_v48  ;;  %v2676_v17 = vmax.f32 %v2446_v60, %v2449_v0 }
 0x166   :  { %v1186_v62 = vadd.f32 %v2331_v33, %v1168_v56  ;;  %v1745_v63 = vpop.f32.mrb[57].mxu0  ;;  %v1815_v25 = vpop.f32.mrb[57].mxu1 }
 0x167   :  { %v1203_v27 = vmax.f32 %v935_v21, %v1185_v38  ;;  %v936_v2 = vmax.f32 %v2674_v32, %v918_v24  ;;  %v1746_v54 = vadd.f32 %v1745_v63, %v1744_v8  ;;  %v1816_v61 = vadd.f32 %v1815_v25, %v1814_v29  ;;  %v1747_v5 = vpop.f32.mrb[58].mxu0  ;;  %v1817_v47 = vpop.f32.mrb[58].mxu1  ;;  %1552 = vst [vmem:[%s2670_s4 + $0x18] sm:$0xff] %v1523_v30  }
 0x168   :  { %v1748_v14 = vpop.f32.mrb[59].mxu0  ;;  %v1818_v15 = vpop.f32.mrb[59].mxu1  ;;  %v2677_v25 = vmax.f32 %v2456_v34, %v2459_v35 }
 0x169   :  { %v1204_v40 = vmax.f32 %v936_v2, %v1186_v62  ;;  %v901_v41 = vmul.f32 %v1746_v54, %v2326_v26  ;;  %v1169_v44 = vmul.f32 %v1816_v61, %v2326_v26  ;;  %v1749_v18 = vadd.f32 %v1748_v14, %v1747_v5 }
 0x16a   :  { %v1819_v59 = vadd.f32 %v1818_v15, %v1817_v47  ;;  %v1221_v12 = vmax.f32 %v1203_v27, 0.0 }
 0x16b   :  { %v1222_v19 = vmax.f32 %v1204_v40, 0.0  ;;  %v919_v22 = vadd.f32 %v2331_v33, %v901_v41  ;;  %v1187_v3 = vadd.f32 %v2331_v33, %v1169_v44  ;;  %v902_v4 = vmul.f32 %v1749_v18, %v2326_v26 }
 0x16c   :  { %v1170_v9 = vmul.f32 %v1819_v59, %v2326_v26  ;;  %v2678_v40 = vmax.f32 %v2466_v39, %v2469_v42 }
 0x16d   :  { %v1528_v31 = vpack.c.bf16 %v1222_v19, %v1221_v12  ;;  %v937_v49 = vmax.f32 %v2675_v45, %v919_v22  ;;  %v1750_v50 = vpop.f32.mrb[60].mxu0  ;;  %v1820_v46 = vpop.f32.mrb[60].mxu1  ;;  %v920_v51 = vadd.f32 %v2331_v33, %v902_v4 }
 0x16e   :  { %v1751_v6 = vpop.f32.mrb[61].mxu0  ;;  %v1821_v7 = vpop.f32.mrb[61].mxu1  ;;  %v1188_v53 = vadd.f32 %v2331_v33, %v1170_v9 }
 0x16f   :  { %1553 = vst [vmem:[%s2670_s4 + $0x20] sm:$0xff] %v1528_v31   ;;  %v1205_v10 = vmax.f32 %v937_v49, %v1187_v3  ;;  %v1752_v11 = vadd.f32 %v1751_v6, %v1750_v50  ;;  %v1822_v13 = vadd.f32 %v1821_v7, %v1820_v46  ;;  %v1753_v16 = vpop.f32.mrb[62].mxu0  ;;  %v1823_v38 = vpop.f32.mrb[62].mxu1  ;;  %v938_v52 = vmax.f32 %v2676_v17, %v920_v51 }
 0x170   :  { %v1754_v48 = vpop.f32.mrb[63].mxu0  ;;  %v1824_v55 = vpop.f32.mrb[63].mxu1  ;;  %v2679_v51 = vmax.f32 %v2476_v23, %v2479_v28 }
 0x171   :  { %v903_v56 = vmul.f32 %v1752_v11, %v2326_v26  ;;  %v1171_v20 = vmul.f32 %v1822_v13, %v2326_v26  ;;  %v1755_v21 = vadd.f32 %v1754_v48, %v1753_v16  ;;  %v1206_v24 = vmax.f32 %v938_v52, %v1188_v53 }
 0x172   :  { %v1825_v8 = vadd.f32 %v1824_v55, %v1823_v38  ;;  %v1223_v63 = vmax.f32 %v1205_v10, 0.0  ;;  %v2680_v55 = vmax.f32 %v2486_v37, %v2489_v43 }
 0x173   :  { %v921_v29 = vadd.f32 %v2331_v33, %v903_v56  ;;  %v1189_v30 = vadd.f32 %v2331_v33, %v1171_v20  ;;  %v904_v62 = vmul.f32 %v1755_v21, %v2326_v26  ;;  %v1224_v60 = vmax.f32 %v1206_v24, 0.0 }
 0x174   :  { %v1172_v0 = vmul.f32 %v1825_v8, %v2326_v26 }
 0x175   :  { %v939_v27 = vmax.f32 %v2677_v25, %v921_v29  ;;  %v922_v32 = vadd.f32 %v2331_v33, %v904_v62  ;;  %v1756_v2 = vpop.f32.mrb[64].mxu0  ;;  %v1826_v54 = vpop.f32.mrb[64].mxu1  ;;  %v1533_v61 = vpack.c.bf16 %v1224_v60, %v1223_v63  ;;  %v2681_v25 = vmax.f32 %v2496_v36, %v2499_v58 }
 0x176   :  { %v1190_v5 = vadd.f32 %v2331_v33, %v1172_v0  ;;  %v1757_v47 = vpop.f32.mrb[65].mxu0  ;;  %v1827_v14 = vpop.f32.mrb[65].mxu1 }
 0x177   :  { %v1207_v15 = vmax.f32 %v939_v27, %v1189_v30  ;;  %v940_v41 = vmax.f32 %v2678_v40, %v922_v32  ;;  %v1758_v44 = vadd.f32 %v1757_v47, %v1756_v2  ;;  %v1828_v18 = vadd.f32 %v1827_v14, %v1826_v54  ;;  %v1759_v59 = vpop.f32.mrb[66].mxu0  ;;  %v1829_v12 = vpop.f32.mrb[66].mxu1  ;;  %1554 = vst [vmem:[%s2670_s4 + $0x28] sm:$0xff] %v1533_v61  }
 0x178   :  { %v1760_v34 = vpop.f32.mrb[67].mxu0  ;;  %v1830_v35 = vpop.f32.mrb[67].mxu1  ;;  %v2682_v61 = vmax.f32 %v2506_v57, %v2509_v1 }
 0x179   :  { %v1208_v19 = vmax.f32 %v940_v41, %v1190_v5  ;;  %v905_v22 = vmul.f32 %v1758_v44, %v2326_v26  ;;  %v1173_v3 = vmul.f32 %v1828_v18, %v2326_v26  ;;  %v1761_v4 = vadd.f32 %v1760_v34, %v1759_v59 }
 0x17a   :  { %v1831_v9 = vadd.f32 %v1830_v35, %v1829_v12  ;;  %v1225_v31 = vmax.f32 %v1207_v15, 0.0 }
 0x17b   :  { %v1226_v39 = vmax.f32 %v1208_v19, 0.0  ;;  %v923_v42 = vadd.f32 %v2331_v33, %v905_v22  ;;  %v1191_v45 = vadd.f32 %v2331_v33, %v1173_v3  ;;  %v906_v49 = vmul.f32 %v1761_v4, %v2326_v26 }
 0x17c   :  { %v1174_v50 = vmul.f32 %v1831_v9, %v2326_v26 }
 0x17d   :  { %v1538_v46 = vpack.c.bf16 %v1226_v39, %v1225_v31  ;;  %v941_v6 = vmax.f32 %v2679_v51, %v923_v42  ;;  %v1762_v7 = vpop.f32.mrb[68].mxu0  ;;  %v1832_v10 = vpop.f32.mrb[68].mxu1  ;;  %v924_v11 = vadd.f32 %v2331_v33, %v906_v49 }
 0x17e   :  { %v1763_v13 = vpop.f32.mrb[69].mxu0  ;;  %v1833_v16 = vpop.f32.mrb[69].mxu1  ;;  %v1192_v28 = vadd.f32 %v2331_v33, %v1174_v50 }
 0x17f   :  { %1555 = vst [vmem:[%s2670_s4 + $0x30] sm:$0xff] %v1538_v46   ;;  %v1209_v38 = vmax.f32 %v941_v6, %v1191_v45  ;;  %v1764_v17 = vadd.f32 %v1763_v13, %v1762_v7  ;;  %v1834_v52 = vadd.f32 %v1833_v16, %v1832_v10  ;;  %v1765_v53 = vpop.f32.mrb[70].mxu0  ;;  %v1835_v48 = vpop.f32.mrb[70].mxu1  ;;  %v942_v23 = vmax.f32 %v2680_v55, %v924_v11 }
 0x180   :  { %v1766_v56 = vpop.f32.mrb[71].mxu0  ;;  %v1836_v20 = vpop.f32.mrb[71].mxu1 }
 0x181   :  { %v907_v21 = vmul.f32 %v1764_v17, %v2326_v26  ;;  %v1175_v24 = vmul.f32 %v1834_v52, %v2326_v26  ;;  %v1767_v8 = vadd.f32 %v1766_v56, %v1765_v53  ;;  %v1210_v29 = vmax.f32 %v942_v23, %v1192_v28 }
 0x182   :  { %v1837_v30 = vadd.f32 %v1836_v20, %v1835_v48  ;;  %v1227_v0 = vmax.f32 %v1209_v38, 0.0 }
 0x183   :  { %v925_v62 = vadd.f32 %v2331_v33, %v907_v21  ;;  %v1193_v63 = vadd.f32 %v2331_v33, %v1175_v24  ;;  %v908_v60 = vmul.f32 %v1767_v8, %v2326_v26  ;;  %v1228_v37 = vmax.f32 %v1210_v29, 0.0 }
 0x184   :  { %v1176_v43 = vmul.f32 %v1837_v30, %v2326_v26 }
 0x185   :  { %v943_v27 = vmax.f32 %v2681_v25, %v925_v62  ;;  %v926_v32 = vadd.f32 %v2331_v33, %v908_v60  ;;  %v1543_v2 = vpack.c.bf16 %v1228_v37, %v1227_v0 }
 0x186   :  { %v1194_v47 = vadd.f32 %v2331_v33, %v1176_v43 }
 0x187   :  { %v1211_v54 = vmax.f32 %v943_v27, %v1193_v63  ;;  %v944_v5 = vmax.f32 %v2682_v61, %v926_v32  ;;  %1556 = vst [vmem:[%s2670_s4 + $0x38] sm:$0xff] %v1543_v2  }
 0x189   :  { %v1212_v14 = vmax.f32 %v944_v5, %v1194_v47  ;;  %v1229_v26 = vmax.f32 %v1211_v54, 0.0 }
 0x18b   :  { %v1230_v15 = vmax.f32 %v1212_v14, 0.0 }
 0x18d   :  { %v1548_v40 = vpack.c.bf16 %v1230_v15, %v1229_v26 }
 0x18f   :  { %1557 = vst [vmem:[%s2670_s4 + $0x40] sm:$0xff] %v1548_v40  }

// kernel: mmaml_convnet3_forward.7
= control target key start
LH: loop header
LB: loop body
LE: loop exit
PB: predicated region body
PF: predicated region fallthrough
CT: control target
= control target key end

     0   :  { %v451_v28 = vlaneseq  ;;  %v6777_v36 = vmov 1983009808   ;;  %vm6779_vm0 = vmmov 0   ;;  %s10019_s0 = inlined_call_operand.vmem [shape: bf16[4,4,3200], index: 0, kind: input, shape index: {}]   ;;  %s10020_s1 = inlined_call_operand.vmem [shape: bf16[3200,128], index: 1, kind: input, shape index: {}]   ;;  %s10021_s2 = inlined_call_operand.vmem [shape: f32[1,128], index: 2, kind: input, shape index: {}]   ;;  %s10022_s3 = inlined_call_operand.vmem [shape: f32[1,128], index: 3, kind: input, shape index: {}]   ;;  %s10023_s4 = inlined_call_operand.vmem [shape: bf16[128,256], index: 4, kind: input, shape index: {}]   ;;  %s10024_s5 = inlined_call_operand.vmem [shape: f32[1,256], index: 5, kind: input, shape index: {}]   ;;  %s10025_s6 = inlined_call_operand.vmem [shape: bf16[256,128], index: 6, kind: input, shape index: {}]   ;;  %s10026_s7 = inlined_call_operand.vmem [shape: f32[1,128], index: 7, kind: input, shape index: {}]   ;;  %s10027_s8 = inlined_call_operand.hbm [shape: f32[4,128], index: 8, kind: output, shape index: {}]  }
   0x1   :  { %v6135_v0 = vld [vmem:[%s10020_s1 + $0x40] sm:$0xff]   ;;  %v6139_v4 = vld [vmem:[%s10020_s1 + $0x48] sm:$0xff]   ;;  %v6143_v8 = vld [vmem:[%s10020_s1 + $0x50] sm:$0xff]   ;;  %v449_v37 = vunpack.c.l.s4 %v6777_v36 }
   0x2   :  { %v6136_v1 = vld [vmem:[%s10020_s1 + $0xc0] sm:$0xff]   ;;  %4936 = vmatprep.subr.bf16.mxu0 %v6135_v0  ;;  %v6140_v5 = vld [vmem:[%s10020_s1 + $0xc8] sm:$0xff]   ;;  %v6144_v9 = vld [vmem:[%s10020_s1 + $0xd0] sm:$0xff]   ;;  %v6923_v33 = vshrl.u32 %v451_v28, 7 }
   0x3   :  { %v6137_v2 = vld [vmem:[%s10020_s1] sm:$0xff]   ;;  %4958 = vmatprep.subr.bf16.mxu1 %v6136_v1  ;;  %v6141_v6 = vld [vmem:[%s10020_s1 + $0x8] sm:$0xff]   ;;  %v6145_v10 = vld [vmem:[%s10020_s1 + $0x10] sm:$0xff]   ;;  %v450_v39 = vunpack.c.0.s8 %v449_v37 }
   0x4   :  { %v6138_v3 = vld [vmem:[%s10020_s1 + $0x80] sm:$0xff]   ;;  %4937 = vmatpush3.bf16.msra.mxu0 %v6137_v2  ;;  %v6142_v7 = vld [vmem:[%s10020_s1 + $0x88] sm:$0xff]   ;;  %v6146_v11 = vld [vmem:[%s10020_s1 + $0x90] sm:$0xff]   ;;  %10166 = vst [vmem:[#allocation5_spill] sm:$0xff] %v6923_v33 }
   0x5   :  { %4959 = vmatpush3.bf16.msra.mxu1 %v6138_v3  ;;  %4938 = vmatprep.subr.bf16.mxu0 %v6139_v4  ;;  %v6147_v12 = vld [vmem:[%s10020_s1 + $0x58] sm:$0xff]   ;;  %v6151_v16 = vld [vmem:[%s10020_s1 + $0x60] sm:$0xff]   ;;  %v6155_v20 = vld [vmem:[%s10020_s1 + $0x68] sm:$0xff]   ;;  %v6935_v41 = vsub.s32 %v450_v39, %v6923_v33 }
   0x6   :  { %4960 = vmatprep.subr.bf16.mxu1 %v6140_v5  ;;  %v6148_v13 = vld [vmem:[%s10020_s1 + $0xd8] sm:$0xff]   ;;  %v6152_v17 = vld [vmem:[%s10020_s1 + $0xe0] sm:$0xff]   ;;  %v6156_v21 = vld [vmem:[%s10020_s1 + $0xe8] sm:$0xff]  }
   0x7   :  { %v6149_v14 = vld [vmem:[%s10020_s1 + $0x18] sm:$0xff]   ;;  %v6153_v18 = vld [vmem:[%s10020_s1 + $0x20] sm:$0xff]   ;;  %v6157_v22 = vld [vmem:[%s10020_s1 + $0x28] sm:$0xff]  }
   0x8   :  { %4939 = vmatpush3.bf16.msra.mxu0 %v6141_v6  ;;  %v6150_v15 = vld [vmem:[%s10020_s1 + $0x98] sm:$0xff]   ;;  %v6154_v19 = vld [vmem:[%s10020_s1 + $0xa0] sm:$0xff]   ;;  %v6158_v23 = vld [vmem:[%s10020_s1 + $0xa8] sm:$0xff]  }
   0x9   :  { %4961 = vmatpush3.bf16.msra.mxu1 %v6142_v7  ;;  %4940 = vmatprep.subr.bf16.mxu0 %v6143_v8  ;;  %v6159_v24 = vld [vmem:[%s10020_s1 + $0x70] sm:$0xff]   ;;  %v6163_v29 = vld [vmem:[%s10020_s1 + $0x78] sm:$0xff]   ;;  %v33_v34 = vld [vmem:[%s10019_s0] sm:$0xff] }
   0xa   :  { %4962 = vmatprep.subr.bf16.mxu1 %v6144_v9  ;;  %v6160_v25 = vld [vmem:[%s10020_s1 + $0xf0] sm:$0xff]   ;;  %v6164_v30 = vld [vmem:[%s10020_s1 + $0xf8] sm:$0xff]   ;;  %v6168_v35 = vld [vmem:[%s10020_s1 + $0x140] sm:$0xff]   ;;  %v447_v40 = vcombine.high %v33_v34, %v33_v34  ;;  %v454_v42 = vrot.slane %v33_v34, %v6935_v41 }
   0xb   :  { %v6161_v26 = vld [vmem:[%s10020_s1 + $0x30] sm:$0xff]   ;;  %v6165_v31 = vld [vmem:[%s10020_s1 + $0x38] sm:$0xff]   ;;  %v6169_v38 = vld [vmem:[%s10020_s1 + $0x1c0] sm:$0xff]  }
   0xc   :  { %4941 = vmatpush3.bf16.msra.mxu0 %v6145_v10  ;;  %v6162_v27 = vld [vmem:[%s10020_s1 + $0xb0] sm:$0xff]   ;;  %v6166_v32 = vld [vmem:[%s10020_s1 + $0xb8] sm:$0xff]   ;;  %v461_v43 = vrot.slane %v447_v40, %v6935_v41  ;;  %v6170_v44 = vld [vmem:[%s10020_s1 + $0x100] sm:$0xff]   ;;  %v462_v46 = vcombine.high %v454_v42, %v454_v42 }
   0xd   :  { %4963 = vmatpush3.bf16.msra.mxu1 %v6146_v11  ;;  %4942 = vmatprep.subr.bf16.mxu0 %v6147_v12  ;;  %v6171_v45 = vld [vmem:[%s10020_s1 + $0x180] sm:$0xff]   ;;  %v6172_v48 = vld [vmem:[%s10020_s1 + $0x148] sm:$0xff]   ;;  %v6176_v52 = vld [vmem:[%s10020_s1 + $0x150] sm:$0xff]  }
   0xe   :  { %4964 = vmatprep.subr.bf16.mxu1 %v6148_v13  ;;  %v463_v47 = vcombine.high %v461_v43, %v461_v43  ;;  %v6173_v49 = vld [vmem:[%s10020_s1 + $0x1c8] sm:$0xff]   ;;  %1813 = vmatprep.mubr.bf16.mxu0 %v462_v46  ;;  %v6177_v53 = vld [vmem:[%s10020_s1 + $0x1d0] sm:$0xff]   ;;  %v6180_v56 = vld [vmem:[%s10020_s1 + $0x158] sm:$0xff]  }
   0xf   :  { %v6174_v50 = vld [vmem:[%s10020_s1 + $0x108] sm:$0xff]   ;;  %v6178_v54 = vld [vmem:[%s10020_s1 + $0x110] sm:$0xff]   ;;  %v6181_v57 = vld [vmem:[%s10020_s1 + $0x1d8] sm:$0xff]  }
  0x10   :  { %4943 = vmatpush3.bf16.msra.mxu0 %v6149_v14  ;;  %1853 = vmatprep.mubr.bf16.mxu1 %v463_v47  ;;  %v6175_v51 = vld [vmem:[%s10020_s1 + $0x188] sm:$0xff]   ;;  %v6179_v55 = vld [vmem:[%s10020_s1 + $0x190] sm:$0xff]   ;;  %v6182_v58 = vld [vmem:[%s10020_s1 + $0x118] sm:$0xff]  }
  0x11   :  { %4965 = vmatpush3.bf16.msra.mxu1 %v6150_v15  ;;  %4944 = vmatprep.subr.bf16.mxu0 %v6151_v16  ;;  %v6183_v59 = vld [vmem:[%s10020_s1 + $0x198] sm:$0xff]   ;;  %v6184_v60 = vld [vmem:[%s10020_s1 + $0x160] sm:$0xff]   ;;  %v6188_v0 = vld [vmem:[%s10020_s1 + $0x168] sm:$0xff]  }
  0x12   :  { %4966 = vmatprep.subr.bf16.mxu1 %v6152_v17  ;;  %v6185_v61 = vld [vmem:[%s10020_s1 + $0x1e0] sm:$0xff]   ;;  %v6189_v1 = vld [vmem:[%s10020_s1 + $0x1e8] sm:$0xff]   ;;  %v6192_v4 = vld [vmem:[%s10020_s1 + $0x170] sm:$0xff]  }
  0x13   :  { %v6186_v62 = vld [vmem:[%s10020_s1 + $0x120] sm:$0xff]   ;;  %v6190_v2 = vld [vmem:[%s10020_s1 + $0x128] sm:$0xff]   ;;  %v6193_v5 = vld [vmem:[%s10020_s1 + $0x1f0] sm:$0xff]  }
  0x14   :  { %4945 = vmatpush3.bf16.msra.mxu0 %v6153_v18  ;;  %v6187_v63 = vld [vmem:[%s10020_s1 + $0x1a0] sm:$0xff]   ;;  %v6191_v3 = vld [vmem:[%s10020_s1 + $0x1a8] sm:$0xff]   ;;  %v6194_v6 = vld [vmem:[%s10020_s1 + $0x130] sm:$0xff]  }
  0x15   :  { %4967 = vmatpush3.bf16.msra.mxu1 %v6154_v19  ;;  %4946 = vmatprep.subr.bf16.mxu0 %v6155_v20  ;;  %v6195_v7 = vld [vmem:[%s10020_s1 + $0x1b0] sm:$0xff]   ;;  %v34_v8 = vld [vmem:[%s10019_s0 + $0x8] sm:$0xff]  ;;  %v6196_v9 = vld [vmem:[%s10020_s1 + $0x178] sm:$0xff]  }
  0x16   :  { %4968 = vmatprep.subr.bf16.mxu1 %v6156_v21  ;;  %v471_v10 = vrot.slane %v34_v8, %v6935_v41  ;;  %v464_v11 = vcombine.high %v34_v8, %v34_v8  ;;  %v6197_v12 = vld [vmem:[%s10020_s1 + $0x1f8] sm:$0xff]   ;;  %v6201_v18 = vld [vmem:[%s10020_s1 + $0x240] sm:$0xff]   ;;  %v6211_v28 = vld [vmem:[%s10020_s1 + $0x210] sm:$0xff]  }
  0x17   :  { %v6198_v13 = vld [vmem:[%s10020_s1 + $0x138] sm:$0xff]   ;;  %v6202_v19 = vld [vmem:[%s10020_s1 + $0x2c0] sm:$0xff]   ;;  %v6221_v39 = vld [vmem:[%s10020_s1 + $0x268] sm:$0xff]  }
  0x18   :  { %4947 = vmatpush3.bf16.msra.mxu0 %v6157_v22  ;;  %v479_v14 = vcombine.high %v471_v10, %v471_v10  ;;  %v478_v15 = vrot.slane %v464_v11, %v6935_v41  ;;  %v6199_v16 = vld [vmem:[%s10020_s1 + $0x1b8] sm:$0xff]   ;;  %v6203_v20 = vld [vmem:[%s10020_s1 + $0x200] sm:$0xff]   ;;  %v6205_v22 = vld [vmem:[%s10020_s1 + $0x248] sm:$0xff]  }
  0x19   :  { %4969 = vmatpush3.bf16.msra.mxu1 %v6158_v23  ;;  %4948 = vmatprep.subr.bf16.mxu0 %v6159_v24  ;;  %v6204_v21 = vld [vmem:[%s10020_s1 + $0x280] sm:$0xff]   ;;  %v6206_v23 = vld [vmem:[%s10020_s1 + $0x2c8] sm:$0xff]   ;;  %v6216_v34 = vld [vmem:[%s10020_s1 + $0x298] sm:$0xff]  }
  0x1a   :  { %4970 = vmatprep.subr.bf16.mxu1 %v6160_v25  ;;  %v480_v17 = vcombine.high %v478_v15, %v478_v15  ;;  %v6207_v24 = vld [vmem:[%s10020_s1 + $0x208] sm:$0xff]   ;;  %v6218_v36 = vld [vmem:[%s10020_s1 + $0x2e0] sm:$0xff]   ;;  %v6227_v46 = vld [vmem:[%s10020_s1 + $0x230] sm:$0xff]  }
  0x1b   :  { %v6208_v25 = vld [vmem:[%s10020_s1 + $0x288] sm:$0xff]   ;;  %v6219_v37 = vld [vmem:[%s10020_s1 + $0x220] sm:$0xff]   ;;  %v6228_v47 = vld [vmem:[%s10020_s1 + $0x2b0] sm:$0xff]  }
  0x1c   :  { %4949 = vmatpush3.bf16.msra.mxu0 %v6161_v26  ;;  %v6209_v26 = vld [vmem:[%s10020_s1 + $0x250] sm:$0xff]   ;;  %v6222_v40 = vld [vmem:[%s10020_s1 + $0x2e8] sm:$0xff]   ;;  %v6248_v8 = vld [vmem:[%s10020_s1 + $0x318] sm:$0xff]  }
  0x1d   :  { %4971 = vmatpush3.bf16.msra.mxu1 %v6162_v27  ;;  %4950 = vmatprep.subr.bf16.mxu0 %v6163_v29  ;;  %v6210_v27 = vld [vmem:[%s10020_s1 + $0x2d0] sm:$0xff]   ;;  %v6251_v11 = vld [vmem:[%s10020_s1 + $0x3e0] sm:$0xff]  }
  0x1e   :  { %4972 = vmatprep.subr.bf16.mxu1 %v6164_v30  ;;  %v6212_v29 = vld [vmem:[%s10020_s1 + $0x290] sm:$0xff]   ;;  %v6213_v30 = vld [vmem:[%s10020_s1 + $0x258] sm:$0xff]  }
  0x20   :  { %4951 = vmatpush3.bf16.msra.mxu0 %v6165_v31  ;;  %v6214_v31 = vld [vmem:[%s10020_s1 + $0x2d8] sm:$0xff]  }
  0x21   :  { %4973 = vmatpush3.bf16.msra.mxu1 %v6166_v32  ;;  %4980 = vmatprep.subr.bf16.mxu0 %v6168_v35  ;;  %v6215_v32 = vld [vmem:[%s10020_s1 + $0x218] sm:$0xff]   ;;  %v6217_v35 = vld [vmem:[%s10020_s1 + $0x260] sm:$0xff]  }
  0x22   :  { %5002 = vmatprep.subr.bf16.mxu1 %v6169_v38  ;;  %v6220_v38 = vld [vmem:[%s10020_s1 + $0x2a0] sm:$0xff]  }
  0x23   :  { %1814 = vmatmul.mubr.bf16.vlgmr.msra.gmra.mrb[0].mxu0 %v454_v42  ;;  %v6223_v42 = vld [vmem:[%s10020_s1 + $0x228] sm:$0xff]  }
  0x24   :  { %1854 = vmatmul.mubr.bf16.vlgmr.msra.gmra.mrb[0].mxu1 %v461_v43  ;;  %4981 = vmatpush3.bf16.msra.mxu0 %v6170_v44  ;;  %v6224_v43 = vld [vmem:[%s10020_s1 + $0x2a8] sm:$0xff]   ;;  %v6225_v44 = vld [vmem:[%s10020_s1 + $0x270] sm:$0xff]  }
  0x25   :  { %5003 = vmatpush3.bf16.msra.mxu1 %v6171_v45  ;;  %4982 = vmatprep.subr.bf16.mxu0 %v6172_v48  ;;  %v6226_v45 = vld [vmem:[%s10020_s1 + $0x2f0] sm:$0xff]  }
  0x26   :  { %5004 = vmatprep.subr.bf16.mxu1 %v6173_v49  ;;  %1893 = vmatprep.mubr.bf16.mxu0 %v479_v14  ;;  %v35_v48 = vld [vmem:[%s10019_s0 + $0x10] sm:$0xff]  ;;  %v6229_v49 = vld [vmem:[%s10020_s1 + $0x278] sm:$0xff]   ;;  %v6254_v14 = vld [vmem:[%s10020_s1 + $0x368] sm:$0xff]  }
  0x27   :  { %1933 = vmatprep.mubr.bf16.mxu1 %v480_v17  ;;  %v6257_v17 = vld [vmem:[%s10020_s1 + $0x3a8] sm:$0xff]  }
  0x28   :  { %4983 = vmatpush3.bf16.msra.mxu0 %v6174_v50  ;;  %v488_v50 = vrot.slane %v35_v48, %v6935_v41 }
  0x29   :  { %5005 = vmatpush3.bf16.msra.mxu1 %v6175_v51  ;;  %4984 = vmatprep.subr.bf16.mxu0 %v6176_v52  ;;  %v481_v51 = vcombine.high %v35_v48, %v35_v48  ;;  %v6230_v52 = vld [vmem:[%s10020_s1 + $0x2f8] sm:$0xff]  }
  0x2a   :  { %5006 = vmatprep.subr.bf16.mxu1 %v6177_v53  ;;  %v6231_v53 = vld [vmem:[%s10020_s1 + $0x238] sm:$0xff]  }
  0x2b   :  { %v6281_v48 = vld [vmem:[%s10020_s1 + $0x418] sm:$0xff]  }
  0x2c   :  { %4985 = vmatpush3.bf16.msra.mxu0 %v6178_v54  ;;  %v496_v54 = vcombine.high %v488_v50, %v488_v50 }
  0x2d   :  { %5007 = vmatpush3.bf16.msra.mxu1 %v6179_v55  ;;  %4986 = vmatprep.subr.bf16.mxu0 %v6180_v56  ;;  %v495_v55 = vrot.slane %v481_v51, %v6935_v41  ;;  %v6232_v56 = vld [vmem:[%s10020_s1 + $0x2b8] sm:$0xff]   ;;  %v6284_v51 = vld [vmem:[%s10020_s1 + $0x4e0] sm:$0xff]  }
  0x2e   :  { %5008 = vmatprep.subr.bf16.mxu1 %v6181_v57 }
  0x2f   :  { %v497_v57 = vcombine.high %v495_v55, %v495_v55 }
  0x30   :  { %4987 = vmatpush3.bf16.msra.mxu0 %v6182_v58  ;;  %v6234_v58 = vld [vmem:[%s10020_s1 + $0x340] sm:$0xff]  }
  0x31   :  { %5009 = vmatpush3.bf16.msra.mxu1 %v6183_v59  ;;  %4988 = vmatprep.subr.bf16.mxu0 %v6184_v60  ;;  %v6235_v59 = vld [vmem:[%s10020_s1 + $0x3c0] sm:$0xff]  }
  0x32   :  { %5010 = vmatprep.subr.bf16.mxu1 %v6185_v61  ;;  %v6236_v60 = vld [vmem:[%s10020_s1 + $0x300] sm:$0xff]  }
  0x33   :  { %v6237_v61 = vld [vmem:[%s10020_s1 + $0x380] sm:$0xff]  }
  0x34   :  { %4989 = vmatpush3.bf16.msra.mxu0 %v6186_v62  ;;  %v6238_v62 = vld [vmem:[%s10020_s1 + $0x348] sm:$0xff]  }
  0x35   :  { %5011 = vmatpush3.bf16.msra.mxu1 %v6187_v63  ;;  %4990 = vmatprep.subr.bf16.mxu0 %v6188_v0  ;;  %v6239_v63 = vld [vmem:[%s10020_s1 + $0x3c8] sm:$0xff]  }
  0x36   :  { %5012 = vmatprep.subr.bf16.mxu1 %v6189_v1  ;;  %v6240_v0 = vld [vmem:[%s10020_s1 + $0x308] sm:$0xff]  }
  0x37   :  { %v6241_v1 = vld [vmem:[%s10020_s1 + $0x388] sm:$0xff]  }
  0x38   :  { %4991 = vmatpush3.bf16.msra.mxu0 %v6190_v2  ;;  %v6242_v2 = vld [vmem:[%s10020_s1 + $0x350] sm:$0xff]  }
  0x39   :  { %5013 = vmatpush3.bf16.msra.mxu1 %v6191_v3  ;;  %4992 = vmatprep.subr.bf16.mxu0 %v6192_v4  ;;  %v6243_v3 = vld [vmem:[%s10020_s1 + $0x3d0] sm:$0xff]  }
  0x3a   :  { %5014 = vmatprep.subr.bf16.mxu1 %v6193_v5  ;;  %v6244_v4 = vld [vmem:[%s10020_s1 + $0x310] sm:$0xff]  }
  0x3b   :  { %v6245_v5 = vld [vmem:[%s10020_s1 + $0x390] sm:$0xff]  }
  0x3c   :  { %4993 = vmatpush3.bf16.msra.mxu0 %v6194_v6  ;;  %v6246_v6 = vld [vmem:[%s10020_s1 + $0x358] sm:$0xff]  }
  0x3d   :  { %5015 = vmatpush3.bf16.msra.mxu1 %v6195_v7  ;;  %4994 = vmatprep.subr.bf16.mxu0 %v6196_v9  ;;  %v6247_v7 = vld [vmem:[%s10020_s1 + $0x3d8] sm:$0xff]  }
  0x3e   :  { %5016 = vmatprep.subr.bf16.mxu1 %v6197_v12  ;;  %v6249_v9 = vld [vmem:[%s10020_s1 + $0x398] sm:$0xff]   ;;  %v6252_v12 = vld [vmem:[%s10020_s1 + $0x320] sm:$0xff]  }
  0x40   :  { %4995 = vmatpush3.bf16.msra.mxu0 %v6198_v13  ;;  %v6253_v13 = vld [vmem:[%s10020_s1 + $0x3a0] sm:$0xff]  }
  0x41   :  { %5017 = vmatpush3.bf16.msra.mxu1 %v6199_v16  ;;  %5024 = vmatprep.subr.bf16.mxu0 %v6201_v18  ;;  %v6256_v16 = vld [vmem:[%s10020_s1 + $0x328] sm:$0xff]   ;;  %v6258_v18 = vld [vmem:[%s10020_s1 + $0x370] sm:$0xff]  }
  0x42   :  { %5046 = vmatprep.subr.bf16.mxu1 %v6202_v19  ;;  %v6259_v19 = vld [vmem:[%s10020_s1 + $0x3f0] sm:$0xff]  }
  0x43   :  { %1894 = vmatmul.mubr.bf16.vlgmr.msra.gmra.mrb[4].mxu0 %v471_v10  ;;  %v6250_v10 = vld [vmem:[%s10020_s1 + $0x360] sm:$0xff]  }
  0x44   :  { %1934 = vmatmul.mubr.bf16.vlgmr.msra.gmra.mrb[4].mxu1 %v478_v15  ;;  %5025 = vmatpush3.bf16.msra.mxu0 %v6203_v20  ;;  %v6255_v15 = vld [vmem:[%s10020_s1 + $0x3e8] sm:$0xff]   ;;  %v6260_v20 = vld [vmem:[%s10020_s1 + $0x330] sm:$0xff]  }
  0x45   :  { %5047 = vmatpush3.bf16.msra.mxu1 %v6204_v21  ;;  %5026 = vmatprep.subr.bf16.mxu0 %v6205_v22  ;;  %v6261_v21 = vld [vmem:[%s10020_s1 + $0x3b0] sm:$0xff]   ;;  %v6262_v22 = vld [vmem:[%s10020_s1 + $0x378] sm:$0xff]  }
  0x46   :  { %5048 = vmatprep.subr.bf16.mxu1 %v6206_v23  ;;  %1973 = vmatprep.mubr.bf16.mxu0 %v496_v54  ;;  %v36_v23 = vld [vmem:[%s10019_s0 + $0x18] sm:$0xff]  ;;  %v7303_v54 = vld [vmem:[%s10020_s1 + $0x468] sm:$0xff]  }
  0x47   :  { %2013 = vmatprep.mubr.bf16.mxu1 %v497_v57  ;;  %v6290_v57 = vld [vmem:[%s10020_s1 + $0x4a8] sm:$0xff]  }
  0x48   :  { %5027 = vmatpush3.bf16.msra.mxu0 %v6207_v24  ;;  %v6263_v24 = vld [vmem:[%s10020_s1 + $0x3f8] sm:$0xff]  }
  0x49   :  { %5049 = vmatpush3.bf16.msra.mxu1 %v6208_v25  ;;  %5028 = vmatprep.subr.bf16.mxu0 %v6209_v26  ;;  %v505_v25 = vrot.slane %v36_v23, %v6935_v41  ;;  %v498_v26 = vcombine.high %v36_v23, %v36_v23  ;;  %v7443_v23 = vld [vmem:[%s10020_s1 + $0x598] sm:$0xff]  }
  0x4a   :  { %5050 = vmatprep.subr.bf16.mxu1 %v6210_v27  ;;  %v6264_v27 = vld [vmem:[%s10020_s1 + $0x338] sm:$0xff]  }
  0x4c   :  { %5029 = vmatpush3.bf16.msra.mxu0 %v6211_v28  ;;  %v6265_v28 = vld [vmem:[%s10020_s1 + $0x3b8] sm:$0xff]  }
  0x4d   :  { %5051 = vmatpush3.bf16.msra.mxu1 %v6212_v29  ;;  %5030 = vmatprep.subr.bf16.mxu0 %v6213_v30  ;;  %v513_v29 = vcombine.high %v505_v25, %v505_v25  ;;  %v512_v30 = vrot.slane %v498_v26, %v6935_v41  ;;  %v7462_v26 = vld [vmem:[%s10020_s1 + $0x520] sm:$0xff]  }
  0x4e   :  { %5052 = vmatprep.subr.bf16.mxu1 %v6214_v31  ;;  %v6267_v31 = vld [vmem:[%s10020_s1 + $0x440] sm:$0xff]  }
  0x50   :  { %5031 = vmatpush3.bf16.msra.mxu0 %v6215_v32  ;;  %v514_v32 = vcombine.high %v512_v30, %v512_v30 }
  0x51   :  { %5053 = vmatpush3.bf16.msra.mxu1 %v6216_v34  ;;  %5032 = vmatprep.subr.bf16.mxu0 %v6217_v35  ;;  %v6268_v34 = vld [vmem:[%s10020_s1 + $0x4c0] sm:$0xff]  }
  0x52   :  { %5054 = vmatprep.subr.bf16.mxu1 %v6218_v36  ;;  %v6269_v35 = vld [vmem:[%s10020_s1 + $0x400] sm:$0xff]  }
  0x53   :  { %v6270_v36 = vld [vmem:[%s10020_s1 + $0x480] sm:$0xff]  }
  0x54   :  { %5033 = vmatpush3.bf16.msra.mxu0 %v6219_v37  ;;  %v6271_v37 = vld [vmem:[%s10020_s1 + $0x448] sm:$0xff]  }
  0x55   :  { %5055 = vmatpush3.bf16.msra.mxu1 %v6220_v38  ;;  %5034 = vmatprep.subr.bf16.mxu0 %v6221_v39  ;;  %v6272_v38 = vld [vmem:[%s10020_s1 + $0x4c8] sm:$0xff]  }
  0x56   :  { %5056 = vmatprep.subr.bf16.mxu1 %v6222_v40  ;;  %v6273_v39 = vld [vmem:[%s10020_s1 + $0x408] sm:$0xff]  }
  0x57   :  { %v6274_v40 = vld [vmem:[%s10020_s1 + $0x488] sm:$0xff]  }
  0x58   :  { %5035 = vmatpush3.bf16.msra.mxu0 %v6223_v42  ;;  %v6275_v42 = vld [vmem:[%s10020_s1 + $0x450] sm:$0xff]  }
  0x59   :  { %5057 = vmatpush3.bf16.msra.mxu1 %v6224_v43  ;;  %5036 = vmatprep.subr.bf16.mxu0 %v6225_v44  ;;  %v6276_v43 = vld [vmem:[%s10020_s1 + $0x4d0] sm:$0xff]  }
  0x5a   :  { %5058 = vmatprep.subr.bf16.mxu1 %v6226_v45  ;;  %v6277_v44 = vld [vmem:[%s10020_s1 + $0x410] sm:$0xff]  }
  0x5b   :  { %v6278_v45 = vld [vmem:[%s10020_s1 + $0x490] sm:$0xff]  }
  0x5c   :  { %5037 = vmatpush3.bf16.msra.mxu0 %v6227_v46  ;;  %v6279_v46 = vld [vmem:[%s10020_s1 + $0x458] sm:$0xff]  }
  0x5d   :  { %5059 = vmatpush3.bf16.msra.mxu1 %v6228_v47  ;;  %5038 = vmatprep.subr.bf16.mxu0 %v6229_v49  ;;  %v6280_v47 = vld [vmem:[%s10020_s1 + $0x4d8] sm:$0xff]  }
  0x5e   :  { %5060 = vmatprep.subr.bf16.mxu1 %v6230_v52  ;;  %v6282_v49 = vld [vmem:[%s10020_s1 + $0x498] sm:$0xff]   ;;  %v7295_v52 = vld [vmem:[%s10020_s1 + $0x420] sm:$0xff]  }
  0x60   :  { %5039 = vmatpush3.bf16.msra.mxu0 %v6231_v53  ;;  %v6286_v53 = vld [vmem:[%s10020_s1 + $0x4a0] sm:$0xff]  }
  0x61   :  { %5061 = vmatpush3.bf16.msra.mxu1 %v6232_v56  ;;  %5068 = vmatprep.subr.bf16.mxu0 %v6234_v58  ;;  %v7312_v56 = vld [vmem:[%s10020_s1 + $0x428] sm:$0xff]   ;;  %v7321_v58 = vld [vmem:[%s10020_s1 + $0x470] sm:$0xff]  }
  0x62   :  { %5090 = vmatprep.subr.bf16.mxu1 %v6235_v59  ;;  %v6292_v59 = vld [vmem:[%s10020_s1 + $0x4f0] sm:$0xff]  }
  0x63   :  { %1974 = vmatmul.mubr.bf16.vlgmr.msra.gmra.mrb[8].mxu0 %v488_v50  ;;  %v7287_v50 = vld [vmem:[%s10020_s1 + $0x460] sm:$0xff]  }
  0x64   :  { %2014 = vmatmul.mubr.bf16.vlgmr.msra.gmra.mrb[8].mxu1 %v495_v55  ;;  %5069 = vmatpush3.bf16.msra.mxu0 %v6236_v60  ;;  %v6288_v55 = vld [vmem:[%s10020_s1 + $0x4e8] sm:$0xff]   ;;  %v7330_v60 = vld [vmem:[%s10020_s1 + $0x430] sm:$0xff]  }
  0x65   :  { %5091 = vmatpush3.bf16.msra.mxu1 %v6237_v61  ;;  %5070 = vmatprep.subr.bf16.mxu0 %v6238_v62  ;;  %v6294_v61 = vld [vmem:[%s10020_s1 + $0x4b0] sm:$0xff]   ;;  %v7339_v62 = vld [vmem:[%s10020_s1 + $0x478] sm:$0xff]  }
  0x66   :  { %5092 = vmatprep.subr.bf16.mxu1 %v6239_v63  ;;  %2053 = vmatprep.mubr.bf16.mxu0 %v513_v29  ;;  %v37_v63 = vld [vmem:[%s10019_s0 + $0x20] sm:$0xff]  ;;  %v7481_v29 = vld [vmem:[%s10020_s1 + $0x5e8] sm:$0xff]  }
  0x67   :  { %2093 = vmatprep.mubr.bf16.mxu1 %v514_v32  ;;  %v7498_v32 = vld [vmem:[%s10020_s1 + $0x570] sm:$0xff]  }
  0x68   :  { %5071 = vmatpush3.bf16.msra.mxu0 %v6240_v0  ;;  %v6296_v0 = vld [vmem:[%s10020_s1 + $0x4f8] sm:$0xff]  }
  0x69   :  { %5093 = vmatpush3.bf16.msra.mxu1 %v6241_v1  ;;  %5072 = vmatprep.subr.bf16.mxu0 %v6242_v2  ;;  %v522_v1 = vrot.slane %v37_v63, %v6935_v41  ;;  %v515_v2 = vcombine.high %v37_v63, %v37_v63  ;;  %v7588_v63 = vld [vmem:[%s10020_s1 + $0x48] sm:$0xff]  }
  0x6a   :  { %5094 = vmatprep.subr.bf16.mxu1 %v6243_v3  ;;  %v7352_v3 = vld [vmem:[%s10020_s1 + $0x438] sm:$0xff]   ;;  %10168 = vst [vmem:[#allocation7_spill] sm:$0xff] %v7588_v63 }
  0x6c   :  { %5073 = vmatpush3.bf16.msra.mxu0 %v6244_v4  ;;  %v6298_v4 = vld [vmem:[%s10020_s1 + $0x4b8] sm:$0xff]  }
  0x6d   :  { %5095 = vmatpush3.bf16.msra.mxu1 %v6245_v5  ;;  %5074 = vmatprep.subr.bf16.mxu0 %v6246_v6  ;;  %v530_v5 = vcombine.high %v522_v1, %v522_v1  ;;  %v529_v6 = vrot.slane %v515_v2, %v6935_v41  ;;  %v7609_v2 = vld [vmem:[%s10020_s1 + $0x50] sm:$0xff]  }
  0x6e   :  { %5096 = vmatprep.subr.bf16.mxu1 %v6247_v7  ;;  %v7362_v7 = vld [vmem:[%s10020_s1 + $0x540] sm:$0xff]   ;;  %10170 = vst [vmem:[#allocation9_spill] sm:$0xff] %v7609_v2 }
  0x70   :  { %5075 = vmatpush3.bf16.msra.mxu0 %v6248_v8  ;;  %v531_v8 = vcombine.high %v529_v6, %v529_v6 }
  0x71   :  { %5097 = vmatpush3.bf16.msra.mxu1 %v6249_v9  ;;  %5076 = vmatprep.subr.bf16.mxu0 %v6250_v10  ;;  %v6301_v9 = vld [vmem:[%s10020_s1 + $0x5c0] sm:$0xff]  }
  0x72   :  { %5098 = vmatprep.subr.bf16.mxu1 %v6251_v11  ;;  %v7371_v10 = vld [vmem:[%s10020_s1 + $0x500] sm:$0xff]  }
  0x73   :  { %v6303_v11 = vld [vmem:[%s10020_s1 + $0x580] sm:$0xff]  }
  0x74   :  { %5077 = vmatpush3.bf16.msra.mxu0 %v6252_v12  ;;  %v7380_v12 = vld [vmem:[%s10020_s1 + $0x548] sm:$0xff]  }
  0x75   :  { %5099 = vmatpush3.bf16.msra.mxu1 %v6253_v13  ;;  %5078 = vmatprep.subr.bf16.mxu0 %v6254_v14  ;;  %v7386_v13 = vld [vmem:[%s10020_s1 + $0x5c8] sm:$0xff]  }
  0x76   :  { %5100 = vmatprep.subr.bf16.mxu1 %v6255_v15  ;;  %v7391_v14 = vld [vmem:[%s10020_s1 + $0x508] sm:$0xff]  }
  0x77   :  { %v7396_v15 = vld [vmem:[%s10020_s1 + $0x588] sm:$0xff]  }
  0x78   :  { %5079 = vmatpush3.bf16.msra.mxu0 %v6256_v16  ;;  %v7402_v16 = vld [vmem:[%s10020_s1 + $0x550] sm:$0xff]  }
  0x79   :  { %5101 = vmatpush3.bf16.msra.mxu1 %v6257_v17  ;;  %5080 = vmatprep.subr.bf16.mxu0 %v6258_v18  ;;  %v7409_v17 = vld [vmem:[%s10020_s1 + $0x5d0] sm:$0xff]  }
  0x7a   :  { %5102 = vmatprep.subr.bf16.mxu1 %v6259_v19  ;;  %v7414_v18 = vld [vmem:[%s10020_s1 + $0x510] sm:$0xff]  }
  0x7b   :  { %v7419_v19 = vld [vmem:[%s10020_s1 + $0x590] sm:$0xff]  }
  0x7c   :  { %5081 = vmatpush3.bf16.msra.mxu0 %v6260_v20  ;;  %v7426_v20 = vld [vmem:[%s10020_s1 + $0x558] sm:$0xff]  }
  0x7d   :  { %5103 = vmatpush3.bf16.msra.mxu1 %v6261_v21  ;;  %5082 = vmatprep.subr.bf16.mxu0 %v6262_v22  ;;  %v7433_v21 = vld [vmem:[%s10020_s1 + $0x5d8] sm:$0xff]  }
  0x7e   :  { %5104 = vmatprep.subr.bf16.mxu1 %v6263_v24  ;;  %v7438_v22 = vld [vmem:[%s10020_s1 + $0x518] sm:$0xff]   ;;  %v7450_v24 = vld [vmem:[%s10020_s1 + $0x560] sm:$0xff]  }
  0x80   :  { %5083 = vmatpush3.bf16.msra.mxu0 %v6264_v27  ;;  %v7467_v27 = vld [vmem:[%s10020_s1 + $0x5a0] sm:$0xff]  }
  0x81   :  { %5105 = vmatpush3.bf16.msra.mxu1 %v6265_v28  ;;  %5112 = vmatprep.subr.bf16.mxu0 %v6267_v31  ;;  %v7474_v28 = vld [vmem:[%s10020_s1 + $0x568] sm:$0xff]  }
  0x82   :  { %5134 = vmatprep.subr.bf16.mxu1 %v6268_v34  ;;  %v7491_v31 = vld [vmem:[%s10020_s1 + $0x5a8] sm:$0xff]   ;;  %v7505_v34 = vld [vmem:[%s10020_s1 + $0x5f0] sm:$0xff]  }
  0x83   :  { %2054 = vmatmul.mubr.bf16.vlgmr.msra.gmra.mrb[12].mxu0 %v505_v25  ;;  %v7457_v25 = vld [vmem:[%s10020_s1 + $0x5e0] sm:$0xff]  }
  0x84   :  { %2094 = vmatmul.mubr.bf16.vlgmr.msra.gmra.mrb[12].mxu1 %v512_v30  ;;  %5113 = vmatpush3.bf16.msra.mxu0 %v6269_v35  ;;  %v7486_v30 = vld [vmem:[%s10020_s1 + $0x528] sm:$0xff]   ;;  %v7510_v35 = vld [vmem:[%s10020_s1 + $0x530] sm:$0xff]  }
  0x85   :  { %5135 = vmatpush3.bf16.msra.mxu1 %v6270_v36  ;;  %5114 = vmatprep.subr.bf16.mxu0 %v6271_v37  ;;  %v7515_v36 = vld [vmem:[%s10020_s1 + $0x5b0] sm:$0xff]   ;;  %v7522_v37 = vld [vmem:[%s10020_s1 + $0x578] sm:$0xff]  }
  0x86   :  { %5136 = vmatprep.subr.bf16.mxu1 %v6272_v38  ;;  %2133 = vmatprep.mubr.bf16.mxu0 %v530_v5  ;;  %v38_v38 = vld [vmem:[%s10019_s0 + $0x28] sm:$0xff]  ;;  %v7621_v5 = vld [vmem:[%s10020_s1 + $0x10] sm:$0xff]  }
  0x87   :  { %2173 = vmatprep.mubr.bf16.mxu1 %v531_v8  ;;  %10171 = vst [vmem:[#allocation10_spill] sm:$0xff] %v7621_v5  ;;  %v7634_v8 = vld [vmem:[%s10020_s1 + $0x620] sm:$0xff]  }
  0x88   :  { %5115 = vmatpush3.bf16.msra.mxu0 %v6273_v39  ;;  %v7532_v39 = vld [vmem:[%s10020_s1 + $0x5f8] sm:$0xff]  }
  0x89   :  { %5137 = vmatpush3.bf16.msra.mxu1 %v6274_v40  ;;  %5116 = vmatprep.subr.bf16.mxu0 %v6275_v42  ;;  %v539_v40 = vrot.slane %v38_v38, %v6935_v41  ;;  %v532_v42 = vcombine.high %v38_v38, %v38_v38 }
  0x8a   :  { %5138 = vmatprep.subr.bf16.mxu1 %v6276_v43  ;;  %v7538_v43 = vld [vmem:[%s10020_s1 + $0x538] sm:$0xff]  }
  0x8c   :  { %5117 = vmatpush3.bf16.msra.mxu0 %v6277_v44  ;;  %v547_v44 = vcombine.high %v539_v40, %v539_v40 }
  0x8d   :  { %5139 = vmatpush3.bf16.msra.mxu1 %v6278_v45  ;;  %5118 = vmatprep.subr.bf16.mxu0 %v6279_v46  ;;  %v546_v45 = vrot.slane %v532_v42, %v6935_v41  ;;  %v7546_v46 = vld [vmem:[%s10020_s1 + $0x5b8] sm:$0xff]  }
  0x8e   :  { %5140 = vmatprep.subr.bf16.mxu1 %v6280_v47 }
  0x8f   :  { %v548_v47 = vcombine.high %v546_v45, %v546_v45 }
  0x90   :  { %5119 = vmatpush3.bf16.msra.mxu0 %v6281_v48  ;;  %v7555_v48 = vld [vmem:[%s10020_s1 + $0x600] sm:$0xff]  }
  0x91   :  { %5141 = vmatpush3.bf16.msra.mxu1 %v6282_v49  ;;  %5120 = vmatprep.subr.bf16.mxu0 %v7287_v50  ;;  %v10031_v49 = vmov 0.0  }
  0x92   :  { %5142 = vmatprep.subr.bf16.mxu1 %v6284_v51  ;;  %v7561_v51 = vld [vmem:[%s10020_s1 + $0x40] sm:$0xff]  }
  0x94   :  { %5121 = vmatpush3.bf16.msra.mxu0 %v7295_v52 }
  0x95   :  { %5143 = vmatpush3.bf16.msra.mxu1 %v6286_v53  ;;  %5122 = vmatprep.subr.bf16.mxu0 %v7303_v54  ;;  %v4879_v53 = vld [vmem:[%s10019_s0 + $0x32] sm:$0xff] }
  0x96   :  { %5144 = vmatprep.subr.bf16.mxu1 %v6288_v55  ;;  %v7570_v55 = vld [vmem:[%s10020_s1 + $0x608] sm:$0xff]  }
  0x98   :  { %5123 = vmatpush3.bf16.msra.mxu0 %v7312_v56 }
  0x99   :  { %5145 = vmatpush3.bf16.msra.mxu1 %v6290_v57  ;;  %5124 = vmatprep.subr.bf16.mxu0 %v7321_v58  ;;  %v7573_v57 = vrot.slane %v4879_v53, %v6935_v41 }
  0x9a   :  { %5146 = vmatprep.subr.bf16.mxu1 %v6292_v59  ;;  %v7579_v59 = vld [vmem:[%s10020_s1] sm:$0xff]  }
  0x9b   :  { %10167 = vst [vmem:[#allocation6_spill] sm:$0xff] %v7579_v59 }
  0x9c   :  { %5125 = vmatpush3.bf16.msra.mxu0 %v7330_v60 }
  0x9d   :  { %5147 = vmatpush3.bf16.msra.mxu1 %v6294_v61  ;;  %5126 = vmatprep.subr.bf16.mxu0 %v7339_v62  ;;  %v2345_v61 = vcombine.high %v7573_v57, %v7573_v57 }
  0x9e   :  { %5148 = vmatprep.subr.bf16.mxu1 %v6296_v0  ;;  %v7594_v0 = vld [vmem:[%s10020_s1 + $0x610] sm:$0xff]  }
  0xa0   :  { %5127 = vmatpush3.bf16.msra.mxu0 %v7352_v3 }
  0xa1   :  { %5149 = vmatpush3.bf16.msra.mxu1 %v6298_v4  ;;  %5156 = vmatprep.subr.bf16.mxu0 %v7362_v7  ;;  %v7615_v4 = vld [vmem:[%s10020_s1 + $0x618] sm:$0xff]  }
  0xa2   :  { %5178 = vmatprep.subr.bf16.mxu1 %v6301_v9  ;;  %v7640_v9 = vld [vmem:[%s10020_s1 + $0x18] sm:$0xff]  }
  0xa3   :  { %2134 = vmatmul.mubr.bf16.vlgmr.msra.gmra.mrb[16].mxu0 %v522_v1  ;;  %v7602_v1 = vld [vmem:[%s10020_s1 + $0x8] sm:$0xff]   ;;  %10173 = vst [vmem:[#allocation12_spill] sm:$0xff] %v7640_v9 }
  0xa4   :  { %2174 = vmatmul.mubr.bf16.vlgmr.msra.gmra.mrb[16].mxu1 %v529_v6  ;;  %5157 = vmatpush3.bf16.msra.mxu0 %v7371_v10  ;;  %10169 = vst [vmem:[#allocation8_spill] sm:$0xff] %v7602_v1  ;;  %v7628_v6 = vld [vmem:[%s10020_s1 + $0x58] sm:$0xff]  }
  0xa5   :  { %5179 = vmatpush3.bf16.msra.mxu1 %v6303_v11  ;;  %5158 = vmatprep.subr.bf16.mxu0 %v7380_v12  ;;  %10172 = vst [vmem:[#allocation11_spill] sm:$0xff] %v7628_v6  ;;  %v7647_v11 = vld [vmem:[%s10020_s1 + $0x60] sm:$0xff]  }
  0xa6   :  { %5180 = vmatprep.subr.bf16.mxu1 %v7386_v13  ;;  %2213 = vmatprep.mubr.bf16.mxu0 %v547_v44  ;;  %10174 = vst [vmem:[#allocation13_spill] sm:$0xff] %v7647_v11 }
  0xa7   :  { %2253 = vmatprep.mubr.bf16.mxu1 %v548_v47 }
  0xa8   :  { %5159 = vmatpush3.bf16.msra.mxu0 %v7391_v14 }
  0xa9   :  { %5181 = vmatpush3.bf16.msra.mxu1 %v7396_v15  ;;  %5160 = vmatprep.subr.bf16.mxu0 %v7402_v16 }
  0xaa   :  { %5182 = vmatprep.subr.bf16.mxu1 %v7409_v17 }
  0xac   :  { %5161 = vmatpush3.bf16.msra.mxu0 %v7414_v18 }
  0xad   :  { %5183 = vmatpush3.bf16.msra.mxu1 %v7419_v19  ;;  %5162 = vmatprep.subr.bf16.mxu0 %v7426_v20 }
  0xae   :  { %5184 = vmatprep.subr.bf16.mxu1 %v7433_v21 }
  0xb0   :  { %5163 = vmatpush3.bf16.msra.mxu0 %v7438_v22 }
  0xb1   :  { %5185 = vmatpush3.bf16.msra.mxu1 %v7443_v23  ;;  %5164 = vmatprep.subr.bf16.mxu0 %v7450_v24 }
  0xb2   :  { %5186 = vmatprep.subr.bf16.mxu1 %v7457_v25 }
  0xb4   :  { %5165 = vmatpush3.bf16.msra.mxu0 %v7462_v26 }
  0xb5   :  { %5187 = vmatpush3.bf16.msra.mxu1 %v7467_v27  ;;  %5166 = vmatprep.subr.bf16.mxu0 %v7474_v28 }
  0xb6   :  { %5188 = vmatprep.subr.bf16.mxu1 %v7481_v29 }
  0xb8   :  { %5167 = vmatpush3.bf16.msra.mxu0 %v7486_v30 }
  0xb9   :  { %5189 = vmatpush3.bf16.msra.mxu1 %v7491_v31  ;;  %5168 = vmatprep.subr.bf16.mxu0 %v7498_v32 }
  0xba   :  { %5190 = vmatprep.subr.bf16.mxu1 %v7505_v34 }
  0xbc   :  { %5169 = vmatpush3.bf16.msra.mxu0 %v7510_v35 }
  0xbd   :  { %5191 = vmatpush3.bf16.msra.mxu1 %v7515_v36  ;;  %5170 = vmatprep.subr.bf16.mxu0 %v7522_v37 }
  0xbe   :  { %5192 = vmatprep.subr.bf16.mxu1 %v7532_v39 }
  0xc0   :  { %5171 = vmatpush3.bf16.msra.mxu0 %v7538_v43 }
  0xc1   :  { %5193 = vmatpush3.bf16.msra.mxu1 %v7546_v46  ;;  %6050 = vmatprep.subr.bf16.mxu0 %v10031_v49 }
  0xc2   :  { %5209 = vmatprep.subr.bf16.mxu1 %v7561_v51 }
  0xc3   :  { %2214 = vmatmul.mubr.bf16.vlgmr.msra.gmra.mrb[20].mxu0 %v539_v40 }
  0xc4   :  { %2254 = vmatmul.mubr.bf16.vlgmr.msra.gmra.mrb[20].mxu1 %v546_v45  ;;  %6051 = vmatpush3.bf16.msra.mxu0 %v7555_v48 }
  0xc5   :  { %5210 = vmatpush3.bf16.msra.mxu1 %v7579_v59  ;;  %6052 = vmatprep.subr.bf16.mxu0 %v10031_v49 }
  0xc6   :  { %5211 = vmatprep.subr.bf16.mxu1 %v7588_v63  ;;  %6066 = vmatprep.mubr.msk.bf16.mxu0 %vm6779_vm0, %v10031_v49 }
  0xc7   :  { %2496 = vmatprep.mubr.bf16.mxu1 %v2345_v61 }
  0xc8   :  { %6053 = vmatpush3.bf16.msra.mxu0 %v7570_v55 }
  0xc9   :  { %5212 = vmatpush3.bf16.msra.mxu1 %v7602_v1  ;;  %6054 = vmatprep.subr.bf16.mxu0 %v10031_v49 }
  0xca   :  { %5213 = vmatprep.subr.bf16.mxu1 %v7609_v2 }
  0xcc   :  { %6055 = vmatpush3.bf16.msra.mxu0 %v7594_v0 }
  0xcd   :  { %5214 = vmatpush3.bf16.msra.mxu1 %v7621_v5  ;;  %6056 = vmatprep.subr.bf16.mxu0 %v10031_v49 }
  0xce   :  { %5215 = vmatprep.subr.bf16.mxu1 %v7628_v6 }
  0xd0   :  { %6057 = vmatpush3.bf16.msra.mxu0 %v7615_v4 }
  0xd1   :  { %5216 = vmatpush3.bf16.msra.mxu1 %v7640_v9  ;;  %6058 = vmatprep.subr.bf16.mxu0 %v10031_v49 }
  0xd2   :  { %5217 = vmatprep.subr.bf16.mxu1 %v7647_v11 }
  0xd3   :  { %13 = vsyncpa [#allocation3], 0  ;;  %v7654_v38 = vld [vmem:[%s10020_s1 + $0x20] sm:$0xff]   ;;  %v7660_v40 = vld [vmem:[%s10020_s1 + $0x628] sm:$0xff]   ;;  %v2330_v61 = vcombine.high %v4879_v53, %v4879_v53  ;;  %v10180_v53 = vmov 0.0  }
  0xd4   :  { %6059 = vmatpush3.bf16.msra.mxu0 %v7634_v8  ;;  %10175 = vst [vmem:[#allocation14_spill] sm:$0xff] %v7654_v38  ;;  %v7666_v42 = vld [vmem:[%s10020_s1 + $0x68] sm:$0xff]   ;;  %v7679_v45 = vld [vmem:[%s10020_s1 + $0x630] sm:$0xff]   ;;  %v7691_v33 = vld [vmem:[%s10019_s0 + $0x3a] sm:$0xff] }
  0xd5   :  { %5218 = vmatpush3.bf16.msra.mxu1 %v7654_v38  ;;  %6060 = vmatprep.subr.bf16.mxu0 %v10031_v49  ;;  %10176 = vst [vmem:[#allocation15_spill] sm:$0xff] %v7666_v42  ;;  %v7673_v44 = vld [vmem:[%s10020_s1 + $0x28] sm:$0xff]   ;;  %v7685_v47 = vld [vmem:[%s10020_s1 + $0x70] sm:$0xff]   ;;  %v7723_v38 = vld [vmem:[%s10020_s1 + $0x38] sm:$0xff]  }
  0xd6   :  { %5219 = vmatprep.subr.bf16.mxu1 %v7666_v42  ;;  %10177 = vst [vmem:[#allocation16_spill] sm:$0xff] %v7673_v44  ;;  %10178 = vst [vmem:[#allocation17_spill] sm:$0xff] %v7685_v47  ;;  %v7713_v42 = vrot.slane %v2330_v61, %v6935_v41  ;;  %v7732_v61 = vld [vmem:[%s10020_s1 + $0xc0] sm:$0xff]   ;;  %v7779_v5 = vld [vmem:[%s10020_s1 + $0x108] sm:$0xff]  }
  0xd7   :  { %10182 = vst [vmem:[#allocation20_spill] sm:$0xff] %v7723_v38  ;;  %10183 = vst [vmem:[#allocation21_spill] sm:$0xff] %v7732_v61  ;;  %v7738_v11 = vld [vmem:[%s10020_s1 + $0x140] sm:$0xff]  }
  0xd8   :  { %6061 = vmatpush3.bf16.msra.mxu0 %v7660_v40  ;;  %10184 = vst [vmem:[#allocation22_spill] sm:$0xff] %v7738_v11  ;;  %v7749_v6 = vld [vmem:[%s10020_s1 + $0x80] sm:$0xff]   ;;  %10190 = vst [vmem:[#allocation28_spill] sm:$0xff] %v7779_v5 }
  0xd9   :  { %5220 = vmatpush3.bf16.msra.mxu1 %v7673_v44  ;;  %6062 = vmatprep.subr.bf16.mxu0 %v10031_v49  ;;  %v7697_v44 = vld [vmem:[%s10020_s1 + $0x30] sm:$0xff]   ;;  %v7703_v49 = vld [vmem:[%s10020_s1 + $0x638] sm:$0xff]   ;;  %10185 = vst [vmem:[#allocation23_spill] sm:$0xff] %v7749_v6 }
  0xda   :  { %5221 = vmatprep.subr.bf16.mxu1 %v7685_v47  ;;  %10179 = vst [vmem:[#allocation18_spill] sm:$0xff] %v7697_v44  ;;  %v7709_v47 = vld [vmem:[%s10020_s1 + $0x78] sm:$0xff]  }
  0xdb   :  { %10181 = vst [vmem:[#allocation19_spill] sm:$0xff] %v7709_v47 }
  0xdc   :  { %6063 = vmatpush3.bf16.msra.mxu0 %v7679_v45 }
  0xdd   :  { %5222 = vmatpush3.bf16.msra.mxu1 %v7697_v44  ;;  %6064 = vmatprep.subr.bf16.mxu0 %v10180_v53  ;;  %v7717_v44 = vrot.slane %v7691_v33, %v6935_v41 }
  0xde   :  { %5223 = vmatprep.subr.bf16.mxu1 %v7709_v47  ;;  %v4676_v47 = vld.sshfl [vmem:[%s10019_s0 + $0x30] sm:$0x3 pattern:$0x76325410] }
  0xdf   :  { %v2362_v9 = vcombine.high %v7717_v44, %v7717_v44 }
  0xe0   :  { %6065 = vmatpush3.bf16.msra.mxu0 %v7703_v49 }
  0xe1   :  { %5224 = vmatpush3.bf16.msra.mxu1 %v7723_v38  ;;  %5231 = vmatprep.subr.bf16.mxu0 %v7732_v61  ;;  %v2346_v38 = vcombine.high %v7713_v42, %v7713_v42 }
  0xe2   :  { %5253 = vmatprep.subr.bf16.mxu1 %v7738_v11  ;;  %v7755_v11 = vld [vmem:[%s10020_s1 + $0x100] sm:$0xff]  }
  0xe3   :  { %6067 = vmatmul.mubr.bf16.vlgmr.msra.gmra.mrb[24].mxu0 %v4676_v47  ;;  %10186 = vst [vmem:[#allocation24_spill] sm:$0xff] %v7755_v11  ;;  %v7761_v47 = vld [vmem:[%s10020_s1 + $0xc8] sm:$0xff]  }
  0xe4   :  { %2497 = vmatmul.mubr.bf16.vlgmr.msra.gmra.mrb[24].mxu1 %v7573_v57  ;;  %5232 = vmatpush3.bf16.msra.mxu0 %v7749_v6  ;;  %10187 = vst [vmem:[#allocation25_spill] sm:$0xff] %v7761_v47  ;;  %v7767_v57 = vld [vmem:[%s10020_s1 + $0x148] sm:$0xff]  }
  0xe5   :  { %5254 = vmatpush3.bf16.msra.mxu1 %v7755_v11  ;;  %5233 = vmatprep.subr.bf16.mxu0 %v7761_v47  ;;  %10188 = vst [vmem:[#allocation26_spill] sm:$0xff] %v7767_v57  ;;  %v7773_v11 = vld [vmem:[%s10020_s1 + $0x88] sm:$0xff]  }
  0xe6   :  { %5255 = vmatprep.subr.bf16.mxu1 %v7767_v57  ;;  %2536 = vmatprep.mubr.bf16.mxu0 %v2346_v38  ;;  %10189 = vst [vmem:[#allocation27_spill] sm:$0xff] %v7773_v11  ;;  %v7785_v57 = vld [vmem:[%s10020_s1 + $0xd0] sm:$0xff]   ;;  %v7869_v6 = vld [vmem:[%s10020_s1 + $0xa8] sm:$0xff]  }
  0xe7   :  { %2576 = vmatprep.mubr.bf16.mxu1 %v2362_v9  ;;  %10191 = vst [vmem:[#allocation29_spill] sm:$0xff] %v7785_v57  ;;  %v7791_v9 = vld [vmem:[%s10020_s1 + $0x150] sm:$0xff]   ;;  %10205 = vst [vmem:[#allocation43_spill] sm:$0xff] %v7869_v6 }
  0xe8   :  { %5234 = vmatpush3.bf16.msra.mxu0 %v7773_v11  ;;  %10192 = vst [vmem:[#allocation30_spill] sm:$0xff] %v7791_v9  ;;  %v7797_v38 = vld [vmem:[%s10020_s1 + $0x90] sm:$0xff]  }
  0xe9   :  { %5256 = vmatpush3.bf16.msra.mxu1 %v7779_v5  ;;  %5235 = vmatprep.subr.bf16.mxu0 %v7785_v57  ;;  %10193 = vst [vmem:[#allocation31_spill] sm:$0xff] %v7797_v38  ;;  %v7803_v5 = vld [vmem:[%s10020_s1 + $0x110] sm:$0xff]   ;;  %v7809_v57 = vld [vmem:[%s10020_s1 + $0xd8] sm:$0xff]  }
  0xea   :  { %5257 = vmatprep.subr.bf16.mxu1 %v7791_v9  ;;  %10194 = vst [vmem:[#allocation32_spill] sm:$0xff] %v7803_v5  ;;  %10195 = vst [vmem:[#allocation33_spill] sm:$0xff] %v7809_v57  ;;  %v7815_v9 = vld [vmem:[%s10020_s1 + $0x158] sm:$0xff]  }
  0xeb   :  { %10196 = vst [vmem:[#allocation34_spill] sm:$0xff] %v7815_v9 }
  0xec   :  { %5236 = vmatpush3.bf16.msra.mxu0 %v7797_v38  ;;  %v7821_v38 = vld [vmem:[%s10020_s1 + $0x98] sm:$0xff]  }
  0xed   :  { %5258 = vmatpush3.bf16.msra.mxu1 %v7803_v5  ;;  %5237 = vmatprep.subr.bf16.mxu0 %v7809_v57  ;;  %10197 = vst [vmem:[#allocation35_spill] sm:$0xff] %v7821_v38  ;;  %v7827_v5 = vld [vmem:[%s10020_s1 + $0x118] sm:$0xff]   ;;  %v7833_v57 = vld [vmem:[%s10020_s1 + $0xe0] sm:$0xff]  }
  0xee   :  { %5259 = vmatprep.subr.bf16.mxu1 %v7815_v9  ;;  %10198 = vst [vmem:[#allocation36_spill] sm:$0xff] %v7827_v5  ;;  %10199 = vst [vmem:[#allocation37_spill] sm:$0xff] %v7833_v57  ;;  %v7839_v9 = vld [vmem:[%s10020_s1 + $0x160] sm:$0xff]  }
  0xef   :  { %10200 = vst [vmem:[#allocation38_spill] sm:$0xff] %v7839_v9 }
  0xf0   :  { %5238 = vmatpush3.bf16.msra.mxu0 %v7821_v38  ;;  %v7845_v38 = vld [vmem:[%s10020_s1 + $0xa0] sm:$0xff]  }
  0xf1   :  { %5260 = vmatpush3.bf16.msra.mxu1 %v7827_v5  ;;  %5239 = vmatprep.subr.bf16.mxu0 %v7833_v57  ;;  %10201 = vst [vmem:[#allocation39_spill] sm:$0xff] %v7845_v38  ;;  %v7851_v5 = vld [vmem:[%s10020_s1 + $0x120] sm:$0xff]   ;;  %v7857_v57 = vld [vmem:[%s10020_s1 + $0xe8] sm:$0xff]  }
  0xf2   :  { %5261 = vmatprep.subr.bf16.mxu1 %v7839_v9  ;;  %10202 = vst [vmem:[#allocation40_spill] sm:$0xff] %v7851_v5  ;;  %10203 = vst [vmem:[#allocation41_spill] sm:$0xff] %v7857_v57  ;;  %v7863_v9 = vld [vmem:[%s10020_s1 + $0x168] sm:$0xff]  }
  0xf3   :  { %10204 = vst [vmem:[#allocation42_spill] sm:$0xff] %v7863_v9 }
  0xf4   :  { %5240 = vmatpush3.bf16.msra.mxu0 %v7845_v38 }
  0xf5   :  { %5262 = vmatpush3.bf16.msra.mxu1 %v7851_v5  ;;  %5241 = vmatprep.subr.bf16.mxu0 %v7857_v57  ;;  %v7875_v57 = vld [vmem:[%s10020_s1 + $0x128] sm:$0xff]  }
  0xf6   :  { %5263 = vmatprep.subr.bf16.mxu1 %v7863_v9  ;;  %v4952_v38 = vpop.f32.mrb[0].mxu0  ;;  %10206 = vst [vmem:[#allocation44_spill] sm:$0xff] %v7875_v57 }
  0xf7   :  { %v4974_v2 = vpop.f32.mrb[0].mxu1  ;;  %v4953_v11 = vpop.f32.mrb[1].mxu0 }
  0xf8   :  { %v4975_v1 = vpop.f32.mrb[1].mxu1  ;;  %v4954_v47 = vadd.f32 %v4953_v11, %v4952_v38  ;;  %v4955_v63 = vpop.f32.mrb[2].mxu0  ;;  %5242 = vmatpush3.bf16.msra.mxu0 %v7869_v6  ;;  %v7902_v38 = vld [vmem:[%s10020_s1 + $0xb0] sm:$0xff]  }
  0xf9   :  { %v4976_v5 = vadd.f32 %v4975_v1, %v4974_v2  ;;  %5264 = vmatpush3.bf16.msra.mxu1 %v7875_v57  ;;  %v4977_v9 = vpop.f32.mrb[2].mxu1  ;;  %v4956_v59 = vpop.f32.mrb[3].mxu0  ;;  %v7881_v63 = vld [vmem:[%s10020_s1 + $0xf0] sm:$0xff]   ;;  %10209 = vst [vmem:[#allocation47_spill] sm:$0xff] %v7902_v38  ;;  %v7939_v57 = vld [vmem:[%s10020_s1 + $0x138] sm:$0xff]  }
  0xfa   :  { %10207 = vst [vmem:[#allocation45_spill] sm:$0xff] %v7881_v63  ;;  %5243 = vmatprep.subr.bf16.mxu0 %v7881_v63  ;;  %v7887_v1 = vld [vmem:[%s10020_s1 + $0x170] sm:$0xff]   ;;  %v4978_v2 = vpop.f32.mrb[3].mxu1  ;;  %v2347_v59 = vcombine.high %v7691_v33, %v7691_v33  ;;  %v7897_v9 = vld [vmem:[%s10019_s0 + $0x42] sm:$0xff]  ;;  %v7914_v33 = vld [vmem:[%s10020_s1 + $0xf8] sm:$0xff]  }
  0xfb   :  { %10208 = vst [vmem:[#allocation46_spill] sm:$0xff] %v7887_v1  ;;  %5265 = vmatprep.subr.bf16.mxu1 %v7887_v1  ;;  %v7890_v11 = vadd.f32 %v4976_v5, %v4954_v47  ;;  %v7908_v5 = vld [vmem:[%s10020_s1 + $0x130] sm:$0xff]   ;;  %10211 = vst [vmem:[#allocation49_spill] sm:$0xff] %v7914_v33  ;;  %v7920_v47 = vld [vmem:[%s10020_s1 + $0x178] sm:$0xff]  }
  0xfc   :  { %5244 = vmatpush3.bf16.msra.mxu0 %v7902_v38  ;;  %10210 = vst [vmem:[#allocation48_spill] sm:$0xff] %v7908_v5  ;;  %10212 = vst [vmem:[#allocation50_spill] sm:$0xff] %v7920_v47  ;;  %v7924_v2 = vrot.slane %v2347_v59, %v6935_v41  ;;  %v7933_v1 = vld [vmem:[%s10020_s1 + $0xb8] sm:$0xff]   ;;  %v7945_v59 = vld [vmem:[%s10020_s1 + $0x1c0] sm:$0xff]  }
  0xfd   :  { %5266 = vmatpush3.bf16.msra.mxu1 %v7908_v5  ;;  %5245 = vmatprep.subr.bf16.mxu0 %v7914_v33  ;;  %v7928_v5 = vrot.slane %v7897_v9, %v6935_v41  ;;  %10213 = vst [vmem:[#allocation51_spill] sm:$0xff] %v7933_v1  ;;  %10214 = vst [vmem:[#allocation52_spill] sm:$0xff] %v7939_v57  ;;  %v8083_v63 = vld [vmem:[%s10020_s1 + $0x1a8] sm:$0xff]  }
  0xfe   :  { %5267 = vmatprep.subr.bf16.mxu1 %v7920_v47  ;;  %10215 = vst [vmem:[#allocation53_spill] sm:$0xff] %v7945_v59  ;;  %v7951_v47 = vld [vmem:[%s10020_s1 + $0x240] sm:$0xff]   ;;  %10237 = vst [vmem:[#allocation75_spill] sm:$0xff] %v8083_v63 }
  0xff   :  { %10216 = vst [vmem:[#allocation54_spill] sm:$0xff] %v7951_v47 }
 0x100   :  { %5246 = vmatpush3.bf16.msra.mxu0 %v7933_v1  ;;  %v2363_v1 = vcombine.high %v7924_v2, %v7924_v2 }
 0x101   :  { %5268 = vmatpush3.bf16.msra.mxu1 %v7939_v57  ;;  %5275 = vmatprep.subr.bf16.mxu0 %v7945_v59  ;;  %v2379_v57 = vcombine.high %v7928_v5, %v7928_v5  ;;  %v7963_v59 = vld [vmem:[%s10020_s1 + $0x180] sm:$0xff]  }
 0x102   :  { %5297 = vmatprep.subr.bf16.mxu1 %v7951_v47  ;;  %10217 = vst [vmem:[#allocation55_spill] sm:$0xff] %v7963_v59  ;;  %v7969_v47 = vld [vmem:[%s10020_s1 + $0x200] sm:$0xff]  }
 0x103   :  { %2537 = vmatmul.mubr.bf16.vlgmr.msra.gmra.mrb[28].mxu0 %v7713_v42  ;;  %10218 = vst [vmem:[#allocation56_spill] sm:$0xff] %v7969_v47  ;;  %v7975_v42 = vld [vmem:[%s10020_s1 + $0x1c8] sm:$0xff]  }
 0x104   :  { %2577 = vmatmul.mubr.bf16.vlgmr.msra.gmra.mrb[28].mxu1 %v7717_v44  ;;  %5276 = vmatpush3.bf16.msra.mxu0 %v7963_v59  ;;  %10219 = vst [vmem:[#allocation57_spill] sm:$0xff] %v7975_v42  ;;  %v7981_v44 = vld [vmem:[%s10020_s1 + $0x248] sm:$0xff]  }
 0x105   :  { %5298 = vmatpush3.bf16.msra.mxu1 %v7969_v47  ;;  %5277 = vmatprep.subr.bf16.mxu0 %v7975_v42  ;;  %10220 = vst [vmem:[#allocation58_spill] sm:$0xff] %v7981_v44  ;;  %v7987_v47 = vld [vmem:[%s10020_s1 + $0x188] sm:$0xff]  }
 0x106   :  { %5299 = vmatprep.subr.bf16.mxu1 %v7981_v44  ;;  %2616 = vmatprep.mubr.bf16.mxu0 %v2363_v1  ;;  %10221 = vst [vmem:[#allocation59_spill] sm:$0xff] %v7987_v47  ;;  %v7993_v42 = vld [vmem:[%s10020_s1 + $0x208] sm:$0xff]   ;;  %v7999_v44 = vld [vmem:[%s10020_s1 + $0x1d0] sm:$0xff]  }
 0x107   :  { %2656 = vmatprep.mubr.bf16.mxu1 %v2379_v57  ;;  %10222 = vst [vmem:[#allocation60_spill] sm:$0xff] %v7993_v42  ;;  %10223 = vst [vmem:[#allocation61_spill] sm:$0xff] %v7999_v44  ;;  %v8005_v57 = vld [vmem:[%s10020_s1 + $0x250] sm:$0xff]  }
 0x108   :  { %5278 = vmatpush3.bf16.msra.mxu0 %v7987_v47  ;;  %10224 = vst [vmem:[#allocation62_spill] sm:$0xff] %v8005_v57  ;;  %v8011_v1 = vld [vmem:[%s10020_s1 + $0x190] sm:$0xff]  }
 0x109   :  { %5300 = vmatpush3.bf16.msra.mxu1 %v7993_v42  ;;  %5279 = vmatprep.subr.bf16.mxu0 %v7999_v44  ;;  %10225 = vst [vmem:[#allocation63_spill] sm:$0xff] %v8011_v1  ;;  %v8017_v42 = vld [vmem:[%s10020_s1 + $0x210] sm:$0xff]   ;;  %v8023_v44 = vld [vmem:[%s10020_s1 + $0x1d8] sm:$0xff]  }
 0x10a   :  { %5301 = vmatprep.subr.bf16.mxu1 %v8005_v57  ;;  %10226 = vst [vmem:[#allocation64_spill] sm:$0xff] %v8017_v42  ;;  %10227 = vst [vmem:[#allocation65_spill] sm:$0xff] %v8023_v44  ;;  %v8029_v57 = vld [vmem:[%s10020_s1 + $0x258] sm:$0xff]  }
 0x10b   :  { %10228 = vst [vmem:[#allocation66_spill] sm:$0xff] %v8029_v57 }
 0x10c   :  { %5280 = vmatpush3.bf16.msra.mxu0 %v8011_v1  ;;  %v8035_v1 = vld [vmem:[%s10020_s1 + $0x198] sm:$0xff]  }
 0x10d   :  { %5302 = vmatpush3.bf16.msra.mxu1 %v8017_v42  ;;  %5281 = vmatprep.subr.bf16.mxu0 %v8023_v44  ;;  %10229 = vst [vmem:[#allocation67_spill] sm:$0xff] %v8035_v1  ;;  %v8041_v42 = vld [vmem:[%s10020_s1 + $0x218] sm:$0xff]   ;;  %v8047_v44 = vld [vmem:[%s10020_s1 + $0x1e0] sm:$0xff]  }
 0x10e   :  { %5303 = vmatprep.subr.bf16.mxu1 %v8029_v57  ;;  %10230 = vst [vmem:[#allocation68_spill] sm:$0xff] %v8041_v42  ;;  %10231 = vst [vmem:[#allocation69_spill] sm:$0xff] %v8047_v44  ;;  %v8053_v57 = vld [vmem:[%s10020_s1 + $0x260] sm:$0xff]  }
 0x10f   :  { %10232 = vst [vmem:[#allocation70_spill] sm:$0xff] %v8053_v57 }
 0x110   :  { %5282 = vmatpush3.bf16.msra.mxu0 %v8035_v1  ;;  %v8059_v1 = vld [vmem:[%s10020_s1 + $0x1a0] sm:$0xff]  }
 0x111   :  { %5304 = vmatpush3.bf16.msra.mxu1 %v8041_v42  ;;  %5283 = vmatprep.subr.bf16.mxu0 %v8047_v44  ;;  %10233 = vst [vmem:[#allocation71_spill] sm:$0xff] %v8059_v1  ;;  %v8065_v42 = vld [vmem:[%s10020_s1 + $0x220] sm:$0xff]   ;;  %v8071_v44 = vld [vmem:[%s10020_s1 + $0x1e8] sm:$0xff]  }
 0x112   :  { %5305 = vmatprep.subr.bf16.mxu1 %v8053_v57  ;;  %10234 = vst [vmem:[#allocation72_spill] sm:$0xff] %v8065_v42  ;;  %10235 = vst [vmem:[#allocation73_spill] sm:$0xff] %v8071_v44  ;;  %v8077_v57 = vld [vmem:[%s10020_s1 + $0x268] sm:$0xff]  }
 0x113   :  { %10236 = vst [vmem:[#allocation74_spill] sm:$0xff] %v8077_v57 }
 0x114   :  { %5284 = vmatpush3.bf16.msra.mxu0 %v8059_v1 }
 0x115   :  { %5306 = vmatpush3.bf16.msra.mxu1 %v8065_v42  ;;  %5285 = vmatprep.subr.bf16.mxu0 %v8071_v44  ;;  %v8089_v44 = vld [vmem:[%s10020_s1 + $0x228] sm:$0xff]  }
 0x116   :  { %5307 = vmatprep.subr.bf16.mxu1 %v8077_v57  ;;  %v4996_v1 = vpop.f32.mrb[4].mxu0  ;;  %10238 = vst [vmem:[#allocation76_spill] sm:$0xff] %v8089_v44 }
 0x117   :  { %v5018_v47 = vpop.f32.mrb[4].mxu1  ;;  %v4997_v59 = vpop.f32.mrb[5].mxu0 }
 0x118   :  { %v5019_v33 = vpop.f32.mrb[5].mxu1  ;;  %v4998_v38 = vadd.f32 %v4997_v59, %v4996_v1  ;;  %v4999_v42 = vpop.f32.mrb[6].mxu0  ;;  %5286 = vmatpush3.bf16.msra.mxu0 %v8083_v63  ;;  %v8095_v59 = vld [vmem:[%s10020_s1 + $0x1f0] sm:$0xff]  }
 0x119   :  { %5308 = vmatpush3.bf16.msra.mxu1 %v8089_v44  ;;  %v5020_v57 = vadd.f32 %v5019_v33, %v5018_v47  ;;  %v5021_v6 = vpop.f32.mrb[6].mxu1  ;;  %v5000_v61 = vpop.f32.mrb[7].mxu0  ;;  %10239 = vst [vmem:[#allocation77_spill] sm:$0xff] %v8095_v59  ;;  %5287 = vmatprep.subr.bf16.mxu0 %v8095_v59  ;;  %v8101_v42 = vld [vmem:[%s10020_s1 + $0x270] sm:$0xff]  }
 0x11a   :  { %10240 = vst [vmem:[#allocation78_spill] sm:$0xff] %v8101_v42  ;;  %5309 = vmatprep.subr.bf16.mxu1 %v8101_v42  ;;  %v5022_v1 = vpop.f32.mrb[7].mxu1  ;;  %v1896_v44 = vadd.f32 %v4998_v38, %v7890_v11  ;;  %v2364_v6 = vcombine.high %v7897_v9, %v7897_v9  ;;  %v8110_v61 = vld [vmem:[%s10019_s0 + $0x4a] sm:$0xff]  ;;  %v8129_v9 = vld [vmem:[%s10020_s1 + $0x1f8] sm:$0xff]  }
 0x11b   :  { %v8117_v47 = vld [vmem:[%s10020_s1 + $0x1b0] sm:$0xff]   ;;  %10243 = vst [vmem:[#allocation81_spill] sm:$0xff] %v8129_v9  ;;  %v8135_v38 = vld [vmem:[%s10020_s1 + $0x278] sm:$0xff]  }
 0x11c   :  { %v8112_v33 = vadd.f32 %v5020_v57, %v1896_v44  ;;  %10241 = vst [vmem:[#allocation79_spill] sm:$0xff] %v8117_v47  ;;  %5288 = vmatpush3.bf16.msra.mxu0 %v8117_v47  ;;  %v8123_v11 = vld [vmem:[%s10020_s1 + $0x230] sm:$0xff]   ;;  %10244 = vst [vmem:[#allocation82_spill] sm:$0xff] %v8135_v38  ;;  %v8139_v44 = vrot.slane %v2364_v6, %v6935_v41  ;;  %v8143_v57 = vrot.slane %v8110_v61, %v6935_v41  ;;  %v8148_v1 = vld [vmem:[%s10020_s1 + $0x1b8] sm:$0xff]  }
 0x11d   :  { %10242 = vst [vmem:[#allocation80_spill] sm:$0xff] %v8123_v11  ;;  %5310 = vmatpush3.bf16.msra.mxu1 %v8123_v11  ;;  %5289 = vmatprep.subr.bf16.mxu0 %v8129_v9  ;;  %10245 = vst [vmem:[#allocation83_spill] sm:$0xff] %v8148_v1  ;;  %v8154_v11 = vld [vmem:[%s10020_s1 + $0x238] sm:$0xff]   ;;  %v8160_v6 = vld [vmem:[%s10020_s1 + $0x2c0] sm:$0xff]  }
 0x11e   :  { %5311 = vmatprep.subr.bf16.mxu1 %v8135_v38  ;;  %10246 = vst [vmem:[#allocation84_spill] sm:$0xff] %v8154_v11  ;;  %10247 = vst [vmem:[#allocation85_spill] sm:$0xff] %v8160_v6  ;;  %v8166_v38 = vld [vmem:[%s10020_s1 + $0x340] sm:$0xff]   ;;  %v2380_v42 = vcombine.high %v8139_v44, %v8139_v44  ;;  %v8298_v47 = vld [vmem:[%s10020_s1 + $0x2a8] sm:$0xff]  }
 0x11f   :  { %10248 = vst [vmem:[#allocation86_spill] sm:$0xff] %v8166_v38 }
 0x120   :  { %5290 = vmatpush3.bf16.msra.mxu0 %v8148_v1 }
 0x121   :  { %5312 = vmatpush3.bf16.msra.mxu1 %v8154_v11  ;;  %5319 = vmatprep.subr.bf16.mxu0 %v8160_v6  ;;  %v2396_v11 = vcombine.high %v8143_v57, %v8143_v57  ;;  %v8178_v6 = vld [vmem:[%s10020_s1 + $0x280] sm:$0xff]  }
 0x122   :  { %5341 = vmatprep.subr.bf16.mxu1 %v8166_v38  ;;  %10249 = vst [vmem:[#allocation87_spill] sm:$0xff] %v8178_v6  ;;  %v8184_v38 = vld [vmem:[%s10020_s1 + $0x300] sm:$0xff]  }
 0x123   :  { %2617 = vmatmul.mubr.bf16.vlgmr.msra.gmra.mrb[32].mxu0 %v7924_v2  ;;  %10250 = vst [vmem:[#allocation88_spill] sm:$0xff] %v8184_v38  ;;  %v8190_v2 = vld [vmem:[%s10020_s1 + $0x2c8] sm:$0xff]  }
 0x124   :  { %2657 = vmatmul.mubr.bf16.vlgmr.msra.gmra.mrb[32].mxu1 %v7928_v5  ;;  %5320 = vmatpush3.bf16.msra.mxu0 %v8178_v6  ;;  %10251 = vst [vmem:[#allocation89_spill] sm:$0xff] %v8190_v2  ;;  %v8196_v5 = vld [vmem:[%s10020_s1 + $0x348] sm:$0xff]  }
 0x125   :  { %5342 = vmatpush3.bf16.msra.mxu1 %v8184_v38  ;;  %5321 = vmatprep.subr.bf16.mxu0 %v8190_v2  ;;  %10252 = vst [vmem:[#allocation90_spill] sm:$0xff] %v8196_v5  ;;  %v8202_v38 = vld [vmem:[%s10020_s1 + $0x288] sm:$0xff]  }
 0x126   :  { %5343 = vmatprep.subr.bf16.mxu1 %v8196_v5  ;;  %2696 = vmatprep.mubr.bf16.mxu0 %v2380_v42  ;;  %10253 = vst [vmem:[#allocation91_spill] sm:$0xff] %v8202_v38  ;;  %v8208_v2 = vld [vmem:[%s10020_s1 + $0x308] sm:$0xff]   ;;  %v8214_v5 = vld [vmem:[%s10020_s1 + $0x2d0] sm:$0xff]  }
 0x127   :  { %2736 = vmatprep.mubr.bf16.mxu1 %v2396_v11  ;;  %10254 = vst [vmem:[#allocation92_spill] sm:$0xff] %v8208_v2  ;;  %10255 = vst [vmem:[#allocation93_spill] sm:$0xff] %v8214_v5  ;;  %v8220_v42 = vld [vmem:[%s10020_s1 + $0x350] sm:$0xff]  }
 0x128   :  { %5322 = vmatpush3.bf16.msra.mxu0 %v8202_v38  ;;  %10256 = vst [vmem:[#allocation94_spill] sm:$0xff] %v8220_v42  ;;  %v8226_v11 = vld [vmem:[%s10020_s1 + $0x290] sm:$0xff]  }
 0x129   :  { %5344 = vmatpush3.bf16.msra.mxu1 %v8208_v2  ;;  %5323 = vmatprep.subr.bf16.mxu0 %v8214_v5  ;;  %10257 = vst [vmem:[#allocation95_spill] sm:$0xff] %v8226_v11  ;;  %v8232_v2 = vld [vmem:[%s10020_s1 + $0x310] sm:$0xff]   ;;  %v8238_v5 = vld [vmem:[%s10020_s1 + $0x2d8] sm:$0xff]  }
 0x12a   :  { %5345 = vmatprep.subr.bf16.mxu1 %v8220_v42  ;;  %10258 = vst [vmem:[#allocation96_spill] sm:$0xff] %v8232_v2  ;;  %10259 = vst [vmem:[#allocation97_spill] sm:$0xff] %v8238_v5  ;;  %v8244_v42 = vld [vmem:[%s10020_s1 + $0x358] sm:$0xff]  }
 0x12b   :  { %10260 = vst [vmem:[#allocation98_spill] sm:$0xff] %v8244_v42 }
 0x12c   :  { %5324 = vmatpush3.bf16.msra.mxu0 %v8226_v11  ;;  %v8250_v11 = vld [vmem:[%s10020_s1 + $0x298] sm:$0xff]  }
 0x12d   :  { %5346 = vmatpush3.bf16.msra.mxu1 %v8232_v2  ;;  %5325 = vmatprep.subr.bf16.mxu0 %v8238_v5  ;;  %10261 = vst [vmem:[#allocation99_spill] sm:$0xff] %v8250_v11  ;;  %v8256_v2 = vld [vmem:[%s10020_s1 + $0x318] sm:$0xff]   ;;  %v8262_v5 = vld [vmem:[%s10020_s1 + $0x2e0] sm:$0xff]  }
 0x12e   :  { %5347 = vmatprep.subr.bf16.mxu1 %v8244_v42  ;;  %10262 = vst [vmem:[#allocation100_spill] sm:$0xff] %v8256_v2  ;;  %10263 = vst [vmem:[#allocation101_spill] sm:$0xff] %v8262_v5  ;;  %v8268_v42 = vld [vmem:[%s10020_s1 + $0x360] sm:$0xff]  }
 0x12f   :  { %10264 = vst [vmem:[#allocation102_spill] sm:$0xff] %v8268_v42 }
 0x130   :  { %5326 = vmatpush3.bf16.msra.mxu0 %v8250_v11  ;;  %v8274_v11 = vld [vmem:[%s10020_s1 + $0x2a0] sm:$0xff]  }
 0x131   :  { %5348 = vmatpush3.bf16.msra.mxu1 %v8256_v2  ;;  %5327 = vmatprep.subr.bf16.mxu0 %v8262_v5  ;;  %10265 = vst [vmem:[#allocation103_spill] sm:$0xff] %v8274_v11  ;;  %v8280_v2 = vld [vmem:[%s10020_s1 + $0x320] sm:$0xff]   ;;  %v8286_v5 = vld [vmem:[%s10020_s1 + $0x2e8] sm:$0xff]  }
 0x132   :  { %5349 = vmatprep.subr.bf16.mxu1 %v8268_v42  ;;  %10266 = vst [vmem:[#allocation104_spill] sm:$0xff] %v8280_v2  ;;  %10267 = vst [vmem:[#allocation105_spill] sm:$0xff] %v8286_v5  ;;  %v8292_v42 = vld [vmem:[%s10020_s1 + $0x368] sm:$0xff]  }
 0x133   :  { %10268 = vst [vmem:[#allocation106_spill] sm:$0xff] %v8292_v42 }
 0x134   :  { %5328 = vmatpush3.bf16.msra.mxu0 %v8274_v11 }
 0x135   :  { %5350 = vmatpush3.bf16.msra.mxu1 %v8280_v2  ;;  %5329 = vmatprep.subr.bf16.mxu0 %v8286_v5  ;;  %v8304_v5 = vld [vmem:[%s10020_s1 + $0x328] sm:$0xff]  }
 0x136   :  { %5351 = vmatprep.subr.bf16.mxu1 %v8292_v42  ;;  %v5040_v11 = vpop.f32.mrb[8].mxu0  ;;  %10269 = vst [vmem:[#allocation107_spill] sm:$0xff] %v8304_v5 }
 0x137   :  { %v5062_v38 = vpop.f32.mrb[8].mxu1  ;;  %v5041_v6 = vpop.f32.mrb[9].mxu0 }
 0x138   :  { %v5063_v1 = vpop.f32.mrb[9].mxu1  ;;  %v5042_v9 = vadd.f32 %v5041_v6, %v5040_v11  ;;  %v5043_v2 = vpop.f32.mrb[10].mxu0  ;;  %5330 = vmatpush3.bf16.msra.mxu0 %v8298_v47  ;;  %v8310_v6 = vld [vmem:[%s10020_s1 + $0x2f0] sm:$0xff]  }
 0x139   :  { %5352 = vmatpush3.bf16.msra.mxu1 %v8304_v5  ;;  %v5064_v42 = vadd.f32 %v5063_v1, %v5062_v38  ;;  %v5065_v59 = vpop.f32.mrb[10].mxu1  ;;  %v5044_v63 = vpop.f32.mrb[11].mxu0  ;;  %5331 = vmatprep.subr.bf16.mxu0 %v8310_v6  ;;  %v8316_v2 = vld [vmem:[%s10020_s1 + $0x370] sm:$0xff]  }
 0x13a   :  { %10270 = vst [vmem:[#allocation108_spill] sm:$0xff] %v8316_v2  ;;  %5353 = vmatprep.subr.bf16.mxu1 %v8316_v2  ;;  %v5066_v11 = vpop.f32.mrb[11].mxu1  ;;  %v1976_v5 = vadd.f32 %v5042_v9, %v8112_v33  ;;  %v2381_v63 = vcombine.high %v8110_v61, %v8110_v61  ;;  %v8325_v59 = vld [vmem:[%s10019_s0 + $0x52] sm:$0xff] }
 0x13b   :  { %v8332_v1 = vld [vmem:[%s10020_s1 + $0x2b0] sm:$0xff]   ;;  %v8344_v61 = vld [vmem:[%s10020_s1 + $0x2f8] sm:$0xff]  }
 0x13c   :  { %v8327_v38 = vadd.f32 %v5064_v42, %v1976_v5  ;;  %5332 = vmatpush3.bf16.msra.mxu0 %v8332_v1  ;;  %v8338_v33 = vld [vmem:[%s10020_s1 + $0x330] sm:$0xff]   ;;  %10272 = vst [vmem:[#allocation110_spill] sm:$0xff] %v8344_v61  ;;  %v8350_v9 = vld [vmem:[%s10020_s1 + $0x378] sm:$0xff]   ;;  %v8354_v5 = vrot.slane %v2381_v63, %v6935_v41  ;;  %v8358_v42 = vrot.slane %v8325_v59, %v6935_v41  ;;  %v8375_v63 = vld [vmem:[%s10020_s1 + $0x3c0] sm:$0xff]  }
 0x13d   :  { %10271 = vst [vmem:[#allocation109_spill] sm:$0xff] %v8338_v33  ;;  %5354 = vmatpush3.bf16.msra.mxu1 %v8338_v33  ;;  %5333 = vmatprep.subr.bf16.mxu0 %v8344_v61  ;;  %10273 = vst [vmem:[#allocation111_spill] sm:$0xff] %v8350_v9  ;;  %v8363_v11 = vld [vmem:[%s10020_s1 + $0x2b8] sm:$0xff]  }
 0x13e   :  { %5355 = vmatprep.subr.bf16.mxu1 %v8350_v9  ;;  %10274 = vst [vmem:[#allocation112_spill] sm:$0xff] %v8363_v11  ;;  %v8369_v33 = vld [vmem:[%s10020_s1 + $0x338] sm:$0xff]   ;;  %10276 = vst [vmem:[#allocation114_spill] sm:$0xff] %v8375_v63  ;;  %v8381_v9 = vld [vmem:[%s10020_s1 + $0x440] sm:$0xff]   ;;  %v2397_v2 = vcombine.high %v8354_v5, %v8354_v5 }
 0x13f   :  { %10275 = vst [vmem:[#allocation113_spill] sm:$0xff] %v8369_v33  ;;  %10277 = vst [vmem:[#allocation115_spill] sm:$0xff] %v8381_v9 }
 0x140   :  { %5334 = vmatpush3.bf16.msra.mxu0 %v8363_v11 }
 0x141   :  { %5356 = vmatpush3.bf16.msra.mxu1 %v8369_v33  ;;  %5363 = vmatprep.subr.bf16.mxu0 %v8375_v63  ;;  %v2413_v33 = vcombine.high %v8358_v42, %v8358_v42  ;;  %v8393_v63 = vld [vmem:[%s10020_s1 + $0x380] sm:$0xff]  }
 0x142   :  { %5385 = vmatprep.subr.bf16.mxu1 %v8381_v9  ;;  %10278 = vst [vmem:[#allocation116_spill] sm:$0xff] %v8393_v63  ;;  %v8399_v9 = vld [vmem:[%s10020_s1 + $0x400] sm:$0xff]  }
 0x143   :  { %2697 = vmatmul.mubr.bf16.vlgmr.msra.gmra.mrb[36].mxu0 %v8139_v44  ;;  %10279 = vst [vmem:[#allocation117_spill] sm:$0xff] %v8399_v9  ;;  %v8405_v44 = vld [vmem:[%s10020_s1 + $0x3c8] sm:$0xff]  }
 0x144   :  { %2737 = vmatmul.mubr.bf16.vlgmr.msra.gmra.mrb[36].mxu1 %v8143_v57  ;;  %5364 = vmatpush3.bf16.msra.mxu0 %v8393_v63  ;;  %10280 = vst [vmem:[#allocation118_spill] sm:$0xff] %v8405_v44  ;;  %v8411_v57 = vld [vmem:[%s10020_s1 + $0x448] sm:$0xff]  }
 0x145   :  { %5386 = vmatpush3.bf16.msra.mxu1 %v8399_v9  ;;  %5365 = vmatprep.subr.bf16.mxu0 %v8405_v44  ;;  %10281 = vst [vmem:[#allocation119_spill] sm:$0xff] %v8411_v57  ;;  %v8417_v9 = vld [vmem:[%s10020_s1 + $0x388] sm:$0xff]  }
 0x146   :  { %5387 = vmatprep.subr.bf16.mxu1 %v8411_v57  ;;  %2776 = vmatprep.mubr.bf16.mxu0 %v2397_v2  ;;  %10282 = vst [vmem:[#allocation120_spill] sm:$0xff] %v8417_v9  ;;  %v8423_v44 = vld [vmem:[%s10020_s1 + $0x408] sm:$0xff]   ;;  %v8429_v57 = vld [vmem:[%s10020_s1 + $0x3d0] sm:$0xff]  }
 0x147   :  { %2816 = vmatprep.mubr.bf16.mxu1 %v2413_v33  ;;  %10283 = vst [vmem:[#allocation121_spill] sm:$0xff] %v8423_v44  ;;  %10284 = vst [vmem:[#allocation122_spill] sm:$0xff] %v8429_v57  ;;  %v8435_v2 = vld [vmem:[%s10020_s1 + $0x450] sm:$0xff]  }
 0x148   :  { %5366 = vmatpush3.bf16.msra.mxu0 %v8417_v9  ;;  %10285 = vst [vmem:[#allocation123_spill] sm:$0xff] %v8435_v2  ;;  %v8441_v33 = vld [vmem:[%s10020_s1 + $0x390] sm:$0xff]  }
 0x149   :  { %5388 = vmatpush3.bf16.msra.mxu1 %v8423_v44  ;;  %5367 = vmatprep.subr.bf16.mxu0 %v8429_v57  ;;  %10286 = vst [vmem:[#allocation124_spill] sm:$0xff] %v8441_v33  ;;  %v8447_v44 = vld [vmem:[%s10020_s1 + $0x410] sm:$0xff]   ;;  %v8453_v57 = vld [vmem:[%s10020_s1 + $0x3d8] sm:$0xff]  }
 0x14a   :  { %5389 = vmatprep.subr.bf16.mxu1 %v8435_v2  ;;  %10287 = vst [vmem:[#allocation125_spill] sm:$0xff] %v8447_v44  ;;  %10288 = vst [vmem:[#allocation126_spill] sm:$0xff] %v8453_v57  ;;  %v8459_v2 = vld [vmem:[%s10020_s1 + $0x458] sm:$0xff]  }
 0x14b   :  { %10289 = vst [vmem:[#allocation127_spill] sm:$0xff] %v8459_v2 }
 0x14c   :  { %5368 = vmatpush3.bf16.msra.mxu0 %v8441_v33  ;;  %v8465_v33 = vld [vmem:[%s10020_s1 + $0x398] sm:$0xff]  }
 0x14d   :  { %5390 = vmatpush3.bf16.msra.mxu1 %v8447_v44  ;;  %5369 = vmatprep.subr.bf16.mxu0 %v8453_v57  ;;  %10290 = vst [vmem:[#allocation128_spill] sm:$0xff] %v8465_v33  ;;  %v8471_v44 = vld [vmem:[%s10020_s1 + $0x418] sm:$0xff]   ;;  %v8477_v57 = vld [vmem:[%s10020_s1 + $0x3e0] sm:$0xff]  }
 0x14e   :  { %5391 = vmatprep.subr.bf16.mxu1 %v8459_v2  ;;  %10291 = vst [vmem:[#allocation129_spill] sm:$0xff] %v8471_v44  ;;  %10292 = vst [vmem:[#allocation130_spill] sm:$0xff] %v8477_v57  ;;  %v8484_v2 = vld [vmem:[%s10020_s1 + $0x3a0] sm:$0xff]  }
 0x14f   :  { %10293 = vst [vmem:[#allocation131_spill] sm:$0xff] %v8484_v2 }
 0x150   :  { %5370 = vmatpush3.bf16.msra.mxu0 %v8465_v33 }
 0x151   :  { %5392 = vmatpush3.bf16.msra.mxu1 %v8471_v44  ;;  %5371 = vmatprep.subr.bf16.mxu0 %v8477_v57  ;;  %v8491_v44 = vld [vmem:[%s10020_s1 + $0x3e8] sm:$0xff]  }
 0x152   :  { %5393 = vmatprep.subr.bf16.mxu1 %v7287_v50  ;;  %10294 = vst [vmem:[#allocation132_spill] sm:$0xff] %v8491_v44 }
 0x154   :  { %5372 = vmatpush3.bf16.msra.mxu0 %v8484_v2  ;;  %v8498_v2 = vld [vmem:[%s10020_s1 + $0x3a8] sm:$0xff]  }
 0x155   :  { %5394 = vmatpush3.bf16.msra.mxu1 %v7295_v52  ;;  %5373 = vmatprep.subr.bf16.mxu0 %v8491_v44 }
 0x156   :  { %5395 = vmatprep.subr.bf16.mxu1 %v7303_v54  ;;  %v5084_v57 = vpop.f32.mrb[12].mxu0  ;;  %v8505_v54 = vld [vmem:[%s10020_s1 + $0x3f0] sm:$0xff]  }
 0x157   :  { %v5106_v50 = vpop.f32.mrb[12].mxu1  ;;  %v5085_v33 = vpop.f32.mrb[13].mxu0 }
 0x158   :  { %v5107_v9 = vpop.f32.mrb[13].mxu1  ;;  %v5086_v63 = vadd.f32 %v5085_v33, %v5084_v57  ;;  %v5087_v11 = vpop.f32.mrb[14].mxu0  ;;  %5374 = vmatpush3.bf16.msra.mxu0 %v8498_v2  ;;  %v2398_v33 = vcombine.high %v8325_v59, %v8325_v59 }
 0x159   :  { %5396 = vmatpush3.bf16.msra.mxu1 %v7312_v56  ;;  %v5108_v52 = vadd.f32 %v5107_v9, %v5106_v50  ;;  %v5109_v61 = vpop.f32.mrb[14].mxu1  ;;  %v5088_v44 = vpop.f32.mrb[15].mxu0  ;;  %5375 = vmatprep.subr.bf16.mxu0 %v8505_v54  ;;  %v8515_v56 = vld [vmem:[%s10019_s0 + $0x5a] sm:$0xff]  ;;  %v8522_v9 = vld [vmem:[%s10020_s1 + $0x3b0] sm:$0xff]  }
 0x15a   :  { %5397 = vmatprep.subr.bf16.mxu1 %v7321_v58  ;;  %v5110_v11 = vpop.f32.mrb[15].mxu1  ;;  %v2056_v57 = vadd.f32 %v5086_v63, %v8327_v38  ;;  %v8529_v58 = vld [vmem:[%s10020_s1 + $0x3f8] sm:$0xff]   ;;  %v8534_v59 = vrot.slane %v2398_v33, %v6935_v41  ;;  %v8538_v38 = vrot.slane %v8515_v56, %v6935_v41  ;;  %v8633_v33 = vld [vmem:[%s10020_s1 + $0x4a8] sm:$0xff]  }
 0x15b   :  { %10295 = vst [vmem:[#allocation133_spill] sm:$0xff] %v8633_v33 }
 0x15c   :  { %v8517_v61 = vadd.f32 %v5108_v52, %v2056_v57  ;;  %5376 = vmatpush3.bf16.msra.mxu0 %v8522_v9  ;;  %v2414_v63 = vcombine.high %v8534_v59, %v8534_v59  ;;  %v2430_v44 = vcombine.high %v8538_v38, %v8538_v38 }
 0x15d   :  { %5398 = vmatpush3.bf16.msra.mxu1 %v7330_v60  ;;  %5377 = vmatprep.subr.bf16.mxu0 %v8529_v58  ;;  %v8543_v60 = vld [vmem:[%s10020_s1 + $0x3b8] sm:$0xff]  }
 0x15e   :  { %5399 = vmatprep.subr.bf16.mxu1 %v7339_v62  ;;  %v8550_v62 = vld [vmem:[%s10020_s1 + $0x4c0] sm:$0xff]  }
 0x160   :  { %5378 = vmatpush3.bf16.msra.mxu0 %v8543_v60 }
 0x161   :  { %5400 = vmatpush3.bf16.msra.mxu1 %v7352_v3  ;;  %5407 = vmatprep.subr.bf16.mxu0 %v8550_v62  ;;  %v8563_v3 = vld [vmem:[%s10020_s1 + $0x480] sm:$0xff]  }
 0x162   :  { %5429 = vmatprep.subr.bf16.mxu1 %v7362_v7  ;;  %v8570_v7 = vld [vmem:[%s10020_s1 + $0x4c8] sm:$0xff]  }
 0x163   :  { %2777 = vmatmul.mubr.bf16.vlgmr.msra.gmra.mrb[40].mxu0 %v8354_v5  ;;  %v8577_v5 = vld [vmem:[%s10020_s1 + $0x488] sm:$0xff]  }
 0x164   :  { %2817 = vmatmul.mubr.bf16.vlgmr.msra.gmra.mrb[40].mxu1 %v8358_v42  ;;  %5408 = vmatpush3.bf16.msra.mxu0 %v8563_v3 }
 0x165   :  { %5430 = vmatpush3.bf16.msra.mxu1 %v7371_v10  ;;  %5409 = vmatprep.subr.bf16.mxu0 %v8570_v7  ;;  %v8584_v10 = vld [vmem:[%s10020_s1 + $0x4d0] sm:$0xff]  }
 0x166   :  { %5431 = vmatprep.subr.bf16.mxu1 %v7380_v12  ;;  %2856 = vmatprep.mubr.bf16.mxu0 %v2414_v63  ;;  %v8591_v12 = vld [vmem:[%s10020_s1 + $0x490] sm:$0xff]  }
 0x167   :  { %2896 = vmatprep.mubr.bf16.mxu1 %v2430_v44 }
 0x168   :  { %5410 = vmatpush3.bf16.msra.mxu0 %v8577_v5 }
 0x169   :  { %5432 = vmatpush3.bf16.msra.mxu1 %v7391_v14  ;;  %5411 = vmatprep.subr.bf16.mxu0 %v8584_v10  ;;  %v8598_v14 = vld [vmem:[%s10020_s1 + $0x4d8] sm:$0xff]  }
 0x16a   :  { %5433 = vmatprep.subr.bf16.mxu1 %v7402_v16  ;;  %v8605_v16 = vld [vmem:[%s10020_s1 + $0x498] sm:$0xff]  }
 0x16c   :  { %5412 = vmatpush3.bf16.msra.mxu0 %v8591_v12 }
 0x16d   :  { %5434 = vmatpush3.bf16.msra.mxu1 %v7414_v18  ;;  %5413 = vmatprep.subr.bf16.mxu0 %v8598_v14  ;;  %v8612_v18 = vld [vmem:[%s10020_s1 + $0x4e0] sm:$0xff]  }
 0x16e   :  { %5435 = vmatprep.subr.bf16.mxu1 %v7426_v20  ;;  %v8619_v20 = vld [vmem:[%s10020_s1 + $0x4a0] sm:$0xff]  }
 0x170   :  { %5414 = vmatpush3.bf16.msra.mxu0 %v8605_v16 }
 0x171   :  { %5436 = vmatpush3.bf16.msra.mxu1 %v7438_v22  ;;  %5415 = vmatprep.subr.bf16.mxu0 %v8612_v18  ;;  %v8626_v22 = vld [vmem:[%s10020_s1 + $0x4e8] sm:$0xff]  }
 0x172   :  { %5437 = vmatprep.subr.bf16.mxu1 %v7450_v24 }
 0x174   :  { %5416 = vmatpush3.bf16.msra.mxu0 %v8619_v20 }
 0x175   :  { %5438 = vmatpush3.bf16.msra.mxu1 %v7462_v26  ;;  %5417 = vmatprep.subr.bf16.mxu0 %v8626_v22 }
 0x176   :  { %5439 = vmatprep.subr.bf16.mxu1 %v7474_v28  ;;  %v5128_v42 = vpop.f32.mrb[16].mxu0  ;;  %v8640_v28 = vld [vmem:[%s10020_s1 + $0x4f0] sm:$0xff]  }
 0x177   :  { %v5150_v24 = vpop.f32.mrb[16].mxu1  ;;  %v5129_v50 = vpop.f32.mrb[17].mxu0 }
 0x178   :  { %v5151_v52 = vpop.f32.mrb[17].mxu1  ;;  %v5130_v11 = vadd.f32 %v5129_v50, %v5128_v42  ;;  %v5131_v57 = vpop.f32.mrb[18].mxu0  ;;  %5418 = vmatpush3.bf16.msra.mxu0 %v8633_v33 }
 0x179   :  { %5440 = vmatpush3.bf16.msra.mxu1 %v7486_v30  ;;  %v5152_v26 = vadd.f32 %v5151_v52, %v5150_v24  ;;  %v5153_v63 = vpop.f32.mrb[18].mxu1  ;;  %v5132_v44 = vpop.f32.mrb[19].mxu0  ;;  %5419 = vmatprep.subr.bf16.mxu0 %v8640_v28  ;;  %v2415_v57 = vcombine.high %v8515_v56, %v8515_v56  ;;  %v8650_v30 = vld [vmem:[%s10020_s1 + $0x4b0] sm:$0xff]   ;;  %v10301_v24 = vld [vmem:[#allocation8_spill] sm:$0xff]  ;;  %v10303_v52 = vld [vmem:[#allocation9_spill] sm:$0xff] }
 0x17a   :  { %5441 = vmatprep.subr.bf16.mxu1 %v7498_v32  ;;  %v5154_v42 = vpop.f32.mrb[19].mxu1  ;;  %v2136_v50 = vadd.f32 %v5130_v11, %v8517_v61  ;;  %v8657_v32 = vld [vmem:[%s10020_s1 + $0x4f8] sm:$0xff]   ;;  %v10304_v11 = vld [vmem:[#allocation29_spill] sm:$0xff] }
 0x17b   :  { %v8662_v56 = vrot.slane %v2415_v57, %v6935_v41  ;;  %v8667_v61 = vld [vmem:[%s10020_s1 + $0x4b8] sm:$0xff]   ;;  %v10308_v44 = vld [vmem:[#allocation33_spill] sm:$0xff] }
 0x17c   :  { %v2176_v33 = vadd.f32 %v5152_v26, %v2136_v50  ;;  %5420 = vmatpush3.bf16.msra.mxu0 %v8650_v30  ;;  %v10306_v26 = vld [vmem:[#allocation31_spill] sm:$0xff]  ;;  %v10309_v42 = vld [vmem:[#allocation12_spill] sm:$0xff]  ;;  %v10311_v57 = vld [vmem:[#allocation13_spill] sm:$0xff] }
 0x17d   :  { %5442 = vmatpush3.bf16.msra.mxu1 %v7510_v35  ;;  %5421 = vmatprep.subr.bf16.mxu0 %v8657_v32  ;;  %v8674_v35 = vld [vmem:[%s10020_s1 + $0x5c0] sm:$0xff]   ;;  %v10307_v63 = vld [vmem:[#allocation11_spill] sm:$0xff] }
 0x17e   :  { %5443 = vmatprep.subr.bf16.mxu1 %v7522_v37  ;;  %v2431_v37 = vcombine.high %v8662_v56, %v8662_v56  ;;  %v10310_v50 = vld [vmem:[#allocation35_spill] sm:$0xff] }
 0x180   :  { %5422 = vmatpush3.bf16.msra.mxu0 %v8667_v61 }
 0x181   :  { %5444 = vmatpush3.bf16.msra.mxu1 %v7538_v43  ;;  %5451 = vmatprep.subr.bf16.mxu0 %v8674_v35  ;;  %v8685_v43 = vld [vmem:[%s10020_s1 + $0x580] sm:$0xff]  }
 0x182   :  { %6070 = vmatprep.subr.bf16.mxu1 %v10180_v53 }
 0x183   :  { %2857 = vmatmul.mubr.bf16.vlgmr.msra.gmra.mrb[44].mxu0 %v8534_v59  ;;  %v10297_v59 = vld [vmem:[#allocation6_spill] sm:$0xff] }
 0x184   :  { %2897 = vmatmul.mubr.bf16.vlgmr.msra.gmra.mrb[44].mxu1 %v8538_v38  ;;  %5452 = vmatpush3.bf16.msra.mxu0 %v8685_v43  ;;  %v10298_v38 = vld [vmem:[#allocation23_spill] sm:$0xff] }
 0x185   :  { %6071 = vmatpush3.bf16.msra.mxu1 %v7555_v48  ;;  %5453 = vmatprep.subr.bf16.mxu0 %v7386_v13 }
 0x186   :  { %6072 = vmatprep.subr.bf16.mxu1 %v10180_v53  ;;  %2936 = vmatprep.mubr.bf16.mxu0 %v2431_v37  ;;  %v10313_v37 = vld [vmem:[#allocation14_spill] sm:$0xff] }
 0x187   :  { %6086 = vmatprep.mubr.msk.bf16.mxu1 %vm6779_vm0, %v10180_v53 }
 0x188   :  { %5454 = vmatpush3.bf16.msra.mxu0 %v7396_v15 }
 0x189   :  { %6073 = vmatpush3.bf16.msra.mxu1 %v7570_v55  ;;  %5455 = vmatprep.subr.bf16.mxu0 %v7409_v17 }
 0x18a   :  { %6074 = vmatprep.subr.bf16.mxu1 %v10180_v53 }
 0x18c   :  { %5456 = vmatpush3.bf16.msra.mxu0 %v7419_v19 }
 0x18d   :  { %6075 = vmatpush3.bf16.msra.mxu1 %v7594_v0  ;;  %5457 = vmatprep.subr.bf16.mxu0 %v7433_v21  ;;  %v4887_v21 = vld [vmem:[%s10019_s0 + $0x64] sm:$0xff] }
 0x18e   :  { %6076 = vmatprep.subr.bf16.mxu1 %v10180_v53 }
 0x190   :  { %5458 = vmatpush3.bf16.msra.mxu0 %v7443_v23 }
 0x191   :  { %6077 = vmatpush3.bf16.msra.mxu1 %v7615_v4  ;;  %5459 = vmatprep.subr.bf16.mxu0 %v7457_v25  ;;  %v3002_v4 = vcombine.high %v4887_v21, %v4887_v21 }
 0x192   :  { %6078 = vmatprep.subr.bf16.mxu1 %v10180_v53 }
 0x194   :  { %5460 = vmatpush3.bf16.msra.mxu0 %v7467_v27 }
 0x195   :  { %6079 = vmatpush3.bf16.msra.mxu1 %v7634_v8  ;;  %5461 = vmatprep.subr.bf16.mxu0 %v7481_v29 }
 0x196   :  { %6080 = vmatprep.subr.bf16.mxu1 %v10180_v53  ;;  %v5172_v13 = vpop.f32.mrb[20].mxu0 }
 0x197   :  { %v5194_v15 = vpop.f32.mrb[20].mxu1  ;;  %v5173_v17 = vpop.f32.mrb[21].mxu0 }
 0x198   :  { %v5195_v19 = vpop.f32.mrb[21].mxu1  ;;  %v5174_v23 = vadd.f32 %v5173_v17, %v5172_v13  ;;  %v5175_v25 = vpop.f32.mrb[22].mxu0  ;;  %5462 = vmatpush3.bf16.msra.mxu0 %v7491_v31  ;;  %v3009_v31 = vrot.slane %v4887_v21, %v6935_v41  ;;  %v10314_v13 = vld [vmem:[#allocation39_spill] sm:$0xff]  ;;  %v10316_v17 = vld [vmem:[#allocation41_spill] sm:$0xff] }
 0x199   :  { %6081 = vmatpush3.bf16.msra.mxu1 %v7660_v40  ;;  %v5196_v27 = vadd.f32 %v5195_v19, %v5194_v15  ;;  %v5197_v48 = vpop.f32.mrb[22].mxu1  ;;  %v5176_v55 = vpop.f32.mrb[23].mxu0  ;;  %5463 = vmatprep.subr.bf16.mxu0 %v7505_v34  ;;  %v3016_v40 = vrot.slane %v3002_v4, %v6935_v41  ;;  %v4886_v34 = vld.sshfl [vmem:[%s10019_s0 + $0x62] sm:$0x3 pattern:$0x76325410] }
 0x19a   :  { %6082 = vmatprep.subr.bf16.mxu1 %v10180_v53  ;;  %v5198_v29 = vpop.f32.mrb[23].mxu1  ;;  %v2216_v0 = vadd.f32 %v5174_v23, %v2176_v33  ;;  %v10305_v33 = vld [vmem:[#allocation10_spill] sm:$0xff]  ;;  %v10315_v15 = vld [vmem:[#allocation15_spill] sm:$0xff] }
 0x19b   :  { %v4888_v48 = vld [vmem:[%s10019_s0 + $0x6c] sm:$0xff]  ;;  %v10317_v29 = vld [vmem:[#allocation16_spill] sm:$0xff] }
 0x19c   :  { %5464 = vmatpush3.bf16.msra.mxu0 %v7515_v36  ;;  %v2256_v8 = vadd.f32 %v5196_v27, %v2216_v0  ;;  %v10296_v36 = vld [vmem:[#allocation21_spill] sm:$0xff]  ;;  %v10318_v0 = vld [vmem:[#allocation43_spill] sm:$0xff] }
 0x19d   :  { %6083 = vmatpush3.bf16.msra.mxu1 %v7679_v45  ;;  %5465 = vmatprep.subr.bf16.mxu0 %v7532_v39  ;;  %v3017_v45 = vcombine.high %v3009_v31, %v3009_v31  ;;  %v3018_v39 = vcombine.high %v3016_v40, %v3016_v40 }
 0x19e   :  { %6084 = vmatprep.subr.bf16.mxu1 %v10180_v53 }
 0x1a0   :  { %5466 = vmatpush3.bf16.msra.mxu0 %v7546_v46  ;;  %v10299_v46 = vld [vmem:[#allocation7_spill] sm:$0xff] }
 0x1a1   :  { %6085 = vmatpush3.bf16.msra.mxu1 %v7703_v49  ;;  %5482 = vmatprep.subr.bf16.mxu0 %v7561_v51  ;;  %v10300_v49 = vld [vmem:[#allocation25_spill] sm:$0xff]  ;;  %v10302_v51 = vld [vmem:[#allocation27_spill] sm:$0xff] }
 0x1a2   :  { %5504 = vmatprep.subr.bf16.mxu1 %v10296_v36 }
 0x1a3   :  { %2937 = vmatmul.mubr.bf16.vlgmr.msra.gmra.mrb[48].mxu0 %v8662_v56  ;;  %v10312_v56 = vld [vmem:[#allocation37_spill] sm:$0xff] }
 0x1a4   :  { %6087 = vmatmul.mubr.bf16.vlgmr.msra.gmra.mrb[48].mxu1 %v4886_v34  ;;  %5483 = vmatpush3.bf16.msra.mxu0 %v10297_v59  ;;  %v3019_v59 = vcombine.high %v4888_v48, %v4888_v48 }
 0x1a5   :  { %5505 = vmatpush3.bf16.msra.mxu1 %v10298_v38  ;;  %5484 = vmatprep.subr.bf16.mxu0 %v10299_v46  ;;  %v10321_v38 = vld [vmem:[#allocation18_spill] sm:$0xff]  ;;  %v10322_v46 = vld [vmem:[#allocation47_spill] sm:$0xff] }
 0x1a6   :  { %5506 = vmatprep.subr.bf16.mxu1 %v10300_v49  ;;  %3168 = vmatprep.mubr.bf16.mxu0 %v3017_v45  ;;  %v10319_v45 = vld [vmem:[#allocation17_spill] sm:$0xff]  ;;  %v10323_v49 = vld [vmem:[#allocation19_spill] sm:$0xff] }
 0x1a7   :  { %3208 = vmatprep.mubr.bf16.mxu1 %v3018_v39  ;;  %v10320_v39 = vld [vmem:[#allocation45_spill] sm:$0xff] }
 0x1a8   :  { %5485 = vmatpush3.bf16.msra.mxu0 %v10301_v24  ;;  %v10324_v24 = vld [vmem:[#allocation49_spill] sm:$0xff] }
 0x1a9   :  { %5507 = vmatpush3.bf16.msra.mxu1 %v10302_v51  ;;  %5486 = vmatprep.subr.bf16.mxu0 %v10303_v52  ;;  %v3026_v51 = vrot.slane %v4888_v48, %v6935_v41  ;;  %v3033_v52 = vrot.slane %v3019_v59, %v6935_v41  ;;  %v10342_v48 = vld [vmem:[#allocation67_spill] sm:$0xff] }
 0x1aa   :  { %5508 = vmatprep.subr.bf16.mxu1 %v10304_v11  ;;  %v10325_v11 = vld [vmem:[#allocation20_spill] sm:$0xff] }
 0x1ac   :  { %5487 = vmatpush3.bf16.msra.mxu0 %v10305_v33  ;;  %v10326_v33 = vld [vmem:[#allocation51_spill] sm:$0xff] }
 0x1ad   :  { %5509 = vmatpush3.bf16.msra.mxu1 %v10306_v26  ;;  %5488 = vmatprep.subr.bf16.mxu0 %v10307_v63  ;;  %v10327_v26 = vld [vmem:[#allocation22_spill] sm:$0xff]  ;;  %v10328_v63 = vld [vmem:[#allocation53_spill] sm:$0xff] }
 0x1ae   :  { %5510 = vmatprep.subr.bf16.mxu1 %v10308_v44  ;;  %v3034_v44 = vcombine.high %v3026_v51, %v3026_v51 }
 0x1b0   :  { %5489 = vmatpush3.bf16.msra.mxu0 %v10309_v42  ;;  %v3035_v42 = vcombine.high %v3033_v52, %v3033_v52 }
 0x1b1   :  { %5511 = vmatpush3.bf16.msra.mxu1 %v10310_v50  ;;  %5490 = vmatprep.subr.bf16.mxu0 %v10311_v57  ;;  %v10329_v50 = vld [vmem:[#allocation24_spill] sm:$0xff]  ;;  %v10330_v57 = vld [vmem:[#allocation55_spill] sm:$0xff] }
 0x1b2   :  { %5512 = vmatprep.subr.bf16.mxu1 %v10312_v56  ;;  %v10331_v56 = vld [vmem:[#allocation26_spill] sm:$0xff] }
 0x1b4   :  { %5491 = vmatpush3.bf16.msra.mxu0 %v10313_v37  ;;  %v10332_v37 = vld [vmem:[#allocation57_spill] sm:$0xff] }
 0x1b5   :  { %5513 = vmatpush3.bf16.msra.mxu1 %v10314_v13  ;;  %5492 = vmatprep.subr.bf16.mxu0 %v10315_v15  ;;  %v10333_v13 = vld [vmem:[#allocation28_spill] sm:$0xff]  ;;  %v10334_v15 = vld [vmem:[#allocation59_spill] sm:$0xff] }
 0x1b6   :  { %5514 = vmatprep.subr.bf16.mxu1 %v10316_v17  ;;  %v2295_v19 = vpop.f32.mrb[24].mxu0  ;;  %v10335_v17 = vld [vmem:[#allocation30_spill] sm:$0xff] }
 0x1b7   :  { %v5225_v21 = vpop.f32.mrb[24].mxu1  ;;  %v8750_v23 = vadd.f32 %v2295_v19, %v2256_v8  ;;  %v6068_v25 = vpop.f32.mrb[25].mxu0  ;;  %v10336_v19 = vld [vmem:[#allocation61_spill] sm:$0xff] }
 0x1b8   :  { %v5226_v27 = vpop.f32.mrb[25].mxu1  ;;  %v2298_v55 = vpop.f32.mrb[26].mxu0  ;;  %5493 = vmatpush3.bf16.msra.mxu0 %v10317_v29  ;;  %v10340_v25 = vld [vmem:[#allocation65_spill] sm:$0xff] }
 0x1b9   :  { %5515 = vmatpush3.bf16.msra.mxu1 %v10318_v0  ;;  %v5227_v4 = vadd.f32 %v5226_v27, %v5225_v21  ;;  %v5228_v34 = vpop.f32.mrb[26].mxu1  ;;  %v6069_v36 = vpop.f32.mrb[27].mxu0  ;;  %5494 = vmatprep.subr.bf16.mxu0 %v10319_v45  ;;  %v10339_v21 = vld [vmem:[#allocation34_spill] sm:$0xff]  ;;  %v10341_v27 = vld [vmem:[#allocation36_spill] sm:$0xff]  ;;  %v10344_v29 = vld [vmem:[#allocation69_spill] sm:$0xff] }
 0x1ba   :  { %5516 = vmatprep.subr.bf16.mxu1 %v10320_v39  ;;  %v5229_v8 = vpop.f32.mrb[27].mxu1  ;;  %v10343_v55 = vld [vmem:[#allocation38_spill] sm:$0xff]  ;;  %v10345_v0 = vld [vmem:[#allocation40_spill] sm:$0xff]  ;;  %v10346_v34 = vld [vmem:[#allocation71_spill] sm:$0xff] }
 0x1bb   :  { %v10347_v36 = vld [vmem:[#allocation42_spill] sm:$0xff]  ;;  %v10348_v45 = vld [vmem:[#allocation73_spill] sm:$0xff] }
 0x1bc   :  { %5495 = vmatpush3.bf16.msra.mxu0 %v10321_v38 }
 0x1bd   :  { %5517 = vmatpush3.bf16.msra.mxu1 %v10322_v46  ;;  %5496 = vmatprep.subr.bf16.mxu0 %v10323_v49  ;;  %v4889_v46 = vld [vmem:[%s10019_s0 + $0x74] sm:$0xff] }
 0x1be   :  { %5518 = vmatprep.subr.bf16.mxu1 %v10324_v24 }
 0x1c0   :  { %5497 = vmatpush3.bf16.msra.mxu0 %v10325_v11  ;;  %v10349_v11 = vld [vmem:[#allocation44_spill] sm:$0xff] }
 0x1c1   :  { %5519 = vmatpush3.bf16.msra.mxu1 %v10326_v33  ;;  %5526 = vmatprep.subr.bf16.mxu0 %v10327_v26  ;;  %v10350_v26 = vld [vmem:[#allocation75_spill] sm:$0xff] }
 0x1c2   :  { %5548 = vmatprep.subr.bf16.mxu1 %v10328_v63 }
 0x1c3   :  { %3169 = vmatmul.mubr.bf16.vlgmr.msra.gmra.mrb[52].mxu0 %v3009_v31  ;;  %v10337_v31 = vld [vmem:[#allocation32_spill] sm:$0xff] }
 0x1c4   :  { %3209 = vmatmul.mubr.bf16.vlgmr.msra.gmra.mrb[52].mxu1 %v3016_v40  ;;  %5527 = vmatpush3.bf16.msra.mxu0 %v10329_v50  ;;  %v10338_v40 = vld [vmem:[#allocation63_spill] sm:$0xff] }
 0x1c5   :  { %5549 = vmatpush3.bf16.msra.mxu1 %v10330_v57  ;;  %5528 = vmatprep.subr.bf16.mxu0 %v10331_v56  ;;  %v10352_v57 = vld [vmem:[#allocation77_spill] sm:$0xff] }
 0x1c6   :  { %5550 = vmatprep.subr.bf16.mxu1 %v10332_v37  ;;  %3248 = vmatprep.mubr.bf16.mxu0 %v3034_v44  ;;  %v3036_v37 = vcombine.high %v4889_v46, %v4889_v46 }
 0x1c7   :  { %3288 = vmatprep.mubr.bf16.mxu1 %v3035_v42  ;;  %v10351_v42 = vld [vmem:[#allocation46_spill] sm:$0xff] }
 0x1c8   :  { %5529 = vmatpush3.bf16.msra.mxu0 %v10333_v13 }
 0x1c9   :  { %5551 = vmatpush3.bf16.msra.mxu1 %v10334_v15  ;;  %5530 = vmatprep.subr.bf16.mxu0 %v10335_v17  ;;  %v10353_v15 = vld [vmem:[#allocation48_spill] sm:$0xff]  ;;  %v10354_v17 = vld [vmem:[#allocation79_spill] sm:$0xff] }
 0x1ca   :  { %5552 = vmatprep.subr.bf16.mxu1 %v10336_v19  ;;  %v10355_v19 = vld [vmem:[#allocation50_spill] sm:$0xff] }
 0x1cc   :  { %5531 = vmatpush3.bf16.msra.mxu0 %v10337_v31  ;;  %v10356_v31 = vld [vmem:[#allocation81_spill] sm:$0xff] }
 0x1cd   :  { %5553 = vmatpush3.bf16.msra.mxu1 %v10338_v40  ;;  %5532 = vmatprep.subr.bf16.mxu0 %v10339_v21  ;;  %v3043_v40 = vrot.slane %v4889_v46, %v6935_v41  ;;  %v3050_v21 = vrot.slane %v3036_v37, %v6935_v41  ;;  %v10371_v46 = vld [vmem:[#allocation66_spill] sm:$0xff] }
 0x1ce   :  { %5554 = vmatprep.subr.bf16.mxu1 %v10340_v25  ;;  %v10357_v25 = vld [vmem:[#allocation52_spill] sm:$0xff] }
 0x1d0   :  { %5533 = vmatpush3.bf16.msra.mxu0 %v10341_v27  ;;  %v10358_v27 = vld [vmem:[#allocation83_spill] sm:$0xff] }
 0x1d1   :  { %5555 = vmatpush3.bf16.msra.mxu1 %v10342_v48  ;;  %5534 = vmatprep.subr.bf16.mxu0 %v10343_v55  ;;  %v10359_v48 = vld [vmem:[#allocation54_spill] sm:$0xff]  ;;  %v3051_v55 = vcombine.high %v3043_v40, %v3043_v40 }
 0x1d2   :  { %5556 = vmatprep.subr.bf16.mxu1 %v10344_v29  ;;  %v3052_v29 = vcombine.high %v3050_v21, %v3050_v21 }
 0x1d4   :  { %5535 = vmatpush3.bf16.msra.mxu0 %v10345_v0  ;;  %v10361_v0 = vld [vmem:[#allocation56_spill] sm:$0xff] }
 0x1d5   :  { %5557 = vmatpush3.bf16.msra.mxu1 %v10346_v34  ;;  %5536 = vmatprep.subr.bf16.mxu0 %v10347_v36  ;;  %v10362_v34 = vld [vmem:[#allocation87_spill] sm:$0xff]  ;;  %v10363_v36 = vld [vmem:[#allocation58_spill] sm:$0xff] }
 0x1d6   :  { %5558 = vmatprep.subr.bf16.mxu1 %v10348_v45  ;;  %v5247_v39 = vpop.f32.mrb[28].mxu0  ;;  %v10364_v45 = vld [vmem:[#allocation89_spill] sm:$0xff] }
 0x1d7   :  { %v5269_v8 = vpop.f32.mrb[28].mxu1  ;;  %v5248_v59 = vpop.f32.mrb[29].mxu0 }
 0x1d8   :  { %v5270_v38 = vpop.f32.mrb[29].mxu1  ;;  %v5249_v49 = vadd.f32 %v5248_v59, %v5247_v39  ;;  %v5250_v24 = vpop.f32.mrb[30].mxu0  ;;  %5537 = vmatpush3.bf16.msra.mxu0 %v10349_v11  ;;  %v10365_v39 = vld [vmem:[#allocation60_spill] sm:$0xff]  ;;  %v10367_v59 = vld [vmem:[#allocation62_spill] sm:$0xff]  ;;  %v10374_v11 = vld [vmem:[#allocation99_spill] sm:$0xff] }
 0x1d9   :  { %v5271_v33 = vadd.f32 %v5270_v38, %v5269_v8  ;;  %5559 = vmatpush3.bf16.msra.mxu1 %v10350_v26  ;;  %v5272_v63 = vpop.f32.mrb[30].mxu1  ;;  %v5251_v44 = vpop.f32.mrb[31].mxu0  ;;  %5538 = vmatprep.subr.bf16.mxu0 %v10351_v42  ;;  %v10366_v8 = vld [vmem:[#allocation91_spill] sm:$0xff]  ;;  %v10368_v38 = vld [vmem:[#allocation93_spill] sm:$0xff]  ;;  %v10373_v24 = vld [vmem:[#allocation68_spill] sm:$0xff] }
 0x1da   :  { %v5273_v50 = vpop.f32.mrb[31].mxu1  ;;  %5560 = vmatprep.subr.bf16.mxu1 %v10352_v57  ;;  %v2539_v56 = vadd.f32 %v5249_v49, %v5227_v4  ;;  %v10360_v4 = vld [vmem:[#allocation85_spill] sm:$0xff]  ;;  %v10377_v63 = vld [vmem:[#allocation72_spill] sm:$0xff]  ;;  %v10378_v44 = vld [vmem:[#allocation103_spill] sm:$0xff] }
 0x1db   :  { %v10372_v49 = vld [vmem:[#allocation97_spill] sm:$0xff]  ;;  %v10379_v42 = vld [vmem:[#allocation74_spill] sm:$0xff] }
 0x1dc   :  { %v2579_v13 = vadd.f32 %v5271_v33, %v2539_v56  ;;  %5539 = vmatpush3.bf16.msra.mxu0 %v10353_v15  ;;  %v10375_v33 = vld [vmem:[#allocation70_spill] sm:$0xff]  ;;  %v10376_v26 = vld [vmem:[#allocation101_spill] sm:$0xff] }
 0x1dd   :  { %5561 = vmatpush3.bf16.msra.mxu1 %v10354_v17  ;;  %5540 = vmatprep.subr.bf16.mxu0 %v10355_v19  ;;  %v10380_v50 = vld [vmem:[#allocation105_spill] sm:$0xff]  ;;  %v4890_v17 = vld [vmem:[%s10019_s0 + $0x7c] sm:$0xff] }
 0x1de   :  { %5562 = vmatprep.subr.bf16.mxu1 %v10356_v31 }
 0x1e0   :  { %5541 = vmatpush3.bf16.msra.mxu0 %v10357_v25  ;;  %v10381_v25 = vld [vmem:[#allocation76_spill] sm:$0xff] }
 0x1e1   :  { %5563 = vmatpush3.bf16.msra.mxu1 %v10358_v27  ;;  %5570 = vmatprep.subr.bf16.mxu0 %v10359_v48 }
 0x1e2   :  { %5592 = vmatprep.subr.bf16.mxu1 %v10360_v4 }
 0x1e3   :  { %3249 = vmatmul.mubr.bf16.vlgmr.msra.gmra.mrb[56].mxu0 %v3026_v51  ;;  %v10369_v51 = vld [vmem:[#allocation64_spill] sm:$0xff] }
 0x1e4   :  { %3289 = vmatmul.mubr.bf16.vlgmr.msra.gmra.mrb[56].mxu1 %v3033_v52  ;;  %5571 = vmatpush3.bf16.msra.mxu0 %v10361_v0  ;;  %v10370_v52 = vld [vmem:[#allocation95_spill] sm:$0xff] }
 0x1e5   :  { %5593 = vmatpush3.bf16.msra.mxu1 %v10362_v34  ;;  %5572 = vmatprep.subr.bf16.mxu0 %v10363_v36  ;;  %v3053_v34 = vcombine.high %v4890_v17, %v4890_v17 }
 0x1e6   :  { %5594 = vmatprep.subr.bf16.mxu1 %v10364_v45  ;;  %3328 = vmatprep.mubr.bf16.mxu0 %v3051_v55  ;;  %v10382_v55 = vld [vmem:[#allocation78_spill] sm:$0xff]  ;;  %v10383_v45 = vld [vmem:[#allocation80_spill] sm:$0xff] }
 0x1e7   :  { %3368 = vmatprep.mubr.bf16.mxu1 %v3052_v29 }
 0x1e8   :  { %5573 = vmatpush3.bf16.msra.mxu0 %v10365_v39  ;;  %v10384_v39 = vld [vmem:[#allocation82_spill] sm:$0xff] }
 0x1e9   :  { %5595 = vmatpush3.bf16.msra.mxu1 %v10366_v8  ;;  %5574 = vmatprep.subr.bf16.mxu0 %v10367_v59  ;;  %v10385_v8 = vld [vmem:[#allocation110_spill] sm:$0xff]  ;;  %v3067_v59 = vrot.slane %v3053_v34, %v6935_v41 }
 0x1ea   :  { %5596 = vmatprep.subr.bf16.mxu1 %v10368_v38  ;;  %v10386_v38 = vld [vmem:[#allocation84_spill] sm:$0xff] }
 0x1ec   :  { %5575 = vmatpush3.bf16.msra.mxu0 %v10369_v51  ;;  %v10387_v51 = vld [vmem:[#allocation112_spill] sm:$0xff] }
 0x1ed   :  { %5597 = vmatpush3.bf16.msra.mxu1 %v10370_v52  ;;  %5576 = vmatprep.subr.bf16.mxu0 %v10371_v46  ;;  %v3069_v46 = vcombine.high %v3067_v59, %v3067_v59 }
 0x1ee   :  { %5598 = vmatprep.subr.bf16.mxu1 %v10372_v49  ;;  %v10391_v49 = vld [vmem:[#allocation116_spill] sm:$0xff] }
 0x1f0   :  { %5577 = vmatpush3.bf16.msra.mxu0 %v10373_v24  ;;  %v10392_v24 = vld [vmem:[#allocation90_spill] sm:$0xff] }
 0x1f1   :  { %5599 = vmatpush3.bf16.msra.mxu1 %v10374_v11  ;;  %5578 = vmatprep.subr.bf16.mxu0 %v10375_v33  ;;  %v10393_v11 = vld [vmem:[#allocation118_spill] sm:$0xff]  ;;  %v10394_v33 = vld [vmem:[#allocation92_spill] sm:$0xff] }
 0x1f2   :  { %5600 = vmatprep.subr.bf16.mxu1 %v10376_v26  ;;  %v10395_v26 = vld [vmem:[#allocation120_spill] sm:$0xff] }
 0x1f4   :  { %5579 = vmatpush3.bf16.msra.mxu0 %v10377_v63  ;;  %v10396_v63 = vld [vmem:[#allocation94_spill] sm:$0xff] }
 0x1f5   :  { %5601 = vmatpush3.bf16.msra.mxu1 %v10378_v44  ;;  %5580 = vmatprep.subr.bf16.mxu0 %v10379_v42  ;;  %v10397_v44 = vld [vmem:[#allocation122_spill] sm:$0xff] }
 0x1f6   :  { %5602 = vmatprep.subr.bf16.mxu1 %v10380_v50  ;;  %v5291_v57 = vpop.f32.mrb[32].mxu0  ;;  %v10400_v42 = vld [vmem:[#allocation98_spill] sm:$0xff] }
 0x1f7   :  { %v5313_v56 = vpop.f32.mrb[32].mxu1  ;;  %v5292_v37 = vpop.f32.mrb[33].mxu0  ;;  %v10401_v50 = vld [vmem:[#allocation126_spill] sm:$0xff] }
 0x1f8   :  { %v5314_v15 = vpop.f32.mrb[33].mxu1  ;;  %v5293_v19 = vadd.f32 %v5292_v37, %v5291_v57  ;;  %v5294_v31 = vpop.f32.mrb[34].mxu0  ;;  %5581 = vmatpush3.bf16.msra.mxu0 %v10381_v25  ;;  %v10402_v57 = vld [vmem:[#allocation100_spill] sm:$0xff]  ;;  %v10404_v37 = vld [vmem:[#allocation102_spill] sm:$0xff] }
 0x1f9   :  { %v5315_v27 = vadd.f32 %v5314_v15, %v5313_v56  ;;  %5603 = vmatpush3.bf16.msra.mxu1 %v8298_v47  ;;  %v5316_v48 = vpop.f32.mrb[34].mxu1  ;;  %v5295_v4 = vpop.f32.mrb[35].mxu0  ;;  %5582 = vmatprep.subr.bf16.mxu0 %v10382_v55  ;;  %v3060_v47 = vrot.slane %v4890_v17, %v6935_v41  ;;  %v10403_v56 = vld [vmem:[#allocation128_spill] sm:$0xff]  ;;  %v10405_v15 = vld [vmem:[#allocation130_spill] sm:$0xff] }
 0x1fa   :  { %v5317_v29 = vpop.f32.mrb[35].mxu1  ;;  %5604 = vmatprep.subr.bf16.mxu1 %v8310_v6  ;;  %v2619_v0 = vadd.f32 %v5293_v19, %v2579_v13  ;;  %v10388_v6 = vld [vmem:[#allocation86_spill] sm:$0xff]  ;;  %v10406_v17 = vld [vmem:[#allocation104_spill] sm:$0xff]  ;;  %v10407_v19 = vld [vmem:[#allocation131_spill] sm:$0xff] }
 0x1fb   :  { %v10389_v13 = vld [vmem:[#allocation114_spill] sm:$0xff]  ;;  %v3068_v52 = vcombine.high %v3060_v47, %v3060_v47  ;;  %v10409_v25 = vld [vmem:[#allocation132_spill] sm:$0xff]  ;;  %v4891_v29 = vld [vmem:[%s10019_s0 + $0x84] sm:$0xff] }
 0x1fc   :  { %v2659_v36 = vadd.f32 %v5315_v27, %v2619_v0  ;;  %5583 = vmatpush3.bf16.msra.mxu0 %v10383_v45  ;;  %v10408_v31 = vld [vmem:[#allocation106_spill] sm:$0xff]  ;;  %v10410_v45 = vld [vmem:[#allocation107_spill] sm:$0xff] }
 0x1fd   :  { %5605 = vmatpush3.bf16.msra.mxu1 %v8332_v1  ;;  %5584 = vmatprep.subr.bf16.mxu0 %v10384_v39  ;;  %v10390_v1 = vld [vmem:[#allocation88_spill] sm:$0xff] }
 0x1fe   :  { %5606 = vmatprep.subr.bf16.mxu1 %v10385_v8 }
 0x200   :  { %5585 = vmatpush3.bf16.msra.mxu0 %v10386_v38 }
 0x201   :  { %5607 = vmatpush3.bf16.msra.mxu1 %v10387_v51  ;;  %5614 = vmatprep.subr.bf16.mxu0 %v10388_v6  ;;  %v10411_v51 = vld [vmem:[#allocation108_spill] sm:$0xff] }
 0x202   :  { %5636 = vmatprep.subr.bf16.mxu1 %v10389_v13 }
 0x203   :  { %3329 = vmatmul.mubr.bf16.vlgmr.msra.gmra.mrb[60].mxu0 %v3043_v40  ;;  %v10398_v40 = vld [vmem:[#allocation96_spill] sm:$0xff] }
 0x204   :  { %3369 = vmatmul.mubr.bf16.vlgmr.msra.gmra.mrb[60].mxu1 %v3050_v21  ;;  %5615 = vmatpush3.bf16.msra.mxu0 %v10390_v1  ;;  %v10399_v21 = vld [vmem:[#allocation124_spill] sm:$0xff]  ;;  %v10412_v1 = vld [vmem:[#allocation109_spill] sm:$0xff] }
 0x205   :  { %5637 = vmatpush3.bf16.msra.mxu1 %v10391_v49  ;;  %5616 = vmatprep.subr.bf16.mxu0 %v10392_v24  ;;  %v10413_v49 = vld [vmem:[#allocation111_spill] sm:$0xff] }
 0x206   :  { %5638 = vmatprep.subr.bf16.mxu1 %v10393_v11  ;;  %3408 = vmatprep.mubr.bf16.mxu0 %v3068_v52  ;;  %v3070_v52 = vcombine.high %v4891_v29, %v4891_v29  ;;  %v10414_v11 = vld [vmem:[#allocation113_spill] sm:$0xff] }
 0x207   :  { %3448 = vmatprep.mubr.bf16.mxu1 %v3069_v46 }
 0x208   :  { %5617 = vmatpush3.bf16.msra.mxu0 %v10394_v33  ;;  %v8878_v24 = vrot.slane %v3070_v52, %v6935_v41  ;;  %v10417_v33 = vld [vmem:[#allocation119_spill] sm:$0xff]  ;;  %v9082_v52 = vld [vmem:[%s10020_s1 + $0x5a0] sm:$0xff]  }
 0x209   :  { %5639 = vmatpush3.bf16.msra.mxu1 %v10395_v26  ;;  %5618 = vmatprep.subr.bf16.mxu0 %v10396_v63  ;;  %v4892_v26 = vld [vmem:[%s10019_s0 + $0x8c] sm:$0xff] }
 0x20a   :  { %5640 = vmatprep.subr.bf16.mxu1 %v10397_v44 }
 0x20c   :  { %5619 = vmatpush3.bf16.msra.mxu0 %v10398_v40 }
 0x20d   :  { %5641 = vmatpush3.bf16.msra.mxu1 %v10399_v21  ;;  %5620 = vmatprep.subr.bf16.mxu0 %v10400_v42  ;;  %v10423_v21 = vld [vmem:[#allocation133_spill] sm:$0xff] }
 0x20e   :  { %5642 = vmatprep.subr.bf16.mxu1 %v10401_v50  ;;  %v8936_v50 = vld [vmem:[%s10020_s1 + $0x470] sm:$0xff]  }
 0x210   :  { %5621 = vmatpush3.bf16.msra.mxu0 %v10402_v57 }
 0x211   :  { %5643 = vmatpush3.bf16.msra.mxu1 %v10403_v56  ;;  %5622 = vmatprep.subr.bf16.mxu0 %v10404_v37  ;;  %v3087_v37 = vcombine.high %v4892_v26, %v4892_v26 }
 0x212   :  { %5644 = vmatprep.subr.bf16.mxu1 %v10405_v15 }
 0x214   :  { %5623 = vmatpush3.bf16.msra.mxu0 %v10406_v17  ;;  %v8945_v17 = vld [vmem:[%s10020_s1 + $0x430] sm:$0xff]  }
 0x215   :  { %5645 = vmatpush3.bf16.msra.mxu1 %v10407_v19  ;;  %5624 = vmatprep.subr.bf16.mxu0 %v10408_v31  ;;  %v8952_v19 = vld [vmem:[%s10020_s1 + $0x478] sm:$0xff]   ;;  %v8960_v31 = vrot.slane %v3087_v37, %v6935_v41  ;;  %v6593_v37 = vld [vmem:[%s10020_s1] sm:$0xff]  }
 0x216   :  { %5646 = vmatprep.subr.bf16.mxu1 %v10409_v25  ;;  %v5335_v27 = vpop.f32.mrb[36].mxu0  ;;  %v8965_v25 = vld [vmem:[%s10020_s1 + $0x438] sm:$0xff]  }
 0x217   :  { %v5357_v48 = vpop.f32.mrb[36].mxu1  ;;  %v5336_v4 = vpop.f32.mrb[37].mxu0 }
 0x218   :  { %v5358_v55 = vpop.f32.mrb[37].mxu1  ;;  %v5337_v0 = vadd.f32 %v5336_v4, %v5335_v27  ;;  %v5338_v34 = vpop.f32.mrb[38].mxu0  ;;  %5625 = vmatpush3.bf16.msra.mxu0 %v10410_v45  ;;  %v3103_v27 = vcombine.high %v8960_v31, %v8960_v31  ;;  %v9010_v4 = vld [vmem:[%s10020_s1 + $0x588] sm:$0xff]   ;;  %v9040_v45 = vld [vmem:[%s10020_s1 + $0x558] sm:$0xff]  }
 0x219   :  { %v5359_v39 = vadd.f32 %v5358_v55, %v5357_v48  ;;  %5647 = vmatpush3.bf16.msra.mxu1 %v8498_v2  ;;  %v5360_v8 = vpop.f32.mrb[38].mxu1  ;;  %v5339_v38 = vpop.f32.mrb[39].mxu0  ;;  %5626 = vmatprep.subr.bf16.mxu0 %v10411_v51  ;;  %v8875_v2 = vrot.slane %v4891_v29, %v6935_v41  ;;  %v8998_v48 = vld [vmem:[%s10020_s1 + $0x5c8] sm:$0xff]   ;;  %v9016_v55 = vld [vmem:[%s10020_s1 + $0x550] sm:$0xff]   ;;  %v9064_v51 = vld [vmem:[%s10020_s1 + $0x560] sm:$0xff]  }
 0x21a   :  { %v5361_v6 = vpop.f32.mrb[39].mxu1  ;;  %5648 = vmatprep.subr.bf16.mxu1 %v8505_v54  ;;  %v2699_v13 = vadd.f32 %v5337_v0, %v2659_v36  ;;  %v10415_v54 = vld [vmem:[#allocation115_spill] sm:$0xff]  ;;  %v10416_v36 = vld [vmem:[#allocation117_spill] sm:$0xff] }
 0x21b   :  { %v9022_v29 = vld [vmem:[%s10020_s1 + $0x5d0] sm:$0xff]   ;;  %v9052_v8 = vld [vmem:[%s10020_s1 + $0x518] sm:$0xff]   ;;  %v9070_v6 = vld [vmem:[%s10020_s1 + $0x5e0] sm:$0xff]  }
 0x21c   :  { %v2739_v46 = vadd.f32 %v5359_v39, %v2699_v13  ;;  %5627 = vmatpush3.bf16.msra.mxu0 %v10412_v1  ;;  %v9028_v0 = vld [vmem:[%s10020_s1 + $0x510] sm:$0xff]   ;;  %v9046_v39 = vld [vmem:[%s10020_s1 + $0x5d8] sm:$0xff]   ;;  %v9076_v13 = vld [vmem:[%s10020_s1 + $0x520] sm:$0xff]  }
 0x21d   :  { %5649 = vmatpush3.bf16.msra.mxu1 %v8522_v9  ;;  %5628 = vmatprep.subr.bf16.mxu0 %v10413_v49  ;;  %v3085_v9 = vcombine.high %v8875_v2, %v8875_v2  ;;  %v9034_v34 = vld [vmem:[%s10020_s1 + $0x590] sm:$0xff]   ;;  %v9058_v38 = vld [vmem:[%s10020_s1 + $0x598] sm:$0xff]   ;;  %v9094_v1 = vld [vmem:[%s10020_s1 + $0x5e8] sm:$0xff]  }
 0x21e   :  { %5650 = vmatprep.subr.bf16.mxu1 %v8529_v58  ;;  %v3086_v58 = vcombine.high %v8878_v24, %v8878_v24 }
 0x220   :  { %5629 = vmatpush3.bf16.msra.mxu0 %v10414_v11 }
 0x221   :  { %5651 = vmatpush3.bf16.msra.mxu1 %v8543_v60  ;;  %5658 = vmatprep.subr.bf16.mxu0 %v10415_v54  ;;  %v10418_v60 = vld [vmem:[#allocation121_spill] sm:$0xff] }
 0x222   :  { %5680 = vmatprep.subr.bf16.mxu1 %v8550_v62  ;;  %v10419_v62 = vld [vmem:[#allocation123_spill] sm:$0xff] }
 0x223   :  { %3409 = vmatmul.mubr.bf16.vlgmr.msra.gmra.mrb[64].mxu0 %v3060_v47  ;;  %v10420_v47 = vld [vmem:[#allocation125_spill] sm:$0xff] }
 0x224   :  { %3449 = vmatmul.mubr.bf16.vlgmr.msra.gmra.mrb[64].mxu1 %v3067_v59  ;;  %5659 = vmatpush3.bf16.msra.mxu0 %v10416_v36  ;;  %v10421_v59 = vld [vmem:[#allocation127_spill] sm:$0xff] }
 0x225   :  { %5681 = vmatpush3.bf16.msra.mxu1 %v8563_v3  ;;  %5660 = vmatprep.subr.bf16.mxu0 %v10417_v33  ;;  %v10422_v3 = vld [vmem:[#allocation129_spill] sm:$0xff] }
 0x226   :  { %5682 = vmatprep.subr.bf16.mxu1 %v8570_v7  ;;  %3488 = vmatprep.mubr.bf16.mxu0 %v3085_v9  ;;  %v8905_v7 = vld [vmem:[%s10020_s1 + $0x460] sm:$0xff]   ;;  %v9106_v33 = vld [vmem:[%s10020_s1 + $0x5a8] sm:$0xff]  }
 0x227   :  { %3528 = vmatprep.mubr.bf16.mxu1 %v3086_v58  ;;  %v9100_v58 = vld [vmem:[%s10020_s1 + $0x528] sm:$0xff]  }
 0x228   :  { %5661 = vmatpush3.bf16.msra.mxu0 %v10418_v60 }
 0x229   :  { %5683 = vmatpush3.bf16.msra.mxu1 %v8577_v5  ;;  %5662 = vmatprep.subr.bf16.mxu0 %v10419_v62  ;;  %v8912_v5 = vld [vmem:[%s10020_s1 + $0x420] sm:$0xff]  }
 0x22a   :  { %5684 = vmatprep.subr.bf16.mxu1 %v8584_v10  ;;  %v8919_v10 = vld [vmem:[%s10020_s1 + $0x468] sm:$0xff]  }
 0x22c   :  { %5663 = vmatpush3.bf16.msra.mxu0 %v10420_v47  ;;  %v9112_v47 = vld [vmem:[%s10020_s1 + $0x570] sm:$0xff]  }
 0x22d   :  { %5685 = vmatpush3.bf16.msra.mxu1 %v8591_v12  ;;  %5664 = vmatprep.subr.bf16.mxu0 %v10421_v59 }
 0x22e   :  { %5686 = vmatprep.subr.bf16.mxu1 %v8598_v14 }
 0x230   :  { %5665 = vmatpush3.bf16.msra.mxu0 %v10422_v3  ;;  %v9118_v3 = vld [vmem:[%s10020_s1 + $0x5f0] sm:$0xff]  }
 0x231   :  { %5687 = vmatpush3.bf16.msra.mxu1 %v8605_v16  ;;  %5666 = vmatprep.subr.bf16.mxu0 %v8905_v7 }
 0x232   :  { %5688 = vmatprep.subr.bf16.mxu1 %v8612_v18 }
 0x234   :  { %5667 = vmatpush3.bf16.msra.mxu0 %v8912_v5 }
 0x235   :  { %5689 = vmatpush3.bf16.msra.mxu1 %v8619_v20  ;;  %5668 = vmatprep.subr.bf16.mxu0 %v8919_v10  ;;  %v8929_v20 = vld [vmem:[%s10020_s1 + $0x428] sm:$0xff]  }
 0x236   :  { %5690 = vmatprep.subr.bf16.mxu1 %v8626_v22  ;;  %v5379_v12 = vpop.f32.mrb[40].mxu0 }
 0x237   :  { %v5401_v14 = vpop.f32.mrb[40].mxu1  ;;  %v5380_v16 = vpop.f32.mrb[41].mxu0 }
 0x238   :  { %v5402_v18 = vpop.f32.mrb[41].mxu1  ;;  %v5381_v63 = vadd.f32 %v5380_v16, %v5379_v12  ;;  %v5382_v44 = vpop.f32.mrb[42].mxu0  ;;  %5669 = vmatpush3.bf16.msra.mxu0 %v8929_v20 }
 0x239   :  { %v5403_v40 = vadd.f32 %v5402_v18, %v5401_v14  ;;  %5691 = vmatpush3.bf16.msra.mxu1 %v10423_v21  ;;  %v5404_v22 = vpop.f32.mrb[42].mxu1  ;;  %v5383_v42 = vpop.f32.mrb[43].mxu0  ;;  %5670 = vmatprep.subr.bf16.mxu0 %v8936_v50  ;;  %v9125_v14 = vld [vmem:[%s10019_s0 + $0x96] sm:$0xff] }
 0x23a   :  { %v5405_v57 = vpop.f32.mrb[43].mxu1  ;;  %5692 = vmatprep.subr.bf16.mxu1 %v8640_v28  ;;  %v2779_v56 = vadd.f32 %v5381_v63, %v2739_v46  ;;  %v8957_v28 = vrot.slane %v4892_v26, %v6935_v41  ;;  %v9088_v46 = vld [vmem:[%s10020_s1 + $0x568] sm:$0xff]   ;;  %v9132_v18 = vld [vmem:[%s10020_s1 + $0x530] sm:$0xff]   ;;  %v9144_v63 = vld [vmem:[%s10020_s1 + $0x578] sm:$0xff]  }
 0x23b   :  { %v9138_v26 = vld [vmem:[%s10020_s1 + $0x5b0] sm:$0xff]   ;;  %v9150_v44 = vld [vmem:[%s10020_s1 + $0x5f8] sm:$0xff]   ;;  %v6591_v42 = vld [vmem:[%s10020_s1 + $0x40] sm:$0xff]  }
 0x23c   :  { %v8940_v15 = vadd.f32 %v5403_v40, %v2779_v56  ;;  %5671 = vmatpush3.bf16.msra.mxu0 %v8945_v17  ;;  %v9155_v40 = vrot.slane %v9125_v14, %v6935_v41  ;;  %v9160_v21 = vld [vmem:[%s10020_s1 + $0x538] sm:$0xff]   ;;  %v9180_v56 = vld [vmem:[%s10020_s1 + $0x600] sm:$0xff]  }
 0x23d   :  { %5693 = vmatpush3.bf16.msra.mxu1 %v8650_v30  ;;  %5672 = vmatprep.subr.bf16.mxu0 %v8952_v19  ;;  %v8972_v30 = vld [vmem:[%s10020_s1 + $0x540] sm:$0xff]   ;;  %v9166_v22 = vld [vmem:[%s10020_s1 + $0x5b8] sm:$0xff]  }
 0x23e   :  { %5694 = vmatprep.subr.bf16.mxu1 %v8657_v32  ;;  %v3102_v32 = vcombine.high %v8957_v28, %v8957_v28  ;;  %v3689_v57 = vcombine.high %v9155_v40, %v9155_v40 }
 0x240   :  { %5673 = vmatpush3.bf16.msra.mxu0 %v8965_v25 }
 0x241   :  { %5695 = vmatpush3.bf16.msra.mxu1 %v8667_v61  ;;  %5702 = vmatprep.subr.bf16.mxu0 %v8972_v30  ;;  %v8985_v61 = vld [vmem:[%s10020_s1 + $0x500] sm:$0xff]  }
 0x242   :  { %5724 = vmatprep.subr.bf16.mxu1 %v8674_v35  ;;  %v8992_v35 = vld [vmem:[%s10020_s1 + $0x548] sm:$0xff]  }
 0x243   :  { %3489 = vmatmul.mubr.bf16.vlgmr.msra.gmra.mrb[68].mxu0 %v8875_v2 }
 0x244   :  { %3529 = vmatmul.mubr.bf16.vlgmr.msra.gmra.mrb[68].mxu1 %v8878_v24  ;;  %5703 = vmatpush3.bf16.msra.mxu0 %v8985_v61 }
 0x245   :  { %5725 = vmatpush3.bf16.msra.mxu1 %v8685_v43  ;;  %5704 = vmatprep.subr.bf16.mxu0 %v8992_v35  ;;  %v9004_v43 = vld [vmem:[%s10020_s1 + $0x508] sm:$0xff]  }
 0x246   :  { %5726 = vmatprep.subr.bf16.mxu1 %v8998_v48  ;;  %3568 = vmatprep.mubr.bf16.mxu0 %v3102_v32  ;;  %v6597_v32 = vld [vmem:[%s10020_s1 + $0x50] sm:$0xff]  }
 0x247   :  { %3608 = vmatprep.mubr.bf16.mxu1 %v3103_v27  ;;  %v9208_v27 = vld [vmem:[%s10020_s1 + $0x610] sm:$0xff]  }
 0x248   :  { %5705 = vmatpush3.bf16.msra.mxu0 %v9004_v43 }
 0x249   :  { %5727 = vmatpush3.bf16.msra.mxu1 %v9010_v4  ;;  %5706 = vmatprep.subr.bf16.mxu0 %v9016_v55 }
 0x24a   :  { %5728 = vmatprep.subr.bf16.mxu1 %v9022_v29 }
 0x24c   :  { %5707 = vmatpush3.bf16.msra.mxu0 %v9028_v0 }
 0x24d   :  { %5729 = vmatpush3.bf16.msra.mxu1 %v9034_v34  ;;  %5708 = vmatprep.subr.bf16.mxu0 %v9040_v45 }
 0x24e   :  { %5730 = vmatprep.subr.bf16.mxu1 %v9046_v39 }
 0x250   :  { %5709 = vmatpush3.bf16.msra.mxu0 %v9052_v8 }
 0x251   :  { %5731 = vmatpush3.bf16.msra.mxu1 %v9058_v38  ;;  %5710 = vmatprep.subr.bf16.mxu0 %v9064_v51 }
 0x252   :  { %5732 = vmatprep.subr.bf16.mxu1 %v9070_v6 }
 0x254   :  { %5711 = vmatpush3.bf16.msra.mxu0 %v9076_v13 }
 0x255   :  { %5733 = vmatpush3.bf16.msra.mxu1 %v9082_v52  ;;  %5712 = vmatprep.subr.bf16.mxu0 %v9088_v46 }
 0x256   :  { %5734 = vmatprep.subr.bf16.mxu1 %v9094_v1  ;;  %v5423_v49 = vpop.f32.mrb[44].mxu0 }
 0x257   :  { %v5445_v2 = vpop.f32.mrb[44].mxu1  ;;  %v5424_v24 = vpop.f32.mrb[45].mxu0 }
 0x258   :  { %v5446_v11 = vpop.f32.mrb[45].mxu1  ;;  %v5425_v54 = vadd.f32 %v5424_v24, %v5423_v49  ;;  %v5426_v9 = vpop.f32.mrb[46].mxu0  ;;  %5713 = vmatpush3.bf16.msra.mxu0 %v9100_v58  ;;  %v6599_v49 = vld [vmem:[%s10020_s1 + $0x10] sm:$0xff]   ;;  %v9221_v24 = vld [vmem:[%s10020_s1 + $0x618] sm:$0xff]  }
 0x259   :  { %v5447_v36 = vadd.f32 %v5446_v11, %v5445_v2  ;;  %5735 = vmatpush3.bf16.msra.mxu1 %v9106_v33  ;;  %v5448_v60 = vpop.f32.mrb[46].mxu1  ;;  %v5427_v62 = vpop.f32.mrb[47].mxu0  ;;  %5714 = vmatprep.subr.bf16.mxu0 %v9112_v47  ;;  %v6600_v2 = vld [vmem:[%s10020_s1 + $0x58] sm:$0xff]   ;;  %v9234_v9 = vld [vmem:[%s10020_s1 + $0x620] sm:$0xff]  }
 0x25a   :  { %v5449_v59 = vpop.f32.mrb[47].mxu1  ;;  %5736 = vmatprep.subr.bf16.mxu1 %v9118_v3  ;;  %v2859_v12 = vadd.f32 %v5425_v54, %v8940_v15  ;;  %v6594_v15 = vld [vmem:[%s10020_s1 + $0x48] sm:$0xff]   ;;  %v6602_v11 = vld [vmem:[%s10020_s1 + $0x18] sm:$0xff]   ;;  %v6603_v54 = vld [vmem:[%s10020_s1 + $0x60] sm:$0xff]  }
 0x25b   :  { %v6606_v60 = vld [vmem:[%s10020_s1 + $0x68] sm:$0xff]  }
 0x25c   :  { %v9127_v16 = vadd.f32 %v5447_v36, %v2859_v12  ;;  %5715 = vmatpush3.bf16.msra.mxu0 %v9132_v18  ;;  %v6605_v36 = vld [vmem:[%s10020_s1 + $0x20] sm:$0xff]  }
 0x25d   :  { %5737 = vmatpush3.bf16.msra.mxu1 %v9138_v26  ;;  %5716 = vmatprep.subr.bf16.mxu0 %v9144_v63 }
 0x25e   :  { %5738 = vmatprep.subr.bf16.mxu1 %v9150_v44 }
 0x260   :  { %5717 = vmatpush3.bf16.msra.mxu0 %v9160_v21 }
 0x261   :  { %5739 = vmatpush3.bf16.msra.mxu1 %v9166_v22  ;;  %6090 = vmatprep.subr.bf16.mxu0 %v10180_v53 }
 0x262   :  { %5755 = vmatprep.subr.bf16.mxu1 %v6591_v42 }
 0x263   :  { %3569 = vmatmul.mubr.bf16.vlgmr.msra.gmra.mrb[72].mxu0 %v8957_v28  ;;  %v9195_v28 = vld [vmem:[%s10020_s1 + $0x608] sm:$0xff]  }
 0x264   :  { %3609 = vmatmul.mubr.bf16.vlgmr.msra.gmra.mrb[72].mxu1 %v8960_v31  ;;  %6091 = vmatpush3.bf16.msra.mxu0 %v9180_v56  ;;  %v6596_v31 = vld [vmem:[%s10020_s1 + $0x8] sm:$0xff]  }
 0x265   :  { %5756 = vmatpush3.bf16.msra.mxu1 %v6593_v37  ;;  %6092 = vmatprep.subr.bf16.mxu0 %v10180_v53 }
 0x266   :  { %5757 = vmatprep.subr.bf16.mxu1 %v6594_v15  ;;  %6106 = vmatprep.mubr.msk.bf16.mxu0 %vm6779_vm0, %v10180_v53  ;;  %v9247_v15 = vld [vmem:[%s10020_s1 + $0x628] sm:$0xff]  }
 0x267   :  { %3840 = vmatprep.mubr.bf16.mxu1 %v3689_v57 }
 0x268   :  { %6093 = vmatpush3.bf16.msra.mxu0 %v9195_v28 }
 0x269   :  { %5758 = vmatpush3.bf16.msra.mxu1 %v6596_v31  ;;  %6094 = vmatprep.subr.bf16.mxu0 %v10180_v53  ;;  %v6608_v31 = vld [vmem:[%s10020_s1 + $0x28] sm:$0xff]  }
 0x26a   :  { %5759 = vmatprep.subr.bf16.mxu1 %v6597_v32 }
 0x26c   :  { %6095 = vmatpush3.bf16.msra.mxu0 %v9208_v27 }
 0x26d   :  { %5760 = vmatpush3.bf16.msra.mxu1 %v6599_v49  ;;  %6096 = vmatprep.subr.bf16.mxu0 %v10180_v53  ;;  %v9256_v49 = vld [vmem:[%s10021_s2] ss:$0 sm:$0xff] }
 0x26e   :  { %5761 = vmatprep.subr.bf16.mxu1 %v6600_v2  ;;  %10424 = vst [vmem:[#allocation21_spill] sm:$0xff] %v9256_v49 }
 0x270   :  { %6097 = vmatpush3.bf16.msra.mxu0 %v9221_v24 }
 0x271   :  { %5762 = vmatpush3.bf16.msra.mxu1 %v6602_v11  ;;  %6098 = vmatprep.subr.bf16.mxu0 %v10180_v53 }
 0x272   :  { %5763 = vmatprep.subr.bf16.mxu1 %v6603_v54  ;;  %v6609_v54 = vld [vmem:[%s10020_s1 + $0x70] sm:$0xff]  }
 0x274   :  { %6099 = vmatpush3.bf16.msra.mxu0 %v9234_v9 }
 0x275   :  { %5764 = vmatpush3.bf16.msra.mxu1 %v6605_v36  ;;  %6100 = vmatprep.subr.bf16.mxu0 %v10180_v53 }
 0x276   :  { %5765 = vmatprep.subr.bf16.mxu1 %v6606_v60  ;;  %v5467_v62 = vpop.f32.mrb[48].mxu0  ;;  %v3674_v60 = vcombine.high %v9125_v14, %v9125_v14  ;;  %v6611_v14 = vld [vmem:[%s10020_s1 + $0x30] sm:$0xff]  }
 0x277   :  { %v2978_v59 = vpop.f32.mrb[48].mxu1  ;;  %v5468_v12 = vpop.f32.mrb[49].mxu0 }
 0x278   :  { %v6088_v42 = vpop.f32.mrb[49].mxu1  ;;  %v5469_v57 = vadd.f32 %v5468_v12, %v5467_v62  ;;  %v5470_v37 = vpop.f32.mrb[50].mxu0  ;;  %6101 = vmatpush3.bf16.msra.mxu0 %v9247_v15  ;;  %v9268_v62 = vld [vmem:[%s10019_s0 + $0x9e] sm:$0xff]  ;;  %v2307_v12 = vmul.f32 %v9256_v49, %v8750_v23 }
 0x279   :  { %5766 = vmatpush3.bf16.msra.mxu1 %v6608_v31  ;;  %v2981_v32 = vpop.f32.mrb[50].mxu1  ;;  %v5471_v2 = vpop.f32.mrb[51].mxu0  ;;  %6102 = vmatprep.subr.bf16.mxu0 %v10180_v53  ;;  %v9275_v37 = vld [vmem:[%s10020_s1 + $0x630] sm:$0xff]   ;;  %v6612_v23 = vld [vmem:[%s10020_s1 + $0x78] sm:$0xff]   ;;  %v9296_v31 = vrot.slane %v9268_v62, %v6935_v41 }
 0x27a   :  { %v6089_v11 = vpop.f32.mrb[51].mxu1  ;;  %5767 = vmatprep.subr.bf16.mxu1 %v6609_v54  ;;  %v2939_v36 = vadd.f32 %v5469_v57, %v9127_v16  ;;  %v9284_v16 = vld [vmem:[%s10022_s3] ss:$0 sm:$0xff]  ;;  %v9292_v57 = vrot.slane %v3674_v60, %v6935_v41  ;;  %v6614_v54 = vld [vmem:[%s10020_s1 + $0x38] sm:$0xff]  }
 0x27b   :  { %10425 = vst [vmem:[#allocation6_spill] sm:$0xff] %v9284_v16  ;;  %v9299_v32 = vadd.f32 %v9284_v16, %v2307_v12  ;;  %v9307_v11 = vld [vmem:[%s10020_s1 + $0x638] sm:$0xff]   ;;  %v6615_v60 = vld [vmem:[%s10020_s1 + $0xc0] sm:$0xff]  }
 0x27c   :  { %v2979_v42 = vadd.f32 %v2978_v59, %v2939_v36  ;;  %6103 = vmatpush3.bf16.msra.mxu0 %v9275_v37  ;;  %v4894_v36 = vld.sshfl [vmem:[%s10019_s0 + $0x94] sm:$0x3 pattern:$0x76325410]  ;;  %v6616_v12 = vld [vmem:[%s10020_s1 + $0x140] sm:$0xff]  }
 0x27d   :  { %5768 = vmatpush3.bf16.msra.mxu1 %v6611_v14  ;;  %6104 = vmatprep.subr.bf16.mxu0 %v10180_v53  ;;  %10426 = vst [vmem:[#allocation23_spill] sm:$0xff] %v9299_v32  ;;  %v3690_v14 = vcombine.high %v9292_v57, %v9292_v57 }
 0x27e   :  { %5769 = vmatprep.subr.bf16.mxu1 %v6612_v23  ;;  %v2984_v59 = vmul.f32 %v9256_v49, %v2979_v42  ;;  %v3706_v23 = vcombine.high %v9296_v31, %v9296_v31 }
 0x280   :  { %v9302_v2 = vadd.f32 %v9284_v16, %v2984_v59  ;;  %6105 = vmatpush3.bf16.msra.mxu0 %v9307_v11  ;;  %v6617_v59 = vld [vmem:[%s10020_s1 + $0x80] sm:$0xff]  }
 0x281   :  { %5770 = vmatpush3.bf16.msra.mxu1 %v6614_v54  ;;  %5777 = vmatprep.subr.bf16.mxu0 %v6615_v60  ;;  %v6618_v54 = vld [vmem:[%s10020_s1 + $0x100] sm:$0xff]   ;;  %v6619_v60 = vld [vmem:[%s10020_s1 + $0xc8] sm:$0xff]  }
 0x282   :  { %10427 = vst [vmem:[#allocation7_spill] sm:$0xff] %v9302_v2  ;;  %5799 = vmatprep.subr.bf16.mxu1 %v6616_v12  ;;  %v6622_v12 = vld [vmem:[%s10020_s1 + $0x108] sm:$0xff]  }
 0x283   :  { %6107 = vmatmul.mubr.bf16.vlgmr.msra.gmra.mrb[76].mxu0 %v4894_v36  ;;  %v6620_v36 = vld [vmem:[%s10020_s1 + $0x148] sm:$0xff]  }
 0x284   :  { %3841 = vmatmul.mubr.bf16.vlgmr.msra.gmra.mrb[76].mxu1 %v9155_v40  ;;  %5778 = vmatpush3.bf16.msra.mxu0 %v6617_v59  ;;  %v6621_v40 = vld [vmem:[%s10020_s1 + $0x88] sm:$0xff]   ;;  %v6623_v59 = vld [vmem:[%s10020_s1 + $0xd0] sm:$0xff]  }
 0x285   :  { %5800 = vmatpush3.bf16.msra.mxu1 %v6618_v54  ;;  %5779 = vmatprep.subr.bf16.mxu0 %v6619_v60  ;;  %v6626_v54 = vld [vmem:[%s10020_s1 + $0x110] sm:$0xff]   ;;  %v6627_v60 = vld [vmem:[%s10020_s1 + $0xd8] sm:$0xff]  }
 0x286   :  { %5801 = vmatprep.subr.bf16.mxu1 %v6620_v36  ;;  %3880 = vmatprep.mubr.bf16.mxu0 %v3690_v14  ;;  %v6624_v14 = vld [vmem:[%s10020_s1 + $0x150] sm:$0xff]   ;;  %v6628_v36 = vld [vmem:[%s10020_s1 + $0x158] sm:$0xff]  }
 0x287   :  { %3920 = vmatprep.mubr.bf16.mxu1 %v3706_v23  ;;  %v6625_v23 = vld [vmem:[%s10020_s1 + $0x90] sm:$0xff]  }
 0x288   :  { %5780 = vmatpush3.bf16.msra.mxu0 %v6621_v40  ;;  %v6629_v40 = vld [vmem:[%s10020_s1 + $0x98] sm:$0xff]  }
 0x289   :  { %5802 = vmatpush3.bf16.msra.mxu1 %v6622_v12  ;;  %5781 = vmatprep.subr.bf16.mxu0 %v6623_v59  ;;  %v6630_v12 = vld [vmem:[%s10020_s1 + $0x118] sm:$0xff]   ;;  %v6631_v59 = vld [vmem:[%s10020_s1 + $0xe0] sm:$0xff]  }
 0x28a   :  { %5803 = vmatprep.subr.bf16.mxu1 %v6624_v14  ;;  %v6632_v14 = vld [vmem:[%s10020_s1 + $0x160] sm:$0xff]  }
 0x28c   :  { %5782 = vmatpush3.bf16.msra.mxu0 %v6625_v23  ;;  %v6633_v23 = vld [vmem:[%s10020_s1 + $0xa0] sm:$0xff]  }
 0x28d   :  { %5804 = vmatpush3.bf16.msra.mxu1 %v6626_v54  ;;  %5783 = vmatprep.subr.bf16.mxu0 %v6627_v60  ;;  %v6634_v54 = vld [vmem:[%s10020_s1 + $0x120] sm:$0xff]   ;;  %v6635_v60 = vld [vmem:[%s10020_s1 + $0xe8] sm:$0xff]  }
 0x28e   :  { %5805 = vmatprep.subr.bf16.mxu1 %v6628_v36  ;;  %v6636_v36 = vld [vmem:[%s10020_s1 + $0x168] sm:$0xff]  }
 0x290   :  { %5784 = vmatpush3.bf16.msra.mxu0 %v6629_v40 }
 0x291   :  { %5806 = vmatpush3.bf16.msra.mxu1 %v6630_v12  ;;  %5785 = vmatprep.subr.bf16.mxu0 %v6631_v59 }
 0x292   :  { %5807 = vmatprep.subr.bf16.mxu1 %v6632_v14 }
 0x294   :  { %5786 = vmatpush3.bf16.msra.mxu0 %v6633_v23 }
 0x295   :  { %5808 = vmatpush3.bf16.msra.mxu1 %v6634_v54  ;;  %5787 = vmatprep.subr.bf16.mxu0 %v6635_v60  ;;  %v6637_v54 = vld [vmem:[%s10020_s1 + $0xa8] sm:$0xff]  }
 0x296   :  { %5809 = vmatprep.subr.bf16.mxu1 %v6636_v36  ;;  %v5498_v40 = vpop.f32.mrb[52].mxu0  ;;  %v6638_v60 = vld [vmem:[%s10020_s1 + $0x128] sm:$0xff]   ;;  %v6639_v36 = vld [vmem:[%s10020_s1 + $0xf0] sm:$0xff]  }
 0x297   :  { %v5520_v12 = vpop.f32.mrb[52].mxu1  ;;  %v5499_v59 = vpop.f32.mrb[53].mxu0 }
 0x298   :  { %v5521_v14 = vpop.f32.mrb[53].mxu1  ;;  %v5500_v23 = vadd.f32 %v5499_v59, %v5498_v40  ;;  %v5501_v2 = vpop.f32.mrb[54].mxu0  ;;  %5788 = vmatpush3.bf16.msra.mxu0 %v6637_v54  ;;  %v3691_v59 = vcombine.high %v9268_v62, %v9268_v62  ;;  %v6644_v62 = vld [vmem:[%s10020_s1 + $0x178] sm:$0xff]  }
 0x299   :  { %v5522_v42 = vadd.f32 %v5521_v14, %v5520_v12  ;;  %5810 = vmatpush3.bf16.msra.mxu1 %v6638_v60  ;;  %v5523_v32 = vpop.f32.mrb[54].mxu1  ;;  %v5502_v16 = vpop.f32.mrb[55].mxu0  ;;  %5789 = vmatprep.subr.bf16.mxu0 %v6639_v36  ;;  %v6640_v2 = vld [vmem:[%s10020_s1 + $0x170] sm:$0xff]   ;;  %v6645_v60 = vld [vmem:[%s10020_s1 + $0xb8] sm:$0xff]  }
 0x29a   :  { %v5524_v40 = vpop.f32.mrb[55].mxu1  ;;  %5811 = vmatprep.subr.bf16.mxu1 %v6640_v2  ;;  %v9408_v16 = vld [vmem:[%s10019_s0 + $0xa6] sm:$0xff]  ;;  %v6641_v32 = vld [vmem:[%s10020_s1 + $0xb0] sm:$0xff]   ;;  %v6646_v36 = vld [vmem:[%s10020_s1 + $0x138] sm:$0xff]  }
 0x29b   :  { %v9401_v12 = vadd.f32 %v5522_v42, %v5500_v23  ;;  %v6642_v14 = vld [vmem:[%s10020_s1 + $0x130] sm:$0xff]   ;;  %v6643_v42 = vld [vmem:[%s10020_s1 + $0xf8] sm:$0xff]   ;;  %v9423_v23 = vrot.slane %v3691_v59, %v6935_v41  ;;  %v9427_v54 = vrot.slane %v9408_v16, %v6935_v41  ;;  %v6647_v40 = vld [vmem:[%s10020_s1 + $0x1c0] sm:$0xff]  }
 0x29c   :  { %5790 = vmatpush3.bf16.msra.mxu0 %v6641_v32  ;;  %v6648_v2 = vld [vmem:[%s10020_s1 + $0x240] sm:$0xff]  }
 0x29d   :  { %5812 = vmatpush3.bf16.msra.mxu1 %v6642_v14  ;;  %5791 = vmatprep.subr.bf16.mxu0 %v6643_v42  ;;  %v3707_v59 = vcombine.high %v9423_v23, %v9423_v23  ;;  %v3723_v32 = vcombine.high %v9427_v54, %v9427_v54  ;;  %v6649_v14 = vld [vmem:[%s10020_s1 + $0x180] sm:$0xff]  }
 0x29e   :  { %5813 = vmatprep.subr.bf16.mxu1 %v6644_v62  ;;  %v6650_v42 = vld [vmem:[%s10020_s1 + $0x200] sm:$0xff]   ;;  %v6651_v62 = vld [vmem:[%s10020_s1 + $0x1c8] sm:$0xff]  }
 0x2a0   :  { %5792 = vmatpush3.bf16.msra.mxu0 %v6645_v60  ;;  %v6654_v60 = vld [vmem:[%s10020_s1 + $0x208] sm:$0xff]  }
 0x2a1   :  { %5814 = vmatpush3.bf16.msra.mxu1 %v6646_v36  ;;  %5821 = vmatprep.subr.bf16.mxu0 %v6647_v40  ;;  %v6655_v36 = vld [vmem:[%s10020_s1 + $0x1d0] sm:$0xff]  }
 0x2a2   :  { %5843 = vmatprep.subr.bf16.mxu1 %v6648_v2  ;;  %v6656_v40 = vld [vmem:[%s10020_s1 + $0x250] sm:$0xff]  }
 0x2a3   :  { %3881 = vmatmul.mubr.bf16.vlgmr.msra.gmra.mrb[80].mxu0 %v9292_v57  ;;  %v6652_v57 = vld [vmem:[%s10020_s1 + $0x248] sm:$0xff]   ;;  %v6657_v2 = vld [vmem:[%s10020_s1 + $0x190] sm:$0xff]  }
 0x2a4   :  { %3921 = vmatmul.mubr.bf16.vlgmr.msra.gmra.mrb[80].mxu1 %v9296_v31  ;;  %5822 = vmatpush3.bf16.msra.mxu0 %v6649_v14  ;;  %v6653_v31 = vld [vmem:[%s10020_s1 + $0x188] sm:$0xff]   ;;  %v6660_v14 = vld [vmem:[%s10020_s1 + $0x258] sm:$0xff]  }
 0x2a5   :  { %5844 = vmatpush3.bf16.msra.mxu1 %v6650_v42  ;;  %5823 = vmatprep.subr.bf16.mxu0 %v6651_v62  ;;  %v6661_v42 = vld [vmem:[%s10020_s1 + $0x198] sm:$0xff]  }
 0x2a6   :  { %5845 = vmatprep.subr.bf16.mxu1 %v6652_v57  ;;  %3960 = vmatprep.mubr.bf16.mxu0 %v3707_v59  ;;  %v6658_v59 = vld [vmem:[%s10020_s1 + $0x210] sm:$0xff]   ;;  %v6662_v62 = vld [vmem:[%s10020_s1 + $0x218] sm:$0xff]   ;;  %v6663_v57 = vld [vmem:[%s10020_s1 + $0x1e0] sm:$0xff]  }
 0x2a7   :  { %4000 = vmatprep.mubr.bf16.mxu1 %v3723_v32  ;;  %v6659_v32 = vld [vmem:[%s10020_s1 + $0x1d8] sm:$0xff]  }
 0x2a8   :  { %5824 = vmatpush3.bf16.msra.mxu0 %v6653_v31  ;;  %v6664_v31 = vld [vmem:[%s10020_s1 + $0x260] sm:$0xff]  }
 0x2a9   :  { %5846 = vmatpush3.bf16.msra.mxu1 %v6654_v60  ;;  %5825 = vmatprep.subr.bf16.mxu0 %v6655_v36  ;;  %v6665_v60 = vld [vmem:[%s10020_s1 + $0x1a0] sm:$0xff]  }
 0x2aa   :  { %5847 = vmatprep.subr.bf16.mxu1 %v6656_v40  ;;  %v6666_v36 = vld [vmem:[%s10020_s1 + $0x220] sm:$0xff]   ;;  %v6667_v40 = vld [vmem:[%s10020_s1 + $0x1e8] sm:$0xff]  }
 0x2ac   :  { %5826 = vmatpush3.bf16.msra.mxu0 %v6657_v2  ;;  %v6668_v2 = vld [vmem:[%s10020_s1 + $0x268] sm:$0xff]  }
 0x2ad   :  { %5848 = vmatpush3.bf16.msra.mxu1 %v6658_v59  ;;  %5827 = vmatprep.subr.bf16.mxu0 %v6659_v32 }
 0x2ae   :  { %5849 = vmatprep.subr.bf16.mxu1 %v6660_v14 }
 0x2b0   :  { %5828 = vmatpush3.bf16.msra.mxu0 %v6661_v42 }
 0x2b1   :  { %5850 = vmatpush3.bf16.msra.mxu1 %v6662_v62  ;;  %5829 = vmatprep.subr.bf16.mxu0 %v6663_v57 }
 0x2b2   :  { %5851 = vmatprep.subr.bf16.mxu1 %v6664_v31  ;;  %v6669_v31 = vld [vmem:[%s10020_s1 + $0x1a8] sm:$0xff]  }
 0x2b4   :  { %5830 = vmatpush3.bf16.msra.mxu0 %v6665_v60 }
 0x2b5   :  { %5852 = vmatpush3.bf16.msra.mxu1 %v6666_v36  ;;  %5831 = vmatprep.subr.bf16.mxu0 %v6667_v40  ;;  %v6670_v36 = vld [vmem:[%s10020_s1 + $0x228] sm:$0xff]  }
 0x2b6   :  { %5853 = vmatprep.subr.bf16.mxu1 %v6668_v2  ;;  %v5542_v59 = vpop.f32.mrb[56].mxu0  ;;  %v6671_v2 = vld [vmem:[%s10020_s1 + $0x1f0] sm:$0xff]  }
 0x2b7   :  { %v5564_v32 = vpop.f32.mrb[56].mxu1  ;;  %v5543_v14 = vpop.f32.mrb[57].mxu0 }
 0x2b8   :  { %v5565_v42 = vpop.f32.mrb[57].mxu1  ;;  %v5544_v62 = vadd.f32 %v5543_v14, %v5542_v59  ;;  %v5545_v57 = vpop.f32.mrb[58].mxu0  ;;  %5832 = vmatpush3.bf16.msra.mxu0 %v6669_v31  ;;  %v6672_v14 = vld [vmem:[%s10020_s1 + $0x270] sm:$0xff]  }
 0x2b9   :  { %v5566_v60 = vadd.f32 %v5565_v42, %v5564_v32  ;;  %5854 = vmatpush3.bf16.msra.mxu1 %v6670_v36  ;;  %v5567_v40 = vpop.f32.mrb[58].mxu1  ;;  %v5546_v49 = vpop.f32.mrb[59].mxu0  ;;  %5833 = vmatprep.subr.bf16.mxu0 %v6671_v2  ;;  %v3708_v42 = vcombine.high %v9408_v16, %v9408_v16  ;;  %v6673_v31 = vld [vmem:[%s10020_s1 + $0x1b0] sm:$0xff]   ;;  %v6676_v16 = vld [vmem:[%s10020_s1 + $0x278] sm:$0xff]  }
 0x2ba   :  { %v5568_v59 = vpop.f32.mrb[59].mxu1  ;;  %5855 = vmatprep.subr.bf16.mxu1 %v6672_v14  ;;  %v3251_v32 = vadd.f32 %v5544_v62, %v9401_v12  ;;  %v9525_v49 = vld [vmem:[%s10019_s0 + $0xae] sm:$0xff]  ;;  %v6675_v12 = vld [vmem:[%s10020_s1 + $0x1f8] sm:$0xff]   ;;  %v6680_v14 = vld [vmem:[%s10020_s1 + $0x340] sm:$0xff]  }
 0x2bb   :  { %v6674_v36 = vld [vmem:[%s10020_s1 + $0x230] sm:$0xff]   ;;  %v9542_v62 = vrot.slane %v3708_v42, %v6935_v41  ;;  %v6677_v40 = vld [vmem:[%s10020_s1 + $0x1b8] sm:$0xff]   ;;  %v6679_v59 = vld [vmem:[%s10020_s1 + $0x2c0] sm:$0xff]  }
 0x2bc   :  { %v9527_v57 = vadd.f32 %v5566_v60, %v3251_v32  ;;  %5834 = vmatpush3.bf16.msra.mxu0 %v6673_v31  ;;  %v9546_v60 = vrot.slane %v9525_v49, %v6935_v41  ;;  %v6678_v2 = vld [vmem:[%s10020_s1 + $0x238] sm:$0xff]   ;;  %v6681_v31 = vld [vmem:[%s10020_s1 + $0x280] sm:$0xff]  }
 0x2bd   :  { %5856 = vmatpush3.bf16.msra.mxu1 %v6674_v36  ;;  %5835 = vmatprep.subr.bf16.mxu0 %v6675_v12  ;;  %v3724_v32 = vcombine.high %v9542_v62, %v9542_v62  ;;  %v6682_v36 = vld [vmem:[%s10020_s1 + $0x300] sm:$0xff]   ;;  %v6683_v12 = vld [vmem:[%s10020_s1 + $0x2c8] sm:$0xff]  }
 0x2be   :  { %5857 = vmatprep.subr.bf16.mxu1 %v6676_v16  ;;  %v3740_v42 = vcombine.high %v9546_v60, %v9546_v60  ;;  %v6686_v16 = vld [vmem:[%s10020_s1 + $0x308] sm:$0xff]  }
 0x2c0   :  { %5836 = vmatpush3.bf16.msra.mxu0 %v6677_v40  ;;  %v6687_v40 = vld [vmem:[%s10020_s1 + $0x2d0] sm:$0xff]  }
 0x2c1   :  { %5858 = vmatpush3.bf16.msra.mxu1 %v6678_v2  ;;  %5865 = vmatprep.subr.bf16.mxu0 %v6679_v59  ;;  %v6688_v2 = vld [vmem:[%s10020_s1 + $0x350] sm:$0xff]  }
 0x2c2   :  { %5887 = vmatprep.subr.bf16.mxu1 %v6680_v14  ;;  %v6689_v59 = vld [vmem:[%s10020_s1 + $0x290] sm:$0xff]  }
 0x2c3   :  { %3961 = vmatmul.mubr.bf16.vlgmr.msra.gmra.mrb[84].mxu0 %v9423_v23  ;;  %v6684_v23 = vld [vmem:[%s10020_s1 + $0x348] sm:$0xff]   ;;  %v6690_v14 = vld [vmem:[%s10020_s1 + $0x310] sm:$0xff]  }
 0x2c4   :  { %4001 = vmatmul.mubr.bf16.vlgmr.msra.gmra.mrb[84].mxu1 %v9427_v54  ;;  %5866 = vmatpush3.bf16.msra.mxu0 %v6681_v31  ;;  %v6685_v54 = vld [vmem:[%s10020_s1 + $0x288] sm:$0xff]   ;;  %v6693_v31 = vld [vmem:[%s10020_s1 + $0x298] sm:$0xff]  }
 0x2c5   :  { %5888 = vmatpush3.bf16.msra.mxu1 %v6682_v36  ;;  %5867 = vmatprep.subr.bf16.mxu0 %v6683_v12  ;;  %v6694_v36 = vld [vmem:[%s10020_s1 + $0x318] sm:$0xff]   ;;  %v6695_v12 = vld [vmem:[%s10020_s1 + $0x2e0] sm:$0xff]  }
 0x2c6   :  { %5889 = vmatprep.subr.bf16.mxu1 %v6684_v23  ;;  %4040 = vmatprep.mubr.bf16.mxu0 %v3724_v32  ;;  %v6691_v32 = vld [vmem:[%s10020_s1 + $0x2d8] sm:$0xff]   ;;  %v6696_v23 = vld [vmem:[%s10020_s1 + $0x360] sm:$0xff]  }
 0x2c7   :  { %4080 = vmatprep.mubr.bf16.mxu1 %v3740_v42  ;;  %v6692_v42 = vld [vmem:[%s10020_s1 + $0x358] sm:$0xff]  }
 0x2c8   :  { %5868 = vmatpush3.bf16.msra.mxu0 %v6685_v54  ;;  %v6697_v54 = vld [vmem:[%s10020_s1 + $0x2a0] sm:$0xff]  }
 0x2c9   :  { %5890 = vmatpush3.bf16.msra.mxu1 %v6686_v16  ;;  %5869 = vmatprep.subr.bf16.mxu0 %v6687_v40  ;;  %v6698_v16 = vld [vmem:[%s10020_s1 + $0x320] sm:$0xff]   ;;  %v6699_v40 = vld [vmem:[%s10020_s1 + $0x2e8] sm:$0xff]  }
 0x2ca   :  { %5891 = vmatprep.subr.bf16.mxu1 %v6688_v2  ;;  %v6700_v2 = vld [vmem:[%s10020_s1 + $0x368] sm:$0xff]  }
 0x2cc   :  { %5870 = vmatpush3.bf16.msra.mxu0 %v6689_v59 }
 0x2cd   :  { %5892 = vmatpush3.bf16.msra.mxu1 %v6690_v14  ;;  %5871 = vmatprep.subr.bf16.mxu0 %v6691_v32 }
 0x2ce   :  { %5893 = vmatprep.subr.bf16.mxu1 %v6692_v42 }
 0x2d0   :  { %5872 = vmatpush3.bf16.msra.mxu0 %v6693_v31 }
 0x2d1   :  { %5894 = vmatpush3.bf16.msra.mxu1 %v6694_v36  ;;  %5873 = vmatprep.subr.bf16.mxu0 %v6695_v12  ;;  %v6701_v12 = vld [vmem:[%s10020_s1 + $0x2a8] sm:$0xff]  }
 0x2d2   :  { %5895 = vmatprep.subr.bf16.mxu1 %v6696_v23 }
 0x2d4   :  { %5874 = vmatpush3.bf16.msra.mxu0 %v6697_v54  ;;  %v6702_v54 = vld [vmem:[%s10020_s1 + $0x328] sm:$0xff]  }
 0x2d5   :  { %5896 = vmatpush3.bf16.msra.mxu1 %v6698_v16  ;;  %5875 = vmatprep.subr.bf16.mxu0 %v6699_v40 }
 0x2d6   :  { %5897 = vmatprep.subr.bf16.mxu1 %v6700_v2  ;;  %v5586_v59 = vpop.f32.mrb[60].mxu0  ;;  %v6703_v2 = vld [vmem:[%s10020_s1 + $0x2f0] sm:$0xff]  }
 0x2d7   :  { %v5608_v14 = vpop.f32.mrb[60].mxu1  ;;  %v5587_v32 = vpop.f32.mrb[61].mxu0 }
 0x2d8   :  { %v5609_v42 = vpop.f32.mrb[61].mxu1  ;;  %v5588_v31 = vadd.f32 %v5587_v32, %v5586_v59  ;;  %v5589_v36 = vpop.f32.mrb[62].mxu0  ;;  %5876 = vmatpush3.bf16.msra.mxu0 %v6701_v12  ;;  %v6704_v32 = vld [vmem:[%s10020_s1 + $0x370] sm:$0xff]  }
 0x2d9   :  { %v5610_v23 = vadd.f32 %v5609_v42, %v5608_v14  ;;  %5898 = vmatpush3.bf16.msra.mxu1 %v6702_v54  ;;  %v5611_v16 = vpop.f32.mrb[62].mxu1  ;;  %v5590_v40 = vpop.f32.mrb[63].mxu0  ;;  %5877 = vmatprep.subr.bf16.mxu0 %v6703_v2  ;;  %v3725_v42 = vcombine.high %v9525_v49, %v9525_v49  ;;  %v9644_v36 = vld [vmem:[%s10019_s0 + $0xb6] sm:$0xff] }
 0x2da   :  { %v5612_v59 = vpop.f32.mrb[63].mxu1  ;;  %5899 = vmatprep.subr.bf16.mxu1 %v6704_v32  ;;  %v3331_v14 = vadd.f32 %v5588_v31, %v9527_v57  ;;  %v6705_v54 = vld [vmem:[%s10020_s1 + $0x2b0] sm:$0xff]   ;;  %v6707_v49 = vld [vmem:[%s10020_s1 + $0x2f8] sm:$0xff]   ;;  %v6712_v32 = vld [vmem:[%s10020_s1 + $0x440] sm:$0xff]  }
 0x2db   :  { %v6706_v16 = vld [vmem:[%s10020_s1 + $0x330] sm:$0xff]   ;;  %v6708_v57 = vld [vmem:[%s10020_s1 + $0x378] sm:$0xff]   ;;  %v9661_v31 = vrot.slane %v3725_v42, %v6935_v41  ;;  %v6711_v59 = vld [vmem:[%s10020_s1 + $0x3c0] sm:$0xff]  }
 0x2dc   :  { %v9646_v12 = vadd.f32 %v5610_v23, %v3331_v14  ;;  %5878 = vmatpush3.bf16.msra.mxu0 %v6705_v54  ;;  %v9665_v23 = vrot.slane %v9644_v36, %v6935_v41  ;;  %v6709_v40 = vld [vmem:[%s10020_s1 + $0x2b8] sm:$0xff]   ;;  %v6713_v54 = vld [vmem:[%s10020_s1 + $0x380] sm:$0xff]  }
 0x2dd   :  { %5900 = vmatpush3.bf16.msra.mxu1 %v6706_v16  ;;  %5879 = vmatprep.subr.bf16.mxu0 %v6707_v49  ;;  %v6710_v2 = vld [vmem:[%s10020_s1 + $0x338] sm:$0xff]   ;;  %v3741_v14 = vcombine.high %v9661_v31, %v9661_v31  ;;  %v6714_v16 = vld [vmem:[%s10020_s1 + $0x400] sm:$0xff]   ;;  %v6715_v49 = vld [vmem:[%s10020_s1 + $0x3c8] sm:$0xff]  }
 0x2de   :  { %5901 = vmatprep.subr.bf16.mxu1 %v6708_v57  ;;  %v3757_v42 = vcombine.high %v9665_v23, %v9665_v23  ;;  %v6718_v57 = vld [vmem:[%s10020_s1 + $0x408] sm:$0xff]  }
 0x2e0   :  { %5880 = vmatpush3.bf16.msra.mxu0 %v6709_v40  ;;  %v6719_v40 = vld [vmem:[%s10020_s1 + $0x3d0] sm:$0xff]  }
 0x2e1   :  { %5902 = vmatpush3.bf16.msra.mxu1 %v6710_v2  ;;  %5909 = vmatprep.subr.bf16.mxu0 %v6711_v59  ;;  %v6720_v2 = vld [vmem:[%s10020_s1 + $0x450] sm:$0xff]  }
 0x2e2   :  { %5931 = vmatprep.subr.bf16.mxu1 %v6712_v32  ;;  %v6721_v59 = vld [vmem:[%s10020_s1 + $0x390] sm:$0xff]  }
 0x2e3   :  { %4041 = vmatmul.mubr.bf16.vlgmr.msra.gmra.mrb[88].mxu0 %v9542_v62  ;;  %v6716_v62 = vld [vmem:[%s10020_s1 + $0x448] sm:$0xff]   ;;  %v6722_v32 = vld [vmem:[%s10020_s1 + $0x410] sm:$0xff]  }
 0x2e4   :  { %4081 = vmatmul.mubr.bf16.vlgmr.msra.gmra.mrb[88].mxu1 %v9546_v60  ;;  %5910 = vmatpush3.bf16.msra.mxu0 %v6713_v54  ;;  %v6717_v60 = vld [vmem:[%s10020_s1 + $0x388] sm:$0xff]   ;;  %v6725_v54 = vld [vmem:[%s10020_s1 + $0x398] sm:$0xff]  }
 0x2e5   :  { %5932 = vmatpush3.bf16.msra.mxu1 %v6714_v16  ;;  %5911 = vmatprep.subr.bf16.mxu0 %v6715_v49  ;;  %v6726_v16 = vld [vmem:[%s10020_s1 + $0x418] sm:$0xff]   ;;  %v6727_v49 = vld [vmem:[%s10020_s1 + $0x3e0] sm:$0xff]  }
 0x2e6   :  { %5933 = vmatprep.subr.bf16.mxu1 %v6716_v62  ;;  %4120 = vmatprep.mubr.bf16.mxu0 %v3741_v14  ;;  %v6723_v14 = vld [vmem:[%s10020_s1 + $0x3d8] sm:$0xff]   ;;  %v6728_v62 = vld [vmem:[%s10020_s1 + $0x3a0] sm:$0xff]  }
 0x2e7   :  { %4160 = vmatprep.mubr.bf16.mxu1 %v3757_v42  ;;  %v6724_v42 = vld [vmem:[%s10020_s1 + $0x458] sm:$0xff]  }
 0x2e8   :  { %5912 = vmatpush3.bf16.msra.mxu0 %v6717_v60  ;;  %v6729_v60 = vld [vmem:[%s10020_s1 + $0x3e8] sm:$0xff]  }
 0x2e9   :  { %5934 = vmatpush3.bf16.msra.mxu1 %v6718_v57  ;;  %5913 = vmatprep.subr.bf16.mxu0 %v6719_v40 }
 0x2ea   :  { %5935 = vmatprep.subr.bf16.mxu1 %v6720_v2 }
 0x2ec   :  { %5914 = vmatpush3.bf16.msra.mxu0 %v6721_v59 }
 0x2ed   :  { %5936 = vmatpush3.bf16.msra.mxu1 %v6722_v32  ;;  %5915 = vmatprep.subr.bf16.mxu0 %v6723_v14  ;;  %v6730_v14 = vld [vmem:[%s10020_s1 + $0x3a8] sm:$0xff]  }
 0x2ee   :  { %5937 = vmatprep.subr.bf16.mxu1 %v6724_v42 }
 0x2f0   :  { %5916 = vmatpush3.bf16.msra.mxu0 %v6725_v54 }
 0x2f1   :  { %5938 = vmatpush3.bf16.msra.mxu1 %v6726_v16  ;;  %5917 = vmatprep.subr.bf16.mxu0 %v6727_v49 }
 0x2f2   :  { %5939 = vmatprep.subr.bf16.mxu1 %v8905_v7 }
 0x2f4   :  { %5918 = vmatpush3.bf16.msra.mxu0 %v6728_v62  ;;  %v3742_v62 = vcombine.high %v9644_v36, %v9644_v36 }
 0x2f5   :  { %5940 = vmatpush3.bf16.msra.mxu1 %v8912_v5  ;;  %5919 = vmatprep.subr.bf16.mxu0 %v6729_v60  ;;  %v9753_v60 = vld [vmem:[%s10019_s0 + $0xbe] sm:$0xff] }
 0x2f6   :  { %5941 = vmatprep.subr.bf16.mxu1 %v8919_v10  ;;  %v5630_v57 = vpop.f32.mrb[64].mxu0  ;;  %v6731_v10 = vld [vmem:[%s10020_s1 + $0x3f0] sm:$0xff]   ;;  %v9766_v36 = vrot.slane %v3742_v62, %v6935_v41 }
 0x2f7   :  { %v5652_v40 = vpop.f32.mrb[64].mxu1  ;;  %v5631_v2 = vpop.f32.mrb[65].mxu0 }
 0x2f8   :  { %v5653_v59 = vpop.f32.mrb[65].mxu1  ;;  %v5632_v32 = vadd.f32 %v5631_v2, %v5630_v57  ;;  %v5633_v7 = vpop.f32.mrb[66].mxu0  ;;  %5920 = vmatpush3.bf16.msra.mxu0 %v6730_v14  ;;  %v6732_v57 = vld [vmem:[%s10020_s1 + $0x3b0] sm:$0xff]  }
 0x2f9   :  { %v5654_v42 = vadd.f32 %v5653_v59, %v5652_v40  ;;  %5942 = vmatpush3.bf16.msra.mxu1 %v8929_v20  ;;  %v5655_v5 = vpop.f32.mrb[66].mxu1  ;;  %v5634_v54 = vpop.f32.mrb[67].mxu0  ;;  %5921 = vmatprep.subr.bf16.mxu0 %v6731_v10  ;;  %v6734_v40 = vld [vmem:[%s10020_s1 + $0x3b8] sm:$0xff]  }
 0x2fa   :  { %v5656_v16 = vpop.f32.mrb[67].mxu1  ;;  %5943 = vmatprep.subr.bf16.mxu1 %v8936_v50  ;;  %v3411_v49 = vadd.f32 %v5632_v32, %v9646_v12  ;;  %v6733_v50 = vld [vmem:[%s10020_s1 + $0x3f8] sm:$0xff]   ;;  %v9770_v12 = vrot.slane %v9753_v60, %v6935_v41 }
 0x2fc   :  { %v9755_v20 = vadd.f32 %v5654_v42, %v3411_v49  ;;  %5922 = vmatpush3.bf16.msra.mxu0 %v6732_v57  ;;  %v3774_v2 = vcombine.high %v9770_v12, %v9770_v12  ;;  %v6746_v42 = vld [vmem:[%s10020_s1 + $0x4a8] sm:$0xff]   ;;  %v3759_v49 = vcombine.high %v9753_v60, %v9753_v60  ;;  %v6749_v57 = vld [vmem:[%s10020_s1 + $0x4f8] sm:$0xff]  }
 0x2fd   :  { %5944 = vmatpush3.bf16.msra.mxu1 %v8945_v17  ;;  %5923 = vmatprep.subr.bf16.mxu0 %v6733_v50  ;;  %v6735_v17 = vld [vmem:[%s10020_s1 + $0x4c0] sm:$0xff]   ;;  %v6750_v60 = vld [vmem:[%s10020_s1 + $0x4b8] sm:$0xff]  }
 0x2fe   :  { %5945 = vmatprep.subr.bf16.mxu1 %v8952_v19  ;;  %v3758_v19 = vcombine.high %v9766_v36, %v9766_v36 }
 0x300   :  { %5924 = vmatpush3.bf16.msra.mxu0 %v6734_v40  ;;  %v10431_v40 = vld [vmem:[#allocation7_spill] sm:$0xff] }
 0x301   :  { %5946 = vmatpush3.bf16.msra.mxu1 %v8965_v25  ;;  %5953 = vmatprep.subr.bf16.mxu0 %v6735_v17  ;;  %v6736_v25 = vld [vmem:[%s10020_s1 + $0x480] sm:$0xff]  }
 0x302   :  { %5975 = vmatprep.subr.bf16.mxu1 %v8972_v30  ;;  %v6737_v30 = vld [vmem:[%s10020_s1 + $0x4c8] sm:$0xff]  }
 0x303   :  { %4121 = vmatmul.mubr.bf16.vlgmr.msra.gmra.mrb[92].mxu0 %v9661_v31  ;;  %v6738_v31 = vld [vmem:[%s10020_s1 + $0x488] sm:$0xff]  }
 0x304   :  { %4161 = vmatmul.mubr.bf16.vlgmr.msra.gmra.mrb[92].mxu1 %v9665_v23  ;;  %5954 = vmatpush3.bf16.msra.mxu0 %v6736_v25  ;;  %v6741_v23 = vld [vmem:[%s10020_s1 + $0x4d8] sm:$0xff]  }
 0x305   :  { %5976 = vmatpush3.bf16.msra.mxu1 %v8985_v61  ;;  %5955 = vmatprep.subr.bf16.mxu0 %v6737_v30  ;;  %v6739_v61 = vld [vmem:[%s10020_s1 + $0x4d0] sm:$0xff]  }
 0x306   :  { %5977 = vmatprep.subr.bf16.mxu1 %v8992_v35  ;;  %4200 = vmatprep.mubr.bf16.mxu0 %v3758_v19  ;;  %v6740_v35 = vld [vmem:[%s10020_s1 + $0x490] sm:$0xff]  }
 0x307   :  { %4240 = vmatprep.mubr.bf16.mxu1 %v3774_v2 }
 0x308   :  { %5956 = vmatpush3.bf16.msra.mxu0 %v6738_v31 }
 0x309   :  { %5978 = vmatpush3.bf16.msra.mxu1 %v9004_v43  ;;  %5957 = vmatprep.subr.bf16.mxu0 %v6739_v61  ;;  %v6742_v43 = vld [vmem:[%s10020_s1 + $0x498] sm:$0xff]  }
 0x30a   :  { %5979 = vmatprep.subr.bf16.mxu1 %v9016_v55  ;;  %v6743_v55 = vld [vmem:[%s10020_s1 + $0x4e0] sm:$0xff]  }
 0x30c   :  { %5958 = vmatpush3.bf16.msra.mxu0 %v6740_v35 }
 0x30d   :  { %5980 = vmatpush3.bf16.msra.mxu1 %v9028_v0  ;;  %5959 = vmatprep.subr.bf16.mxu0 %v6741_v23  ;;  %v6744_v0 = vld [vmem:[%s10020_s1 + $0x4a0] sm:$0xff]  }
 0x30e   :  { %5981 = vmatprep.subr.bf16.mxu1 %v9040_v45  ;;  %v6745_v45 = vld [vmem:[%s10020_s1 + $0x4e8] sm:$0xff]  }
 0x310   :  { %5960 = vmatpush3.bf16.msra.mxu0 %v6742_v43 }
 0x311   :  { %5982 = vmatpush3.bf16.msra.mxu1 %v9052_v8  ;;  %5961 = vmatprep.subr.bf16.mxu0 %v6743_v55 }
 0x312   :  { %5983 = vmatprep.subr.bf16.mxu1 %v9064_v51 }
 0x314   :  { %5962 = vmatpush3.bf16.msra.mxu0 %v6744_v0 }
 0x315   :  { %5984 = vmatpush3.bf16.msra.mxu1 %v9076_v13  ;;  %5963 = vmatprep.subr.bf16.mxu0 %v6745_v45 }
 0x316   :  { %5985 = vmatprep.subr.bf16.mxu1 %v9088_v46  ;;  %v5674_v8 = vpop.f32.mrb[68].mxu0  ;;  %v6747_v46 = vld [vmem:[%s10020_s1 + $0x4f0] sm:$0xff]  }
 0x317   :  { %v5696_v59 = vpop.f32.mrb[68].mxu1  ;;  %v5675_v32 = vpop.f32.mrb[69].mxu0 }
 0x318   :  { %v5697_v7 = vpop.f32.mrb[69].mxu1  ;;  %v5676_v14 = vadd.f32 %v5675_v32, %v5674_v8  ;;  %v5677_v51 = vpop.f32.mrb[70].mxu0  ;;  %5964 = vmatpush3.bf16.msra.mxu0 %v6746_v42  ;;  %v6361_v32 = vld [vmem:[%s10023_s4 + $0x4] ss:$8 sps:$4 sm:$0xff]   ;;  %v6365_v42 = vld [vmem:[%s10023_s4 + $0x20] ss:$8 sps:$4 sm:$0xff]  }
 0x319   :  { %v5698_v5 = vadd.f32 %v5697_v7, %v5696_v59  ;;  %5986 = vmatpush3.bf16.msra.mxu1 %v9100_v58  ;;  %v5699_v13 = vpop.f32.mrb[70].mxu1  ;;  %v5678_v54 = vpop.f32.mrb[71].mxu0  ;;  %5965 = vmatprep.subr.bf16.mxu0 %v6747_v46  ;;  %v6748_v58 = vld [vmem:[%s10020_s1 + $0x4b0] sm:$0xff]   ;;  %v6359_v59 = vld [vmem:[%s10023_s4] ss:$8 sps:$4 sm:$0xff]  }
 0x31a   :  { %v5700_v10 = vpop.f32.mrb[71].mxu1  ;;  %5987 = vmatprep.subr.bf16.mxu1 %v9112_v47  ;;  %v3491_v16 = vadd.f32 %v5676_v14, %v9755_v20  ;;  %v3773_v47 = vrot.slane %v3759_v49, %v6935_v41  ;;  %v6752_v41 = vld [vmem:[%s10020_s1 + $0x580] sm:$0xff]   ;;  %v6364_v7 = vld [vmem:[%s10023_s4 + $0x14] ss:$8 sps:$4 sm:$0xff]   ;;  %v6362_v14 = vld [vmem:[%s10023_s4 + $0x10] ss:$8 sps:$4 sm:$0xff]  }
 0x31b   :  { %v6367_v51 = vld [vmem:[%s10023_s4 + $0x24] ss:$8 sps:$4 sm:$0xff]   ;;  %v6368_v13 = vld [vmem:[%s10023_s4 + $0x30] ss:$8 sps:$4 sm:$0xff]  }
 0x31c   :  { %v3531_v62 = vadd.f32 %v5698_v5, %v3491_v16  ;;  %5966 = vmatpush3.bf16.msra.mxu0 %v6748_v58  ;;  %v3775_v20 = vcombine.high %v3773_v47, %v3773_v47  ;;  %v6370_v5 = vld [vmem:[%s10023_s4 + $0x34] ss:$8 sps:$4 sm:$0xff]   ;;  %v6373_v10 = vld [vmem:[%s10023_s4 + $0x44] ss:$8 sps:$4 sm:$0xff]  }
 0x31d   :  { %5988 = vmatpush3.bf16.msra.mxu1 %v9132_v18  ;;  %5967 = vmatprep.subr.bf16.mxu0 %v6749_v57  ;;  %v6751_v18 = vld [vmem:[%s10020_s1 + $0x5c0] sm:$0xff]  }
 0x31e   :  { %5989 = vmatprep.subr.bf16.mxu1 %v9144_v63 }
 0x320   :  { %5968 = vmatpush3.bf16.msra.mxu0 %v6750_v60 }
 0x321   :  { %5990 = vmatpush3.bf16.msra.mxu1 %v9160_v21  ;;  %5997 = vmatprep.subr.bf16.mxu0 %v6751_v18 }
 0x322   :  { %6110 = vmatprep.subr.bf16.mxu1 %v10180_v53 }
 0x323   :  { %4201 = vmatmul.mubr.bf16.vlgmr.msra.gmra.mrb[96].mxu0 %v9766_v36  ;;  %v10429_v36 = vld [vmem:[#allocation6_spill] sm:$0xff] }
 0x324   :  { %4241 = vmatmul.mubr.bf16.vlgmr.msra.gmra.mrb[96].mxu1 %v9770_v12  ;;  %5998 = vmatpush3.bf16.msra.mxu0 %v6752_v41  ;;  %v10430_v12 = vld [vmem:[#allocation23_spill] sm:$0xff] }
 0x325   :  { %6111 = vmatpush3.bf16.msra.mxu1 %v9180_v56  ;;  %5999 = vmatprep.subr.bf16.mxu0 %v8998_v48  ;;  %v10432_v17 = vmax.f32 %v10430_v12, %v10431_v40  ;;  %v6393_v40 = vld [vmem:[%s10025_s6 + $0x68] sm:$0xff]  }
 0x326   :  { %6112 = vmatprep.subr.bf16.mxu1 %v10180_v53  ;;  %4280 = vmatprep.mubr.bf16.mxu0 %v3775_v20 }
 0x327   :  { %6126 = vmatprep.mubr.msk.bf16.mxu1 %vm6779_vm0, %v10180_v53 }
 0x328   :  { %6000 = vmatpush3.bf16.msra.mxu0 %v9010_v4 }
 0x329   :  { %6113 = vmatpush3.bf16.msra.mxu1 %v9195_v28  ;;  %6001 = vmatprep.subr.bf16.mxu0 %v9022_v29 }
 0x32a   :  { %6114 = vmatprep.subr.bf16.mxu1 %v10180_v53 }
 0x32c   :  { %6002 = vmatpush3.bf16.msra.mxu0 %v9034_v34 }
 0x32d   :  { %6115 = vmatpush3.bf16.msra.mxu1 %v9208_v27  ;;  %6003 = vmatprep.subr.bf16.mxu0 %v9046_v39 }
 0x32e   :  { %6116 = vmatprep.subr.bf16.mxu1 %v10180_v53 }
 0x330   :  { %6004 = vmatpush3.bf16.msra.mxu0 %v9058_v38 }
 0x331   :  { %6117 = vmatpush3.bf16.msra.mxu1 %v9221_v24  ;;  %6005 = vmatprep.subr.bf16.mxu0 %v9070_v6 }
 0x332   :  { %6118 = vmatprep.subr.bf16.mxu1 %v10180_v53 }
 0x334   :  { %6006 = vmatpush3.bf16.msra.mxu0 %v9082_v52 }
 0x335   :  { %6119 = vmatpush3.bf16.msra.mxu1 %v9234_v9  ;;  %6007 = vmatprep.subr.bf16.mxu0 %v9094_v1 }
 0x336   :  { %6120 = vmatprep.subr.bf16.mxu1 %v10180_v53  ;;  %v5718_v48 = vpop.f32.mrb[72].mxu0 }
 0x337   :  { %v5740_v4 = vpop.f32.mrb[72].mxu1  ;;  %v5719_v29 = vpop.f32.mrb[73].mxu0 }
 0x338   :  { %v5741_v34 = vpop.f32.mrb[73].mxu1  ;;  %v5720_v39 = vadd.f32 %v5719_v29, %v5718_v48  ;;  %v5721_v38 = vpop.f32.mrb[74].mxu0  ;;  %6008 = vmatpush3.bf16.msra.mxu0 %v9106_v33  ;;  %v4902_v33 = vld.sshfl [vmem:[%s10019_s0 + $0xc6] sm:$0x3 pattern:$0x76325410] }
 0x339   :  { %v5742_v63 = vadd.f32 %v5741_v34, %v5740_v4  ;;  %6121 = vmatpush3.bf16.msra.mxu1 %v9247_v15  ;;  %v5743_v6 = vpop.f32.mrb[74].mxu1  ;;  %v5722_v21 = vpop.f32.mrb[75].mxu0  ;;  %6009 = vmatprep.subr.bf16.mxu0 %v9118_v3  ;;  %v6376_v48 = vld [vmem:[%s10023_s4 + $0x54] ss:$8 sps:$4 sm:$0xff]   ;;  %v6374_v4 = vld [vmem:[%s10023_s4 + $0x50] ss:$8 sps:$4 sm:$0xff]  }
 0x33a   :  { %v5744_v52 = vpop.f32.mrb[75].mxu1  ;;  %6122 = vmatprep.subr.bf16.mxu1 %v10180_v53  ;;  %v3571_v1 = vadd.f32 %v5720_v39, %v3531_v62  ;;  %v6371_v62 = vld [vmem:[%s10023_s4 + $0x40] ss:$8 sps:$4 sm:$0xff]   ;;  %v6379_v34 = vld [vmem:[%s10023_s4 + $0x64] ss:$8 sps:$4 sm:$0xff]   ;;  %v6780_v6 = vmov 0  }
 0x33b   :  { %v6377_v39 = vld [vmem:[%s10023_s4 + $0x60] ss:$8 sps:$4 sm:$0xff]   ;;  %v6382_v38 = vld [vmem:[%s10023_s4 + $0x74] ss:$8 sps:$4 sm:$0xff]  }
 0x33c   :  { %6010 = vmatpush3.bf16.msra.mxu0 %v9138_v26  ;;  %v3611_v56 = vadd.f32 %v5742_v63, %v3571_v1  ;;  %v6380_v63 = vld [vmem:[%s10023_s4 + $0x70] ss:$8 sps:$4 sm:$0xff]   ;;  %v6383_v21 = vld [vmem:[%s10025_s6 + $0x40] sm:$0xff]   ;;  %v6385_v1 = vld [vmem:[%s10025_s6 + $0x48] sm:$0xff]   ;;  %s6781_s4 = smov [#allocation2]  }
 0x33d   :  { %6123 = vmatpush3.bf16.msra.mxu1 %v9275_v37  ;;  %6011 = vmatprep.subr.bf16.mxu0 %v9150_v44  ;;  %v10428_v37 = vld [vmem:[#allocation21_spill] sm:$0xff]  ;;  %s4668_s14 = sshll.u32 %s6781_s4, 4  ;;  %s4669_s14 = int_to_ptr.vmem [resolvable:$true] %s4668_s14 }
 0x33e   :  { %6124 = vmatprep.subr.bf16.mxu1 %v10180_v53  ;;  %v6384_v52 = vld [vmem:[%s10025_s6] sm:$0xff]   ;;  %s6753_s2 = scalar_lea.vmem %s4669_s14, 64  ;;  %p6758_p1 = scmp.lt.s32.totalorder %s4669_s14, %s4669_s14 }
 0x33f   :  { %p6754_p0 = scmp.ne.s32.totalorder %s4669_s14, %s6753_s2  ;;  %p6759_p2 = scmp.lt.s32.totalorder %s6753_s2, %s6753_s2 }
 0x340   :  { %6012 = vmatpush3.bf16.msra.mxu0 %v9166_v22 }
 0x341   :  { %6125 = vmatpush3.bf16.msra.mxu1 %v9307_v11  ;;  %4441 = vmatprep.subr.bf16.mxu0 %v6361_v32  ;;  %p6760_p3 = por %p6759_p2, %p6758_p1 }
 0x342   :  { %6028 = vmatprep.subr.bf16.mxu1 %v6383_v21 }
 0x343   :  { %4281 = vmatmul.mubr.bf16.vlgmr.msra.gmra.mrb[100].mxu0 %v3773_v47  ;;  %p6761_p4 = pnand %p6760_p3, %p6754_p0 }
 0x344   :  { %6127 = vmatmul.mubr.bf16.vlgmr.msra.gmra.mrb[100].mxu1 %v4902_v33  ;;  %4442 = vmatpush1.bf16.msra.mxu0 %v6359_v59  ;;  %v6387_v33 = vld [vmem:[%s10025_s6 + $0x50] sm:$0xff]  }
 0x345   :  { %4443 = vmatprep.subr.bf16.mxu0 %v6364_v7  ;;  %4473 = vmatprep.mubr.bf16.mxu0 %v6780_v6 }
 0x346   :  { %6029 = vmatpush3.bf16.msra.mxu1 %v6384_v52 }
 0x347   :  { %6030 = vmatprep.subr.bf16.mxu1 %v6385_v1 }
 0x348   :  { %4444 = vmatpush1.bf16.msra.mxu0 %v6362_v14 }
 0x349   :  { %4445 = vmatprep.subr.bf16.mxu0 %v6367_v51 }
 0x34c   :  { %4446 = vmatpush1.bf16.msra.mxu0 %v6365_v42 }
 0x34d   :  { %4447 = vmatprep.subr.bf16.mxu0 %v6370_v5 }
 0x350   :  { %4448 = vmatpush1.bf16.msra.mxu0 %v6368_v13 }
 0x351   :  { %4449 = vmatprep.subr.bf16.mxu0 %v6373_v10 }
 0x354   :  { %4450 = vmatpush1.bf16.msra.mxu0 %v6371_v62 }
 0x355   :  { %4451 = vmatprep.subr.bf16.mxu0 %v6376_v48 }
 0x356   :  { %v3650_v3 = vpop.f32.mrb[76].mxu0 }
 0x357   :  { %v5771_v28 = vpop.f32.mrb[76].mxu1  ;;  %v3651_v26 = vadd.f32 %v3650_v3, %v3611_v56  ;;  %v6108_v27 = vpop.f32.mrb[77].mxu0  ;;  %v6386_v56 = vld [vmem:[%s10025_s6 + $0x8] sm:$0xff]   ;;  %v6388_v3 = vld [vmem:[%s10025_s6 + $0x10] sm:$0xff]  }
 0x358   :  { %v5772_v24 = vpop.f32.mrb[77].mxu1  ;;  %v3653_v9 = vpop.f32.mrb[78].mxu0  ;;  %4452 = vmatpush1.bf16.msra.mxu0 %v6374_v4  ;;  %6031 = vmatpush3.bf16.msra.mxu1 %v6386_v56  ;;  %v6391_v27 = vld [vmem:[%s10025_s6 + $0x60] sm:$0xff]   ;;  %v6395_v56 = vld [vmem:[%s10025_s6 + $0x70] sm:$0xff]  }
 0x359   :  { %v5773_v15 = vadd.f32 %v5772_v24, %v5771_v28  ;;  %v5774_v44 = vpop.f32.mrb[78].mxu1  ;;  %v3656_v53 = vmul.f32 %v10428_v37, %v3651_v26  ;;  %v6109_v50 = vpop.f32.mrb[79].mxu0  ;;  %4453 = vmatprep.subr.bf16.mxu0 %v6379_v34  ;;  %6032 = vmatprep.subr.bf16.mxu1 %v6387_v33  ;;  %v6389_v28 = vld [vmem:[%s10025_s6 + $0x58] sm:$0xff]   ;;  %v6396_v33 = vld [vmem:[%s10025_s6 + $0x30] sm:$0xff]  }
 0x35a   :  { %v5775_v22 = vpop.f32.mrb[79].mxu1  ;;  %v6390_v26 = vld [vmem:[%s10025_s6 + $0x18] sm:$0xff]  }
 0x35b   :  { %v3657_v11 = vadd.f32 %v10429_v36, %v3656_v53  ;;  %v6392_v53 = vld [vmem:[%s10025_s6 + $0x20] sm:$0xff]  }
 0x35c   :  { %4454 = vmatpush1.bf16.msra.mxu0 %v6377_v39  ;;  %6033 = vmatpush3.bf16.msra.mxu1 %v6388_v3 }
 0x35d   :  { %v9898_v19 = vmax.f32 %v10432_v17, %v3657_v11  ;;  %4455 = vmatprep.subr.bf16.mxu0 %v6382_v38  ;;  %6034 = vmatprep.subr.bf16.mxu1 %v6389_v28  ;;  %v4349_v28 = vld [vmem:[%s10024_s5] sm:$0x3] }
 0x360   :  { %4456 = vmatpush1.bf16.msra.mxu0 %v6380_v63  ;;  %6035 = vmatpush3.bf16.msra.mxu1 %v6390_v26 }
 0x361   :  { %6036 = vmatprep.subr.bf16.mxu1 %v6391_v27 }
 0x364   :  { %6037 = vmatpush3.bf16.msra.mxu1 %v6392_v53 }
 0x365   :  { %6038 = vmatprep.subr.bf16.mxu1 %v6393_v40 }
 0x376   :  { %v5793_v2 = vpop.f32.mrb[80].mxu0 }
 0x377   :  { %v5815_v25 = vpop.f32.mrb[80].mxu1  ;;  %v5794_v30 = vpop.f32.mrb[81].mxu0 }
 0x378   :  { %v5816_v31 = vpop.f32.mrb[81].mxu1  ;;  %v5795_v61 = vadd.f32 %v5794_v30, %v5793_v2  ;;  %v5796_v35 = vpop.f32.mrb[82].mxu0  ;;  %v6394_v30 = vld [vmem:[%s10025_s6 + $0x28] sm:$0xff]  }
 0x379   :  { %v5817_v23 = vadd.f32 %v5816_v31, %v5815_v25  ;;  %v5818_v43 = vpop.f32.mrb[82].mxu1  ;;  %v5797_v55 = vpop.f32.mrb[83].mxu0  ;;  %6039 = vmatpush3.bf16.msra.mxu1 %v6394_v30  ;;  %v4919_v30 = vld [vmem:[%s10026_s7] ss:$0 sm:$0xff] }
 0x37a   :  { %v5819_v0 = vpop.f32.mrb[83].mxu1  ;;  %v3883_v45 = vadd.f32 %v5795_v61, %v5773_v15  ;;  %6040 = vmatprep.subr.bf16.mxu1 %v6395_v56 }
 0x37c   :  { %v3923_v8 = vadd.f32 %v5817_v23, %v3883_v45 }
 0x37d   :  { %6041 = vmatpush3.bf16.msra.mxu1 %v6396_v33 }
 0x396   :  { %v5837_v54 = vpop.f32.mrb[84].mxu0 }
 0x397   :  { %v5859_v46 = vpop.f32.mrb[84].mxu1  ;;  %v5838_v16 = vpop.f32.mrb[85].mxu0 }
 0x398   :  { %v5860_v49 = vpop.f32.mrb[85].mxu1  ;;  %v5839_v58 = vadd.f32 %v5838_v16, %v5837_v54  ;;  %v5840_v57 = vpop.f32.mrb[86].mxu0 }
 0x399   :  { %v5861_v47 = vadd.f32 %v5860_v49, %v5859_v46  ;;  %v5862_v60 = vpop.f32.mrb[86].mxu1  ;;  %v5841_v18 = vpop.f32.mrb[87].mxu0 }
 0x39a   :  { %v5863_v20 = vpop.f32.mrb[87].mxu1  ;;  %v3963_v41 = vadd.f32 %v5839_v58, %v3923_v8 }
 0x39c   :  { %v4003_v29 = vadd.f32 %v5861_v47, %v3963_v41 }
 0x3b6   :  { %v5881_v24 = vpop.f32.mrb[88].mxu0 }
 0x3b7   :  { %v5903_v9 = vpop.f32.mrb[88].mxu1  ;;  %v5882_v15 = vpop.f32.mrb[89].mxu0 }
 0x3b8   :  { %v5904_v44 = vpop.f32.mrb[89].mxu1  ;;  %v5883_v50 = vadd.f32 %v5882_v15, %v5881_v24  ;;  %v5884_v22 = vpop.f32.mrb[90].mxu0 }
 0x3b9   :  { %v5905_v11 = vadd.f32 %v5904_v44, %v5903_v9  ;;  %v5906_v12 = vpop.f32.mrb[90].mxu1  ;;  %v5885_v17 = vpop.f32.mrb[91].mxu0 }
 0x3ba   :  { %v5907_v2 = vpop.f32.mrb[91].mxu1  ;;  %v4043_v25 = vadd.f32 %v5883_v50, %v4003_v29 }
 0x3bc   :  { %v4083_v31 = vadd.f32 %v5905_v11, %v4043_v25 }
 0x3d6   :  { %v5925_v61 = vpop.f32.mrb[92].mxu0 }
 0x3d7   :  { %v5947_v35 = vpop.f32.mrb[92].mxu1  ;;  %v5926_v23 = vpop.f32.mrb[93].mxu0 }
 0x3d8   :  { %v5948_v43 = vpop.f32.mrb[93].mxu1  ;;  %v5927_v55 = vadd.f32 %v5926_v23, %v5925_v61  ;;  %v5928_v0 = vpop.f32.mrb[94].mxu0 }
 0x3d9   :  { %v5949_v45 = vadd.f32 %v5948_v43, %v5947_v35  ;;  %v5950_v8 = vpop.f32.mrb[94].mxu1  ;;  %v5929_v59 = vpop.f32.mrb[95].mxu0 }
 0x3da   :  { %v5951_v32 = vpop.f32.mrb[95].mxu1  ;;  %v4123_v7 = vadd.f32 %v5927_v55, %v4083_v31 }
 0x3dc   :  { %v4163_v14 = vadd.f32 %v5949_v45, %v4123_v7 }
 0x3f6   :  { %v5969_v51 = vpop.f32.mrb[96].mxu0 }
 0x3f7   :  { %v5991_v42 = vpop.f32.mrb[96].mxu1  ;;  %v5970_v5 = vpop.f32.mrb[97].mxu0 }
 0x3f8   :  { %v5992_v13 = vpop.f32.mrb[97].mxu1  ;;  %v5971_v54 = vadd.f32 %v5970_v5, %v5969_v51  ;;  %v5972_v46 = vpop.f32.mrb[98].mxu0 }
 0x3f9   :  { %v5993_v10 = vadd.f32 %v5992_v13, %v5991_v42  ;;  %v5994_v16 = vpop.f32.mrb[98].mxu1  ;;  %v5973_v49 = vpop.f32.mrb[99].mxu0 }
 0x3fa   :  { %v5995_v62 = vpop.f32.mrb[99].mxu1  ;;  %v4203_v58 = vadd.f32 %v5971_v54, %v4163_v14 }
 0x3fc   :  { %v4243_v57 = vadd.f32 %v5993_v10, %v4203_v58 }
 0x416   :  { %v6013_v47 = vpop.f32.mrb[100].mxu0 }
 0x417   :  { %v4322_v60 = vpop.f32.mrb[100].mxu1  ;;  %v6014_v18 = vpop.f32.mrb[101].mxu0 }
 0x418   :  { %v6128_v20 = vpop.f32.mrb[101].mxu1  ;;  %v6015_v41 = vadd.f32 %v6014_v18, %v6013_v47  ;;  %v6016_v48 = vpop.f32.mrb[102].mxu0 }
 0x419   :  { %v4325_v4 = vpop.f32.mrb[102].mxu1  ;;  %v6017_v29 = vpop.f32.mrb[103].mxu0 }
 0x41a   :  { %v6129_v34 = vpop.f32.mrb[103].mxu1  ;;  %v4283_v39 = vadd.f32 %v6015_v41, %v4243_v57 }
 0x41c   :  { %v4323_v38 = vadd.f32 %v4322_v60, %v4283_v39 }
 0x41e   :  { %v4328_v63 = vmul.f32 %v10428_v37, %v4323_v38  ;;  %v6397_v37 = vld [vmem:[%s10025_s6 + $0x78] sm:$0xff]  }
 0x41f   :  { %6042 = vmatprep.subr.bf16.mxu1 %v6397_v37 }
 0x420   :  { %v4329_v6 = vadd.f32 %v10429_v36, %v4328_v63  ;;  %v6398_v36 = vld [vmem:[%s10025_s6 + $0x38] sm:$0xff]  }
 0x421   :  { %6043 = vmatpush3.bf16.msra.mxu1 %v6398_v36 }
 0x422   :  { %v4330_v21 = vmax.f32 %v9898_v19, %v4329_v6  ;;  %v10433_v19 = vld [vmem:[#allocation5_spill] sm:$0xff] }
 0x423   :  { %v4353_v3 = vsub.s32 0, %v10433_v19  ;;  %v4357_v26 = vsub.s32 1, %v10433_v19 }
 0x424   :  { %v4331_v52 = vmax.f32 %v4330_v21, 0.0 }
 0x425   :  { %v4354_v27 = vrot.slane %v4349_v28, %v4353_v3  ;;  %v4358_v24 = vrot.slane %v4349_v28, %v4357_v26 }
 0x426   :  { %v4332_v1 = vpack.c.bf16 %v4331_v52, %v4331_v52 }
 0x428   :  { %4474 = vmatmul.mubr.bf16.vlgmr.msra.gmra.mrb[104].mxu0 %v4332_v1 }
 0x4fb   :  { %v4475_v9 = vpop.f32.mrb[104].mxu0 }
 0x4fc   :  { %v4476_v15 = vadd.f32 %v4475_v9, %v4354_v27  ;;  %v4477_v44 = vpop.f32.mrb[105].mxu0 }
 0x4fd   :  { %v4478_v53 = vadd.f32 %v4477_v44, %v4358_v24  ;;  %v4479_v50 = vpop.f32.mrb[106].mxu0 }
 0x4fe   :  { %v4482_v22 = vmax.f32 %v4476_v15, 0.0  ;;  %v4480_v11 = vpop.f32.mrb[107].mxu0 }
 0x4ff   :  { %v4483_v12 = vmax.f32 %v4478_v53, 0.0 }
 0x500   :  { %v4484_v17 = vpack.c.bf16 %v4482_v22, %v4482_v22 }
 0x501   :  { %v4485_v40 = vpack.c.bf16 %v4483_v12, %v4483_v12 }
 0x503   :  { %4653 = vmatprep.mubr.bf16.mxu1 %v4485_v40 }
 0x504   :  { %4654 = vmatmul.mubr.bf16.vlgmr.msra.gmra.mrb[104].mxu1 %v4484_v17 }
 0x5d7   :  { %v6044_v2 = vpop.f32.mrb[104].mxu1 }
 0x5d8   :  { %v6045_v25 = vpop.f32.mrb[105].mxu1 }
 0x5d9   :  { %v6046_v31 = vadd.f32 %v6045_v25, %v6044_v2  ;;  %v6047_v61 = vpop.f32.mrb[106].mxu1 }
 0x5da   :  { %v6048_v35 = vpop.f32.mrb[107].mxu1 }
 0x5db   :  { %v4656_v23 = vadd.f32 %v6046_v31, %v4919_v30 }
 0x5dd   :  { %4661 = vst [vmem:[#allocation2] sm:$0xf] %v4656_v23 }
 0x5de   :  { %6764 = shalt.err (!%p6761_p4)
}
 0x5df   :  { %s6765_s17 = scalar_lea.hbm %s10027_s8, 64 }
 0x5e0   :  { %p6766_p5 = scmp.ne.s32.totalorder %s10027_s8, %s6765_s17  ;;  %p6769_p6 = scmp.lt.u32.totalorder %s6765_s17, %s10027_s8 }
 0x5e2   :  { %p6771_p7 = pnand %p6769_p6, %p6766_p5 }
 0x5e4   :  { %6774 = shalt.err (!%p6771_p7)
}
 0x5e5   :  { %4671 = dma.vmem_to_hbm [thread:$0]  %s4669_s14, 64, %s10027_s8, [#allocation3]  }
 0x5e6   :  { %6775 = dma.done.wait [#allocation3], 64  }
 0x5e7   :  { %6776 = vsyncadd [#allocation3], 4294967232 }
 0x5e8   :  { %4675 = vsyncpa [#allocation3], 1 }

</bundles_post_ra>
